<compile_context>
chip_gen: v7x
topology: tpu7x:2x2x1
jax: 0.10.0
libtpu: 0.0.40
codegen_flags: <defaults>
</compile_context>

<pallas_src>
import functools

import numpy as np
import jax
import jax.numpy as jnp
from jax import lax
from jax.experimental import pallas as pl
from jax.experimental.pallas import tpu as pltpu


# ---------------------------------------------------------------------------
# Host-side, one-time parameter transforms (weight layout plumbing only)
# ---------------------------------------------------------------------------

def _conv_band(w_hwio, S):
    """Banded 'conv-as-matmul' weights.

    Returns band of shape (3, S*Cin, S*Cout) such that, with activations laid
    out as rows x[h, w*Cin + ci] and two zero rows added above/below (height
    padding), a 3x3 stride-1 'same' conv is

        out[h, :] = sum_dy  xpad[h + dy, :] @ band[dy]

    Width zero-padding is encoded by the zero blocks of the band.
    """
    w = np.asarray(w_hwio, np.float32)
    kh, kw, cin, cout = w.shape
    band = np.zeros((kh, S * cin, S * cout), np.float32)
    for dy in range(kh):
        for dx in range(kw):
            for wo in range(S):
                wi = wo + dx - 1
                if 0 <= wi < S:
                    band[dy, wi * cin:(wi + 1) * cin,
                         wo * cout:(wo + 1) * cout] = w[dy, dx]
    return band


def _row_pool_mat(S):
    """(2, S//2, S) 0/1 matrices selecting even / odd rows (pool rows)."""
    e = np.zeros((2, S // 2, S), np.float32)
    idx = np.arange(S // 2)
    e[0, idx, 2 * idx] = 1.0
    e[1, idx, 2 * idx + 1] = 1.0
    return e


def _col_pool_mat(S, C):
    """(2, S*C, (S//2)*C) 0/1 matrices selecting even / odd width positions
    (per-channel) in the (w*C + c) lane layout, compacting W -> W/2."""
    sel = np.zeros((2, S * C, (S // 2) * C), np.float32)
    wo, cc = np.meshgrid(np.arange(S // 2), np.arange(C), indexing="ij")
    sel[0, (2 * wo) * C + cc, wo * C + cc] = 1.0
    sel[1, (2 * wo + 1) * C + cc, wo * C + cc] = 1.0
    return sel


def _wfc_reorder(wfc, Hf, Wf, C):
    """Fold torch's NCHW flatten order into the Linear weights: returns
    (Hf, Wf*C, OUT) with w3[h, w*C+c, o] == wfc[c*Hf*Wf + h*Wf + w, o]."""
    w = np.asarray(wfc, np.float32)
    out = w.shape[1]
    w = w.reshape(C, Hf, Wf, out).transpose(1, 2, 0, 3)
    return w.reshape(Hf, Wf * C, out)


def prepare_params(params, H, W):
    assert H == W and H % 4 == 0
    hid = params["w1"].shape[3]
    S1, S2, Sf = H, H // 2, H // 4

    def tile_bias(b, S):
        return jnp.asarray(np.tile(np.asarray(b, np.float32), S)[None, :])

    return {
        "band1": jnp.asarray(_conv_band(params["w1"], S1)),
        "b1": tile_bias(params["b1"], S1),
        "band2": jnp.asarray(_conv_band(params["w2"], S1)),
        "b2": tile_bias(params["b2"], S1),
        "e1": jnp.asarray(_row_pool_mat(S1)),
        "sel1": jnp.asarray(_col_pool_mat(S1, hid)),
        "band3": jnp.asarray(_conv_band(params["w3"], S2)),
        "b3": tile_bias(params["b3"], S2),
        "band4": jnp.asarray(_conv_band(params["w4"], S2)),
        "b4": tile_bias(params["b4"], S2),
        "e2": jnp.asarray(_row_pool_mat(S2)),
        "sel2": jnp.asarray(_col_pool_mat(S2, hid)),
        "wfc": jnp.asarray(_wfc_reorder(params["wfc"], Sf, Sf, hid)),
        "bfc": jnp.asarray(np.asarray(params["bfc"], np.float32)[None, :]),
    }


# ---------------------------------------------------------------------------
# The fused Pallas kernel (one image per grid step)
# ---------------------------------------------------------------------------

def tiny_vgg_kernel(x_ref,
                    band1_ref, b1_ref, band2_ref, b2_ref, e1_ref, sel1_ref,
                    band3_ref, b3_ref, band4_ref, b4_ref, e2_ref, sel2_ref,
                    wfc_ref, bfc_ref,
                    o_ref,
                    xpad1_ref, xpad2_ref, xpad3_ref, xpad4_ref):
    f32 = jnp.float32

    def fill_pad(xpad_ref, val, S):
        # Height padding: zero top & bottom rows, activation in rows 1..S.
        nl = xpad_ref.shape[1]
        xpad_ref[pl.ds(0, 1), :] = jnp.zeros((1, nl), f32)
        xpad_ref[pl.ds(S + 1, 1), :] = jnp.zeros((1, nl), f32)
        xpad_ref[pl.ds(1, S), :] = val

    def conv_relu(xpad_ref, band_ref, b_ref, S):
        acc = jnp.zeros((S, band_ref.shape[2]), f32)
        for dy in range(3):
            acc = acc + jnp.dot(xpad_ref[pl.ds(dy, S), :], band_ref[dy],
                                preferred_element_type=f32)
        return jnp.maximum(acc + b_ref[...], 0.0)

    def maxpool2x2(z, e_ref, sel_ref):
        # Row pool (even/odd row selection matmuls), then width pool+compaction
        # (even/odd column-group selection matmuls).
        zr = jnp.maximum(jnp.dot(e_ref[0], z, preferred_element_type=f32),
                         jnp.dot(e_ref[1], z, preferred_element_type=f32))
        return jnp.maximum(jnp.dot(zr, sel_ref[0], preferred_element_type=f32),
                           jnp.dot(zr, sel_ref[1], preferred_element_type=f32))

    S1 = xpad1_ref.shape[0] - 2          # 64
    S2 = xpad3_ref.shape[0] - 2          # 32

    # ---- conv_block_1 -----------------------------------------------------
    fill_pad(xpad1_ref, x_ref[0], S1)
    h = conv_relu(xpad1_ref, band1_ref, b1_ref, S1)          # (S1, S1*C)
    fill_pad(xpad2_ref, h, S1)
    h = conv_relu(xpad2_ref, band2_ref, b2_ref, S1)          # (S1, S1*C)
    h = maxpool2x2(h, e1_ref, sel1_ref)                      # (S2, S2*C)

    # ---- conv_block_2 -----------------------------------------------------
    fill_pad(xpad3_ref, h, S2)
    h = conv_relu(xpad3_ref, band3_ref, b3_ref, S2)          # (S2, S2*C)
    fill_pad(xpad4_ref, h, S2)
    h = conv_relu(xpad4_ref, band4_ref, b4_ref, S2)          # (S2, S2*C)
    h = maxpool2x2(h, e2_ref, sel2_ref)                      # (Sf, Sf*C)

    # ---- classifier (flatten order folded into wfc's row permutation) -----
    acc = bfc_ref[...]                                       # (1, OUT)
    for r in range(h.shape[0]):
        acc = acc + jnp.dot(h[r:r + 1, :], wfc_ref[r],
                            preferred_element_type=f32)
    o_ref[...] = acc.reshape(1, 1, -1).astype(o_ref.dtype)


# ---------------------------------------------------------------------------
# Wrapper
# ---------------------------------------------------------------------------

def tiny_vgg_forward_fn(x_nchw, prep):
    B, Cin, H, W = x_nchw.shape
    assert H == W and H % 4 == 0
    out_dim = prep["bfc"].shape[1]
    hid = prep["b1"].shape[1] // W
    S1, S2 = H, H // 2

    # NCHW -> lane-dense (B, H, W*Cin) layout (boundary layout plumbing only).
    x = jnp.transpose(x_nchw, (0, 2, 3, 1)).reshape(B, H, W * Cin)

    weight_names = ("band1", "b1", "band2", "b2", "e1", "sel1",
                    "band3", "b3", "band4", "b4", "e2", "sel2", "wfc", "bfc")
    weight_args = [prep[k] for k in weight_names]

    def _const_spec(a):
        n = a.ndim
        return pl.BlockSpec(a.shape, lambda i: (0,) * n)

    in_specs = [pl.BlockSpec((1, H, W * Cin), lambda i: (i, 0, 0))]
    in_specs += [_const_spec(a) for a in weight_args]

    out = pl.pallas_call(
        tiny_vgg_kernel,
        out_shape=jax.ShapeDtypeStruct((B, 1, out_dim), jnp.float32),
        grid=(B,),
        in_specs=in_specs,
        out_specs=pl.BlockSpec((1, 1, out_dim), lambda i: (i, 0, 0)),
        scratch_shapes=[
            pltpu.VMEM((H + 2, W * Cin), jnp.float32),     # padded input
            pltpu.VMEM((S1 + 2, S1 * hid), jnp.float32),   # padded conv1 out
            pltpu.VMEM((S2 + 2, S2 * hid), jnp.float32),   # padded pool1 out
            pltpu.VMEM((S2 + 2, S2 * hid), jnp.float32),   # padded conv3 out
        ],
        compiler_params=pltpu.CompilerParams(
            dimension_semantics=("parallel",),             # both cores on v7x
            vmem_limit_bytes=48 * 1024 * 1024),
    )(x, *weight_args)
    return out.reshape(B, out_dim)


tiny_vgg_forward = jax.jit(tiny_vgg_forward_fn)


# --------------------------- Reference (pure JAX) ----------------------------

def ref_forward(x_nchw, params):
    hp = lax.Precision.HIGHEST

    def conv_relu(x, w_hwio, b):
        w = jnp.transpose(w_hwio, (3, 2, 0, 1))  # HWIO -> OIHW
        y = lax.conv_general_dilated(
            x, w, window_strides=(1, 1), padding=((1, 1), (1, 1)),
            dimension_numbers=("NCHW", "OIHW", "NCHW"), precision=hp)
        return jnp.maximum(y + b[None, :, None, None], 0.0)

    def pool(x):
        return lax.reduce_window(x, -jnp.inf, lax.max,
                                 (1, 1, 2, 2), (1, 1, 2, 2), "VALID")

    x = conv_relu(x_nchw, params["w1"], params["b1"])
    x = conv_relu(x, params["w2"], params["b2"])
    x = pool(x)
    x = conv_relu(x, params["w3"], params["b3"])
    x = conv_relu(x, params["w4"], params["b4"])
    x = pool(x)
    x = x.reshape(x.shape[0], -1)
    return jnp.dot(x, params["wfc"], precision=hp) + params["bfc"]


# ------------------------------------ Main -----------------------------------

if __name__ == "__main__":
    # Classifier requires hidden*16*16 features => input spatial must be 64x64
    # (two 2x2 max-pools: 64 -> 32 -> 16).
    B, C_IN, HID, OUT = 2, 3, 8, 3
    H = W = 64
    assert (H // 4) * (W // 4) == 16 * 16

    key = jax.random.PRNGKey(0)
    ks = jax.random.split(key, 11)

    def winit(k, shape, fan_in):
        return (jax.random.normal(k, shape, jnp.float32) /
                jnp.sqrt(fan_in)).astype(jnp.float32)

    params = {
        "w1": winit(ks[0], (3, 3, C_IN, HID), 3 * 3 * C_IN),
        "b1": winit(ks[1], (HID,), 3 * 3 * C_IN),
        "w2": winit(ks[2], (3, 3, HID, HID), 3 * 3 * HID),
        "b2": winit(ks[3], (HID,), 3 * 3 * HID),
        "w3": winit(ks[4], (3, 3, HID, HID), 3 * 3 * HID),
        "b3": winit(ks[5], (HID,), 3 * 3 * HID),
        "w4": winit(ks[6], (3, 3, HID, HID), 3 * 3 * HID),
        "b4": winit(ks[7], (HID,), 3 * 3 * HID),
        "wfc": winit(ks[8], (HID * 16 * 16, OUT), HID * 16 * 16),
        "bfc": winit(ks[9], (OUT,), HID * 16 * 16),
    }

    x = jax.random.normal(ks[10], (B, C_IN, H, W), jnp.float32)

    prep = prepare_params(params, H, W)
    out = jax.block_until_ready(tiny_vgg_forward(x, prep))

    ref = ref_forward(x, params)
    assert out.shape == (B, OUT), out.shape
    assert jnp.allclose(out, ref, atol=2e-2, rtol=2e-2), (out, ref)

    print("KERNEL_OK")
</pallas_src>

<mosaic_0001>
module attributes {stable_mosaic.version = 11 : i64} {
  func.func @tiny_vgg_kernel(%arg0: i32, %arg1: memref<1x64x192xf32, #tpu.memory_space<vmem>>, %arg2: memref<3x192x512xf32, #tpu.memory_space<vmem>>, %arg3: memref<1x512xf32, #tpu.memory_space<vmem>>, %arg4: memref<3x512x512xf32, #tpu.memory_space<vmem>>, %arg5: memref<1x512xf32, #tpu.memory_space<vmem>>, %arg6: memref<2x32x64xf32, #tpu.memory_space<vmem>>, %arg7: memref<2x512x256xf32, #tpu.memory_space<vmem>>, %arg8: memref<3x256x256xf32, #tpu.memory_space<vmem>>, %arg9: memref<1x256xf32, #tpu.memory_space<vmem>>, %arg10: memref<3x256x256xf32, #tpu.memory_space<vmem>>, %arg11: memref<1x256xf32, #tpu.memory_space<vmem>>, %arg12: memref<2x16x32xf32, #tpu.memory_space<vmem>>, %arg13: memref<2x256x128xf32, #tpu.memory_space<vmem>>, %arg14: memref<16x128x3xf32, #tpu.memory_space<vmem>>, %arg15: memref<1x3xf32, #tpu.memory_space<vmem>>, %arg16: memref<1x1x3xf32, #tpu.memory_space<vmem>>, %arg17: memref<66x192xf32, #tpu.memory_space<vmem>>, %arg18: memref<66x512xf32, #tpu.memory_space<vmem>>, %arg19: memref<34x256xf32, #tpu.memory_space<vmem>>, %arg20: memref<34x256xf32, #tpu.memory_space<vmem>>) attributes {dimension_semantics = [#tpu.dimension_semantics<parallel>], iteration_bounds = array<i64: 2>, scalar_prefetch = 0 : i64, scratch_operands = 4 : i64, tpu.core_type = #tpu.core_type<tc>, window_params = [{transform_indices = @transform_0, window_bounds = array<i64: 1, 64, 192>}, {pipeline_mode = #tpu.pipeline_mode<synchronous>, transform_indices = @transform_1, window_bounds = array<i64: 3, 192, 512>}, {pipeline_mode = #tpu.pipeline_mode<synchronous>, transform_indices = @transform_2, window_bounds = array<i64: 1, 512>}, {pipeline_mode = #tpu.pipeline_mode<synchronous>, transform_indices = @transform_3, window_bounds = array<i64: 3, 512, 512>}, {pipeline_mode = #tpu.pipeline_mode<synchronous>, transform_indices = @transform_4, window_bounds = array<i64: 1, 512>}, {pipeline_mode = #tpu.pipeline_mode<synchronous>, transform_indices = @transform_5, window_bounds = array<i64: 2, 32, 64>}, {pipeline_mode = #tpu.pipeline_mode<synchronous>, transform_indices = @transform_6, window_bounds = array<i64: 2, 512, 256>}, {pipeline_mode = #tpu.pipeline_mode<synchronous>, transform_indices = @transform_7, window_bounds = array<i64: 3, 256, 256>}, {pipeline_mode = #tpu.pipeline_mode<synchronous>, transform_indices = @transform_8, window_bounds = array<i64: 1, 256>}, {pipeline_mode = #tpu.pipeline_mode<synchronous>, transform_indices = @transform_9, window_bounds = array<i64: 3, 256, 256>}, {pipeline_mode = #tpu.pipeline_mode<synchronous>, transform_indices = @transform_10, window_bounds = array<i64: 1, 256>}, {pipeline_mode = #tpu.pipeline_mode<synchronous>, transform_indices = @transform_11, window_bounds = array<i64: 2, 16, 32>}, {pipeline_mode = #tpu.pipeline_mode<synchronous>, transform_indices = @transform_12, window_bounds = array<i64: 2, 256, 128>}, {pipeline_mode = #tpu.pipeline_mode<synchronous>, transform_indices = @transform_13, window_bounds = array<i64: 16, 128, 3>}, {pipeline_mode = #tpu.pipeline_mode<synchronous>, transform_indices = @transform_14, window_bounds = array<i64: 1, 3>}, {transform_indices = @transform_15, window_bounds = array<i64: 1, 1, 3>}]} {
    %c0 = arith.constant 0 : index
    %c0_0 = arith.constant 0 : index
    %c0_1 = arith.constant 0 : index
    %0 = vector.load %arg1[%c0, %c0_0, %c0_1] : memref<1x64x192xf32, #tpu.memory_space<vmem>>, vector<1x64x192xf32>
    %1 = vector.shape_cast %0 : vector<1x64x192xf32> to vector<64x192xf32>
    %cst = arith.constant 0.000000e+00 : f32
    %2 = vector.broadcast %cst : f32 to vector<1x192xf32>
    %c0_2 = arith.constant 0 : index
    %c0_3 = arith.constant 0 : index
    %3 = vector.load %arg17[%c0_2, %c0_3] : memref<66x192xf32, #tpu.memory_space<vmem>>, vector<1x192xf32>
    tpu.vector_store %arg17[%c0_2, %c0_3], %2 {strides = array<i32>} : memref<66x192xf32, #tpu.memory_space<vmem>>, vector<1x192xf32>,
    %cst_4 = arith.constant 0.000000e+00 : f32
    %4 = vector.broadcast %cst_4 : f32 to vector<1x192xf32>
    %c65 = arith.constant 65 : index
    %c0_5 = arith.constant 0 : index
    %5 = vector.load %arg17[%c65, %c0_5] : memref<66x192xf32, #tpu.memory_space<vmem>>, vector<1x192xf32>
    tpu.vector_store %arg17[%c65, %c0_5], %4 {strides = array<i32>} : memref<66x192xf32, #tpu.memory_space<vmem>>, vector<1x192xf32>,
    %c1 = arith.constant 1 : index
    %c0_6 = arith.constant 0 : index
    %6 = vector.load %arg17[%c1, %c0_6] : memref<66x192xf32, #tpu.memory_space<vmem>>, vector<64x192xf32>
    tpu.vector_store %arg17[%c1, %c0_6], %1 {strides = array<i32>} : memref<66x192xf32, #tpu.memory_space<vmem>>, vector<64x192xf32>,
    %cst_7 = arith.constant 0.000000e+00 : f32
    %7 = vector.broadcast %cst_7 : f32 to vector<64x512xf32>
    %c0_8 = arith.constant 0 : index
    %c0_9 = arith.constant 0 : index
    %8 = vector.load %arg17[%c0_8, %c0_9] : memref<66x192xf32, #tpu.memory_space<vmem>>, vector<64x192xf32>
    %c0_10 = arith.constant 0 : index
    %c0_11 = arith.constant 0 : index
    %c0_12 = arith.constant 0 : index
    %9 = vector.load %arg2[%c0_10, %c0_11, %c0_12] : memref<3x192x512xf32, #tpu.memory_space<vmem>>, vector<1x192x512xf32>
    %10 = vector.shape_cast %9 : vector<1x192x512xf32> to vector<192x512xf32>
    %cst_13 = arith.constant dense<0.000000e+00> : vector<64x512xf32>
    %11 = tpu.matmul %8, %10, %cst_13 {dimension_numbers = #tpu.dot_dimension_numbers<[1], [0], [0], [1], [0, 0, 1, 1], [], []>} : vector<64x192xf32>, vector<192x512xf32>, vector<64x512xf32> -> vector<64x512xf32>
    %12 = arith.addf %7, %11 : vector<64x512xf32>
    %c1_14 = arith.constant 1 : index
    %c0_15 = arith.constant 0 : index
    %13 = vector.load %arg17[%c1_14, %c0_15] : memref<66x192xf32, #tpu.memory_space<vmem>>, vector<64x192xf32>
    %c1_16 = arith.constant 1 : index
    %c0_17 = arith.constant 0 : index
    %c0_18 = arith.constant 0 : index
    %14 = vector.load %arg2[%c1_16, %c0_17, %c0_18] : memref<3x192x512xf32, #tpu.memory_space<vmem>>, vector<1x192x512xf32>
    %15 = vector.shape_cast %14 : vector<1x192x512xf32> to vector<192x512xf32>
    %cst_19 = arith.constant dense<0.000000e+00> : vector<64x512xf32>
    %16 = tpu.matmul %13, %15, %cst_19 {dimension_numbers = #tpu.dot_dimension_numbers<[1], [0], [0], [1], [0, 0, 1, 1], [], []>} : vector<64x192xf32>, vector<192x512xf32>, vector<64x512xf32> -> vector<64x512xf32>
    %17 = arith.addf %12, %16 : vector<64x512xf32>
    %c2 = arith.constant 2 : index
    %c0_20 = arith.constant 0 : index
    %18 = vector.load %arg17[%c2, %c0_20] : memref<66x192xf32, #tpu.memory_space<vmem>>, vector<64x192xf32>
    %c2_21 = arith.constant 2 : index
    %c0_22 = arith.constant 0 : index
    %c0_23 = arith.constant 0 : index
    %19 = vector.load %arg2[%c2_21, %c0_22, %c0_23] : memref<3x192x512xf32, #tpu.memory_space<vmem>>, vector<1x192x512xf32>
    %20 = vector.shape_cast %19 : vector<1x192x512xf32> to vector<192x512xf32>
    %cst_24 = arith.constant dense<0.000000e+00> : vector<64x512xf32>
    %21 = tpu.matmul %18, %20, %cst_24 {dimension_numbers = #tpu.dot_dimension_numbers<[1], [0], [0], [1], [0, 0, 1, 1], [], []>} : vector<64x192xf32>, vector<192x512xf32>, vector<64x512xf32> -> vector<64x512xf32>
    %22 = arith.addf %17, %21 : vector<64x512xf32>
    %c0_25 = arith.constant 0 : index
    %c0_26 = arith.constant 0 : index
    %23 = vector.load %arg3[%c0_25, %c0_26] : memref<1x512xf32, #tpu.memory_space<vmem>>, vector<1x512xf32>
    %24 = vector.broadcast %23 : vector<1x512xf32> to vector<64x512xf32>
    %25 = arith.addf %22, %24 : vector<64x512xf32>
    %cst_27 = arith.constant 0.000000e+00 : f32
    %26 = vector.broadcast %cst_27 : f32 to vector<64x512xf32>
    %27 = arith.maximumf %25, %26 : vector<64x512xf32>
    %cst_28 = arith.constant 0.000000e+00 : f32
    %28 = vector.broadcast %cst_28 : f32 to vector<1x512xf32>
    %c0_29 = arith.constant 0 : index
    %c0_30 = arith.constant 0 : index
    %29 = vector.load %arg18[%c0_29, %c0_30] : memref<66x512xf32, #tpu.memory_space<vmem>>, vector<1x512xf32>
    tpu.vector_store %arg18[%c0_29, %c0_30], %28 {strides = array<i32>} : memref<66x512xf32, #tpu.memory_space<vmem>>, vector<1x512xf32>,
    %cst_31 = arith.constant 0.000000e+00 : f32
    %30 = vector.broadcast %cst_31 : f32 to vector<1x512xf32>
    %c65_32 = arith.constant 65 : index
    %c0_33 = arith.constant 0 : index
    %31 = vector.load %arg18[%c65_32, %c0_33] : memref<66x512xf32, #tpu.memory_space<vmem>>, vector<1x512xf32>
    tpu.vector_store %arg18[%c65_32, %c0_33], %30 {strides = array<i32>} : memref<66x512xf32, #tpu.memory_space<vmem>>, vector<1x512xf32>,
    %c1_34 = arith.constant 1 : index
    %c0_35 = arith.constant 0 : index
    %32 = vector.load %arg18[%c1_34, %c0_35] : memref<66x512xf32, #tpu.memory_space<vmem>>, vector<64x512xf32>
    tpu.vector_store %arg18[%c1_34, %c0_35], %27 {strides = array<i32>} : memref<66x512xf32, #tpu.memory_space<vmem>>, vector<64x512xf32>,
    %cst_36 = arith.constant 0.000000e+00 : f32
    %33 = vector.broadcast %cst_36 : f32 to vector<64x512xf32>
    %c0_37 = arith.constant 0 : index
    %c0_38 = arith.constant 0 : index
    %34 = vector.load %arg18[%c0_37, %c0_38] : memref<66x512xf32, #tpu.memory_space<vmem>>, vector<64x512xf32>
    %c0_39 = arith.constant 0 : index
    %c0_40 = arith.constant 0 : index
    %c0_41 = arith.constant 0 : index
    %35 = vector.load %arg4[%c0_39, %c0_40, %c0_41] : memref<3x512x512xf32, #tpu.memory_space<vmem>>, vector<1x512x512xf32>
    %36 = vector.shape_cast %35 : vector<1x512x512xf32> to vector<512x512xf32>
    %cst_42 = arith.constant dense<0.000000e+00> : vector<64x512xf32>
    %37 = tpu.matmul %34, %36, %cst_42 {dimension_numbers = #tpu.dot_dimension_numbers<[1], [0], [0], [1], [0, 0, 1, 1], [], []>} : vector<64x512xf32>, vector<512x512xf32>, vector<64x512xf32> -> vector<64x512xf32>
    %38 = arith.addf %33, %37 : vector<64x512xf32>
    %c1_43 = arith.constant 1 : index
    %c0_44 = arith.constant 0 : index
    %39 = vector.load %arg18[%c1_43, %c0_44] : memref<66x512xf32, #tpu.memory_space<vmem>>, vector<64x512xf32>
    %c1_45 = arith.constant 1 : index
    %c0_46 = arith.constant 0 : index
    %c0_47 = arith.constant 0 : index
    %40 = vector.load %arg4[%c1_45, %c0_46, %c0_47] : memref<3x512x512xf32, #tpu.memory_space<vmem>>, vector<1x512x512xf32>
    %41 = vector.shape_cast %40 : vector<1x512x512xf32> to vector<512x512xf32>
    %cst_48 = arith.constant dense<0.000000e+00> : vector<64x512xf32>
    %42 = tpu.matmul %39, %41, %cst_48 {dimension_numbers = #tpu.dot_dimension_numbers<[1], [0], [0], [1], [0, 0, 1, 1], [], []>} : vector<64x512xf32>, vector<512x512xf32>, vector<64x512xf32> -> vector<64x512xf32>
    %43 = arith.addf %38, %42 : vector<64x512xf32>
    %c2_49 = arith.constant 2 : index
    %c0_50 = arith.constant 0 : index
    %44 = vector.load %arg18[%c2_49, %c0_50] : memref<66x512xf32, #tpu.memory_space<vmem>>, vector<64x512xf32>
    %c2_51 = arith.constant 2 : index
    %c0_52 = arith.constant 0 : index
    %c0_53 = arith.constant 0 : index
    %45 = vector.load %arg4[%c2_51, %c0_52, %c0_53] : memref<3x512x512xf32, #tpu.memory_space<vmem>>, vector<1x512x512xf32>
    %46 = vector.shape_cast %45 : vector<1x512x512xf32> to vector<512x512xf32>
    %cst_54 = arith.constant dense<0.000000e+00> : vector<64x512xf32>
    %47 = tpu.matmul %44, %46, %cst_54 {dimension_numbers = #tpu.dot_dimension_numbers<[1], [0], [0], [1], [0, 0, 1, 1], [], []>} : vector<64x512xf32>, vector<512x512xf32>, vector<64x512xf32> -> vector<64x512xf32>
    %48 = arith.addf %43, %47 : vector<64x512xf32>
    %c0_55 = arith.constant 0 : index
    %c0_56 = arith.constant 0 : index
    %49 = vector.load %arg5[%c0_55, %c0_56] : memref<1x512xf32, #tpu.memory_space<vmem>>, vector<1x512xf32>
    %50 = vector.broadcast %49 : vector<1x512xf32> to vector<64x512xf32>
    %51 = arith.addf %48, %50 : vector<64x512xf32>
    %cst_57 = arith.constant 0.000000e+00 : f32
    %52 = vector.broadcast %cst_57 : f32 to vector<64x512xf32>
    %53 = arith.maximumf %51, %52 : vector<64x512xf32>
    %c0_58 = arith.constant 0 : index
    %c0_59 = arith.constant 0 : index
    %c0_60 = arith.constant 0 : index
    %54 = vector.load %arg6[%c0_58, %c0_59, %c0_60] : memref<2x32x64xf32, #tpu.memory_space<vmem>>, vector<1x32x64xf32>
    %55 = vector.shape_cast %54 : vector<1x32x64xf32> to vector<32x64xf32>
    %cst_61 = arith.constant dense<0.000000e+00> : vector<32x512xf32>
    %56 = tpu.matmul %55, %53, %cst_61 {dimension_numbers = #tpu.dot_dimension_numbers<[1], [0], [0], [1], [0, 0, 1, 1], [], []>} : vector<32x64xf32>, vector<64x512xf32>, vector<32x512xf32> -> vector<32x512xf32>
    %c1_62 = arith.constant 1 : index
    %c0_63 = arith.constant 0 : index
    %c0_64 = arith.constant 0 : index
    %57 = vector.load %arg6[%c1_62, %c0_63, %c0_64] : memref<2x32x64xf32, #tpu.memory_space<vmem>>, vector<1x32x64xf32>
    %58 = vector.shape_cast %57 : vector<1x32x64xf32> to vector<32x64xf32>
    %cst_65 = arith.constant dense<0.000000e+00> : vector<32x512xf32>
    %59 = tpu.matmul %58, %53, %cst_65 {dimension_numbers = #tpu.dot_dimension_numbers<[1], [0], [0], [1], [0, 0, 1, 1], [], []>} : vector<32x64xf32>, vector<64x512xf32>, vector<32x512xf32> -> vector<32x512xf32>
    %60 = arith.maximumf %56, %59 : vector<32x512xf32>
    %c0_66 = arith.constant 0 : index
    %c0_67 = arith.constant 0 : index
    %c0_68 = arith.constant 0 : index
    %61 = vector.load %arg7[%c0_66, %c0_67, %c0_68] : memref<2x512x256xf32, #tpu.memory_space<vmem>>, vector<1x512x256xf32>
    %62 = vector.shape_cast %61 : vector<1x512x256xf32> to vector<512x256xf32>
    %cst_69 = arith.constant dense<0.000000e+00> : vector<32x256xf32>
    %63 = tpu.matmul %60, %62, %cst_69 {dimension_numbers = #tpu.dot_dimension_numbers<[1], [0], [0], [1], [0, 0, 1, 1], [], []>} : vector<32x512xf32>, vector<512x256xf32>, vector<32x256xf32> -> vector<32x256xf32>
    %c1_70 = arith.constant 1 : index
    %c0_71 = arith.constant 0 : index
    %c0_72 = arith.constant 0 : index
    %64 = vector.load %arg7[%c1_70, %c0_71, %c0_72] : memref<2x512x256xf32, #tpu.memory_space<vmem>>, vector<1x512x256xf32>
    %65 = vector.shape_cast %64 : vector<1x512x256xf32> to vector<512x256xf32>
    %cst_73 = arith.constant dense<0.000000e+00> : vector<32x256xf32>
    %66 = tpu.matmul %60, %65, %cst_73 {dimension_numbers = #tpu.dot_dimension_numbers<[1], [0], [0], [1], [0, 0, 1, 1], [], []>} : vector<32x512xf32>, vector<512x256xf32>, vector<32x256xf32> -> vector<32x256xf32>
    %67 = arith.maximumf %63, %66 : vector<32x256xf32>
    %cst_74 = arith.constant 0.000000e+00 : f32
    %68 = vector.broadcast %cst_74 : f32 to vector<1x256xf32>
    %c0_75 = arith.constant 0 : index
    %c0_76 = arith.constant 0 : index
    %69 = vector.load %arg19[%c0_75, %c0_76] : memref<34x256xf32, #tpu.memory_space<vmem>>, vector<1x256xf32>
    tpu.vector_store %arg19[%c0_75, %c0_76], %68 {strides = array<i32>} : memref<34x256xf32, #tpu.memory_space<vmem>>, vector<1x256xf32>,
    %cst_77 = arith.constant 0.000000e+00 : f32
    %70 = vector.broadcast %cst_77 : f32 to vector<1x256xf32>
    %c33 = arith.constant 33 : index
    %c0_78 = arith.constant 0 : index
    %71 = vector.load %arg19[%c33, %c0_78] : memref<34x256xf32, #tpu.memory_space<vmem>>, vector<1x256xf32>
    tpu.vector_store %arg19[%c33, %c0_78], %70 {strides = array<i32>} : memref<34x256xf32, #tpu.memory_space<vmem>>, vector<1x256xf32>,
    %c1_79 = arith.constant 1 : index
    %c0_80 = arith.constant 0 : index
    %72 = vector.load %arg19[%c1_79, %c0_80] : memref<34x256xf32, #tpu.memory_space<vmem>>, vector<32x256xf32>
    tpu.vector_store %arg19[%c1_79, %c0_80], %67 {strides = array<i32>} : memref<34x256xf32, #tpu.memory_space<vmem>>, vector<32x256xf32>,
    %cst_81 = arith.constant 0.000000e+00 : f32
    %73 = vector.broadcast %cst_81 : f32 to vector<32x256xf32>
    %c0_82 = arith.constant 0 : index
    %c0_83 = arith.constant 0 : index
    %74 = vector.load %arg19[%c0_82, %c0_83] : memref<34x256xf32, #tpu.memory_space<vmem>>, vector<32x256xf32>
    %c0_84 = arith.constant 0 : index
    %c0_85 = arith.constant 0 : index
    %c0_86 = arith.constant 0 : index
    %75 = vector.load %arg8[%c0_84, %c0_85, %c0_86] : memref<3x256x256xf32, #tpu.memory_space<vmem>>, vector<1x256x256xf32>
    %76 = vector.shape_cast %75 : vector<1x256x256xf32> to vector<256x256xf32>
    %cst_87 = arith.constant dense<0.000000e+00> : vector<32x256xf32>
    %77 = tpu.matmul %74, %76, %cst_87 {dimension_numbers = #tpu.dot_dimension_numbers<[1], [0], [0], [1], [0, 0, 1, 1], [], []>} : vector<32x256xf32>, vector<256x256xf32>, vector<32x256xf32> -> vector<32x256xf32>
    %78 = arith.addf %73, %77 : vector<32x256xf32>
    %c1_88 = arith.constant 1 : index
    %c0_89 = arith.constant 0 : index
    %79 = vector.load %arg19[%c1_88, %c0_89] : memref<34x256xf32, #tpu.memory_space<vmem>>, vector<32x256xf32>
    %c1_90 = arith.constant 1 : index
    %c0_91 = arith.constant 0 : index
    %c0_92 = arith.constant 0 : index
    %80 = vector.load %arg8[%c1_90, %c0_91, %c0_92] : memref<3x256x256xf32, #tpu.memory_space<vmem>>, vector<1x256x256xf32>
    %81 = vector.shape_cast %80 : vector<1x256x256xf32> to vector<256x256xf32>
    %cst_93 = arith.constant dense<0.000000e+00> : vector<32x256xf32>
    %82 = tpu.matmul %79, %81, %cst_93 {dimension_numbers = #tpu.dot_dimension_numbers<[1], [0], [0], [1], [0, 0, 1, 1], [], []>} : vector<32x256xf32>, vector<256x256xf32>, vector<32x256xf32> -> vector<32x256xf32>
    %83 = arith.addf %78, %82 : vector<32x256xf32>
    %c2_94 = arith.constant 2 : index
    %c0_95 = arith.constant 0 : index
    %84 = vector.load %arg19[%c2_94, %c0_95] : memref<34x256xf32, #tpu.memory_space<vmem>>, vector<32x256xf32>
    %c2_96 = arith.constant 2 : index
    %c0_97 = arith.constant 0 : index
    %c0_98 = arith.constant 0 : index
    %85 = vector.load %arg8[%c2_96, %c0_97, %c0_98] : memref<3x256x256xf32, #tpu.memory_space<vmem>>, vector<1x256x256xf32>
    %86 = vector.shape_cast %85 : vector<1x256x256xf32> to vector<256x256xf32>
    %cst_99 = arith.constant dense<0.000000e+00> : vector<32x256xf32>
    %87 = tpu.matmul %84, %86, %cst_99 {dimension_numbers = #tpu.dot_dimension_numbers<[1], [0], [0], [1], [0, 0, 1, 1], [], []>} : vector<32x256xf32>, vector<256x256xf32>, vector<32x256xf32> -> vector<32x256xf32>
    %88 = arith.addf %83, %87 : vector<32x256xf32>
    %c0_100 = arith.constant 0 : index
    %c0_101 = arith.constant 0 : index
    %89 = vector.load %arg9[%c0_100, %c0_101] : memref<1x256xf32, #tpu.memory_space<vmem>>, vector<1x256xf32>
    %90 = vector.broadcast %89 : vector<1x256xf32> to vector<32x256xf32>
    %91 = arith.addf %88, %90 : vector<32x256xf32>
    %cst_102 = arith.constant 0.000000e+00 : f32
    %92 = vector.broadcast %cst_102 : f32 to vector<32x256xf32>
    %93 = arith.maximumf %91, %92 : vector<32x256xf32>
    %cst_103 = arith.constant 0.000000e+00 : f32
    %94 = vector.broadcast %cst_103 : f32 to vector<1x256xf32>
    %c0_104 = arith.constant 0 : index
    %c0_105 = arith.constant 0 : index
    %95 = vector.load %arg20[%c0_104, %c0_105] : memref<34x256xf32, #tpu.memory_space<vmem>>, vector<1x256xf32>
    tpu.vector_store %arg20[%c0_104, %c0_105], %94 {strides = array<i32>} : memref<34x256xf32, #tpu.memory_space<vmem>>, vector<1x256xf32>,
    %cst_106 = arith.constant 0.000000e+00 : f32
    %96 = vector.broadcast %cst_106 : f32 to vector<1x256xf32>
    %c33_107 = arith.constant 33 : index
    %c0_108 = arith.constant 0 : index
    %97 = vector.load %arg20[%c33_107, %c0_108] : memref<34x256xf32, #tpu.memory_space<vmem>>, vector<1x256xf32>
    tpu.vector_store %arg20[%c33_107, %c0_108], %96 {strides = array<i32>} : memref<34x256xf32, #tpu.memory_space<vmem>>, vector<1x256xf32>,
    %c1_109 = arith.constant 1 : index
    %c0_110 = arith.constant 0 : index
    %98 = vector.load %arg20[%c1_109, %c0_110] : memref<34x256xf32, #tpu.memory_space<vmem>>, vector<32x256xf32>
    tpu.vector_store %arg20[%c1_109, %c0_110], %93 {strides = array<i32>} : memref<34x256xf32, #tpu.memory_space<vmem>>, vector<32x256xf32>,
    %cst_111 = arith.constant 0.000000e+00 : f32
    %99 = vector.broadcast %cst_111 : f32 to vector<32x256xf32>
    %c0_112 = arith.constant 0 : index
    %c0_113 = arith.constant 0 : index
    %100 = vector.load %arg20[%c0_112, %c0_113] : memref<34x256xf32, #tpu.memory_space<vmem>>, vector<32x256xf32>
    %c0_114 = arith.constant 0 : index
    %c0_115 = arith.constant 0 : index
    %c0_116 = arith.constant 0 : index
    %101 = vector.load %arg10[%c0_114, %c0_115, %c0_116] : memref<3x256x256xf32, #tpu.memory_space<vmem>>, vector<1x256x256xf32>
    %102 = vector.shape_cast %101 : vector<1x256x256xf32> to vector<256x256xf32>
    %cst_117 = arith.constant dense<0.000000e+00> : vector<32x256xf32>
    %103 = tpu.matmul %100, %102, %cst_117 {dimension_numbers = #tpu.dot_dimension_numbers<[1], [0], [0], [1], [0, 0, 1, 1], [], []>} : vector<32x256xf32>, vector<256x256xf32>, vector<32x256xf32> -> vector<32x256xf32>
    %104 = arith.addf %99, %103 : vector<32x256xf32>
    %c1_118 = arith.constant 1 : index
    %c0_119 = arith.constant 0 : index
    %105 = vector.load %arg20[%c1_118, %c0_119] : memref<34x256xf32, #tpu.memory_space<vmem>>, vector<32x256xf32>
    %c1_120 = arith.constant 1 : index
    %c0_121 = arith.constant 0 : index
    %c0_122 = arith.constant 0 : index
    %106 = vector.load %arg10[%c1_120, %c0_121, %c0_122] : memref<3x256x256xf32, #tpu.memory_space<vmem>>, vector<1x256x256xf32>
    %107 = vector.shape_cast %106 : vector<1x256x256xf32> to vector<256x256xf32>
    %cst_123 = arith.constant dense<0.000000e+00> : vector<32x256xf32>
    %108 = tpu.matmul %105, %107, %cst_123 {dimension_numbers = #tpu.dot_dimension_numbers<[1], [0], [0], [1], [0, 0, 1, 1], [], []>} : vector<32x256xf32>, vector<256x256xf32>, vector<32x256xf32> -> vector<32x256xf32>
    %109 = arith.addf %104, %108 : vector<32x256xf32>
    %c2_124 = arith.constant 2 : index
    %c0_125 = arith.constant 0 : index
    %110 = vector.load %arg20[%c2_124, %c0_125] : memref<34x256xf32, #tpu.memory_space<vmem>>, vector<32x256xf32>
    %c2_126 = arith.constant 2 : index
    %c0_127 = arith.constant 0 : index
    %c0_128 = arith.constant 0 : index
    %111 = vector.load %arg10[%c2_126, %c0_127, %c0_128] : memref<3x256x256xf32, #tpu.memory_space<vmem>>, vector<1x256x256xf32>
    %112 = vector.shape_cast %111 : vector<1x256x256xf32> to vector<256x256xf32>
    %cst_129 = arith.constant dense<0.000000e+00> : vector<32x256xf32>
    %113 = tpu.matmul %110, %112, %cst_129 {dimension_numbers = #tpu.dot_dimension_numbers<[1], [0], [0], [1], [0, 0, 1, 1], [], []>} : vector<32x256xf32>, vector<256x256xf32>, vector<32x256xf32> -> vector<32x256xf32>
    %114 = arith.addf %109, %113 : vector<32x256xf32>
    %c0_130 = arith.constant 0 : index
    %c0_131 = arith.constant 0 : index
    %115 = vector.load %arg11[%c0_130, %c0_131] : memref<1x256xf32, #tpu.memory_space<vmem>>, vector<1x256xf32>
    %116 = vector.broadcast %115 : vector<1x256xf32> to vector<32x256xf32>
    %117 = arith.addf %114, %116 : vector<32x256xf32>
    %cst_132 = arith.constant 0.000000e+00 : f32
    %118 = vector.broadcast %cst_132 : f32 to vector<32x256xf32>
    %119 = arith.maximumf %117, %118 : vector<32x256xf32>
    %c0_133 = arith.constant 0 : index
    %c0_134 = arith.constant 0 : index
    %c0_135 = arith.constant 0 : index
    %120 = vector.load %arg12[%c0_133, %c0_134, %c0_135] : memref<2x16x32xf32, #tpu.memory_space<vmem>>, vector<1x16x32xf32>
    %121 = vector.shape_cast %120 : vector<1x16x32xf32> to vector<16x32xf32>
    %cst_136 = arith.constant dense<0.000000e+00> : vector<16x256xf32>
    %122 = tpu.matmul %121, %119, %cst_136 {dimension_numbers = #tpu.dot_dimension_numbers<[1], [0], [0], [1], [0, 0, 1, 1], [], []>} : vector<16x32xf32>, vector<32x256xf32>, vector<16x256xf32> -> vector<16x256xf32>
    %c1_137 = arith.constant 1 : index
    %c0_138 = arith.constant 0 : index
    %c0_139 = arith.constant 0 : index
    %123 = vector.load %arg12[%c1_137, %c0_138, %c0_139] : memref<2x16x32xf32, #tpu.memory_space<vmem>>, vector<1x16x32xf32>
    %124 = vector.shape_cast %123 : vector<1x16x32xf32> to vector<16x32xf32>
    %cst_140 = arith.constant dense<0.000000e+00> : vector<16x256xf32>
    %125 = tpu.matmul %124, %119, %cst_140 {dimension_numbers = #tpu.dot_dimension_numbers<[1], [0], [0], [1], [0, 0, 1, 1], [], []>} : vector<16x32xf32>, vector<32x256xf32>, vector<16x256xf32> -> vector<16x256xf32>
    %126 = arith.maximumf %122, %125 : vector<16x256xf32>
    %c0_141 = arith.constant 0 : index
    %c0_142 = arith.constant 0 : index
    %c0_143 = arith.constant 0 : index
    %127 = vector.load %arg13[%c0_141, %c0_142, %c0_143] : memref<2x256x128xf32, #tpu.memory_space<vmem>>, vector<1x256x128xf32>
    %128 = vector.shape_cast %127 : vector<1x256x128xf32> to vector<256x128xf32>
    %cst_144 = arith.constant dense<0.000000e+00> : vector<16x128xf32>
    %129 = tpu.matmul %126, %128, %cst_144 {dimension_numbers = #tpu.dot_dimension_numbers<[1], [0], [0], [1], [0, 0, 1, 1], [], []>} : vector<16x256xf32>, vector<256x128xf32>, vector<16x128xf32> -> vector<16x128xf32>
    %c1_145 = arith.constant 1 : index
    %c0_146 = arith.constant 0 : index
    %c0_147 = arith.constant 0 : index
    %130 = vector.load %arg13[%c1_145, %c0_146, %c0_147] : memref<2x256x128xf32, #tpu.memory_space<vmem>>, vector<1x256x128xf32>
    %131 = vector.shape_cast %130 : vector<1x256x128xf32> to vector<256x128xf32>
    %cst_148 = arith.constant dense<0.000000e+00> : vector<16x128xf32>
    %132 = tpu.matmul %126, %131, %cst_148 {dimension_numbers = #tpu.dot_dimension_numbers<[1], [0], [0], [1], [0, 0, 1, 1], [], []>} : vector<16x256xf32>, vector<256x128xf32>, vector<16x128xf32> -> vector<16x128xf32>
    %133 = arith.maximumf %129, %132 : vector<16x128xf32>
    %c0_149 = arith.constant 0 : index
    %c0_150 = arith.constant 0 : index
    %134 = vector.load %arg15[%c0_149, %c0_150] : memref<1x3xf32, #tpu.memory_space<vmem>>, vector<1x3xf32>
    %135 = vector.extract_strided_slice %133 {offsets = [0, 0], sizes = [1, 128], strides = [1, 1]} : vector<16x128xf32> to vector<1x128xf32>
    %c0_151 = arith.constant 0 : index
    %c0_152 = arith.constant 0 : index
    %c0_153 = arith.constant 0 : index
    %136 = vector.load %arg14[%c0_151, %c0_152, %c0_153] : memref<16x128x3xf32, #tpu.memory_space<vmem>>, vector<1x128x3xf32>
    %137 = vector.shape_cast %136 : vector<1x128x3xf32> to vector<128x3xf32>
    %cst_154 = arith.constant dense<0.000000e+00> : vector<1x3xf32>
    %138 = tpu.matmul %135, %137, %cst_154 {dimension_numbers = #tpu.dot_dimension_numbers<[1], [0], [0], [1], [0, 0, 1, 1], [], []>} : vector<1x128xf32>, vector<128x3xf32>, vector<1x3xf32> -> vector<1x3xf32>
    %139 = arith.addf %134, %138 : vector<1x3xf32>
    %140 = vector.extract_strided_slice %133 {offsets = [1, 0], sizes = [1, 128], strides = [1, 1]} : vector<16x128xf32> to vector<1x128xf32>
    %c1_155 = arith.constant 1 : index
    %c0_156 = arith.constant 0 : index
    %c0_157 = arith.constant 0 : index
    %141 = vector.load %arg14[%c1_155, %c0_156, %c0_157] : memref<16x128x3xf32, #tpu.memory_space<vmem>>, vector<1x128x3xf32>
    %142 = vector.shape_cast %141 : vector<1x128x3xf32> to vector<128x3xf32>
    %cst_158 = arith.constant dense<0.000000e+00> : vector<1x3xf32>
    %143 = tpu.matmul %140, %142, %cst_158 {dimension_numbers = #tpu.dot_dimension_numbers<[1], [0], [0], [1], [0, 0, 1, 1], [], []>} : vector<1x128xf32>, vector<128x3xf32>, vector<1x3xf32> -> vector<1x3xf32>
    %144 = arith.addf %139, %143 : vector<1x3xf32>
    %145 = vector.extract_strided_slice %133 {offsets = [2, 0], sizes = [1, 128], strides = [1, 1]} : vector<16x128xf32> to vector<1x128xf32>
    %c2_159 = arith.constant 2 : index
    %c0_160 = arith.constant 0 : index
    %c0_161 = arith.constant 0 : index
    %146 = vector.load %arg14[%c2_159, %c0_160, %c0_161] : memref<16x128x3xf32, #tpu.memory_space<vmem>>, vector<1x128x3xf32>
    %147 = vector.shape_cast %146 : vector<1x128x3xf32> to vector<128x3xf32>
    %cst_162 = arith.constant dense<0.000000e+00> : vector<1x3xf32>
    %148 = tpu.matmul %145, %147, %cst_162 {dimension_numbers = #tpu.dot_dimension_numbers<[1], [0], [0], [1], [0, 0, 1, 1], [], []>} : vector<1x128xf32>, vector<128x3xf32>, vector<1x3xf32> -> vector<1x3xf32>
    %149 = arith.addf %144, %148 : vector<1x3xf32>
    %150 = vector.extract_strided_slice %133 {offsets = [3, 0], sizes = [1, 128], strides = [1, 1]} : vector<16x128xf32> to vector<1x128xf32>
    %c3 = arith.constant 3 : index
    %c0_163 = arith.constant 0 : index
    %c0_164 = arith.constant 0 : index
    %151 = vector.load %arg14[%c3, %c0_163, %c0_164] : memref<16x128x3xf32, #tpu.memory_space<vmem>>, vector<1x128x3xf32>
    %152 = vector.shape_cast %151 : vector<1x128x3xf32> to vector<128x3xf32>
    %cst_165 = arith.constant dense<0.000000e+00> : vector<1x3xf32>
    %153 = tpu.matmul %150, %152, %cst_165 {dimension_numbers = #tpu.dot_dimension_numbers<[1], [0], [0], [1], [0, 0, 1, 1], [], []>} : vector<1x128xf32>, vector<128x3xf32>, vector<1x3xf32> -> vector<1x3xf32>
    %154 = arith.addf %149, %153 : vector<1x3xf32>
    %155 = vector.extract_strided_slice %133 {offsets = [4, 0], sizes = [1, 128], strides = [1, 1]} : vector<16x128xf32> to vector<1x128xf32>
    %c4 = arith.constant 4 : index
    %c0_166 = arith.constant 0 : index
    %c0_167 = arith.constant 0 : index
    %156 = vector.load %arg14[%c4, %c0_166, %c0_167] : memref<16x128x3xf32, #tpu.memory_space<vmem>>, vector<1x128x3xf32>
    %157 = vector.shape_cast %156 : vector<1x128x3xf32> to vector<128x3xf32>
    %cst_168 = arith.constant dense<0.000000e+00> : vector<1x3xf32>
    %158 = tpu.matmul %155, %157, %cst_168 {dimension_numbers = #tpu.dot_dimension_numbers<[1], [0], [0], [1], [0, 0, 1, 1], [], []>} : vector<1x128xf32>, vector<128x3xf32>, vector<1x3xf32> -> vector<1x3xf32>
    %159 = arith.addf %154, %158 : vector<1x3xf32>
    %160 = vector.extract_strided_slice %133 {offsets = [5, 0], sizes = [1, 128], strides = [1, 1]} : vector<16x128xf32> to vector<1x128xf32>
    %c5 = arith.constant 5 : index
    %c0_169 = arith.constant 0 : index
    %c0_170 = arith.constant 0 : index
    %161 = vector.load %arg14[%c5, %c0_169, %c0_170] : memref<16x128x3xf32, #tpu.memory_space<vmem>>, vector<1x128x3xf32>
    %162 = vector.shape_cast %161 : vector<1x128x3xf32> to vector<128x3xf32>
    %cst_171 = arith.constant dense<0.000000e+00> : vector<1x3xf32>
    %163 = tpu.matmul %160, %162, %cst_171 {dimension_numbers = #tpu.dot_dimension_numbers<[1], [0], [0], [1], [0, 0, 1, 1], [], []>} : vector<1x128xf32>, vector<128x3xf32>, vector<1x3xf32> -> vector<1x3xf32>
    %164 = arith.addf %159, %163 : vector<1x3xf32>
    %165 = vector.extract_strided_slice %133 {offsets = [6, 0], sizes = [1, 128], strides = [1, 1]} : vector<16x128xf32> to vector<1x128xf32>
    %c6 = arith.constant 6 : index
    %c0_172 = arith.constant 0 : index
    %c0_173 = arith.constant 0 : index
    %166 = vector.load %arg14[%c6, %c0_172, %c0_173] : memref<16x128x3xf32, #tpu.memory_space<vmem>>, vector<1x128x3xf32>
    %167 = vector.shape_cast %166 : vector<1x128x3xf32> to vector<128x3xf32>
    %cst_174 = arith.constant dense<0.000000e+00> : vector<1x3xf32>
    %168 = tpu.matmul %165, %167, %cst_174 {dimension_numbers = #tpu.dot_dimension_numbers<[1], [0], [0], [1], [0, 0, 1, 1], [], []>} : vector<1x128xf32>, vector<128x3xf32>, vector<1x3xf32> -> vector<1x3xf32>
    %169 = arith.addf %164, %168 : vector<1x3xf32>
    %170 = vector.extract_strided_slice %133 {offsets = [7, 0], sizes = [1, 128], strides = [1, 1]} : vector<16x128xf32> to vector<1x128xf32>
    %c7 = arith.constant 7 : index
    %c0_175 = arith.constant 0 : index
    %c0_176 = arith.constant 0 : index
    %171 = vector.load %arg14[%c7, %c0_175, %c0_176] : memref<16x128x3xf32, #tpu.memory_space<vmem>>, vector<1x128x3xf32>
    %172 = vector.shape_cast %171 : vector<1x128x3xf32> to vector<128x3xf32>
    %cst_177 = arith.constant dense<0.000000e+00> : vector<1x3xf32>
    %173 = tpu.matmul %170, %172, %cst_177 {dimension_numbers = #tpu.dot_dimension_numbers<[1], [0], [0], [1], [0, 0, 1, 1], [], []>} : vector<1x128xf32>, vector<128x3xf32>, vector<1x3xf32> -> vector<1x3xf32>
    %174 = arith.addf %169, %173 : vector<1x3xf32>
    %175 = vector.extract_strided_slice %133 {offsets = [8, 0], sizes = [1, 128], strides = [1, 1]} : vector<16x128xf32> to vector<1x128xf32>
    %c8 = arith.constant 8 : index
    %c0_178 = arith.constant 0 : index
    %c0_179 = arith.constant 0 : index
    %176 = vector.load %arg14[%c8, %c0_178, %c0_179] : memref<16x128x3xf32, #tpu.memory_space<vmem>>, vector<1x128x3xf32>
    %177 = vector.shape_cast %176 : vector<1x128x3xf32> to vector<128x3xf32>
    %cst_180 = arith.constant dense<0.000000e+00> : vector<1x3xf32>
    %178 = tpu.matmul %175, %177, %cst_180 {dimension_numbers = #tpu.dot_dimension_numbers<[1], [0], [0], [1], [0, 0, 1, 1], [], []>} : vector<1x128xf32>, vector<128x3xf32>, vector<1x3xf32> -> vector<1x3xf32>
    %179 = arith.addf %174, %178 : vector<1x3xf32>
    %180 = vector.extract_strided_slice %133 {offsets = [9, 0], sizes = [1, 128], strides = [1, 1]} : vector<16x128xf32> to vector<1x128xf32>
    %c9 = arith.constant 9 : index
    %c0_181 = arith.constant 0 : index
    %c0_182 = arith.constant 0 : index
    %181 = vector.load %arg14[%c9, %c0_181, %c0_182] : memref<16x128x3xf32, #tpu.memory_space<vmem>>, vector<1x128x3xf32>
    %182 = vector.shape_cast %181 : vector<1x128x3xf32> to vector<128x3xf32>
    %cst_183 = arith.constant dense<0.000000e+00> : vector<1x3xf32>
    %183 = tpu.matmul %180, %182, %cst_183 {dimension_numbers = #tpu.dot_dimension_numbers<[1], [0], [0], [1], [0, 0, 1, 1], [], []>} : vector<1x128xf32>, vector<128x3xf32>, vector<1x3xf32> -> vector<1x3xf32>
    %184 = arith.addf %179, %183 : vector<1x3xf32>
    %185 = vector.extract_strided_slice %133 {offsets = [10, 0], sizes = [1, 128], strides = [1, 1]} : vector<16x128xf32> to vector<1x128xf32>
    %c10 = arith.constant 10 : index
    %c0_184 = arith.constant 0 : index
    %c0_185 = arith.constant 0 : index
    %186 = vector.load %arg14[%c10, %c0_184, %c0_185] : memref<16x128x3xf32, #tpu.memory_space<vmem>>, vector<1x128x3xf32>
    %187 = vector.shape_cast %186 : vector<1x128x3xf32> to vector<128x3xf32>
    %cst_186 = arith.constant dense<0.000000e+00> : vector<1x3xf32>
    %188 = tpu.matmul %185, %187, %cst_186 {dimension_numbers = #tpu.dot_dimension_numbers<[1], [0], [0], [1], [0, 0, 1, 1], [], []>} : vector<1x128xf32>, vector<128x3xf32>, vector<1x3xf32> -> vector<1x3xf32>
    %189 = arith.addf %184, %188 : vector<1x3xf32>
    %190 = vector.extract_strided_slice %133 {offsets = [11, 0], sizes = [1, 128], strides = [1, 1]} : vector<16x128xf32> to vector<1x128xf32>
    %c11 = arith.constant 11 : index
    %c0_187 = arith.constant 0 : index
    %c0_188 = arith.constant 0 : index
    %191 = vector.load %arg14[%c11, %c0_187, %c0_188] : memref<16x128x3xf32, #tpu.memory_space<vmem>>, vector<1x128x3xf32>
    %192 = vector.shape_cast %191 : vector<1x128x3xf32> to vector<128x3xf32>
    %cst_189 = arith.constant dense<0.000000e+00> : vector<1x3xf32>
    %193 = tpu.matmul %190, %192, %cst_189 {dimension_numbers = #tpu.dot_dimension_numbers<[1], [0], [0], [1], [0, 0, 1, 1], [], []>} : vector<1x128xf32>, vector<128x3xf32>, vector<1x3xf32> -> vector<1x3xf32>
    %194 = arith.addf %189, %193 : vector<1x3xf32>
    %195 = vector.extract_strided_slice %133 {offsets = [12, 0], sizes = [1, 128], strides = [1, 1]} : vector<16x128xf32> to vector<1x128xf32>
    %c12 = arith.constant 12 : index
    %c0_190 = arith.constant 0 : index
    %c0_191 = arith.constant 0 : index
    %196 = vector.load %arg14[%c12, %c0_190, %c0_191] : memref<16x128x3xf32, #tpu.memory_space<vmem>>, vector<1x128x3xf32>
    %197 = vector.shape_cast %196 : vector<1x128x3xf32> to vector<128x3xf32>
    %cst_192 = arith.constant dense<0.000000e+00> : vector<1x3xf32>
    %198 = tpu.matmul %195, %197, %cst_192 {dimension_numbers = #tpu.dot_dimension_numbers<[1], [0], [0], [1], [0, 0, 1, 1], [], []>} : vector<1x128xf32>, vector<128x3xf32>, vector<1x3xf32> -> vector<1x3xf32>
    %199 = arith.addf %194, %198 : vector<1x3xf32>
    %200 = vector.extract_strided_slice %133 {offsets = [13, 0], sizes = [1, 128], strides = [1, 1]} : vector<16x128xf32> to vector<1x128xf32>
    %c13 = arith.constant 13 : index
    %c0_193 = arith.constant 0 : index
    %c0_194 = arith.constant 0 : index
    %201 = vector.load %arg14[%c13, %c0_193, %c0_194] : memref<16x128x3xf32, #tpu.memory_space<vmem>>, vector<1x128x3xf32>
    %202 = vector.shape_cast %201 : vector<1x128x3xf32> to vector<128x3xf32>
    %cst_195 = arith.constant dense<0.000000e+00> : vector<1x3xf32>
    %203 = tpu.matmul %200, %202, %cst_195 {dimension_numbers = #tpu.dot_dimension_numbers<[1], [0], [0], [1], [0, 0, 1, 1], [], []>} : vector<1x128xf32>, vector<128x3xf32>, vector<1x3xf32> -> vector<1x3xf32>
    %204 = arith.addf %199, %203 : vector<1x3xf32>
    %205 = vector.extract_strided_slice %133 {offsets = [14, 0], sizes = [1, 128], strides = [1, 1]} : vector<16x128xf32> to vector<1x128xf32>
    %c14 = arith.constant 14 : index
    %c0_196 = arith.constant 0 : index
    %c0_197 = arith.constant 0 : index
    %206 = vector.load %arg14[%c14, %c0_196, %c0_197] : memref<16x128x3xf32, #tpu.memory_space<vmem>>, vector<1x128x3xf32>
    %207 = vector.shape_cast %206 : vector<1x128x3xf32> to vector<128x3xf32>
    %cst_198 = arith.constant dense<0.000000e+00> : vector<1x3xf32>
    %208 = tpu.matmul %205, %207, %cst_198 {dimension_numbers = #tpu.dot_dimension_numbers<[1], [0], [0], [1], [0, 0, 1, 1], [], []>} : vector<1x128xf32>, vector<128x3xf32>, vector<1x3xf32> -> vector<1x3xf32>
    %209 = arith.addf %204, %208 : vector<1x3xf32>
    %210 = vector.extract_strided_slice %133 {offsets = [15, 0], sizes = [1, 128], strides = [1, 1]} : vector<16x128xf32> to vector<1x128xf32>
    %c15 = arith.constant 15 : index
    %c0_199 = arith.constant 0 : index
    %c0_200 = arith.constant 0 : index
    %211 = vector.load %arg14[%c15, %c0_199, %c0_200] : memref<16x128x3xf32, #tpu.memory_space<vmem>>, vector<1x128x3xf32>
    %212 = vector.shape_cast %211 : vector<1x128x3xf32> to vector<128x3xf32>
    %cst_201 = arith.constant dense<0.000000e+00> : vector<1x3xf32>
    %213 = tpu.matmul %210, %212, %cst_201 {dimension_numbers = #tpu.dot_dimension_numbers<[1], [0], [0], [1], [0, 0, 1, 1], [], []>} : vector<1x128xf32>, vector<128x3xf32>, vector<1x3xf32> -> vector<1x3xf32>
    %214 = arith.addf %209, %213 : vector<1x3xf32>
    %215 = vector.shape_cast %214 : vector<1x3xf32> to vector<1x1x3xf32>
    %c0_202 = arith.constant 0 : index
    %c0_203 = arith.constant 0 : index
    %c0_204 = arith.constant 0 : index
    %216 = vector.load %arg16[%c0_202, %c0_203, %c0_204] : memref<1x1x3xf32, #tpu.memory_space<vmem>>, vector<1x1x3xf32>
    tpu.vector_store %arg16[%c0_202, %c0_203, %c0_204], %215 {strides = array<i32>} : memref<1x1x3xf32, #tpu.memory_space<vmem>>, vector<1x1x3xf32>,
    return
  }
  func.func @transform_0(%arg0: i32) -> (i32, i32, i32) {
    %c0_i32 = arith.constant 0 : i32
    %c0_i32_0 = arith.constant 0 : i32
    %c0_i32_1 = arith.constant 0 : i32
    return %arg0, %c0_i32, %c0_i32_0 : i32, i32, i32
  }
  func.func @transform_1(%arg0: i32) -> (i32, i32, i32) {
    %c0_i32 = arith.constant 0 : i32
    %c0_i32_0 = arith.constant 0 : i32
    %c0_i32_1 = arith.constant 0 : i32
    %c0_i32_2 = arith.constant 0 : i32
    return %c0_i32, %c0_i32_0, %c0_i32_1 : i32, i32, i32
  }
  func.func @transform_2(%arg0: i32) -> (i32, i32) {
    %c0_i32 = arith.constant 0 : i32
    %c0_i32_0 = arith.constant 0 : i32
    %c0_i32_1 = arith.constant 0 : i32
    return %c0_i32, %c0_i32_0 : i32, i32
  }
  func.func @transform_3(%arg0: i32) -> (i32, i32, i32) {
    %c0_i32 = arith.constant 0 : i32
    %c0_i32_0 = arith.constant 0 : i32
    %c0_i32_1 = arith.constant 0 : i32
    %c0_i32_2 = arith.constant 0 : i32
    return %c0_i32, %c0_i32_0, %c0_i32_1 : i32, i32, i32
  }
  func.func @transform_4(%arg0: i32) -> (i32, i32) {
    %c0_i32 = arith.constant 0 : i32
    %c0_i32_0 = arith.constant 0 : i32
    %c0_i32_1 = arith.constant 0 : i32
    return %c0_i32, %c0_i32_0 : i32, i32
  }
  func.func @transform_5(%arg0: i32) -> (i32, i32, i32) {
    %c0_i32 = arith.constant 0 : i32
    %c0_i32_0 = arith.constant 0 : i32
    %c0_i32_1 = arith.constant 0 : i32
    %c0_i32_2 = arith.constant 0 : i32
    return %c0_i32, %c0_i32_0, %c0_i32_1 : i32, i32, i32
  }
  func.func @transform_6(%arg0: i32) -> (i32, i32, i32) {
    %c0_i32 = arith.constant 0 : i32
    %c0_i32_0 = arith.constant 0 : i32
    %c0_i32_1 = arith.constant 0 : i32
    %c0_i32_2 = arith.constant 0 : i32
    return %c0_i32, %c0_i32_0, %c0_i32_1 : i32, i32, i32
  }
  func.func @transform_7(%arg0: i32) -> (i32, i32, i32) {
    %c0_i32 = arith.constant 0 : i32
    %c0_i32_0 = arith.constant 0 : i32
    %c0_i32_1 = arith.constant 0 : i32
    %c0_i32_2 = arith.constant 0 : i32
    return %c0_i32, %c0_i32_0, %c0_i32_1 : i32, i32, i32
  }
  func.func @transform_8(%arg0: i32) -> (i32, i32) {
    %c0_i32 = arith.constant 0 : i32
    %c0_i32_0 = arith.constant 0 : i32
    %c0_i32_1 = arith.constant 0 : i32
    return %c0_i32, %c0_i32_0 : i32, i32
  }
  func.func @transform_9(%arg0: i32) -> (i32, i32, i32) {
    %c0_i32 = arith.constant 0 : i32
    %c0_i32_0 = arith.constant 0 : i32
    %c0_i32_1 = arith.constant 0 : i32
    %c0_i32_2 = arith.constant 0 : i32
    return %c0_i32, %c0_i32_0, %c0_i32_1 : i32, i32, i32
  }
  func.func @transform_10(%arg0: i32) -> (i32, i32) {
    %c0_i32 = arith.constant 0 : i32
    %c0_i32_0 = arith.constant 0 : i32
    %c0_i32_1 = arith.constant 0 : i32
    return %c0_i32, %c0_i32_0 : i32, i32
  }
  func.func @transform_11(%arg0: i32) -> (i32, i32, i32) {
    %c0_i32 = arith.constant 0 : i32
    %c0_i32_0 = arith.constant 0 : i32
    %c0_i32_1 = arith.constant 0 : i32
    %c0_i32_2 = arith.constant 0 : i32
    return %c0_i32, %c0_i32_0, %c0_i32_1 : i32, i32, i32
  }
  func.func @transform_12(%arg0: i32) -> (i32, i32, i32) {
    %c0_i32 = arith.constant 0 : i32
    %c0_i32_0 = arith.constant 0 : i32
    %c0_i32_1 = arith.constant 0 : i32
    %c0_i32_2 = arith.constant 0 : i32
    return %c0_i32, %c0_i32_0, %c0_i32_1 : i32, i32, i32
  }
  func.func @transform_13(%arg0: i32) -> (i32, i32, i32) {
    %c0_i32 = arith.constant 0 : i32
    %c0_i32_0 = arith.constant 0 : i32
    %c0_i32_1 = arith.constant 0 : i32
    %c0_i32_2 = arith.constant 0 : i32
    return %c0_i32, %c0_i32_0, %c0_i32_1 : i32, i32, i32
  }
  func.func @transform_14(%arg0: i32) -> (i32, i32) {
    %c0_i32 = arith.constant 0 : i32
    %c0_i32_0 = arith.constant 0 : i32
    %c0_i32_1 = arith.constant 0 : i32
    return %c0_i32, %c0_i32_0 : i32, i32
  }
  func.func @transform_15(%arg0: i32) -> (i32, i32, i32) {
    %c0_i32 = arith.constant 0 : i32
    %c0_i32_0 = arith.constant 0 : i32
    %c0_i32_1 = arith.constant 0 : i32
    return %arg0, %c0_i32, %c0_i32_0 : i32, i32, i32
  }
}

</mosaic_0001>

<bundles_post_ra>
// kernel: tiny_vgg_forward_fn.1
= control target key start
LH: loop header
LB: loop body
LE: loop exit
PB: predicated region body
PF: predicated region fallthrough
CT: control target
= control target key end

     0   :  { %s16529_s0 = inlined_call_operand.vmem [shape: f32[2,64,192], index: 0, kind: input, shape index: {}]   ;;  %s16530_s1 = inlined_call_operand.hbm [shape: f32[3,192,512], index: 1, kind: input, shape index: {}]   ;;  %s16531_s2 = inlined_call_operand.hbm [shape: f32[1,512], index: 2, kind: input, shape index: {}]   ;;  %s16532_s3 = inlined_call_operand.hbm [shape: f32[3,512,512], index: 3, kind: input, shape index: {}]   ;;  %s16533_s4 = inlined_call_operand.hbm [shape: f32[1,512], index: 4, kind: input, shape index: {}]   ;;  %s16534_s5 = inlined_call_operand.hbm [shape: f32[2,32,64], index: 5, kind: input, shape index: {}]   ;;  %s16535_s6 = inlined_call_operand.hbm [shape: f32[2,512,256], index: 6, kind: input, shape index: {}]   ;;  %s16536_s7 = inlined_call_operand.hbm [shape: f32[3,256,256], index: 7, kind: input, shape index: {}]   ;;  %s16537_s8 = inlined_call_operand.hbm [shape: f32[1,256], index: 8, kind: input, shape index: {}]   ;;  %s16538_s9 = inlined_call_operand.hbm [shape: f32[3,256,256], index: 9, kind: input, shape index: {}]   ;;  %s16539_s10 = inlined_call_operand.hbm [shape: f32[1,256], index: 10, kind: input, shape index: {}]   ;;  %s16540_s11 = inlined_call_operand.hbm [shape: f32[2,16,32], index: 11, kind: input, shape index: {}]   ;;  %s16541_s12 = inlined_call_operand.hbm [shape: f32[2,256,128], index: 12, kind: input, shape index: {}]   ;;  %s16542_s13 = inlined_call_operand.vmem [shape: f32[16,128,3], index: 13, kind: input, shape index: {}]   ;;  %s16543_s14 = inlined_call_operand.hbm [shape: f32[1,3], index: 14, kind: input, shape index: {}]   ;;  %s16544_s15 = inlined_call_operand.hbm [shape: f32[2,1,3], index: 15, kind: output, shape index: {}]  }
   0x1   :  { %16606 = sst [smem:[#allocation82_spill]] %s16529_s0 }
   0x2   :  { %16607 = sst [smem:[#allocation83_spill]] %s16530_s1 }
   0x3   :  { %16608 = sst [smem:[#allocation84_spill]] %s16531_s2 }
   0x4   :  { %16609 = sst [smem:[#allocation85_spill]] %s16533_s4 }
   0x5   :  { %16610 = sst [smem:[#allocation86_spill]] %s16542_s13 }
   0x6   :  { %16611 = sst [smem:[#allocation87_spill]] %s16544_s15 }
   0x7   :  { %20 = vsyncpa [#allocation7], 0 }
   0x8   :  { %21 = vsyncpa [#allocation10], 0 }
   0x9   :  { %22 = vsyncpa [#allocation13], 0 }
   0xa   :  { %23 = vsyncpa [#allocation16], 0 }
   0xb   :  { %24 = vsyncpa [#allocation19], 0 }
   0xc   :  { %25 = vsyncpa [#allocation22], 0 }
   0xd   :  { %26 = vsyncpa [#allocation25], 0 }
   0xe   :  { %27 = vsyncpa [#allocation8], 0 }
   0xf   :  { %29 = vsyncpa [#allocation8 + $0x1], 0  ;;  %s13609_s18 = smov 0   ;;  %s13611_s19 = smov 0  }
  0x10   :  { %s13613_s20 = smov 0   ;;  %s13615_s21 = smov 0  }
  0x11 LB: > { %16612 = sst [smem:[#allocation36_spill]] %s13492_s18  ;;  %s13630_s22 = sadd.s32 4294967295, %s13504_s21   ;;  %s13504_s21 = sphi %s13615_s21, %s16758_s21   ;;  %s13500_s20 = sphi %s13613_s20, %s16761_s20   ;;  %s13496_s19 = sphi %s13611_s19, %s16760_s19   ;;  %s13492_s18 = sphi %s13609_s18, %s16759_s18  }
  0x12   : > { %16613 = sst [smem:[#allocation37_spill]] %s13496_s19  ;;  %s9063_s23 = sadd.s32 4294967294, %s13504_s21  }
  0x13   : > { %16614 = sst [smem:[#allocation38_spill]] %s13500_s20  ;;  %s13634_s24 = sadd.s32 1, %s13504_s21  }
  0x14   : > { %16615 = sst [smem:[#allocation39_spill]] %s13504_s21  ;;  %s362_s25 = sadd.s32 1, %s13500_s20 }
  0x15   : > { %16616 = sst [smem:[#allocation40_spill]] %s13634_s24  ;;  %s359_s26 = ssub.s32 %s13504_s21, %s13634_s24 }
  0x16   : > { %p372_p0 = scmp.ne.s32.totalorder %s13500_s20, %s13496_s19  ;;  %p360_p1 = scmp.eq.s32.totalorder %s359_s26, 0 }
  0x17   : > { %p373_p2 = scmp.eq.s32.totalorder %s13630_s22, 1  ;;  %p378_p3 = scmp.ne.s32.totalorder %s13496_s19, %s13492_s18 }
  0x18   : > { %p379_p4 = scmp.eq.s32.totalorder %s9063_s23, 1  ;;  %p9064_p7 = scmp.ge.s32.totalorder %s13504_s21, 1 }
  0x19   : > { %s13645_s27 = scalar_select %p360_p1, %s13500_s20, %s362_s25  }
  0x1a   : > { %p13647_p5 = por %p373_p2, %p372_p0  ;;  %p13651_p6 = por %p379_p4, %p378_p3 }
  0x1b   : > { %16617 = sst [smem:[#allocation41_spill]] %s13645_s27  ;;  %p386_p8 = scmp.lt.s32.totalorder %s13504_s21, 3 }
  0x1c   : > { %s16618_s28 = scalar_select %p13647_p5, 1, 0 }
  0x1d   : > { %s16620_s29 = scalar_select %p13651_p6, 1, 0 }
  0x1e   : > { %16619 = sst [smem:[#allocation42_spill]] %s16618_s28  ;;  %p16552_p9 = scmp.eq.s32.totalorder %s13630_s22, 0 }
  0x1f   : > { %16621 = sst [smem:[#allocation43_spill]] %s16620_s29  ;;  %p13658_p10 = pnand %p9064_p7, %p386_p8 }
  0x20   : > { %s13506_s16 = smov [#allocation9]   ;;  %s13507_s23 = smov [#allocation12]  }
  0x21   : > { %s16622_s30 = scalar_select %p13658_p10, 1, 0 }
  0x22   : > { %s412_s17 = sshll.u32 %s13506_s16, 4  ;;  %p12896_p11 = pneg %p13658_p10  ;;  %s413_s17 = int_to_ptr.vmem [resolvable:$true] %s412_s17 }
  0x23   : > { %s436_s25 = sshll.u32 %s13507_s23, 4  ;;  %s13508_s27 = smov [#allocation15]   ;;  %s13670_s25 = int_to_ptr.vmem [resolvable:$true] %s436_s25 }
  0x24   : > { %p13666_p12 = pnand %p16552_p9, %p12896_p11  ;;  %s459_s20 = sshll.u32 %s13508_s27, 4  ;;  %s13672_s20 = int_to_ptr.vmem [resolvable:$true] %s459_s20 }
  0x25   : > { %s16624_s2 = sld [smem:[#allocation84_spill]] }
  0x26   : > { %p13682_p0 = pneg %p13666_p12 }
  0x2b   : > { %s13050_s16 = scalar_lea.hbm %s16624_s2, 64 }
  0x2c   : > { %p13051_p13 = scmp.ne.s32.totalorder %s16624_s2, %s13050_s16  ;;  %p13057_p3 = scmp.lt.u32.totalorder %s13050_s16, %s16624_s2 }
  0x2e   : > { %p13053_p1 = pnand %p13682_p0, %p13051_p13 }
  0x30   : > { %p13054_p2 = pneg %p13053_p1 }
  0x32   : > { %p13059_p4 = pnand %p13057_p3, %p13054_p2 }
  0x34   : > { %13062 = shalt.err (!%p13059_p4)
}
  0x35   : > { %s13063_s24 = scalar_lea.vmem %s413_s17, 64  ;;  %p13071_p9 = scmp.lt.s32.totalorder %s413_s17, %s413_s17 }
  0x36   : > { %p13064_p7 = scmp.ne.s32.totalorder %s413_s17, %s13063_s24  ;;  %p13072_p6 = scmp.lt.s32.totalorder %s13063_s24, %s13063_s24 }
  0x38   : > { %p13066_p8 = pnand %p13064_p7, %p13682_p0  ;;  %p13073_p5 = por %p13072_p6, %p13071_p9 }
  0x3a   : > { %p13067_p11 = pneg %p13066_p8 }
  0x3c   : > { %p13074_p10 = pnand %p13073_p5, %p13067_p11 }
  0x3e   : > { %13077 = shalt.err (!%p13074_p10)
}
  0x3f   : > { %12902 = dma.hbm_to_vmem [thread:$0]  (!%p13666_p12), %s16624_s2, 64, %s413_s17, [#allocation10]  }
  0x40   : > { %s16626_s4 = sld [smem:[#allocation85_spill]] }
  0x46   : > { %s13078_s16 = scalar_lea.hbm %s16626_s4, 64 }
  0x47   : > { %p13079_p13 = scmp.ne.s32.totalorder %s16626_s4, %s13078_s16  ;;  %p13085_p5 = scmp.lt.u32.totalorder %s13078_s16, %s16626_s4 }
  0x49   : > { %p13081_p1 = pnand %p13079_p13, %p13682_p0 }
  0x4b   : > { %p13082_p6 = pneg %p13081_p1 }
  0x4d   : > { %p13087_p9 = pnand %p13085_p5, %p13082_p6 }
  0x4f   : > { %13090 = shalt.err (!%p13087_p9)
}
  0x50   : > { %s13091_s17 = scalar_lea.vmem %s13670_s25, 64  ;;  %p13099_p4 = scmp.lt.s32.totalorder %s13670_s25, %s13670_s25 }
  0x51   : > { %p13092_p10 = scmp.ne.s32.totalorder %s13670_s25, %s13091_s17  ;;  %p13100_p7 = scmp.lt.s32.totalorder %s13091_s17, %s13091_s17 }
  0x53   : > { %p13094_p2 = pnand %p13092_p10, %p13682_p0  ;;  %p13101_p8 = por %p13100_p7, %p13099_p4 }
  0x55   : > { %p13095_p3 = pneg %p13094_p2 }
  0x57   : > { %p13102_p11 = pnand %p13101_p8, %p13095_p3 }
  0x59   : > { %13105 = shalt.err (!%p13102_p11)
}
  0x5a   : > { %12908 = dma.hbm_to_vmem [thread:$0]  (!%p13666_p12), %s16626_s4, 64, %s13670_s25, [#allocation13]  }
  0x5b   : > { %s13106_s15 = scalar_lea.hbm %s16535_s6, 32768 }
  0x5c   : > { %p13107_p13 = scmp.ne.s32.totalorder %s16535_s6, %s13106_s15  ;;  %p13113_p5 = scmp.lt.u32.totalorder %s13106_s15, %s16535_s6 }
  0x5e   : > { %p13109_p1 = pnand %p13107_p13, %p13682_p0 }
  0x60   : > { %p13110_p6 = pneg %p13109_p1 }
  0x62   : > { %p13115_p9 = pnand %p13113_p5, %p13110_p6 }
  0x64   : > { %13118 = shalt.err (!%p13115_p9)
}
  0x65   : > { %s13119_s25 = scalar_lea.vmem %s13672_s20, 32768  ;;  %p13127_p4 = scmp.lt.s32.totalorder %s13672_s20, %s13672_s20 }
  0x66   : > { %p13120_p10 = scmp.ne.s32.totalorder %s13672_s20, %s13119_s25  ;;  %p13128_p7 = scmp.lt.s32.totalorder %s13119_s25, %s13119_s25 }
  0x68   : > { %p13122_p2 = pnand %p13120_p10, %p13682_p0  ;;  %p13129_p8 = por %p13128_p7, %p13127_p4 }
  0x6a   : > { %p13123_p3 = pneg %p13122_p2 }
  0x6c   : > { %p13130_p11 = pnand %p13129_p8, %p13123_p3 }
  0x6e   : > { %13133 = shalt.err (!%p13130_p11)
}
  0x6f   : > { %s16559_s17 = smov 256   ;;  %s16561_s19 = smov 16  }
  0x70   : > { %12914 = dma.hbm_to_vmem [thread:$0]  (!%p13666_p12), %s16535_s6, 32768, %s13672_s20, [#allocation16], %s16559_s17, %s16559_s17, %s16561_s19  }
  0x71   : > { %s13511_s21 = smov [#allocation18]   ;;  %s13512_s29 = smov [#allocation21]  }
  0x72   : > { %s486_s15 = sshll.u32 %s13511_s21, 4  ;;  %s510_s16 = sshll.u32 %s13512_s29, 4  ;;  %s487_s15 = int_to_ptr.vmem [resolvable:$true] %s486_s15  ;;  %s511_s16 = int_to_ptr.vmem [resolvable:$true] %s510_s16 }
  0x73   : > { %s13134_s25 = scalar_lea.hbm %s16537_s8, 32 }
  0x74   : > { %p13135_p13 = scmp.ne.s32.totalorder %s16537_s8, %s13134_s25  ;;  %p13141_p5 = scmp.lt.u32.totalorder %s13134_s25, %s16537_s8 }
  0x76   : > { %p13137_p1 = pnand %p13135_p13, %p13682_p0 }
  0x78   : > { %p13138_p6 = pneg %p13137_p1 }
  0x7a   : > { %p13143_p9 = pnand %p13141_p5, %p13138_p6 }
  0x7c   : > { %13146 = shalt.err (!%p13143_p9)
}
  0x7d   : > { %s13147_s20 = scalar_lea.vmem %s487_s15, 32  ;;  %p13155_p4 = scmp.lt.s32.totalorder %s487_s15, %s487_s15 }
  0x7e   : > { %p13148_p10 = scmp.ne.s32.totalorder %s487_s15, %s13147_s20  ;;  %p13156_p7 = scmp.lt.s32.totalorder %s13147_s20, %s13147_s20 }
  0x80   : > { %p13150_p2 = pnand %p13148_p10, %p13682_p0  ;;  %p13157_p8 = por %p13156_p7, %p13155_p4 }
  0x82   : > { %p13151_p3 = pneg %p13150_p2 }
  0x84   : > { %p13158_p11 = pnand %p13157_p8, %p13151_p3 }
  0x86   : > { %13161 = shalt.err (!%p13158_p11)
}
  0x87   : > { %12920 = dma.hbm_to_vmem [thread:$0]  (!%p13666_p12), %s16537_s8, 32, %s487_s15, [#allocation19]  }
  0x88   : > { %s13162_s28 = scalar_lea.hbm %s16539_s10, 32 }
  0x89   : > { %p13163_p13 = scmp.ne.s32.totalorder %s16539_s10, %s13162_s28  ;;  %p13169_p5 = scmp.lt.u32.totalorder %s13162_s28, %s16539_s10 }
  0x8b   : > { %p13165_p1 = pnand %p13163_p13, %p13682_p0 }
  0x8d   : > { %p13166_p6 = pneg %p13165_p1 }
  0x8f   : > { %p13171_p9 = pnand %p13169_p5, %p13166_p6 }
  0x91   : > { %13174 = shalt.err (!%p13171_p9)
}
  0x92   : > { %s13175_s24 = scalar_lea.vmem %s511_s16, 32  ;;  %p13183_p4 = scmp.lt.s32.totalorder %s511_s16, %s511_s16 }
  0x93   : > { %p13176_p10 = scmp.ne.s32.totalorder %s511_s16, %s13175_s24  ;;  %p13184_p7 = scmp.lt.s32.totalorder %s13175_s24, %s13175_s24 }
  0x95   : > { %p13178_p2 = pnand %p13176_p10, %p13682_p0  ;;  %p13185_p8 = por %p13184_p7, %p13183_p4 }
  0x97   : > { %p13179_p3 = pneg %p13178_p2 }
  0x99   : > { %p13186_p11 = pnand %p13185_p8, %p13179_p3 }
  0x9b   : > { %13189 = shalt.err (!%p13186_p11)
}
  0x9c   : > { %12926 = dma.hbm_to_vmem [thread:$0]  (!%p13666_p12), %s16539_s10, 32, %s511_s16, [#allocation22]  }
  0x9d   : > { %s13513_s20 = smov [#allocation24]   ;;  %s13514_s4 = smov [#allocation6]  }
  0x9e   : > { %s533_s2 = sshll.u32 %s13513_s20, 4  ;;  %s398_s0 = sshll.u32 %s13514_s4, 4  ;;  %s534_s2 = int_to_ptr.vmem [resolvable:$true] %s533_s2  ;;  %s399_s0 = int_to_ptr.vmem [resolvable:$true] %s398_s0 }
  0x9f   : > { %s13190_s18 = scalar_lea.hbm %s16541_s12, 8192 }
  0xa0   : > { %p13191_p13 = scmp.ne.s32.totalorder %s16541_s12, %s13190_s18  ;;  %p13197_p5 = scmp.lt.u32.totalorder %s13190_s18, %s16541_s12 }
  0xa2   : > { %p13193_p1 = pnand %p13191_p13, %p13682_p0 }
  0xa4   : > { %p13194_p6 = pneg %p13193_p1 }
  0xa6   : > { %p13199_p9 = pnand %p13197_p5, %p13194_p6 }
  0xa8   : > { %13202 = shalt.err (!%p13199_p9)
}
  0xa9   : > { %s13203_s16 = scalar_lea.vmem %s534_s2, 8192  ;;  %p13211_p4 = scmp.lt.s32.totalorder %s534_s2, %s534_s2 }
  0xaa   : > { %p13204_p10 = scmp.ne.s32.totalorder %s534_s2, %s13203_s16  ;;  %p13212_p7 = scmp.lt.s32.totalorder %s13203_s16, %s13203_s16 }
  0xac   : > { %p13206_p2 = pnand %p13204_p10, %p13682_p0  ;;  %p13213_p8 = por %p13212_p7, %p13211_p4 }
  0xae   : > { %p13207_p3 = pneg %p13206_p2 }
  0xb0   : > { %p13214_p11 = pnand %p13213_p8, %p13207_p3 }
  0xb2   : > { %13217 = shalt.err (!%p13214_p11)
}
  0xb3   : > { %s16563_s15 = smov 128   ;;  %s16565_s25 = smov 8  }
  0xb4   : > { %12932 = dma.hbm_to_vmem [thread:$0]  (!%p13666_p12), %s16541_s12, 8192, %s534_s2, [#allocation25], %s16563_s15, %s16563_s15, %s16565_s25  }
  0xb5   : > { %s16627_s1 = sld [smem:[#allocation83_spill]] }
  0xbb   : > { %s13218_s18 = scalar_lea.hbm %s16627_s1, 36864 }
  0xbc   : > { %p13219_p13 = scmp.ne.s32.totalorder %s16627_s1, %s13218_s18  ;;  %p13225_p5 = scmp.lt.u32.totalorder %s13218_s18, %s16627_s1 }
  0xbe   : > { %p13221_p1 = pnand %p13219_p13, %p13682_p0 }
  0xc0   : > { %p13222_p6 = pneg %p13221_p1 }
  0xc2   : > { %p13227_p9 = pnand %p13225_p5, %p13222_p6 }
  0xc4   : > { %13230 = shalt.err (!%p13227_p9)
}
  0xc5   : > { %s13231_s16 = scalar_lea.vmem %s399_s0, 36864  ;;  %p13239_p4 = scmp.lt.s32.totalorder %s399_s0, %s399_s0 }
  0xc6   : > { %p13232_p10 = scmp.ne.s32.totalorder %s399_s0, %s13231_s16  ;;  %p13240_p7 = scmp.lt.s32.totalorder %s13231_s16, %s13231_s16 }
  0xc8   : > { %p13234_p2 = pnand %p13232_p10, %p13682_p0  ;;  %p13241_p8 = por %p13240_p7, %p13239_p4 }
  0xca   : > { %p13235_p3 = pneg %p13234_p2 }
  0xcc   : > { %p13242_p11 = pnand %p13241_p8, %p13235_p3 }
  0xce   : > { %13245 = shalt.err (!%p13242_p11)
}
  0xcf   : > { %s13517_s2 = smov 512   ;;  %s13518_s20 = smov 32  }
  0xd0   : > { %12899 = dma.hbm_to_vmem [thread:$0]  (!%p13666_p12), %s16627_s1, 36864, %s399_s0, [#allocation7], %s13517_s2, %s13517_s2, %s13518_s20  }
  0xd1   : > { %s13519_s28 = smov [#allocation11]   ;;  %s13520_s21 = smov [#allocation14]  }
  0xd2   : > { %s422_s18 = sshll.u32 %s13519_s28, 4  ;;  %s446_s29 = sshll.u32 %s13520_s21, 4  ;;  %s423_s18 = int_to_ptr.vmem [resolvable:$true] %s422_s18  ;;  %s447_s29 = int_to_ptr.vmem [resolvable:$true] %s446_s29 }
  0xd3   : > { %s13246_s16 = scalar_lea.hbm %s16532_s3, 98304 }
  0xd4   : > { %p13247_p13 = scmp.ne.s32.totalorder %s16532_s3, %s13246_s16  ;;  %p13253_p5 = scmp.lt.u32.totalorder %s13246_s16, %s16532_s3 }
  0xd6   : > { %p13249_p1 = pnand %p13247_p13, %p13682_p0 }
  0xd8   : > { %p13250_p6 = pneg %p13249_p1 }
  0xda   : > { %p13255_p9 = pnand %p13253_p5, %p13250_p6 }
  0xdc   : > { %13258 = shalt.err (!%p13255_p9)
}
  0xdd   : > { %s13259_s0 = scalar_lea.vmem %s423_s18, 98304  ;;  %p13267_p4 = scmp.lt.s32.totalorder %s423_s18, %s423_s18 }
  0xde   : > { %p13260_p10 = scmp.ne.s32.totalorder %s423_s18, %s13259_s0  ;;  %p13268_p7 = scmp.lt.s32.totalorder %s13259_s0, %s13259_s0 }
  0xe0   : > { %p13262_p2 = pnand %p13260_p10, %p13682_p0  ;;  %p13269_p8 = por %p13268_p7, %p13267_p4 }
  0xe2   : > { %p13263_p3 = pneg %p13262_p2 }
  0xe4   : > { %p13270_p11 = pnand %p13269_p8, %p13263_p3 }
  0xe6   : > { %13273 = shalt.err (!%p13270_p11)
}
  0xe7   : > { %12905 = dma.hbm_to_vmem [thread:$0]  (!%p13666_p12), %s16532_s3, 98304, %s423_s18, [#allocation10], %s13517_s2, %s13517_s2, %s13518_s20  }
  0xe8   : > { %s13274_s4 = scalar_lea.hbm %s16534_s5, 1024 }
  0xe9   : > { %p13275_p13 = scmp.ne.s32.totalorder %s16534_s5, %s13274_s4  ;;  %p13281_p5 = scmp.lt.u32.totalorder %s13274_s4, %s16534_s5 }
  0xeb   : > { %p13277_p1 = pnand %p13275_p13, %p13682_p0 }
  0xed   : > { %p13278_p6 = pneg %p13277_p1 }
  0xef   : > { %p13283_p9 = pnand %p13281_p5, %p13278_p6 }
  0xf1   : > { %13286 = shalt.err (!%p13283_p9)
}
  0xf2   : > { %s13287_s24 = scalar_lea.vmem %s447_s29, 1024  ;;  %p13295_p4 = scmp.lt.s32.totalorder %s447_s29, %s447_s29 }
  0xf3   : > { %p13288_p10 = scmp.ne.s32.totalorder %s447_s29, %s13287_s24  ;;  %p13296_p7 = scmp.lt.s32.totalorder %s13287_s24, %s13287_s24 }
  0xf5   : > { %p13290_p2 = pnand %p13288_p10, %p13682_p0  ;;  %p13297_p8 = por %p13296_p7, %p13295_p4 }
  0xf7   : > { %p13291_p3 = pneg %p13290_p2 }
  0xf9   : > { %p13298_p11 = pnand %p13297_p8, %p13291_p3 }
  0xfb   : > { %13301 = shalt.err (!%p13298_p11)
}
  0xfc   : > { %s16628_s2 = smov 8   ;;  %s16629_s20 = smov 128  }
  0xfd   : > { %12911 = dma.hbm_to_vmem [thread:$0]  (!%p13666_p12), %s16534_s5, 1024, %s447_s29, [#allocation13], %s16629_s20, %s16629_s20, %s16628_s2  }
  0xfe   : > { %s13521_s0 = smov [#allocation17]   ;;  %s13522_s19 = smov [#allocation20]  }
  0xff   : > { %s472_s17 = sshll.u32 %s13521_s0, 4  ;;  %s496_s15 = sshll.u32 %s13522_s19, 4  ;;  %s473_s17 = int_to_ptr.vmem [resolvable:$true] %s472_s17  ;;  %s497_s15 = int_to_ptr.vmem [resolvable:$true] %s496_s15 }
 0x100   : > { %s13302_s13 = scalar_lea.hbm %s16536_s7, 24576 }
 0x101   : > { %p13303_p13 = scmp.ne.s32.totalorder %s16536_s7, %s13302_s13  ;;  %p13309_p5 = scmp.lt.u32.totalorder %s13302_s13, %s16536_s7 }
 0x103   : > { %p13305_p1 = pnand %p13303_p13, %p13682_p0 }
 0x105   : > { %p13306_p6 = pneg %p13305_p1 }
 0x107   : > { %p13311_p9 = pnand %p13309_p5, %p13306_p6 }
 0x109   : > { %13314 = shalt.err (!%p13311_p9)
}
 0x10a   : > { %s13315_s29 = scalar_lea.vmem %s473_s17, 24576  ;;  %p13323_p4 = scmp.lt.s32.totalorder %s473_s17, %s473_s17 }
 0x10b   : > { %p13316_p10 = scmp.ne.s32.totalorder %s473_s17, %s13315_s29  ;;  %p13324_p7 = scmp.lt.s32.totalorder %s13315_s29, %s13315_s29 }
 0x10d   : > { %p13318_p2 = pnand %p13316_p10, %p13682_p0  ;;  %p13325_p8 = por %p13324_p7, %p13323_p4 }
 0x10f   : > { %p13319_p3 = pneg %p13318_p2 }
 0x111   : > { %p13326_p11 = pnand %p13325_p8, %p13319_p3 }
 0x113   : > { %13329 = shalt.err (!%p13326_p11)
}
 0x114   : > { %s16630_s18 = smov 16   ;;  %s16631_s16 = smov 256  }
 0x115   : > { %12917 = dma.hbm_to_vmem [thread:$0]  (!%p13666_p12), %s16536_s7, 24576, %s473_s17, [#allocation16], %s16631_s16, %s16631_s16, %s16630_s18  }
 0x116   : > { %s13330_s13 = scalar_lea.hbm %s16538_s9, 24576 }
 0x117   : > { %p13331_p13 = scmp.ne.s32.totalorder %s16538_s9, %s13330_s13  ;;  %p13337_p5 = scmp.lt.u32.totalorder %s13330_s13, %s16538_s9 }
 0x119   : > { %p13333_p1 = pnand %p13331_p13, %p13682_p0 }
 0x11b   : > { %p13334_p6 = pneg %p13333_p1 }
 0x11d   : > { %p13339_p9 = pnand %p13337_p5, %p13334_p6 }
 0x11f   : > { %13342 = shalt.err (!%p13339_p9)
}
 0x120   : > { %s13343_s29 = scalar_lea.vmem %s497_s15, 24576  ;;  %p13351_p4 = scmp.lt.s32.totalorder %s497_s15, %s497_s15 }
 0x121   : > { %p13344_p10 = scmp.ne.s32.totalorder %s497_s15, %s13343_s29  ;;  %p13352_p7 = scmp.lt.s32.totalorder %s13343_s29, %s13343_s29 }
 0x123   : > { %p13346_p2 = pnand %p13344_p10, %p13682_p0  ;;  %p13353_p8 = por %p13352_p7, %p13351_p4 }
 0x125   : > { %p13347_p3 = pneg %p13346_p2 }
 0x127   : > { %p13354_p11 = pnand %p13353_p8, %p13347_p3 }
 0x129   : > { %13357 = shalt.err (!%p13354_p11)
}
 0x12a   : > { %12923 = dma.hbm_to_vmem [thread:$0]  (!%p13666_p12), %s16538_s9, 24576, %s497_s15, [#allocation19], %s16631_s16, %s16631_s16, %s16630_s18  }
 0x12b   : > { %s13523_s19 = smov [#allocation23]   ;;  %s13524_s4 = smov [#allocation26]  }
 0x12c   : > { %s520_s25 = sshll.u32 %s13523_s19, 4  ;;  %s550_s13 = sshll.u32 %s13524_s4, 4  ;;  %s521_s25 = int_to_ptr.vmem [resolvable:$true] %s520_s25  ;;  %s551_s13 = int_to_ptr.vmem [resolvable:$true] %s550_s13 }
 0x12d   : > { %s13358_s27 = scalar_lea.hbm %s16540_s11, 512 }
 0x12e   : > { %p13359_p13 = scmp.ne.s32.totalorder %s16540_s11, %s13358_s27  ;;  %p13365_p5 = scmp.lt.u32.totalorder %s13358_s27, %s16540_s11 }
 0x130   : > { %p13361_p1 = pnand %p13359_p13, %p13682_p0 }
 0x132   : > { %p13362_p6 = pneg %p13361_p1 }
 0x134   : > { %p13367_p9 = pnand %p13365_p5, %p13362_p6 }
 0x136   : > { %13370 = shalt.err (!%p13367_p9)
}
 0x137   : > { %s13371_s15 = scalar_lea.vmem %s521_s25, 512  ;;  %p13379_p4 = scmp.lt.s32.totalorder %s521_s25, %s521_s25 }
 0x138   : > { %p13372_p10 = scmp.ne.s32.totalorder %s521_s25, %s13371_s15  ;;  %p13380_p7 = scmp.lt.s32.totalorder %s13371_s15, %s13371_s15 }
 0x13a   : > { %p13374_p2 = pnand %p13372_p10, %p13682_p0  ;;  %p13381_p8 = por %p13380_p7, %p13379_p4 }
 0x13c   : > { %p13375_p3 = pneg %p13374_p2 }
 0x13e   : > { %p13382_p11 = pnand %p13381_p8, %p13375_p3 }
 0x140   : > { %13385 = shalt.err (!%p13382_p11)
}
 0x141   : > { %12929 = dma.hbm_to_vmem [thread:$0]  (!%p13666_p12), %s16540_s11, 512, %s521_s25, [#allocation22], %s16629_s20, %s16629_s20, %s16628_s2  }
 0x142   : > { %s13386_s19 = scalar_lea.hbm %s16543_s14, 16 }
 0x143   : > { %p13387_p13 = scmp.ne.s32.totalorder %s16543_s14, %s13386_s19  ;;  %p13393_p5 = scmp.lt.u32.totalorder %s13386_s19, %s16543_s14 }
 0x145   : > { %p13389_p1 = pnand %p13387_p13, %p13682_p0 }
 0x147   : > { %p13390_p6 = pneg %p13389_p1 }
 0x149   : > { %p13395_p9 = pnand %p13393_p5, %p13390_p6 }
 0x14b   : > { %13398 = shalt.err (!%p13395_p9)
}
 0x14c   : > { %s13399_s24 = scalar_lea.vmem %s551_s13, 16  ;;  %s13406_s2 = scalar_lea.vmem %s551_s13, 32 }
 0x14d   : > { %p13400_p10 = scmp.ne.s32.totalorder %s551_s13, %s13399_s24  ;;  %p13407_p4 = scmp.lt.s32.totalorder %s551_s13, %s551_s13 }
 0x14e   : > { %p13408_p7 = scmp.lt.s32.totalorder %s13406_s2, %s13399_s24 }
 0x14f   : > { %p13402_p2 = pnand %p13400_p10, %p13682_p0 }
 0x150   : > { %p13409_p8 = por %p13408_p7, %p13407_p4 }
 0x151   : > { %p13403_p3 = pneg %p13402_p2 }
 0x153   : > { %p13410_p11 = pnand %p13409_p8, %p13403_p3 }
 0x155   : > { %13413 = shalt.err (!%p13410_p11)
}
 0x156   : > { %12935 = dma.hbm_to_vmem [thread:$0]  (!%p13666_p12), %s16543_s14, 16, %s551_s13, [#allocation25]  }
 0x157   : > { %p16632_p13 = scmp.ne.s32.totalorder %s16622_s30, 0 }
 0x159   : > { %571 = sbr.rel (%p16632_p13) target bundleno = 3924 (0xf54), region = 80 }
 0x160   : > { %p16633_p1 = scmp.eq.s32.totalorder %s13630_s22, 0 }
 0x162   : > { %13459 = dma.done.wait (%p16633_p1), [#allocation7], 36864   ;;  %p16634_p0 = pmov %p16633_p1 }
 0x164   : > { %13461 = vsyncadd (%p16634_p0), [#allocation7], 4294930432  ;;  %p16635_p6 = pmov %p16634_p0 }
 0x165   : > { %p16636_p5 = pmov %p16634_p0 }
 0x166   : > { %13463 = dma.done.wait (%p16635_p6), [#allocation10], 98368  }
 0x167   : > { %13465 = vsyncadd (%p16636_p5), [#allocation10], 4294868928  ;;  %p16637_p9 = pmov %p16634_p0 }
 0x168   : > { %p16638_p12 = pmov %p16634_p0 }
 0x169   : > { %13467 = dma.done.wait (%p16637_p9), [#allocation13], 1088  }
 0x16a   : > { %13469 = vsyncadd (%p16638_p12), [#allocation13], 4294966208  ;;  %p16639_p10 = pmov %p16634_p0 }
 0x16b   : > { %p16640_p2 = pmov %p16634_p0 }
 0x16c   : > { %13471 = dma.done.wait (%p16639_p10), [#allocation16], 57344  }
 0x16d   : > { %13473 = vsyncadd (%p16640_p2), [#allocation16], 4294909952  ;;  %p16641_p3 = pmov %p16634_p0 }
 0x16e   : > { %p16642_p4 = pmov %p16634_p0 }
 0x16f   : > { %13475 = dma.done.wait (%p16641_p3), [#allocation19], 24608  }
 0x170   : > { %13477 = vsyncadd (%p16642_p4), [#allocation19], 4294942688  ;;  %p16643_p7 = pmov %p16634_p0 }
 0x171   : > { %p16644_p8 = pmov %p16634_p0 }
 0x172   : > { %13479 = dma.done.wait (%p16643_p7), [#allocation22], 544  }
 0x173   : > { %13481 = vsyncadd (%p16644_p8), [#allocation22], 4294966752  ;;  %p16645_p11 = pmov %p16634_p0 }
 0x174   : > { %p16646_p13 = pmov %p16634_p0 }
 0x175   : > { %13483 = dma.done.wait (%p16645_p11), [#allocation25], 8208  }
 0x176   : > { %13485 = vsyncadd (%p16646_p13), [#allocation25], 4294959088  ;;  %v16567_v0 = vlaneseq  ;;  %v16570_v1 = vmov 0.0   ;;  %v900_v2 = vld [vmem:[#allocation6 + $0x308] sm:$0xff]  ;;  %v902_v4 = vld [vmem:[#allocation6 + $0x318] sm:$0xff]  ;;  %p666_p1 = scmp.lt.s32.totalorder %s13630_s22, 1 }
 0x177   : > { %v904_v3 = vld [vmem:[#allocation6 + $0x328] sm:$0xff]  ;;  %v906_v6 = vld [vmem:[#allocation6 + $0x338] sm:$0xff]  ;;  %v899_v7 = vld [vmem:[#allocation6 + $0x300] sm:$0xff]  ;;  %s16647_s29 = sld [smem:[#allocation82_spill]]  ;;  %vm712_vm1 = vcmask 1040384   ;;  %vm762_vm2 = vcmask 523265  }
 0x178   : > { %vm689_vm0 = vcmp.lt.s32.totalorder %v16567_v0, 192  ;;  %v10315_v5 = vpack.c.bf16 %v904_v3, %v900_v2  ;;  %v903_v8 = vld [vmem:[#allocation6 + $0x320] sm:$0xff]  ;;  %v10363_v9 = vpack.c.bf16 %v906_v6, %v902_v4  ;;  %v901_v11 = vld [vmem:[#allocation6 + $0x310] sm:$0xff]  ;;  %v908_v13 = vld [vmem:[#allocation6 + $0x348] sm:$0xff]  ;;  %s13979_s30 = scalar_select %p666_p1, %s13630_s22, 1  ;;  %vm765_vm3 = vcmask 523264  }
 0x179   : > { %691 = vst.msk [vmem:[#allocation2] ss:$8 sm:$0x3] %vm689_vm0, %v16570_v1  ;;  %694 = vst.msk [vmem:[#allocation2 + $0x81] ss:$8 sm:$0x3] %vm689_vm0, %v16570_v1  ;;  %v10317_v10 = vpack.c.bf16 %v903_v8, %v899_v7 }
 0x17a   : > { %v905_v12 = vld [vmem:[#allocation6 + $0x330] sm:$0xff]  ;;  %10316 = vmatprep.subr.bf16.mxu0 %v10315_v5  ;;  %v912_v15 = vld [vmem:[#allocation6 + $0x368] sm:$0xff]  ;;  %v910_v16 = vld [vmem:[#allocation6 + $0x358] sm:$0xff]  ;;  %10364 = vmatprep.subr.bf16.mxu1 %v10363_v9  ;;  %s9406_s26 = sshll.u32 %s13979_s30, 7  ;;  %vm1013_vm4 = vcmask 1046528   ;;  %vm1646_vm5 = vcmask 1045504  }
 0x17b   : > { %v10365_v14 = vpack.c.bf16 %v905_v12, %v901_v11  ;;  %v914_v17 = vld [vmem:[#allocation6 + $0x378] sm:$0xff]  ;;  %10318 = vmatpush1.bf16.msra.mxu0 %v10317_v10  ;;  %v10319_v18 = vpack.c.bf16 %v912_v15, %v908_v13  ;;  %v907_v20 = vld [vmem:[#allocation6 + $0x340] sm:$0xff]  ;;  %v909_v22 = vld [vmem:[#allocation6 + $0x350] sm:$0xff]  ;;  %vm780_vm6 = vcmask 516096   ;;  %vm2049_vm7 = vcmp.lt.s32.totalorder %v16567_v0, 512  ;;  %s16748_s18 = sld [smem:[#allocation86_spill]] }
 0x17c   : > { %v10367_v19 = vpack.c.bf16 %v914_v17, %v910_v16  ;;  %v911_v21 = vld [vmem:[#allocation6 + $0x360] sm:$0xff]  ;;  %v913_v24 = vld [vmem:[#allocation6 + $0x370] sm:$0xff]  ;;  %v916_v25 = vld [vmem:[#allocation6 + $0x388] sm:$0xff]  ;;  %2054 = vst.msk [vmem:[#allocation3 + $0x101] ss:$8 sm:$0xf] %vm2049_vm7, %v16570_v1 }
 0x17d   : > { %10366 = vmatpush1.bf16.msra.mxu1 %v10365_v14  ;;  %v10321_v23 = vpack.c.bf16 %v911_v21, %v907_v20  ;;  %v920_v26 = vld [vmem:[#allocation6 + $0x3a8] sm:$0xff]  ;;  %10320 = vmatprep.subr.bf16.mxu0 %v10319_v18  ;;  %v10369_v27 = vpack.c.bf16 %v913_v24, %v909_v22  ;;  %v918_v29 = vld [vmem:[#allocation6 + $0x398] sm:$0xff]  ;;  %v915_v31 = vld [vmem:[#allocation6 + $0x380] sm:$0xff]  ;;  %s13985_s17 = scalar_lea.vmem %s16647_s29, %s9406_s26  ;;  %2051 = vst.msk [vmem:[#allocation3] ss:$8 sm:$0xf] %vm2049_vm7, %v16570_v1 }
 0x17e   : > { %10368 = vmatprep.subr.bf16.mxu1 %v10367_v19  ;;  %v10323_v28 = vpack.c.bf16 %v920_v26, %v916_v25  ;;  %v922_v30 = vld [vmem:[#allocation6 + $0x3b8] sm:$0xff]  ;;  %v919_v33 = vld [vmem:[#allocation6 + $0x3a0] sm:$0xff]  ;;  %v917_v34 = vld [vmem:[#allocation6 + $0x390] sm:$0xff]  ;;  %vm7038_vm9 = vcmask 261120   ;;  %vm13527_vm10 = vmmov 0   ;;  %s16750_s20 = sld [smem:[#allocation37_spill]] }
 0x17f   : > { %v10371_v32 = vpack.c.bf16 %v922_v30, %v918_v29  ;;  %v921_v35 = vld [vmem:[#allocation6 + $0x3b0] sm:$0xff]  ;;  %10322 = vmatpush1.bf16.msra.mxu0 %v10321_v23  ;;  %v10325_v36 = vpack.c.bf16 %v919_v33, %v915_v31  ;;  %v924_v37 = vld [vmem:[#allocation6 + $0x3c8] sm:$0xff]  ;;  %v926_v39 = vld [vmem:[#allocation6 + $0x3d8] sm:$0xff]  ;;  %s16751_s1 = sld [smem:[#allocation42_spill]]  ;;  %s9403_s0 = sshll.u32 %s13630_s22, 4  ;;  %vm8867_vm11 = vcmask 16384  }
 0x180   : > { %v928_v38 = vld [vmem:[#allocation6 + $0x3e8] sm:$0xff]  ;;  %10324 = vmatprep.subr.bf16.mxu0 %v10323_v28  ;;  %v10373_v40 = vpack.c.bf16 %v921_v35, %v917_v34  ;;  %v930_v42 = vld [vmem:[#allocation6 + $0x3f8] sm:$0xff]  ;;  %v923_v43 = vld [vmem:[#allocation6 + $0x3c0] sm:$0xff]  ;;  %s16752_s27 = sld [smem:[#allocation87_spill]]  ;;  %s13528_s22 = smov [#allocation27]  }
 0x181   : > { %10370 = vmatpush1.bf16.msra.mxu1 %v10369_v27  ;;  %v10327_v41 = vpack.c.bf16 %v928_v38, %v924_v37  ;;  %v927_v44 = vld [vmem:[#allocation6 + $0x3e0] sm:$0xff]  ;;  %v10375_v45 = vpack.c.bf16 %v930_v42, %v926_v39  ;;  %v925_v46 = vld [vmem:[#allocation6 + $0x3d0] sm:$0xff]  ;;  %v932_v48 = vld [vmem:[#allocation6 + $0x408] sm:$0xff]  ;;  %s16749_s16 = smov %s16748_s18  ;;  %s13418_s25 = sshll.u32 %s13528_s22, 4  ;;  %s13419_s25 = int_to_ptr.vmem [resolvable:$false] %s13418_s25 }
 0x182   : > { %10372 = vmatprep.subr.bf16.mxu1 %v10371_v32  ;;  %v929_v47 = vld [vmem:[#allocation6 + $0x3f0] sm:$0xff]  ;;  %v936_v49 = vld [vmem:[#allocation6 + $0x428] sm:$0xff]  ;;  %v934_v50 = vld [vmem:[#allocation6 + $0x418] sm:$0xff]  ;;  %v10329_v52 = vpack.c.bf16 %v927_v44, %v923_v43  ;;  %s13420_s30 = scalar_lea.vmem %s13419_s25, 32 }
 0x183   : > { %v938_v51 = vld [vmem:[#allocation6 + $0x438] sm:$0xff]  ;;  %10326 = vmatpush1.bf16.msra.mxu0 %v10325_v36  ;;  %v10377_v53 = vpack.c.bf16 %v929_v47, %v925_v46  ;;  %v10331_v54 = vpack.c.bf16 %v936_v49, %v932_v48  ;;  %v931_v55 = vld [vmem:[#allocation6 + $0x400] sm:$0xff]  ;;  %v933_v57 = vld [vmem:[#allocation6 + $0x410] sm:$0xff] }
 0x184   : > { %10328 = vmatprep.subr.bf16.mxu0 %v10327_v41  ;;  %v935_v56 = vld [vmem:[#allocation6 + $0x420] sm:$0xff]  ;;  %v10379_v58 = vpack.c.bf16 %v938_v51, %v934_v50  ;;  %v937_v59 = vld [vmem:[#allocation6 + $0x430] sm:$0xff]  ;;  %v940_v60 = vld [vmem:[#allocation6 + $0x448] sm:$0xff] }
 0x185   : > { %10374 = vmatpush1.bf16.msra.mxu1 %v10373_v40  ;;  %v944_v61 = vld [vmem:[#allocation6 + $0x468] sm:$0xff]  ;;  %v942_v62 = vld [vmem:[#allocation6 + $0x458] sm:$0xff]  ;;  %v10333_v2 = vpack.c.bf16 %v935_v56, %v931_v55  ;;  %v10381_v3 = vpack.c.bf16 %v937_v59, %v933_v57  ;;  %v939_v5 = vld [vmem:[#allocation6 + $0x440] sm:$0xff]  ;;  %p16753_p6 = scmp.ne.s32.totalorder %s16751_s1, 0 }
 0x186   : > { %10376 = vmatprep.subr.bf16.mxu1 %v10375_v45  ;;  %v946_v63 = vld [vmem:[#allocation6 + $0x478] sm:$0xff]  ;;  %v10335_v4 = vpack.c.bf16 %v944_v61, %v940_v60  ;;  %v943_v6 = vld [vmem:[#allocation6 + $0x460] sm:$0xff]  ;;  %v941_v7 = vld [vmem:[#allocation6 + $0x450] sm:$0xff]  ;;  %s16487_s24 = scalar_lea.hbm %s16752_s27, %s9403_s0 }
 0x187   : > { %10330 = vmatpush1.bf16.msra.mxu0 %v10329_v52  ;;  %v10383_v8 = vpack.c.bf16 %v946_v63, %v942_v62  ;;  %v945_v9 = vld [vmem:[#allocation6 + $0x470] sm:$0xff]  ;;  %v948_v10 = vld [vmem:[#allocation6 + $0x488] sm:$0xff]  ;;  %v950_v12 = vld [vmem:[#allocation6 + $0x498] sm:$0xff]  ;;  %v10337_v14 = vpack.c.bf16 %v943_v6, %v939_v5 }
 0x188   : > { %10332 = vmatprep.subr.bf16.mxu0 %v10331_v54  ;;  %v952_v11 = vld [vmem:[#allocation6 + $0x4a8] sm:$0xff]  ;;  %v954_v13 = vld [vmem:[#allocation6 + $0x4b8] sm:$0xff]  ;;  %v10385_v15 = vpack.c.bf16 %v945_v9, %v941_v7  ;;  %v947_v17 = vld [vmem:[#allocation6 + $0x480] sm:$0xff] }
 0x189   : > { %10378 = vmatpush1.bf16.msra.mxu1 %v10377_v53  ;;  %v10339_v16 = vpack.c.bf16 %v952_v11, %v948_v10  ;;  %v951_v18 = vld [vmem:[#allocation6 + $0x4a0] sm:$0xff]  ;;  %v949_v19 = vld [vmem:[#allocation6 + $0x490] sm:$0xff]  ;;  %v10387_v20 = vpack.c.bf16 %v954_v13, %v950_v12  ;;  %v956_v22 = vld [vmem:[#allocation6 + $0x4c8] sm:$0xff] }
 0x18a   : > { %10380 = vmatprep.subr.bf16.mxu1 %v10379_v58  ;;  %v953_v21 = vld [vmem:[#allocation6 + $0x4b0] sm:$0xff]  ;;  %v960_v23 = vld [vmem:[#allocation6 + $0x4e8] sm:$0xff]  ;;  %v958_v24 = vld [vmem:[#allocation6 + $0x4d8] sm:$0xff]  ;;  %v10341_v26 = vpack.c.bf16 %v951_v18, %v947_v17 }
 0x18b   : > { %10334 = vmatpush1.bf16.msra.mxu0 %v10333_v2  ;;  %v962_v25 = vld [vmem:[#allocation6 + $0x4f8] sm:$0xff]  ;;  %v10389_v27 = vpack.c.bf16 %v953_v21, %v949_v19  ;;  %v10343_v28 = vpack.c.bf16 %v960_v23, %v956_v22  ;;  %v955_v29 = vld [vmem:[#allocation6 + $0x4c0] sm:$0xff]  ;;  %v957_v31 = vld [vmem:[#allocation6 + $0x4d0] sm:$0xff] }
 0x18c   : > { %10336 = vmatprep.subr.bf16.mxu0 %v10335_v4  ;;  %v959_v30 = vld [vmem:[#allocation6 + $0x4e0] sm:$0xff]  ;;  %v10391_v32 = vpack.c.bf16 %v962_v25, %v958_v24  ;;  %v961_v33 = vld [vmem:[#allocation6 + $0x4f0] sm:$0xff]  ;;  %v964_v34 = vld [vmem:[#allocation6 + $0x508] sm:$0xff] }
 0x18d   : > { %10382 = vmatpush1.bf16.msra.mxu1 %v10381_v3  ;;  %v968_v35 = vld [vmem:[#allocation6 + $0x528] sm:$0xff]  ;;  %v966_v36 = vld [vmem:[#allocation6 + $0x518] sm:$0xff]  ;;  %v10345_v38 = vpack.c.bf16 %v959_v30, %v955_v29  ;;  %v10393_v39 = vpack.c.bf16 %v961_v33, %v957_v31  ;;  %v963_v41 = vld [vmem:[#allocation6 + $0x500] sm:$0xff] }
 0x18e   : > { %10384 = vmatprep.subr.bf16.mxu1 %v10383_v8  ;;  %v970_v37 = vld [vmem:[#allocation6 + $0x538] sm:$0xff]  ;;  %v10347_v40 = vpack.c.bf16 %v968_v35, %v964_v34  ;;  %v967_v42 = vld [vmem:[#allocation6 + $0x520] sm:$0xff]  ;;  %v965_v43 = vld [vmem:[#allocation6 + $0x510] sm:$0xff] }
 0x18f   : > { %10338 = vmatpush1.bf16.msra.mxu0 %v10337_v14  ;;  %v10395_v44 = vpack.c.bf16 %v970_v37, %v966_v36  ;;  %v969_v45 = vld [vmem:[#allocation6 + $0x530] sm:$0xff]  ;;  %v972_v46 = vld [vmem:[#allocation6 + $0x548] sm:$0xff]  ;;  %v974_v48 = vld [vmem:[#allocation6 + $0x558] sm:$0xff]  ;;  %v10349_v51 = vpack.c.bf16 %v967_v42, %v963_v41 }
 0x190   : > { %10340 = vmatprep.subr.bf16.mxu0 %v10339_v16  ;;  %v976_v47 = vld [vmem:[#allocation6 + $0x568] sm:$0xff]  ;;  %v978_v49 = vld [vmem:[#allocation6 + $0x578] sm:$0xff]  ;;  %v971_v50 = vld [vmem:[#allocation6 + $0x540] sm:$0xff]  ;;  %v10397_v55 = vpack.c.bf16 %v969_v45, %v965_v43 }
 0x191   : > { %10386 = vmatpush1.bf16.msra.mxu1 %v10385_v15  ;;  %v975_v52 = vld [vmem:[#allocation6 + $0x560] sm:$0xff]  ;;  %v672_v53 = vld [vmem:[%s13985_s17 + $0x8] sm:$0xff]  ;;  %v13989_v54 = vld [vmem:[%s13985_s17 + $0x18] sm:$0xff]  ;;  %v10351_v56 = vpack.c.bf16 %v976_v47, %v972_v46  ;;  %v10399_v62 = vpack.c.bf16 %v978_v49, %v974_v48 }
 0x192   : > { %10388 = vmatprep.subr.bf16.mxu1 %v10387_v20  ;;  %v973_v57 = vld [vmem:[#allocation6 + $0x550] sm:$0xff]  ;;  %v980_v59 = vld [vmem:[#allocation6 + $0x588] sm:$0xff]  ;;  %v714_v60 = vrot.slane %v672_v53, 7  ;;  %v717_v61 = vrot.slane %v13989_v54, 7  ;;  %v13994_v3 = vld [vmem:[%s13985_s17 + $0x10] sm:$0xff]  ;;  %v10353_v9 = vpack.c.bf16 %v975_v52, %v971_v50 }
 0x193   : > { %10342 = vmatpush1.bf16.msra.mxu0 %v10341_v26  ;;  %v977_v58 = vld [vmem:[#allocation6 + $0x570] sm:$0xff]  ;;  %v984_v63 = vld [vmem:[#allocation6 + $0x5a8] sm:$0xff]  ;;  %v982_v4 = vld [vmem:[#allocation6 + $0x598] sm:$0xff]  ;;  %v715_v8 = vrot.slane %v13994_v3, 7 }
 0x194   : > { %10344 = vmatprep.subr.bf16.mxu0 %v10343_v28  ;;  %v671_v2 = vld [vmem:[%s13985_s17] sm:$0xff]  ;;  %v986_v5 = vld [vmem:[#allocation6 + $0x5b8] sm:$0xff]  ;;  %v718_v6 = vsel %vm712_vm1, %v714_v60, %v717_v61  ;;  %763 = vst.msk [vmem:[#allocation2 + $0x8] sm:$0xfe] %vm762_vm2, %v714_v60  ;;  %v10401_v10 = vpack.c.bf16 %v977_v58, %v973_v57  ;;  %v10355_v11 = vpack.c.bf16 %v984_v63, %v980_v59  ;;  %v979_v12 = vld [vmem:[#allocation6 + $0x580] sm:$0xff] }
 0x195   : > { %10390 = vmatpush1.bf16.msra.mxu1 %v10389_v27  ;;  %v713_v7 = vrot.slane %v671_v2, 7  ;;  %766 = vst.msk [vmem:[#allocation2 + $0x18] sm:$0xff] %vm765_vm3, %v718_v6  ;;  %v983_v13 = vld [vmem:[#allocation6 + $0x5a0] sm:$0xff]  ;;  %v981_v14 = vld [vmem:[#allocation6 + $0x590] sm:$0xff]  ;;  %v10403_v16 = vpack.c.bf16 %v986_v5, %v982_v4  ;;  %v988_v18 = vld [vmem:[#allocation6 + $0x5c8] sm:$0xff] }
 0x196   : > { %10392 = vmatprep.subr.bf16.mxu1 %v10391_v32  ;;  %v985_v17 = vld [vmem:[#allocation6 + $0x5b0] sm:$0xff]  ;;  %v992_v19 = vld [vmem:[#allocation6 + $0x5e8] sm:$0xff]  ;;  %v990_v20 = vld [vmem:[#allocation6 + $0x5d8] sm:$0xff]  ;;  %v10357_v22 = vpack.c.bf16 %v983_v13, %v979_v12 }
 0x197   : > { %10346 = vmatpush1.bf16.msra.mxu0 %v10345_v38  ;;  %v14005_v15 = vsel %vm712_vm1, %v713_v7, %v715_v8  ;;  %761 = vst [vmem:[#allocation2] sm:$0xfe] %v713_v7  ;;  %v994_v21 = vld [vmem:[#allocation6 + $0x5f8] sm:$0xff]  ;;  %v987_v23 = vld [vmem:[#allocation6 + $0x5c0] sm:$0xff]  ;;  %v10405_v24 = vpack.c.bf16 %v985_v17, %v981_v14  ;;  %v10359_v25 = vpack.c.bf16 %v992_v19, %v988_v18  ;;  %v989_v27 = vld [vmem:[#allocation6 + $0x5d0] sm:$0xff] }
 0x198   : > { %10348 = vmatprep.subr.bf16.mxu0 %v10347_v40  ;;  %764 = vst [vmem:[#allocation2 + $0x10] sm:$0xff] %v14005_v15  ;;  %v991_v26 = vld [vmem:[#allocation6 + $0x5e0] sm:$0xff]  ;;  %v993_v28 = vld [vmem:[#allocation6 + $0x5f0] sm:$0xff]  ;;  %v10407_v29 = vpack.c.bf16 %v994_v21, %v990_v20  ;;  %v799_v31 = vld [vmem:[#allocation6 + $0x8] sm:$0xff]  ;;  %v1015_v40 = vrot.slane %v14005_v15, 1 }
 0x199   : > { %10394 = vmatpush1.bf16.msra.mxu1 %v10393_v39  ;;  %v803_v32 = vld [vmem:[#allocation6 + $0x28] sm:$0xff]  ;;  %v801_v35 = vld [vmem:[#allocation6 + $0x18] sm:$0xff]  ;;  %v10361_v37 = vpack.c.bf16 %v991_v26, %v987_v23  ;;  %v10409_v41 = vpack.c.bf16 %v993_v28, %v989_v27  ;;  %v802_v45 = vld [vmem:[#allocation6 + $0x20] sm:$0xff] }
 0x19a   : > { %10396 = vmatprep.subr.bf16.mxu1 %v10395_v44  ;;  %v805_v36 = vld [vmem:[#allocation6 + $0x38] sm:$0xff]  ;;  %v10411_v42 = vpack.c.bf16 %v803_v32, %v799_v31  ;;  %v798_v44 = vld [vmem:[#allocation6] sm:$0xff]  ;;  %v800_v46 = vld [vmem:[#allocation6 + $0x10] sm:$0xff] }
 0x19b   : > { %10350 = vmatpush1.bf16.msra.mxu0 %v10349_v51  ;;  %v895_v30 = vld [vmem:[#allocation2 + $0x8] sm:$0xfe]  ;;  %v10459_v48 = vpack.c.bf16 %v805_v36, %v801_v35  ;;  %v804_v49 = vld [vmem:[#allocation6 + $0x30] sm:$0xff]  ;;  %v807_v50 = vld [vmem:[#allocation6 + $0x48] sm:$0xff]  ;;  %v10413_v57 = vpack.c.bf16 %v802_v45, %v798_v44 }
 0x19c   : > { %10352 = vmatprep.subr.bf16.mxu0 %v10351_v56  ;;  %v14008_v33 = vld [vmem:[#allocation2 + $0x18] sm:$0xff]  ;;  %v1017_v34 = vrot.slane %v895_v30, 1  ;;  %v809_v52 = vld [vmem:[#allocation6 + $0x58] sm:$0xff]  ;;  %v806_v58 = vld [vmem:[#allocation6 + $0x40] sm:$0xff]  ;;  %v10461_v63 = vpack.c.bf16 %v804_v49, %v800_v46 }
 0x19d   : > { %10398 = vmatpush1.bf16.msra.mxu1 %v10397_v55  ;;  %v1018_v38 = vrot.slane %v14008_v33, 1  ;;  %v811_v51 = vld [vmem:[#allocation6 + $0x68] sm:$0xff]  ;;  %v813_v53 = vld [vmem:[#allocation6 + $0x78] sm:$0xff]  ;;  %v810_v59 = vld [vmem:[#allocation6 + $0x60] sm:$0xff] }
 0x19e   : > { %10400 = vmatprep.subr.bf16.mxu1 %v10399_v62  ;;  %v894_v39 = vld [vmem:[#allocation2] sm:$0xfe]  ;;  %v676_v55 = vld [vmem:[%s13985_s17 + $0x28] sm:$0xff]  ;;  %v10415_v2 = vpack.c.bf16 %v811_v51, %v807_v50  ;;  %v815_v5 = vld [vmem:[#allocation6 + $0x88] sm:$0xff]  ;;  %v10463_v7 = vpack.c.bf16 %v813_v53, %v809_v52  ;;  %v10417_v20 = vpack.c.bf16 %v810_v59, %v806_v58  ;;  %v1651_v58 = vrot.slane %v14008_v33, 2 }
 0x19f   : > { %10354 = vmatpush1.bf16.msra.mxu0 %v10353_v9  ;;  %v1014_v43 = vrot.slane %v894_v39, 1  ;;  %v1019_v47 = vsel %vm1013_vm4, %v1017_v34, %v1018_v38  ;;  %v808_v60 = vld [vmem:[#allocation6 + $0x50] sm:$0xff]  ;;  %v721_v62 = vrot.slane %v676_v55, 7  ;;  %v819_v9 = vld [vmem:[#allocation6 + $0xa8] sm:$0xff]  ;;  %v14025_v14 = vld [vmem:[#allocation6 + $0x80] sm:$0xff] }
 0x1a0   : > { %10356 = vmatprep.subr.bf16.mxu0 %v10355_v11  ;;  %9095 = vmatprep.mubr.msk.f32.mxu0 %vm765_vm3, %v1019_v47  ;;  %v812_v4 = vld [vmem:[#allocation6 + $0x70] sm:$0xff]  ;;  %v821_v11 = vld [vmem:[#allocation6 + $0xb8] sm:$0xff]  ;;  %v678_v19 = vld [vmem:[%s13985_s17 + $0x38] sm:$0xff] }
 0x1a1   : > { %10402 = vmatpush1.bf16.msra.mxu1 %v10401_v10  ;;  %9103 = vmatprep.mubr.msk.f32.mxu1 %vm765_vm3, %v1019_v47  ;;  %v1016_v56 = vsel %vm1013_vm4, %v1014_v43, %v1015_v40  ;;  %v675_v6 = vld [vmem:[%s13985_s17 + $0x20] sm:$0xff]  ;;  %v817_v10 = vld [vmem:[#allocation6 + $0x98] sm:$0xff]  ;;  %v722_v12 = vsel %vm712_vm1, %v717_v61, %v721_v62  ;;  %v14035_v54 = vld [vmem:[#allocation6 + $0xc8] sm:$0xff] }
 0x1a2   : > { %10404 = vmatprep.subr.bf16.mxu1 %v10403_v16  ;;  %v719_v13 = vrot.slane %v675_v6, 7  ;;  %v14027_v16 = vld [vmem:[#allocation6 + $0xa0] sm:$0xff]  ;;  %v14029_v17 = vld [vmem:[#allocation6 + $0x90] sm:$0xff]  ;;  %768 = vst.msk [vmem:[#allocation2 + $0x28] sm:$0xff] %vm765_vm3, %v722_v12  ;;  %v827_v61 = vld [vmem:[#allocation6 + $0xe8] sm:$0xff]  ;;  %v10467_v30 = vpack.c.bf16 %v821_v11, %v817_v10 }
 0x1a3   : > { %10358 = vmatpush1.bf16.msra.mxu0 %v10357_v22  ;;  %v14031_v18 = vld [vmem:[#allocation6 + $0xb0] sm:$0xff]  ;;  %v725_v22 = vrot.slane %v678_v19, 7  ;;  %v677_v23 = vld [vmem:[%s13985_s17 + $0x30] sm:$0xff]  ;;  %v14043_v26 = vld [vmem:[#allocation6 + $0xd8] sm:$0xff]  ;;  %v10423_v43 = vpack.c.bf16 %v827_v61, %v14035_v54 }
 0x1a4   : > { %10360 = vmatprep.subr.bf16.mxu0 %v10359_v25  ;;  %v14040_v21 = vsel %vm712_vm1, %v715_v8, %v719_v13  ;;  %v10419_v25 = vpack.c.bf16 %v819_v9, %v815_v5  ;;  %v829_v27 = vld [vmem:[#allocation6 + $0xf8] sm:$0xff]  ;;  %v14045_v28 = vld [vmem:[#allocation6 + $0xc0] sm:$0xff]  ;;  %v14049_v3 = vld [vmem:[#allocation6 + $0xd0] sm:$0xff] }
 0x1a5   : > { %10406 = vmatpush1.bf16.msra.mxu1 %v10405_v24  ;;  %v10465_v24 = vpack.c.bf16 %v812_v4, %v808_v60  ;;  %v14047_v31 = vld [vmem:[#allocation6 + $0xe0] sm:$0xff]  ;;  %v726_v8 = vsel %vm712_vm1, %v721_v62, %v725_v22  ;;  %v680_v32 = vld [vmem:[%s13985_s17 + $0x48] sm:$0xff]  ;;  %v14053_v34 = vld [vmem:[#allocation6 + $0xf0] sm:$0xff]  ;;  %v1020_v44 = vrot.slane %v14040_v21, 1  ;;  %v10471_v46 = vpack.c.bf16 %v829_v27, %v14043_v26 }
 0x1a6   : > { %10408 = vmatprep.subr.bf16.mxu1 %v10407_v29  ;;  %v723_v29 = vrot.slane %v677_v23, 7  ;;  %v14055_v35 = vld [vmem:[#allocation6 + $0x108] sm:$0xff]  ;;  %770 = vst.msk [vmem:[#allocation2 + $0x38] sm:$0xff] %vm765_vm3, %v726_v8  ;;  %v729_v39 = vrot.slane %v680_v32, 7  ;;  %v679_v45 = vld [vmem:[%s13985_s17 + $0x40] sm:$0xff]  ;;  %v10425_v47 = vpack.c.bf16 %v14047_v31, %v14045_v28  ;;  %v10473_v51 = vpack.c.bf16 %v14053_v34, %v14049_v3  ;;  %v14079_v53 = vld [vmem:[#allocation6 + $0x118] sm:$0xff] }
 0x1a7   : > { %10362 = vmatpush1.bf16.msra.mxu0 %v10361_v37  ;;  %v14057_v36 = vld [vmem:[#allocation6 + $0x128] sm:$0xff]  ;;  %v727_v49 = vrot.slane %v679_v45, 7  ;;  %v14081_v55 = vld [vmem:[#allocation6 + $0x138] sm:$0xff]  ;;  %v14087_v59 = vld [vmem:[#allocation6 + $0x100] sm:$0xff]  ;;  %v1021_v9 = vsel %vm1013_vm4, %v1015_v40, %v1020_v44  ;;  %v1653_v23 = vrot.slane %v14040_v21, 2 }
 0x1a8   : > { %10412 = vmatprep.subr.bf16.mxu0 %v10411_v42  ;;  %v14061_v37 = vsel %vm712_vm1, %v719_v13, %v723_v29  ;;  %v10469_v42 = vpack.c.bf16 %v14031_v18, %v14029_v17  ;;  %v682_v50 = vld [vmem:[%s13985_s17 + $0x58] sm:$0xff]  ;;  %v10427_v52 = vpack.c.bf16 %v14057_v36, %v14055_v35  ;;  %v14089_v60 = vld [vmem:[#allocation6 + $0x120] sm:$0xff]  ;;  %v14098_v6 = vld [vmem:[#allocation6 + $0x110] sm:$0xff]  ;;  %v10475_v13 = vpack.c.bf16 %v14081_v55, %v14079_v53 }
 0x1a9   : > { %10410 = vmatpush1.bf16.msra.mxu1 %v10409_v41  ;;  %v10421_v41 = vpack.c.bf16 %v14027_v16, %v14025_v14  ;;  %v681_v4 = vld [vmem:[%s13985_s17 + $0x50] sm:$0xff]  ;;  %v1657_v12 = vrot.slane %v14061_v37, 2  ;;  %v14112_v16 = vld [vmem:[#allocation6 + $0x148] sm:$0xff]  ;;  %v14118_v40 = vld [vmem:[%s13985_s17 + $0x68] sm:$0xff] }
 0x1aa   : > { %10460 = vmatprep.subr.bf16.mxu1 %v10459_v48  ;;  %1137 = vmatmul.mubr.f32.vlgmr.msra.gmra.mrb[0].mxu0 %v1016_v56  ;;  %v730_v48 = vsel %vm712_vm1, %v725_v22, %v729_v39  ;;  %v731_v11 = vrot.slane %v681_v4, 7  ;;  %v14114_v17 = vld [vmem:[#allocation6 + $0x168] sm:$0xff]  ;;  %v14130_v19 = vld [vmem:[#allocation6 + $0x158] sm:$0xff]  ;;  %v737_v22 = vrot.slane %v14118_v40, 7  ;;  %v14151_v28 = vld [vmem:[%s13985_s17 + $0x60] sm:$0xff] }
 0x1ab   : > { %10414 = vmatpush1.bf16.msra.mxu0 %v10413_v57  ;;  %772 = vst.msk [vmem:[#allocation2 + $0x48] sm:$0xff] %vm765_vm3, %v730_v48  ;;  %v733_v57 = vrot.slane %v682_v50, 7  ;;  %v14156_v31 = vld [vmem:[#allocation6 + $0x150] sm:$0xff]  ;;  %v735_v34 = vrot.slane %v14151_v28, 7  ;;  %v14168_v35 = vsel %vm1646_vm5, %v1653_v23, %v1657_v12  ;;  %v10431_v36 = vpack.c.bf16 %v14114_v17, %v14112_v16  ;;  %v851_v45 = vld [vmem:[#allocation6 + $0x1a8] sm:$0xff]  ;;  %v853_v53 = vld [vmem:[#allocation6 + $0x1b8] sm:$0xff] }
 0x1ac   : > { %1250 = vmatmul.mubr.f32.vlgmr.msra.gmra.mrb[0].mxu1 %v1016_v56  ;;  %10416 = vmatprep.subr.bf16.mxu0 %v10415_v2  ;;  %v14083_v56 = vld [vmem:[#allocation2 + $0x28] sm:$0xff]  ;;  %v14094_v2 = vsel %vm712_vm1, %v723_v29, %v727_v49  ;;  %v14137_v61 = vsel %vm712_vm1, %v727_v49, %v731_v11  ;;  %v14158_v3 = vld [vmem:[#allocation6 + $0x170] sm:$0xff]  ;;  %v855_v40 = vld [vmem:[#allocation6 + $0x1c8] sm:$0xff] }
 0x1ad   : > { %10462 = vmatpush1.bf16.msra.mxu1 %v10461_v63  ;;  %v1022_v62 = vrot.slane %v14083_v56, 1  ;;  %v1024_v63 = vrot.slane %v14061_v37, 1  ;;  %v1655_v5 = vrot.slane %v14083_v56, 2  ;;  %v734_v10 = vsel %vm712_vm1, %v729_v39, %v733_v57  ;;  %v14134_v54 = vld [vmem:[#allocation2 + $0x38] sm:$0xff]  ;;  %v852_v17 = vld [vmem:[#allocation6 + $0x1b0] sm:$0xff] }
 0x1ae   : > { %10464 = vmatprep.subr.bf16.mxu1 %v10463_v7  ;;  %v14100_v7 = vld [vmem:[#allocation6 + $0x130] sm:$0xff]  ;;  %774 = vst.msk [vmem:[#allocation2 + $0x58] sm:$0xff] %vm765_vm3, %v734_v10  ;;  %v1026_v26 = vrot.slane %v14134_v54, 1  ;;  %v1659_v29 = vrot.slane %v14134_v54, 2  ;;  %v1028_v8 = vrot.slane %v14094_v2, 1  ;;  %v738_v32 = vsel %vm712_vm1, %v733_v57, %v737_v22  ;;  %v685_v57 = vld [vmem:[%s13985_s17 + $0x70] sm:$0xff] }
 0x1af   : > { %10418 = vmatpush1.bf16.msra.mxu0 %v10417_v20  ;;  %v1023_v14 = vsel %vm1013_vm4, %v1018_v38, %v1022_v62  ;;  %v14125_v18 = vsel %vm1646_vm5, %v1651_v58, %v1655_v5  ;;  %v10429_v38 = vpack.c.bf16 %v14089_v60, %v14087_v59  ;;  %v14132_v20 = vld [vmem:[#allocation6 + $0x178] sm:$0xff]  ;;  %v1025_v27 = vsel %vm1013_vm4, %v1020_v44, %v1024_v63  ;;  %v847_v44 = vld [vmem:[#allocation6 + $0x188] sm:$0xff]  ;;  %v14199_v60 = vld [vmem:[#allocation6 + $0x180] sm:$0xff] }
 0x1b0   : > { %10420 = vmatprep.subr.bf16.mxu0 %v10419_v25  ;;  %9096 = vmatprep.mubr.msk.f32.mxu0 %vm765_vm3, %v1023_v14  ;;  %v14144_v25 = vld [vmem:[#allocation6 + $0x140] sm:$0xff]  ;;  %v10479_v39 = vpack.c.bf16 %v14132_v20, %v14130_v19  ;;  %776 = vst.msk [vmem:[#allocation2 + $0x68] sm:$0xff] %vm765_vm3, %v738_v32  ;;  %v1661_v49 = vrot.slane %v14094_v2, 2  ;;  %v1032_v55 = vrot.slane %v14137_v61, 1  ;;  %v14197_v59 = vsel %vm1646_vm5, %v1655_v5, %v1659_v29 }
 0x1b1   : > { %10466 = vmatpush1.bf16.msra.mxu1 %v10465_v24  ;;  %v10477_v24 = vpack.c.bf16 %v14100_v7, %v14098_v6  ;;  %9104 = vmatprep.mubr.msk.f32.mxu1 %vm765_vm3, %v1023_v14  ;;  %v1029_v6 = vsel %vm1013_vm4, %v1024_v63, %v1028_v8  ;;  %v739_v5 = vrot.slane %v685_v57, 7  ;;  %v10435_v10 = vpack.c.bf16 %v851_v45, %v847_v44  ;;  %v865_v57 = vld [vmem:[#allocation6 + $0x218] sm:$0xff] }
 0x1b2   : > { %10468 = vmatprep.subr.bf16.mxu1 %v10467_v30  ;;  %1143 = vmatmul.mubr.f32.gmra.mrb[2].mxu0 %v1021_v9  ;;  %v14154_v30 = vld [vmem:[#allocation6 + $0x160] sm:$0xff]  ;;  %v1665_v63 = vrot.slane %v14137_v61, 2  ;;  %v14226_v20 = vsel %vm1646_vm5, %v1657_v12, %v1661_v49  ;;  %v1033_v28 = vsel %vm1013_vm4, %v1028_v8, %v1032_v55 }
 0x1b3   : > { %10422 = vmatpush1.bf16.msra.mxu0 %v10421_v41  ;;  %1256 = vmatmul.mubr.f32.gmra.mrb[2].mxu1 %v1021_v9  ;;  %v1027_v41 = vsel %vm1013_vm4, %v1022_v62, %v1026_v26  ;;  %v10433_v50 = vpack.c.bf16 %v14154_v30, %v14144_v25  ;;  %v14201_v62 = vld [vmem:[#allocation6 + $0x1a0] sm:$0xff]  ;;  %v14221_v19 = vsel %vm712_vm1, %v735_v34, %v739_v5  ;;  %v857_v25 = vld [vmem:[#allocation6 + $0x1d8] sm:$0xff] }
 0x1b4   : > { %10424 = vmatprep.subr.bf16.mxu0 %v10423_v43  ;;  %v686_v43 = vld [vmem:[%s13985_s17 + $0x78] sm:$0xff]  ;;  %9097 = vmatprep.mubr.msk.f32.mxu0 %vm765_vm3, %v1027_v41  ;;  %779 = vst [vmem:[#allocation2 + $0x80] sm:$0x1] %v739_v5  ;;  %v854_v12 = vld [vmem:[#allocation6 + $0x1c0] sm:$0xff]  ;;  %v14253_v44 = vsel %vm1646_vm5, %v1661_v49, %v1665_v63  ;;  %v869_v49 = vld [vmem:[#allocation6 + $0x238] sm:$0xff] }
 0x1b5   : > { %10470 = vmatpush1.bf16.msra.mxu1 %v10469_v42  ;;  %v14175_v42 = vld [vmem:[#allocation2 + $0x48] sm:$0xff]  ;;  %v741_v48 = vrot.slane %v686_v43, 7  ;;  %9105 = vmatprep.mubr.msk.f32.mxu1 %vm765_vm3, %v1027_v41  ;;  %v14209_v7 = vld [vmem:[#allocation2 + $0x58] sm:$0xff]  ;;  %v858_v30 = vld [vmem:[#allocation6 + $0x1e0] sm:$0xff] }
 0x1b6   : > { %10472 = vmatprep.subr.bf16.mxu1 %v10471_v46  ;;  %v1030_v46 = vrot.slane %v14175_v42, 1  ;;  %1149 = vmatmul.mubr.f32.gmra.mrb[4].mxu0 %v1025_v27  ;;  %v1663_v14 = vrot.slane %v14175_v42, 2  ;;  %v856_v41 = vld [vmem:[#allocation6 + $0x1d0] sm:$0xff] }
 0x1b7   : > { %10426 = vmatpush1.bf16.msra.mxu0 %v10425_v47  ;;  %v14182_v47 = vsel %vm712_vm1, %v731_v11, %v735_v34  ;;  %1262 = vmatmul.mubr.f32.gmra.mrb[4].mxu1 %v1025_v27  ;;  %v742_v9 = vsel %vm712_vm1, %v737_v22, %v741_v48  ;;  %781 = vst.msk [vmem:[#allocation2 + $0x88] sm:$0x1] %vm780_vm6, %v741_v48  ;;  %v14213_v11 = vld [vmem:[#allocation6 + $0x190] sm:$0xff]  ;;  %v1667_v22 = vrot.slane %v14209_v7, 2  ;;  %v867_v48 = vld [vmem:[#allocation6 + $0x228] sm:$0xff] }
 0x1b8   : > { %10428 = vmatprep.subr.bf16.mxu0 %v10427_v52  ;;  %v849_v52 = vld [vmem:[#allocation6 + $0x198] sm:$0xff]  ;;  %v1031_v4 = vsel %vm1013_vm4, %v1026_v26, %v1030_v46  ;;  %778 = vst.msk [vmem:[#allocation2 + $0x78] sm:$0xff] %vm765_vm3, %v742_v9  ;;  %v14244_v32 = vsel %vm1646_vm5, %v1659_v29, %v1663_v14  ;;  %v10485_v8 = vpack.c.bf16 %v852_v17, %v14213_v11  ;;  %v860_v29 = vld [vmem:[#allocation6 + $0x1f0] sm:$0xff]  ;;  %v1040_v9 = vrot.slane %v14221_v19, 1 }
 0x1b9   : > { %10474 = vmatpush1.bf16.msra.mxu1 %v10473_v51  ;;  %v10481_v51 = vpack.c.bf16 %v14158_v3, %v14156_v31  ;;  %v10483_v16 = vpack.c.bf16 %v853_v53, %v849_v52  ;;  %9098 = vmatprep.mubr.msk.f32.mxu0 %vm765_vm3, %v1031_v4  ;;  %v861_v26 = vld [vmem:[#allocation6 + $0x1f8] sm:$0xff]  ;;  %v1036_v3 = vrot.slane %v14182_v47, 1  ;;  %v14247_v34 = vsel %vm1646_vm5, %v1663_v14, %v1667_v22 }
 0x1ba   : > { %10476 = vmatprep.subr.bf16.mxu1 %v10475_v13  ;;  %v1034_v13 = vrot.slane %v14209_v7, 1  ;;  %9106 = vmatprep.mubr.msk.f32.mxu1 %vm765_vm3, %v1031_v4  ;;  %v14238_v31 = vld [vmem:[#allocation2 + $0x68] sm:$0xff]  ;;  %v10487_v45 = vpack.c.bf16 %v861_v26, %v857_v25  ;;  %v1673_v52 = vrot.slane %v14221_v19, 2  ;;  %v10441_v53 = vpack.c.bf16 %v858_v30, %v854_v12  ;;  %v875_v25 = vld [vmem:[#allocation6 + $0x268] sm:$0xff] }
 0x1bb   : > { %10430 = vmatpush1.bf16.msra.mxu0 %v10429_v38  ;;  %v859_v38 = vld [vmem:[#allocation6 + $0x1e8] sm:$0xff]  ;;  %1268 = vmatmul.mubr.f32.gmra.mrb[6].mxu1 %v1029_v6  ;;  %v1038_v43 = vrot.slane %v14238_v31, 1  ;;  %v1037_v4 = vsel %vm1013_vm4, %v1032_v55, %v1036_v3  ;;  %v896_v17 = vld [vmem:[#allocation2 + $0x80] sm:$0x1]  ;;  %v873_v26 = vld [vmem:[#allocation6 + $0x258] sm:$0xff] }
 0x1bc   : > { %10432 = vmatprep.subr.bf16.mxu0 %v10431_v36  ;;  %1155 = vmatmul.mubr.f32.gmra.mrb[6].mxu0 %v1029_v6  ;;  %v1035_v27 = vsel %vm1013_vm4, %v1030_v46, %v1034_v13  ;;  %v1669_v36 = vrot.slane %v14182_v47, 2  ;;  %v863_v46 = vld [vmem:[#allocation6 + $0x208] sm:$0xff] }
 0x1bd   : > { %10478 = vmatpush1.bf16.msra.mxu1 %v10477_v24  ;;  %v10437_v24 = vpack.c.bf16 %v14201_v62, %v14199_v60  ;;  %9099 = vmatprep.mubr.msk.f32.mxu0 %vm765_vm3, %v1035_v27  ;;  %v1039_v60 = vsel %vm1013_vm4, %v1034_v13, %v1038_v43  ;;  %v862_v62 = vld [vmem:[#allocation6 + $0x200] sm:$0xff]  ;;  %v10489_v13 = vpack.c.bf16 %v860_v29, %v856_v41 }
 0x1be   : > { %10480 = vmatprep.subr.bf16.mxu1 %v10479_v39  ;;  %v10439_v39 = vpack.c.bf16 %v859_v38, %v855_v40  ;;  %9107 = vmatprep.mubr.msk.f32.mxu1 %vm765_vm3, %v1035_v27  ;;  %v897_v5 = vld [vmem:[#allocation2 + $0x88] sm:$0x1]  ;;  %v14275_v11 = vsel %vm1646_vm5, %v1669_v36, %v1673_v52  ;;  %v10443_v14 = vpack.c.bf16 %v867_v48, %v863_v46  ;;  %v874_v29 = vld [vmem:[#allocation6 + $0x260] sm:$0xff]  ;;  %v872_v46 = vld [vmem:[#allocation6 + $0x250] sm:$0xff] }
 0x1bf   : > { %10434 = vmatpush1.bf16.msra.mxu0 %v10433_v50  ;;  %v1671_v50 = vrot.slane %v14238_v31, 2  ;;  %1274 = vmatmul.mubr.f32.gmra.mrb[8].mxu1 %v1033_v28  ;;  %v14266_v6 = vld [vmem:[#allocation2 + $0x78] sm:$0xff]  ;;  %v10491_v38 = vpack.c.bf16 %v869_v49, %v865_v57  ;;  %v877_v27 = vld [vmem:[#allocation6 + $0x278] sm:$0xff]  ;;  %v1046_v12 = vrot.slane %v897_v5, 1 }
 0x1c0   : > { %10436 = vmatprep.subr.bf16.mxu0 %v10435_v10  ;;  %1161 = vmatmul.mubr.f32.gmra.mrb[8].mxu0 %v1033_v28  ;;  %v1042_v55 = vrot.slane %v14266_v6, 1  ;;  %v1675_v40 = vrot.slane %v14266_v6, 2  ;;  %v879_v57 = vld [vmem:[#allocation6 + $0x288] sm:$0xff]  ;;  %v881_v49 = vld [vmem:[#allocation6 + $0x298] sm:$0xff] }
 0x1c1   : > { %10482 = vmatpush1.bf16.msra.mxu1 %v10481_v51  ;;  %v14258_v51 = vsel %vm1646_vm5, %v1665_v63, %v1669_v36  ;;  %v14270_v10 = vsel %vm1646_vm5, %v1667_v22, %v1671_v50  ;;  %v866_v63 = vld [vmem:[#allocation6 + $0x220] sm:$0xff]  ;;  %v868_v22 = vld [vmem:[#allocation6 + $0x230] sm:$0xff]  ;;  %9100 = vmatprep.mubr.msk.f32.mxu0 %vm765_vm3, %v1039_v60  ;;  %v1041_v36 = vsel %vm1013_vm4, %v1036_v3, %v1040_v9  ;;  %v883_v3 = vld [vmem:[#allocation6 + $0x2a8] sm:$0xff] }
 0x1c2   : > { %10484 = vmatprep.subr.bf16.mxu1 %v10483_v16  ;;  %v864_v16 = vld [vmem:[#allocation6 + $0x210] sm:$0xff]  ;;  %9108 = vmatprep.mubr.msk.f32.mxu1 %vm765_vm3, %v1039_v60  ;;  %v1043_v28 = vsel %vm1013_vm4, %v1038_v43, %v1042_v55  ;;  %v10445_v30 = vpack.c.bf16 %v866_v63, %v862_v62  ;;  %v14286_v48 = vsel %vm1646_vm5, %v1671_v50, %v1675_v40  ;;  %v885_v60 = vld [vmem:[#allocation6 + $0x2b8] sm:$0xff]  ;;  %v882_v63 = vld [vmem:[#allocation6 + $0x2a0] sm:$0xff] }
 0x1c3   : > { %10438 = vmatpush1.bf16.msra.mxu0 %v10437_v24  ;;  %v871_v24 = vld [vmem:[#allocation6 + $0x248] sm:$0xff]  ;;  %1280 = vmatmul.mubr.f32.gmra.mrb[10].mxu1 %v1037_v4  ;;  %v10495_v43 = vpack.c.bf16 %v877_v27, %v873_v26  ;;  %v1047_v62 = vsel %vm1013_vm4, %v1042_v55, %v1046_v12  ;;  %v889_v55 = vld [vmem:[#allocation6 + $0x2d8] sm:$0xff]  ;;  %v886_v12 = vld [vmem:[#allocation6 + $0x2c0] sm:$0xff] }
 0x1c4   : > { %10440 = vmatprep.subr.bf16.mxu0 %v10439_v39  ;;  %1167 = vmatmul.mubr.f32.gmra.mrb[10].mxu0 %v1037_v4  ;;  %v10493_v39 = vpack.c.bf16 %v868_v22, %v864_v16  ;;  %v10447_v41 = vpack.c.bf16 %v875_v25, %v871_v24  ;;  %v880_v16 = vld [vmem:[#allocation6 + $0x290] sm:$0xff]  ;;  %v887_v22 = vld [vmem:[#allocation6 + $0x2c8] sm:$0xff]  ;;  %v893_v25 = vld [vmem:[#allocation6 + $0x2f8] sm:$0xff] }
 0x1c5   : > { %10486 = vmatpush1.bf16.msra.mxu1 %v10485_v8  ;;  %v1044_v8 = vrot.slane %v896_v17, 1  ;;  %9101 = vmatprep.mubr.msk.f32.mxu0 %vm765_vm3, %v1043_v28  ;;  %v10499_v17 = vpack.c.bf16 %v885_v60, %v881_v49  ;;  %v891_v24 = vld [vmem:[#allocation6 + $0x2e8] sm:$0xff]  ;;  %v1550_v49 = vld [vmem:[#allocation6 + $0x620] sm:$0xff]  ;;  %v1548_v60 = vld [vmem:[#allocation6 + $0x610] sm:$0xff] }
 0x1c6   : > { %10488 = vmatprep.subr.bf16.mxu1 %v10487_v45  ;;  %v870_v45 = vld [vmem:[#allocation6 + $0x240] sm:$0xff]  ;;  %9109 = vmatprep.mubr.msk.f32.mxu1 %vm765_vm3, %v1043_v28  ;;  %v10455_v28 = vpack.c.bf16 %v891_v24, %v887_v22 }
 0x1c7   : > { %10442 = vmatpush1.bf16.msra.mxu0 %v10441_v53  ;;  %v876_v53 = vld [vmem:[#allocation6 + $0x270] sm:$0xff]  ;;  %v10449_v4 = vpack.c.bf16 %v874_v29, %v870_v45  ;;  %1286 = vmatmul.mubr.f32.gmra.mrb[12].mxu1 %v1041_v36  ;;  %v1045_v50 = vsel %vm1013_vm4, %v1040_v9, %v1044_v8  ;;  %v783_v9 = vld [vmem:[#allocation2 + $0x8] sm:$0xff]  ;;  %v10503_v8 = vpack.c.bf16 %v893_v25, %v889_v55  ;;  %v1551_v45 = vld [vmem:[#allocation6 + $0x628] sm:$0xff] }
 0x1c8   : > { %10444 = vmatprep.subr.bf16.mxu0 %v10443_v14  ;;  %1173 = vmatmul.mubr.f32.gmra.mrb[12].mxu0 %v1041_v36  ;;  %v10497_v5 = vpack.c.bf16 %v876_v53, %v872_v46  ;;  %v878_v14 = vld [vmem:[#allocation6 + $0x280] sm:$0xff]  ;;  %v888_v36 = vld [vmem:[#allocation6 + $0x2d0] sm:$0xff]  ;;  %v1549_v29 = vld [vmem:[#allocation6 + $0x618] sm:$0xff] }
 0x1c9   : > { %10490 = vmatpush1.bf16.msra.mxu1 %v10489_v13  ;;  %v10451_v13 = vpack.c.bf16 %v883_v3, %v879_v57  ;;  %9102 = vmatprep.mubr.msk.f32.mxu0 %vm765_vm3, %v1047_v62  ;;  %v10453_v26 = vpack.c.bf16 %v882_v63, %v878_v14  ;;  %v1553_v46 = vld [vmem:[#allocation6 + $0x638] sm:$0xff]  ;;  %v1546_v3 = vld [vmem:[#allocation6 + $0x600] sm:$0xff]  ;;  %v782_v63 = vld [vmem:[#allocation2] sm:$0xff] }
 0x1ca   : > { %10492 = vmatprep.subr.bf16.mxu1 %v10491_v38  ;;  %v884_v38 = vld [vmem:[#allocation6 + $0x2b0] sm:$0xff]  ;;  %9110 = vmatprep.mubr.msk.f32.mxu1 %vm765_vm3, %v1047_v62  ;;  %v10555_v62 = vpack.c.bf16 %v1553_v46, %v1549_v29  ;;  %v1561_v14 = vld [vmem:[#allocation6 + $0x678] sm:$0xff]  ;;  %v1554_v22 = vld [vmem:[#allocation6 + $0x640] sm:$0xff] }
 0x1cb   : > { %10446 = vmatpush1.bf16.msra.mxu0 %v10445_v30  ;;  %1292 = vmatmul.mubr.f32.gmra.mrb[14].mxu1 %v1045_v50  ;;  %v10501_v27 = vpack.c.bf16 %v884_v38, %v880_v16  ;;  %v890_v30 = vld [vmem:[#allocation6 + $0x2e0] sm:$0xff]  ;;  %v10509_v16 = vpack.c.bf16 %v1550_v49, %v1546_v3  ;;  %v1556_v55 = vld [vmem:[#allocation6 + $0x650] sm:$0xff]  ;;  %v1577_v3 = vld [vmem:[#allocation6 + $0x6f8] sm:$0xff] }
 0x1cc   : > { %10448 = vmatprep.subr.bf16.mxu0 %v10447_v41  ;;  %1179 = vmatmul.mubr.f32.gmra.mrb[14].mxu0 %v1045_v50  ;;  %v1547_v41 = vld [vmem:[#allocation6 + $0x608] sm:$0xff]  ;;  %v1558_v24 = vld [vmem:[#allocation6 + $0x660] sm:$0xff]  ;;  %v1568_v46 = vld [vmem:[#allocation6 + $0x6b0] sm:$0xff] }
 0x1cd   : > { %10494 = vmatpush1.bf16.msra.mxu1 %v10493_v39  ;;  %v892_v39 = vld [vmem:[#allocation6 + $0x2f0] sm:$0xff]  ;;  %9111 = vmatprep.mubr.msk.f32.mxu0 %vm765_vm3, %v783_v9  ;;  %v10507_v57 = vpack.c.bf16 %v1551_v45, %v1547_v41  ;;  %v1555_v50 = vld [vmem:[#allocation6 + $0x648] sm:$0xff]  ;;  %v1566_v41 = vld [vmem:[#allocation6 + $0x6a0] sm:$0xff] }
 0x1ce   : > { %10496 = vmatprep.subr.bf16.mxu1 %v10495_v43  ;;  %9119 = vmatprep.mubr.msk.f32.mxu1 %vm765_vm3, %v783_v9  ;;  %v10457_v43 = vpack.c.bf16 %v890_v30, %v886_v12  ;;  %v10505_v53 = vpack.c.bf16 %v892_v39, %v888_v36  ;;  %v1560_v9 = vld [vmem:[#allocation6 + $0x670] sm:$0xff]  ;;  %v1569_v12 = vld [vmem:[#allocation6 + $0x6b8] sm:$0xff]  ;;  %v10513_v30 = vpack.c.bf16 %v1558_v24, %v1554_v22  ;;  %v1562_v39 = vld [vmem:[#allocation6 + $0x680] sm:$0xff] }
 0x1cf   : > { %10450 = vmatpush1.bf16.msra.mxu0 %v10449_v4  ;;  %v1552_v4 = vld [vmem:[#allocation6 + $0x630] sm:$0xff]  ;;  %v10561_v36 = vpack.c.bf16 %v1560_v9, %v1556_v55  ;;  %v10517_v49 = vpack.c.bf16 %v1566_v41, %v1562_v39  ;;  %v1578_v55 = vld [vmem:[#allocation6 + $0x700] sm:$0xff] }
 0x1d0   : > { %10452 = vmatprep.subr.bf16.mxu0 %v10451_v13  ;;  %v1557_v13 = vld [vmem:[#allocation6 + $0x658] sm:$0xff]  ;;  %v1564_v45 = vld [vmem:[#allocation6 + $0x690] sm:$0xff]  ;;  %v1586_v41 = vld [vmem:[#allocation6 + $0x740] sm:$0xff] }
 0x1d1   : > { %10498 = vmatpush1.bf16.msra.mxu1 %v10497_v5  ;;  %v1559_v5 = vld [vmem:[#allocation6 + $0x668] sm:$0xff]  ;;  %v10559_v25 = vpack.c.bf16 %v1561_v14, %v1557_v13  ;;  %v1576_v14 = vld [vmem:[#allocation6 + $0x6f0] sm:$0xff] }
 0x1d2   : > { %10500 = vmatprep.subr.bf16.mxu1 %v10499_v17  ;;  %v10557_v17 = vpack.c.bf16 %v1552_v4, %v1548_v60  ;;  %v10511_v38 = vpack.c.bf16 %v1559_v5, %v1555_v50  ;;  %v10565_v60 = vpack.c.bf16 %v1568_v46, %v1564_v45  ;;  %v1570_v4 = vld [vmem:[#allocation6 + $0x6c0] sm:$0xff]  ;;  %v1572_v5 = vld [vmem:[#allocation6 + $0x6d0] sm:$0xff] }
 0x1d3   : > { %10454 = vmatpush1.bf16.msra.mxu0 %v10453_v26  ;;  %v1563_v26 = vld [vmem:[#allocation6 + $0x688] sm:$0xff]  ;;  %v1574_v50 = vld [vmem:[#allocation6 + $0x6e0] sm:$0xff]  ;;  %v10569_v22 = vpack.c.bf16 %v1576_v14, %v1572_v5  ;;  %v1580_v9 = vld [vmem:[#allocation6 + $0x710] sm:$0xff] }
 0x1d4   : > { %10456 = vmatprep.subr.bf16.mxu0 %v10455_v28  ;;  %v1565_v28 = vld [vmem:[#allocation6 + $0x698] sm:$0xff]  ;;  %v1590_v45 = vld [vmem:[#allocation6 + $0x760] sm:$0xff]  ;;  %v1603_v14 = vld [vmem:[#allocation6 + $0x7c8] sm:$0xff] }
 0x1d5   : > { %10502 = vmatpush1.bf16.msra.mxu1 %v10501_v27  ;;  %v1567_v27 = vld [vmem:[#allocation6 + $0x6a8] sm:$0xff]  ;;  %v10563_v29 = vpack.c.bf16 %v1569_v12, %v1565_v28 }
 0x1d6   : > { %10504 = vmatprep.subr.bf16.mxu1 %v10503_v8  ;;  %v10515_v8 = vpack.c.bf16 %v1567_v27, %v1563_v26  ;;  %v1584_v27 = vld [vmem:[#allocation6 + $0x730] sm:$0xff]  ;;  %v1587_v28 = vld [vmem:[#allocation6 + $0x748] sm:$0xff] }
 0x1d7   : > { %10458 = vmatpush1.bf16.msra.mxu0 %v10457_v43  ;;  %v1571_v43 = vld [vmem:[#allocation6 + $0x6c8] sm:$0xff] }
 0x1d8   : > { %10508 = vmatprep.subr.bf16.mxu0 %v10507_v57  ;;  %v1573_v57 = vld [vmem:[#allocation6 + $0x6d8] sm:$0xff]  ;;  %v1591_v12 = vld [vmem:[#allocation6 + $0x768] sm:$0xff] }
 0x1d9   : > { %10506 = vmatpush1.bf16.msra.mxu1 %v10505_v53  ;;  %v1575_v53 = vld [vmem:[#allocation6 + $0x6e8] sm:$0xff]  ;;  %v10567_v13 = vpack.c.bf16 %v1577_v3, %v1573_v57  ;;  %v10527_v39 = vpack.c.bf16 %v1591_v12, %v1587_v28  ;;  %v1601_v3 = vld [vmem:[#allocation6 + $0x7b8] sm:$0xff] }
 0x1da   : > { %10556 = vmatprep.subr.bf16.mxu1 %v10555_v62  ;;  %1380 = vmatmul.mubr.f32.vlgmr.msra.gmra.mrb[0].mxu0 %v782_v63  ;;  %v10519_v62 = vpack.c.bf16 %v1575_v53, %v1571_v43  ;;  %v1592_v43 = vld [vmem:[#allocation6 + $0x770] sm:$0xff]  ;;  %v1595_v53 = vld [vmem:[#allocation6 + $0x788] sm:$0xff]  ;;  %v1617_v28 = vld [vmem:[#allocation6 + $0x838] sm:$0xff] }
 0x1db   : > { %10510 = vmatpush1.bf16.msra.mxu0 %v10509_v16  ;;  %9112 = vmatprep.mubr.msk.f32.mxu0 %vm765_vm3, %v14008_v33  ;;  %v1583_v16 = vld [vmem:[#allocation6 + $0x728] sm:$0xff] }
 0x1dc   : > { %1493 = vmatmul.mubr.f32.vlgmr.msra.gmra.mrb[0].mxu1 %v782_v63  ;;  %10512 = vmatprep.subr.bf16.mxu0 %v10511_v38  ;;  %v1579_v63 = vld [vmem:[#allocation6 + $0x708] sm:$0xff]  ;;  %v1585_v38 = vld [vmem:[#allocation6 + $0x738] sm:$0xff] }
 0x1dd   : > { %10558 = vmatpush1.bf16.msra.mxu1 %v10557_v17  ;;  %9120 = vmatprep.mubr.msk.f32.mxu1 %vm765_vm3, %v14008_v33  ;;  %v1581_v17 = vld [vmem:[#allocation6 + $0x718] sm:$0xff]  ;;  %v10523_v24 = vpack.c.bf16 %v1583_v16, %v1579_v63  ;;  %v1599_v57 = vld [vmem:[#allocation6 + $0x7a8] sm:$0xff] }
 0x1de   : > { %10560 = vmatprep.subr.bf16.mxu1 %v10559_v25  ;;  %1386 = vmatmul.mubr.f32.gmra.mrb[2].mxu0 %v14005_v15  ;;  %v1582_v25 = vld [vmem:[#allocation6 + $0x720] sm:$0xff]  ;;  %v10571_v26 = vpack.c.bf16 %v1585_v38, %v1581_v17  ;;  %v1607_v63 = vld [vmem:[#allocation6 + $0x7e8] sm:$0xff]  ;;  %v1609_v16 = vld [vmem:[#allocation6 + $0x7f8] sm:$0xff] }
 0x1df   : > { %10514 = vmatpush1.bf16.msra.mxu0 %v10513_v30  ;;  %9113 = vmatprep.mubr.msk.f32.mxu0 %vm765_vm3, %v14083_v56  ;;  %v1593_v30 = vld [vmem:[#allocation6 + $0x778] sm:$0xff] }
 0x1e0   : > { %1499 = vmatmul.mubr.f32.gmra.mrb[2].mxu1 %v14005_v15  ;;  %10516 = vmatprep.subr.bf16.mxu0 %v10515_v8  ;;  %v10521_v15 = vpack.c.bf16 %v1574_v50, %v1570_v4  ;;  %v10573_v8 = vpack.c.bf16 %v1584_v27, %v1580_v9  ;;  %v1598_v4 = vld [vmem:[#allocation6 + $0x7a0] sm:$0xff]  ;;  %v1596_v50 = vld [vmem:[#allocation6 + $0x790] sm:$0xff]  ;;  %v1542_v17 = vld [vmem:[#allocation2 + $0x8] sm:$0xfc] }
 0x1e1   : > { %10562 = vmatpush1.bf16.msra.mxu1 %v10561_v36  ;;  %9121 = vmatprep.mubr.msk.f32.mxu1 %vm765_vm3, %v14083_v56  ;;  %v1589_v56 = vld [vmem:[#allocation6 + $0x758] sm:$0xff]  ;;  %v10525_v36 = vpack.c.bf16 %v1582_v25, %v1578_v55  ;;  %v1604_v55 = vld [vmem:[#allocation6 + $0x7d0] sm:$0xff]  ;;  %v1615_v27 = vld [vmem:[#allocation6 + $0x828] sm:$0xff] }
 0x1e2   : > { %10564 = vmatprep.subr.bf16.mxu1 %v10563_v29  ;;  %1392 = vmatmul.mubr.f32.gmra.mrb[4].mxu0 %v14040_v21  ;;  %v1588_v29 = vld [vmem:[#allocation6 + $0x750] sm:$0xff]  ;;  %v10575_v46 = vpack.c.bf16 %v1593_v30, %v1589_v56  ;;  %v1629_v33 = vld [vmem:[#allocation6 + $0x898] sm:$0xff] }
 0x1e3   : > { %10518 = vmatpush1.bf16.msra.mxu0 %v10517_v49  ;;  %9114 = vmatprep.mubr.msk.f32.mxu0 %vm765_vm3, %v14134_v54  ;;  %v10577_v49 = vpack.c.bf16 %v1592_v43, %v1588_v29  ;;  %v1608_v9 = vld [vmem:[#allocation6 + $0x7f0] sm:$0xff]  ;;  %v1619_v29 = vld [vmem:[#allocation6 + $0x848] sm:$0xff]  ;;  %v1625_v43 = vld [vmem:[#allocation6 + $0x878] sm:$0xff] }
 0x1e4   : > { %1505 = vmatmul.mubr.f32.gmra.mrb[4].mxu1 %v14040_v21  ;;  %10520 = vmatprep.subr.bf16.mxu0 %v10519_v62  ;;  %v1594_v62 = vld [vmem:[#allocation6 + $0x780] sm:$0xff]  ;;  %v10585_v56 = vpack.c.bf16 %v1608_v9, %v1604_v55 }
 0x1e5   : > { %10566 = vmatpush1.bf16.msra.mxu1 %v10565_v60  ;;  %9122 = vmatprep.mubr.msk.f32.mxu1 %vm765_vm3, %v14134_v54  ;;  %v1597_v54 = vld [vmem:[#allocation6 + $0x798] sm:$0xff]  ;;  %v10531_v60 = vpack.c.bf16 %v1599_v57, %v1595_v53  ;;  %v3842_v21 = vld [vmem:[#allocation11 + $0x10a0] sm:$0xff] }
 0x1e6   : > { %10568 = vmatprep.subr.bf16.mxu1 %v10567_v13  ;;  %1398 = vmatmul.mubr.f32.gmra.mrb[6].mxu0 %v14061_v37  ;;  %v10579_v5 = vpack.c.bf16 %v1601_v3, %v1597_v54  ;;  %v1600_v13 = vld [vmem:[#allocation6 + $0x7b0] sm:$0xff]  ;;  %v1618_v3 = vld [vmem:[#allocation6 + $0x840] sm:$0xff] }
 0x1e7   : > { %10522 = vmatpush1.bf16.msra.mxu0 %v10521_v15  ;;  %9115 = vmatprep.mubr.msk.f32.mxu0 %vm765_vm3, %v14175_v42  ;;  %v10581_v38 = vpack.c.bf16 %v1600_v13, %v1596_v50  ;;  %v10535_v15 = vpack.c.bf16 %v1607_v63, %v1603_v14  ;;  %v1631_v50 = vld [vmem:[#allocation6 + $0x8a8] sm:$0xff]  ;;  %v1626_v63 = vld [vmem:[#allocation6 + $0x880] sm:$0xff] }
 0x1e8   : > { %1511 = vmatmul.mubr.f32.gmra.mrb[6].mxu1 %v14061_v37  ;;  %10524 = vmatprep.subr.bf16.mxu0 %v10523_v24  ;;  %v10529_v37 = vpack.c.bf16 %v1590_v45, %v1586_v41  ;;  %v1606_v24 = vld [vmem:[#allocation6 + $0x7e0] sm:$0xff]  ;;  %v1616_v45 = vld [vmem:[#allocation6 + $0x830] sm:$0xff] }
 0x1e9   : > { %10570 = vmatpush1.bf16.msra.mxu1 %v10569_v22  ;;  %9123 = vmatprep.mubr.msk.f32.mxu1 %vm765_vm3, %v14175_v42  ;;  %v1605_v42 = vld [vmem:[#allocation6 + $0x7d8] sm:$0xff]  ;;  %v1602_v22 = vld [vmem:[#allocation6 + $0x7c0] sm:$0xff] }
 0x1ea   : > { %10572 = vmatprep.subr.bf16.mxu1 %v10571_v26  ;;  %1404 = vmatmul.mubr.f32.gmra.mrb[8].mxu0 %v14094_v2  ;;  %v10583_v25 = vpack.c.bf16 %v1609_v16, %v1605_v42  ;;  %v1611_v26 = vld [vmem:[#allocation6 + $0x808] sm:$0xff]  ;;  %v10537_v12 = vpack.c.bf16 %v1606_v24, %v1602_v22  ;;  %v1630_v42 = vld [vmem:[#allocation6 + $0x8a0] sm:$0xff]  ;;  %v1628_v16 = vld [vmem:[#allocation6 + $0x890] sm:$0xff] }
 0x1eb   : > { %10526 = vmatpush1.bf16.msra.mxu0 %v10525_v36  ;;  %9116 = vmatprep.mubr.msk.f32.mxu0 %vm765_vm3, %v14209_v7  ;;  %v10539_v30 = vpack.c.bf16 %v1615_v27, %v1611_v26  ;;  %v1610_v36 = vld [vmem:[#allocation6 + $0x800] sm:$0xff]  ;;  %v1637_v22 = vld [vmem:[#allocation6 + $0x8d8] sm:$0xff]  ;;  %v10549_v55 = vpack.c.bf16 %v1630_v42, %v1626_v63  ;;  %v2534_v42 = vld [vmem:[#allocation11 + $0x888] sm:$0xff] }
 0x1ec   : > { %1517 = vmatmul.mubr.f32.gmra.mrb[8].mxu1 %v14094_v2  ;;  %10528 = vmatprep.subr.bf16.mxu0 %v10527_v39  ;;  %v10533_v2 = vpack.c.bf16 %v1598_v4, %v1594_v62  ;;  %v1612_v39 = vld [vmem:[#allocation6 + $0x810] sm:$0xff]  ;;  %v1627_v4 = vld [vmem:[#allocation6 + $0x888] sm:$0xff]  ;;  %v1641_v24 = vld [vmem:[#allocation6 + $0x8f8] sm:$0xff] }
 0x1ed   : > { %10574 = vmatpush1.bf16.msra.mxu1 %v10573_v8  ;;  %9124 = vmatprep.mubr.msk.f32.mxu1 %vm765_vm3, %v14209_v7  ;;  %v1613_v7 = vld [vmem:[#allocation6 + $0x818] sm:$0xff]  ;;  %v1614_v8 = vld [vmem:[#allocation6 + $0x820] sm:$0xff]  ;;  %v10589_v57 = vpack.c.bf16 %v1616_v45, %v1612_v39  ;;  %v1624_v62 = vld [vmem:[#allocation6 + $0x870] sm:$0xff]  ;;  %v10547_v14 = vpack.c.bf16 %v1631_v50, %v1627_v4 }
 0x1ee   : > { %10576 = vmatprep.subr.bf16.mxu1 %v10575_v46  ;;  %1410 = vmatmul.mubr.f32.gmra.mrb[10].mxu0 %v14137_v61  ;;  %v10587_v41 = vpack.c.bf16 %v1617_v28, %v1613_v7  ;;  %v1623_v46 = vld [vmem:[#allocation6 + $0x868] sm:$0xff]  ;;  %v10541_v53 = vpack.c.bf16 %v1614_v8, %v1610_v36  ;;  %v1638_v27 = vld [vmem:[#allocation6 + $0x8e0] sm:$0xff]  ;;  %v1636_v7 = vld [vmem:[#allocation6 + $0x8d0] sm:$0xff] }
 0x1ef   : > { %10530 = vmatpush1.bf16.msra.mxu0 %v10529_v37  ;;  %9117 = vmatprep.mubr.msk.f32.mxu0 %vm765_vm3, %v14238_v31  ;;  %v10543_v54 = vpack.c.bf16 %v1623_v46, %v1619_v29  ;;  %v1622_v37 = vld [vmem:[#allocation6 + $0x860] sm:$0xff]  ;;  %v1541_v28 = vld [vmem:[#allocation2] sm:$0xfc] }
 0x1f0   : > { %1523 = vmatmul.mubr.f32.gmra.mrb[10].mxu1 %v14137_v61  ;;  %10532 = vmatprep.subr.bf16.mxu0 %v10531_v60  ;;  %v1650_v61 = vrot.slane %v1542_v17, 2  ;;  %v1632_v17 = vld [vmem:[#allocation6 + $0x8b0] sm:$0xff]  ;;  %v13021_v45 = vld [vmem:[#allocation2 + $0x10] sm:$0xff] }
 0x1f1   : > { %10578 = vmatpush1.bf16.msra.mxu1 %v10577_v49  ;;  %9125 = vmatprep.mubr.msk.f32.mxu1 %vm765_vm3, %v14238_v31  ;;  %v1621_v31 = vld [vmem:[#allocation6 + $0x858] sm:$0xff]  ;;  %v1620_v49 = vld [vmem:[#allocation6 + $0x850] sm:$0xff]  ;;  %v10597_v9 = vpack.c.bf16 %v1632_v17, %v1628_v16  ;;  %v1648_v29 = vrot.slane %v13021_v45, 2  ;;  %v3834_v63 = vld [vmem:[#allocation11 + $0x1060] sm:$0xff] }
 0x1f2   : > { %10580 = vmatprep.subr.bf16.mxu1 %v10579_v5  ;;  %1416 = vmatmul.mubr.f32.gmra.mrb[12].mxu0 %v14182_v47  ;;  %v10591_v60 = vpack.c.bf16 %v1625_v43, %v1621_v31  ;;  %v10545_v5 = vpack.c.bf16 %v1622_v37, %v1618_v3  ;;  %v10593_v13 = vpack.c.bf16 %v1624_v62, %v1620_v49  ;;  %v2518_v36 = vld [vmem:[#allocation11 + $0x808] sm:$0xff] }
 0x1f3   : > { %10534 = vmatpush1.bf16.msra.mxu0 %v10533_v2  ;;  %9118 = vmatprep.mubr.msk.f32.mxu0 %vm765_vm3, %v14266_v6  ;;  %v2522_v8 = vld [vmem:[#allocation11 + $0x828] sm:$0xff] }
 0x1f4   : > { %1529 = vmatmul.mubr.f32.gmra.mrb[12].mxu1 %v14182_v47  ;;  %10536 = vmatprep.subr.bf16.mxu0 %v10535_v15  ;;  %v1652_v47 = vsel %vm1646_vm5, %v1650_v61, %v1651_v58  ;;  %v1633_v58 = vld [vmem:[#allocation6 + $0x8b8] sm:$0xff]  ;;  %v1639_v15 = vld [vmem:[#allocation6 + $0x8e8] sm:$0xff]  ;;  %v10599_v61 = vpack.c.bf16 %v1641_v24, %v1637_v22  ;;  %v10603_v43 = vpack.c.bf16 %v2522_v8, %v2518_v36 }
 0x1f5   : > { %10582 = vmatpush1.bf16.msra.mxu1 %v10581_v38  ;;  %9126 = vmatprep.mubr.msk.f32.mxu1 %vm765_vm3, %v14266_v6  ;;  %v10595_v2 = vpack.c.bf16 %v1633_v58, %v1629_v33  ;;  %v1635_v38 = vld [vmem:[#allocation6 + $0x8c8] sm:$0xff] }
 0x1f6   : > { %10584 = vmatprep.subr.bf16.mxu1 %v10583_v25  ;;  %1422 = vmatmul.mubr.f32.gmra.mrb[14].mxu0 %v14221_v19  ;;  %v1634_v25 = vld [vmem:[#allocation6 + $0x8c0] sm:$0xff]  ;;  %v10551_v26 = vpack.c.bf16 %v1639_v15, %v1635_v38  ;;  %v2526_v3 = vld [vmem:[#allocation11 + $0x848] sm:$0xff] }
 0x1f7   : > { %10538 = vmatpush1.bf16.msra.mxu0 %v10537_v12  ;;  %9127 = vmatprep.mubr.msk.f32.mxu0 %vm765_vm3, %v1652_v47  ;;  %v1640_v12 = vld [vmem:[#allocation6 + $0x8f0] sm:$0xff]  ;;  %v10553_v39 = vpack.c.bf16 %v1638_v27, %v1634_v25  ;;  %v2525_v58 = vld [vmem:[#allocation11 + $0x840] sm:$0xff] }
 0x1f8   : > { %1535 = vmatmul.mubr.f32.gmra.mrb[14].mxu1 %v14221_v19  ;;  %10540 = vmatprep.subr.bf16.mxu0 %v10539_v30  ;;  %v3827_v30 = vld [vmem:[#allocation11 + $0x1028] sm:$0xff]  ;;  %v10601_v46 = vpack.c.bf16 %v1640_v12, %v1636_v7  ;;  %v2537_v25 = vld [vmem:[#allocation11 + $0x8a0] sm:$0xff] }
 0x1f9   : > { %10586 = vmatpush1.bf16.msra.mxu1 %v10585_v56  ;;  %9135 = vmatprep.mubr.msk.f32.mxu1 %vm765_vm3, %v1652_v47  ;;  %v3823_v56 = vld [vmem:[#allocation11 + $0x1008] sm:$0xff]  ;;  %v2517_v47 = vld [vmem:[#allocation11 + $0x800] sm:$0xff] }
 0x1fa   : > { %10588 = vmatprep.subr.bf16.mxu1 %v10587_v41  ;;  %v1647_v41 = vrot.slane %v1541_v28, 2  ;;  %v11115_v31 = vpack.c.bf16 %v3827_v30, %v3823_v56  ;;  %v2530_v37 = vld [vmem:[#allocation11 + $0x868] sm:$0xff]  ;;  %v2541_v56 = vld [vmem:[#allocation11 + $0x8c0] sm:$0xff] }
 0x1fb   : > { %10542 = vmatpush1.bf16.msra.mxu0 %v10541_v53  ;;  %v2521_v53 = vld [vmem:[#allocation11 + $0x820] sm:$0xff]  ;;  %v3835_v62 = vld [vmem:[#allocation11 + $0x1068] sm:$0xff]  ;;  %v10607_v33 = vpack.c.bf16 %v2530_v37, %v2526_v3 }
 0x1fc   : > { %10544 = vmatprep.subr.bf16.mxu0 %v10543_v54  ;;  %v3826_v54 = vld [vmem:[#allocation11 + $0x1020] sm:$0xff]  ;;  %v1649_v49 = vsel %vm1646_vm5, %v1647_v41, %v1648_v29  ;;  %v10605_v4 = vpack.c.bf16 %v2521_v53, %v2517_v47  ;;  %v2538_v16 = vld [vmem:[#allocation11 + $0x8a8] sm:$0xff] }
 0x1fd   : > { %10590 = vmatpush1.bf16.msra.mxu1 %v10589_v57  ;;  %v3822_v57 = vld [vmem:[#allocation11 + $0x1000] sm:$0xff]  ;;  %v3839_v17 = vld [vmem:[#allocation11 + $0x1088] sm:$0xff]  ;;  %v10611_v24 = vpack.c.bf16 %v2538_v16, %v2534_v42 }
 0x1fe   : > { %10592 = vmatprep.subr.bf16.mxu1 %v10591_v60  ;;  %v3831_v60 = vld [vmem:[#allocation11 + $0x1048] sm:$0xff]  ;;  %v11117_v50 = vpack.c.bf16 %v3826_v54, %v3822_v57  ;;  %v2545_v30 = vld [vmem:[#allocation11 + $0x8e0] sm:$0xff] }
 0x1ff   : > { %10546 = vmatpush1.bf16.msra.mxu0 %v10545_v5  ;;  %v2529_v5 = vld [vmem:[#allocation11 + $0x860] sm:$0xff]  ;;  %v3843_v38 = vld [vmem:[#allocation11 + $0x10a8] sm:$0xff] }
 0x200   : > { %10548 = vmatprep.subr.bf16.mxu0 %v10547_v14  ;;  %v11119_v14 = vpack.c.bf16 %v3835_v62, %v3831_v60  ;;  %v10609_v15 = vpack.c.bf16 %v2529_v5, %v2525_v58  ;;  %v2542_v27 = vld [vmem:[#allocation11 + $0x8c8] sm:$0xff]  ;;  %v3846_v36 = vld [vmem:[#allocation11 + $0x10c0] sm:$0xff]  ;;  %v1544_v60 = vld [vmem:[#allocation2 + $0x88] sm:$0x3] }
 0x201   : > { %10594 = vmatpush1.bf16.msra.mxu1 %v10593_v13  ;;  %v3830_v13 = vld [vmem:[#allocation11 + $0x1040] sm:$0xff]  ;;  %v3851_v7 = vld [vmem:[#allocation11 + $0x10e8] sm:$0xff]  ;;  %v1679_v16 = vrot.slane %v1544_v60, 2 }
 0x202   : > { %10596 = vmatprep.subr.bf16.mxu1 %v10595_v2  ;;  %v1654_v2 = vsel %vm1646_vm5, %v1648_v29, %v1653_v23  ;;  %v11121_v22 = vpack.c.bf16 %v3834_v63, %v3830_v13  ;;  %v2546_v23 = vld [vmem:[#allocation11 + $0x8e8] sm:$0xff]  ;;  %v2549_v47 = vld [vmem:[#allocation11 + $0x900] sm:$0xff] }
 0x203   : > { %10550 = vmatpush1.bf16.msra.mxu0 %v10549_v55  ;;  %v2533_v55 = vld [vmem:[#allocation11 + $0x880] sm:$0xff]  ;;  %v10615_v12 = vpack.c.bf16 %v2546_v23, %v2542_v27  ;;  %v2550_v41 = vld [vmem:[#allocation11 + $0x908] sm:$0xff]  ;;  %v1680_v23 = vsel %vm1646_vm5, %v1675_v40, %v1679_v16 }
 0x204   : > { %10552 = vmatprep.subr.bf16.mxu0 %v10551_v26  ;;  %v11123_v26 = vpack.c.bf16 %v3843_v38, %v3839_v17  ;;  %v10613_v28 = vpack.c.bf16 %v2537_v25, %v2533_v55  ;;  %v2554_v45 = vld [vmem:[#allocation11 + $0x928] sm:$0xff]  ;;  %v2553_v53 = vld [vmem:[#allocation11 + $0x920] sm:$0xff] }
 0x205   : > { %10598 = vmatpush1.bf16.msra.mxu1 %v10597_v9  ;;  %v3838_v9 = vld [vmem:[#allocation11 + $0x1080] sm:$0xff]  ;;  %v3859_v29 = vld [vmem:[#allocation11 + $0x1128] sm:$0xff]  ;;  %v10621_v62 = vpack.c.bf16 %v2553_v53, %v2549_v47 }
 0x206   : > { %10600 = vmatprep.subr.bf16.mxu1 %v10599_v61  ;;  %v11125_v61 = vpack.c.bf16 %v3842_v21, %v3838_v9  ;;  %v3854_v57 = vld [vmem:[#allocation11 + $0x1100] sm:$0xff]  ;;  %v2558_v3 = vld [vmem:[#allocation11 + $0x948] sm:$0xff] }
 0x207   : > { %10554 = vmatpush1.bf16.msra.mxu0 %v10553_v39  ;;  %v3850_v39 = vld [vmem:[#allocation11 + $0x10e0] sm:$0xff]  ;;  %v2562_v37 = vld [vmem:[#allocation11 + $0x968] sm:$0xff] }
 0x208   : > { %11116 = vmatprep.subr.bf16.mxu0 %v11115_v31  ;;  %v11129_v31 = vpack.c.bf16 %v3850_v39, %v3846_v36  ;;  %v3858_v54 = vld [vmem:[#allocation11 + $0x1120] sm:$0xff]  ;;  %v2570_v63 = vld [vmem:[#allocation11 + $0x9a8] sm:$0xff] }
 0x209   : > { %10602 = vmatpush1.bf16.msra.mxu1 %v10601_v46  ;;  %v10617_v46 = vpack.c.bf16 %v2545_v30, %v2541_v56  ;;  %v2561_v58 = vld [vmem:[#allocation11 + $0x960] sm:$0xff]  ;;  %v3875_v42 = vld [vmem:[#allocation11 + $0x11a8] sm:$0xff] }
 0x20a   : > { %10604 = vmatprep.subr.bf16.mxu1 %v10603_v43  ;;  %1770 = vmatmul.mubr.f32.vlgmr.msra.gmra.mrb[0].mxu0 %v1649_v49  ;;  %v10619_v43 = vpack.c.bf16 %v2554_v45, %v2550_v41  ;;  %v3862_v5 = vld [vmem:[#allocation11 + $0x1140] sm:$0xff]  ;;  %v2574_v9 = vld [vmem:[#allocation11 + $0x9c8] sm:$0xff] }
 0x20b   : > { %9128 = vmatprep.mubr.msk.f32.mxu0 %vm765_vm3, %v14125_v18  ;;  %11118 = vmatpush1.bf16.msra.mxu0 %v11117_v50  ;;  %v10623_v50 = vpack.c.bf16 %v2562_v37, %v2558_v3  ;;  %v3866_v13 = vld [vmem:[#allocation11 + $0x1160] sm:$0xff]  ;;  %v3879_v21 = vld [vmem:[#allocation11 + $0x11c8] sm:$0xff] }
 0x20c   : > { %1883 = vmatmul.mubr.f32.vlgmr.msra.gmra.mrb[0].mxu1 %v1649_v49  ;;  %11120 = vmatprep.subr.bf16.mxu0 %v11119_v14  ;;  %v3867_v49 = vld [vmem:[#allocation11 + $0x1168] sm:$0xff]  ;;  %v11137_v38 = vpack.c.bf16 %v3866_v13, %v3862_v5  ;;  %v3870_v55 = vld [vmem:[#allocation11 + $0x1180] sm:$0xff] }
 0x20d   : > { %9136 = vmatprep.mubr.msk.f32.mxu1 %vm765_vm3, %v14125_v18  ;;  %10606 = vmatpush1.bf16.msra.mxu1 %v10605_v4  ;;  %v3847_v18 = vld [vmem:[#allocation11 + $0x10c8] sm:$0xff]  ;;  %v11133_v4 = vpack.c.bf16 %v3858_v54, %v3854_v57  ;;  %v3874_v25 = vld [vmem:[#allocation11 + $0x11a0] sm:$0xff] }
 0x20e   : > { %10608 = vmatprep.subr.bf16.mxu1 %v10607_v33  ;;  %1776 = vmatmul.mubr.f32.gmra.mrb[2].mxu0 %v1654_v2  ;;  %v11127_v8 = vpack.c.bf16 %v3851_v7, %v3847_v18  ;;  %v2557_v33 = vld [vmem:[#allocation11 + $0x940] sm:$0xff]  ;;  %v2566_v14 = vld [vmem:[#allocation11 + $0x988] sm:$0xff]  ;;  %v11141_v7 = vpack.c.bf16 %v3874_v25, %v3870_v55 }
 0x20f   : > { %9129 = vmatprep.mubr.msk.f32.mxu0 %vm765_vm3, %v14197_v59  ;;  %11122 = vmatpush1.bf16.msra.mxu0 %v11121_v22  ;;  %v10625_v17 = vpack.c.bf16 %v2561_v58, %v2557_v33  ;;  %v2565_v22 = vld [vmem:[#allocation11 + $0x980] sm:$0xff]  ;;  %v3883_v27 = vld [vmem:[#allocation11 + $0x11e8] sm:$0xff] }
 0x210   : > { %1889 = vmatmul.mubr.f32.gmra.mrb[2].mxu1 %v1654_v2  ;;  %11124 = vmatprep.subr.bf16.mxu0 %v11123_v26  ;;  %v1543_v2 = vld [vmem:[#allocation2 + $0x80] sm:$0x3]  ;;  %v11143_v56 = vpack.c.bf16 %v3883_v27, %v3879_v21  ;;  %v3882_v30 = vld [vmem:[#allocation11 + $0x11e0] sm:$0xff] }
 0x211   : > { %9137 = vmatprep.mubr.msk.f32.mxu1 %vm765_vm3, %v14197_v59  ;;  %10610 = vmatpush1.bf16.msra.mxu1 %v10609_v15  ;;  %v3855_v59 = vld [vmem:[#allocation11 + $0x1108] sm:$0xff]  ;;  %v10627_v15 = vpack.c.bf16 %v2570_v63, %v2566_v14  ;;  %v2589_v54 = vld [vmem:[#allocation11 + $0xa40] sm:$0xff] }
 0x212   : > { %10612 = vmatprep.subr.bf16.mxu1 %v10611_v24  ;;  %1782 = vmatmul.mubr.f32.gmra.mrb[4].mxu0 %v14168_v35  ;;  %v2569_v24 = vld [vmem:[#allocation11 + $0x9a0] sm:$0xff]  ;;  %v2578_v26 = vld [vmem:[#allocation11 + $0x9e8] sm:$0xff] }
 0x213   : > { %9130 = vmatprep.mubr.msk.f32.mxu0 %vm765_vm3, %v14244_v32  ;;  %11126 = vmatpush1.bf16.msra.mxu0 %v11125_v61  ;;  %v10629_v18 = vpack.c.bf16 %v2569_v24, %v2565_v22  ;;  %v2577_v61 = vld [vmem:[#allocation11 + $0x9e0] sm:$0xff]  ;;  %v2582_v36 = vld [vmem:[#allocation11 + $0xa08] sm:$0xff] }
 0x214   : > { %1895 = vmatmul.mubr.f32.gmra.mrb[4].mxu1 %v14168_v35  ;;  %11128 = vmatprep.subr.bf16.mxu0 %v11127_v8  ;;  %v11131_v35 = vpack.c.bf16 %v3859_v29, %v3855_v59  ;;  %v3887_v40 = vld [vmem:[#allocation11 + $0x1208] sm:$0xff]  ;;  %v2581_v59 = vld [vmem:[#allocation11 + $0xa00] sm:$0xff] }
 0x215   : > { %9138 = vmatprep.mubr.msk.f32.mxu1 %vm765_vm3, %v14244_v32  ;;  %10614 = vmatpush1.bf16.msra.mxu1 %v10613_v28  ;;  %v3863_v32 = vld [vmem:[#allocation11 + $0x1148] sm:$0xff]  ;;  %v10631_v28 = vpack.c.bf16 %v2578_v26, %v2574_v9  ;;  %v2585_v29 = vld [vmem:[#allocation11 + $0xa20] sm:$0xff] }
 0x216   : > { %10616 = vmatprep.subr.bf16.mxu1 %v10615_v12  ;;  %1788 = vmatmul.mubr.f32.gmra.mrb[6].mxu0 %v14226_v20  ;;  %v3878_v12 = vld [vmem:[#allocation11 + $0x11c0] sm:$0xff]  ;;  %v3891_v8 = vld [vmem:[#allocation11 + $0x1228] sm:$0xff]  ;;  %v10637_v53 = vpack.c.bf16 %v2585_v29, %v2581_v59 }
 0x217   : > { %9131 = vmatprep.mubr.msk.f32.mxu0 %vm765_vm3, %v14247_v34  ;;  %11130 = vmatpush1.bf16.msra.mxu0 %v11129_v31  ;;  %v11145_v41 = vpack.c.bf16 %v3882_v30, %v3878_v12  ;;  %v3890_v31 = vld [vmem:[#allocation11 + $0x1220] sm:$0xff]  ;;  %v2590_v19 = vld [vmem:[#allocation11 + $0xa48] sm:$0xff] }
 0x218   : > { %1901 = vmatmul.mubr.f32.gmra.mrb[6].mxu1 %v14226_v20  ;;  %11132 = vmatprep.subr.bf16.mxu0 %v11131_v35  ;;  %v11135_v20 = vpack.c.bf16 %v3867_v49, %v3863_v32  ;;  %v3899_v47 = vld [vmem:[#allocation11 + $0x1268] sm:$0xff]  ;;  %v2593_v3 = vld [vmem:[#allocation11 + $0xa60] sm:$0xff] }
 0x219   : > { %9139 = vmatprep.mubr.msk.f32.mxu1 %vm765_vm3, %v14247_v34  ;;  %10618 = vmatpush1.bf16.msra.mxu1 %v10617_v46  ;;  %v3871_v34 = vld [vmem:[#allocation11 + $0x1188] sm:$0xff]  ;;  %v3886_v46 = vld [vmem:[#allocation11 + $0x1200] sm:$0xff]  ;;  %v10641_v60 = vpack.c.bf16 %v2593_v3, %v2589_v54 }
 0x21a   : > { %10620 = vmatprep.subr.bf16.mxu1 %v10619_v43  ;;  %1794 = vmatmul.mubr.f32.gmra.mrb[8].mxu0 %v14253_v44  ;;  %v2594_v43 = vld [vmem:[#allocation11 + $0xa68] sm:$0xff]  ;;  %v11149_v57 = vpack.c.bf16 %v3890_v31, %v3886_v46  ;;  %v3894_v32 = vld [vmem:[#allocation11 + $0x1240] sm:$0xff] }
 0x21b   : > { %9132 = vmatprep.mubr.msk.f32.mxu0 %vm765_vm3, %v14270_v10  ;;  %11134 = vmatpush1.bf16.msra.mxu0 %v11133_v4  ;;  %v10639_v35 = vpack.c.bf16 %v2594_v43, %v2590_v19  ;;  %v3898_v49 = vld [vmem:[#allocation11 + $0x1260] sm:$0xff]  ;;  %v2598_v4 = vld [vmem:[#allocation11 + $0xa88] sm:$0xff] }
 0x21c   : > { %1907 = vmatmul.mubr.f32.gmra.mrb[8].mxu1 %v14253_v44  ;;  %11136 = vmatprep.subr.bf16.mxu0 %v11135_v20  ;;  %v11139_v44 = vpack.c.bf16 %v3875_v42, %v3871_v34  ;;  %v3903_v33 = vld [vmem:[#allocation11 + $0x1288] sm:$0xff]  ;;  %v2597_v20 = vld [vmem:[#allocation11 + $0xa80] sm:$0xff] }
 0x21d   : > { %9140 = vmatprep.mubr.msk.f32.mxu1 %vm765_vm3, %v14270_v10  ;;  %10622 = vmatpush1.bf16.msra.mxu1 %v10621_v62  ;;  %v1677_v10 = vrot.slane %v1543_v2, 2  ;;  %v11153_v62 = vpack.c.bf16 %v3898_v49, %v3894_v32  ;;  %v3907_v5 = vld [vmem:[#allocation11 + $0x12a8] sm:$0xff]  ;;  %v2601_v13 = vld [vmem:[#allocation11 + $0xaa0] sm:$0xff] }
 0x21e   : > { %10624 = vmatprep.subr.bf16.mxu1 %v10623_v50  ;;  %1800 = vmatmul.mubr.f32.gmra.mrb[10].mxu0 %v14258_v51  ;;  %v2602_v50 = vld [vmem:[#allocation11 + $0xaa8] sm:$0xff]  ;;  %v11155_v14 = vpack.c.bf16 %v3907_v5, %v3903_v33  ;;  %v10645_v63 = vpack.c.bf16 %v2601_v13, %v2597_v20  ;;  %v3902_v34 = vld [vmem:[#allocation11 + $0x1280] sm:$0xff] }
 0x21f   : > { %9133 = vmatprep.mubr.msk.f32.mxu0 %vm765_vm3, %v14286_v48  ;;  %11138 = vmatpush1.bf16.msra.mxu0 %v11137_v38  ;;  %v1678_v6 = vsel %vm1646_vm5, %v1673_v52, %v1677_v10  ;;  %v3895_v52 = vld [vmem:[#allocation11 + $0x1248] sm:$0xff]  ;;  %v10643_v58 = vpack.c.bf16 %v2602_v50, %v2598_v4  ;;  %v3906_v42 = vld [vmem:[#allocation11 + $0x12a0] sm:$0xff] }
 0x220   : > { %1913 = vmatmul.mubr.f32.gmra.mrb[10].mxu1 %v14258_v51  ;;  %v2573_v51 = vld [vmem:[#allocation11 + $0x9c0] sm:$0xff]  ;;  %11140 = vmatprep.subr.bf16.mxu0 %v11139_v44  ;;  %v11151_v37 = vpack.c.bf16 %v3899_v47, %v3895_v52  ;;  %v11157_v16 = vpack.c.bf16 %v3906_v42, %v3902_v34  ;;  %v2606_v2 = vld [vmem:[#allocation11 + $0xac8] sm:$0xff] }
 0x221   : > { %9141 = vmatprep.mubr.msk.f32.mxu1 %vm765_vm3, %v14286_v48  ;;  %10626 = vmatpush1.bf16.msra.mxu1 %v10625_v17  ;;  %v2586_v48 = vld [vmem:[#allocation11 + $0xa28] sm:$0xff]  ;;  %v10633_v39 = vpack.c.bf16 %v2577_v61, %v2573_v51  ;;  %v2605_v24 = vld [vmem:[#allocation11 + $0xac0] sm:$0xff] }
 0x222   : > { %10628 = vmatprep.subr.bf16.mxu1 %v10627_v15  ;;  %1806 = vmatmul.mubr.f32.gmra.mrb[12].mxu0 %v14275_v11  ;;  %v10635_v45 = vpack.c.bf16 %v2586_v48, %v2582_v36  ;;  %v2610_v17 = vld [vmem:[#allocation11 + $0xae8] sm:$0xff]  ;;  %v2609_v55 = vld [vmem:[#allocation11 + $0xae0] sm:$0xff] }
 0x223   : > { %9134 = vmatprep.mubr.msk.f32.mxu0 %vm765_vm3, %v1680_v23  ;;  %11142 = vmatpush1.bf16.msra.mxu0 %v11141_v7  ;;  %v3911_v38 = vld [vmem:[#allocation11 + $0x12c8] sm:$0xff]  ;;  %v10647_v15 = vpack.c.bf16 %v2610_v17, %v2606_v2  ;;  %v10649_v25 = vpack.c.bf16 %v2609_v55, %v2605_v24  ;;  %v3910_v9 = vld [vmem:[#allocation11 + $0x12c0] sm:$0xff]  ;;  %v1963_v55 = vld [vmem:[#allocation9] sm:$0xf] }
 0x224   : > { %1919 = vmatmul.mubr.f32.gmra.mrb[12].mxu1 %v14275_v11  ;;  %11144 = vmatprep.subr.bf16.mxu0 %v11143_v56  ;;  %v11147_v11 = vpack.c.bf16 %v3891_v8, %v3887_v40  ;;  %v3915_v22 = vld [vmem:[#allocation11 + $0x12e8] sm:$0xff]  ;;  %v3914_v26 = vld [vmem:[#allocation11 + $0x12e0] sm:$0xff] }
 0x225   : > { %9142 = vmatprep.mubr.msk.f32.mxu1 %vm765_vm3, %v1680_v23  ;;  %10630 = vmatpush1.bf16.msra.mxu1 %v10629_v18  ;;  %v11159_v44 = vpack.c.bf16 %v3915_v22, %v3911_v38  ;;  %v11161_v10 = vpack.c.bf16 %v3914_v26, %v3910_v9  ;;  %v2614_v21 = vld [vmem:[#allocation11 + $0xb08] sm:$0xff]  ;;  %v2617_v51 = vld [vmem:[#allocation11 + $0xb20] sm:$0xff]  ;;  %v14393_v22 = vshrl.u32 %v16567_v0, 7 }
 0x226   : > { %10632 = vmatprep.subr.bf16.mxu1 %v10631_v28  ;;  %1812 = vmatmul.mubr.f32.gmra.mrb[14].mxu0 %v1678_v6  ;;  %v2618_v27 = vld [vmem:[#allocation11 + $0xb28] sm:$0xff]  ;;  %v2613_v28 = vld [vmem:[#allocation11 + $0xb00] sm:$0xff] }
 0x227   : > { %11146 = vmatpush1.bf16.msra.mxu0 %v11145_v41  ;;  %v3919_v23 = vld [vmem:[#allocation11 + $0x1308] sm:$0xff]  ;;  %v10651_v18 = vpack.c.bf16 %v2618_v27, %v2614_v21  ;;  %v10653_v12 = vpack.c.bf16 %v2617_v51, %v2613_v28  ;;  %v3918_v56 = vld [vmem:[#allocation11 + $0x1300] sm:$0xff]  ;;  %16648 = vst [vmem:[#allocation44_spill] sm:$0xff] %v14393_v22  ;;  %v14396_v24 = vsub.s32 0, %v14393_v22  ;;  %v16568_v9 = vsub.s32 3, %v14393_v22 }
 0x228   : > { %1925 = vmatmul.mubr.f32.gmra.mrb[14].mxu1 %v1678_v6  ;;  %11148 = vmatprep.subr.bf16.mxu0 %v11147_v11  ;;  %v3923_v7 = vld [vmem:[#allocation11 + $0x1328] sm:$0xff]  ;;  %v3922_v30 = vld [vmem:[#allocation11 + $0x1320] sm:$0xff] }
 0x229   : > { %10634 = vmatpush1.bf16.msra.mxu1 %v10633_v39  ;;  %v11163_v61 = vpack.c.bf16 %v3923_v7, %v3919_v23  ;;  %v11165_v36 = vpack.c.bf16 %v3922_v30, %v3918_v56  ;;  %v2622_v48 = vld [vmem:[#allocation11 + $0xb48] sm:$0xff]  ;;  %v2621_v41 = vld [vmem:[#allocation11 + $0xb40] sm:$0xff]  ;;  %16649 = vst [vmem:[#allocation45_spill] sm:$0xff] %v14396_v24  ;;  %v14404_v26 = vrot.slane %v1963_v55, %v14396_v24 }
 0x22a   : > { %10636 = vmatprep.subr.bf16.mxu1 %v10635_v45  ;;  %v2626_v6 = vld [vmem:[#allocation11 + $0xb68] sm:$0xff]  ;;  %v2625_v45 = vld [vmem:[#allocation11 + $0xb60] sm:$0xff]  ;;  %v14425_v51 = vrot.slane %v1963_v55, %v16568_v9 }
 0x22b   : > { %11150 = vmatpush1.bf16.msra.mxu0 %v11149_v57  ;;  %v3927_v40 = vld [vmem:[#allocation11 + $0x1348] sm:$0xff]  ;;  %v10655_v8 = vpack.c.bf16 %v2626_v6, %v2622_v48  ;;  %v10657_v29 = vpack.c.bf16 %v2625_v45, %v2621_v41  ;;  %v3926_v46 = vld [vmem:[#allocation11 + $0x1340] sm:$0xff] }
 0x22c   : > { %11152 = vmatprep.subr.bf16.mxu0 %v11151_v37  ;;  %v3931_v39 = vld [vmem:[#allocation11 + $0x1368] sm:$0xff]  ;;  %v3930_v11 = vld [vmem:[#allocation11 + $0x1360] sm:$0xff] }
 0x22d   : > { %10638 = vmatpush1.bf16.msra.mxu1 %v10637_v53  ;;  %v11167_v59 = vpack.c.bf16 %v3931_v39, %v3927_v40  ;;  %v11169_v31 = vpack.c.bf16 %v3930_v11, %v3926_v46  ;;  %v2630_v19 = vld [vmem:[#allocation11 + $0xb88] sm:$0xff]  ;;  %v2629_v57 = vld [vmem:[#allocation11 + $0xb80] sm:$0xff] }
 0x22e   : > { %10640 = vmatprep.subr.bf16.mxu1 %v10639_v35  ;;  %v2634_v43 = vld [vmem:[#allocation11 + $0xba8] sm:$0xff]  ;;  %v2633_v35 = vld [vmem:[#allocation11 + $0xba0] sm:$0xff] }
 0x22f   : > { %11154 = vmatpush1.bf16.msra.mxu0 %v11153_v62  ;;  %v3935_v52 = vld [vmem:[#allocation11 + $0x1388] sm:$0xff]  ;;  %v10659_v47 = vpack.c.bf16 %v2634_v43, %v2630_v19  ;;  %v10661_v3 = vpack.c.bf16 %v2633_v35, %v2629_v57  ;;  %v3934_v37 = vld [vmem:[#allocation11 + $0x1380] sm:$0xff] }
 0x230   : > { %11156 = vmatprep.subr.bf16.mxu0 %v11155_v14  ;;  %v3939_v53 = vld [vmem:[#allocation11 + $0x13a8] sm:$0xff]  ;;  %v3938_v32 = vld [vmem:[#allocation11 + $0x13a0] sm:$0xff] }
 0x231   : > { %10642 = vmatpush1.bf16.msra.mxu1 %v10641_v60  ;;  %v11171_v54 = vpack.c.bf16 %v3939_v53, %v3935_v52  ;;  %v11173_v49 = vpack.c.bf16 %v3938_v32, %v3934_v37  ;;  %v2638_v60 = vld [vmem:[#allocation11 + $0xbc8] sm:$0xff]  ;;  %v2641_v5 = vld [vmem:[#allocation11 + $0xbe0] sm:$0xff] }
 0x232   : > { %10644 = vmatprep.subr.bf16.mxu1 %v10643_v58  ;;  %v2642_v62 = vld [vmem:[#allocation11 + $0xbe8] sm:$0xff]  ;;  %v2637_v58 = vld [vmem:[#allocation11 + $0xbc0] sm:$0xff] }
 0x233   : > { %11158 = vmatpush1.bf16.msra.mxu0 %v11157_v16  ;;  %v3943_v4 = vld [vmem:[#allocation11 + $0x13c8] sm:$0xff]  ;;  %v10663_v50 = vpack.c.bf16 %v2642_v62, %v2638_v60  ;;  %v10665_v13 = vpack.c.bf16 %v2641_v5, %v2637_v58  ;;  %v3942_v14 = vld [vmem:[#allocation11 + $0x13c0] sm:$0xff] }
 0x234   : > { %11160 = vmatprep.subr.bf16.mxu0 %v11159_v44  ;;  %v3947_v33 = vld [vmem:[#allocation11 + $0x13e8] sm:$0xff]  ;;  %v16569_v44 = vsub.s32 2, %v14393_v22  ;;  %v14408_v21 = vld [vmem:[#allocation11 + $0xc20] sm:$0xff] }
 0x235   : > { %10646 = vmatpush1.bf16.msra.mxu1 %v10645_v63  ;;  %v11175_v20 = vpack.c.bf16 %v3947_v33, %v3943_v4  ;;  %v3946_v63 = vld [vmem:[#allocation11 + $0x13e0] sm:$0xff]  ;;  %v2646_v42 = vld [vmem:[#allocation11 + $0xc08] sm:$0xff] }
 0x236   : > { %10648 = vmatprep.subr.bf16.mxu1 %v10647_v15  ;;  %v11177_v34 = vpack.c.bf16 %v3946_v63, %v3942_v14  ;;  %v2650_v16 = vld [vmem:[#allocation11 + $0xc28] sm:$0xff]  ;;  %v14412_v27 = vrot.slane %v1963_v55, %v16569_v44  ;;  %v14419_v7 = vld [vmem:[#allocation11 + $0x1420] sm:$0xff] }
 0x237   : > { %11162 = vmatpush1.bf16.msra.mxu0 %v11161_v10  ;;  %v10667_v2 = vpack.c.bf16 %v2650_v16, %v2646_v42  ;;  %v3951_v17 = vld [vmem:[#allocation11 + $0x1408] sm:$0xff]  ;;  %v14406_v10 = vld [vmem:[#allocation11 + $0xc00] sm:$0xff] }
 0x238   : > { %11164 = vmatprep.subr.bf16.mxu0 %v11163_v61  ;;  %v3955_v38 = vld [vmem:[#allocation11 + $0x1428] sm:$0xff]  ;;  %v14435_v48 = vld [vmem:[#allocation11 + $0xc60] sm:$0xff] }
 0x239   : > { %10650 = vmatpush1.bf16.msra.mxu1 %v10649_v25  ;;  %v11179_v15 = vpack.c.bf16 %v3955_v38, %v3951_v17  ;;  %v14400_v25 = vsub.s32 1, %v14393_v22  ;;  %v14421_v28 = vld [vmem:[#allocation11 + $0xc48] sm:$0xff]  ;;  %v14437_v6 = vld [vmem:[#allocation11 + $0x1440] sm:$0xff] }
 0x23a   : > { %10652 = vmatprep.subr.bf16.mxu1 %v10651_v18  ;;  %v14417_v18 = vld [vmem:[#allocation11 + $0x1400] sm:$0xff]  ;;  %v14427_v61 = vld [vmem:[#allocation11 + $0xc68] sm:$0xff] }
 0x23b   : > { %11166 = vmatpush1.bf16.msra.mxu0 %v11165_v36  ;;  %16650 = vst [vmem:[#allocation46_spill] sm:$0xff] %v14400_v25  ;;  %v14415_v23 = vrot.slane %v1963_v55, %v14400_v25  ;;  %v14431_v56 = vld [vmem:[#allocation11 + $0x1468] sm:$0xff]  ;;  %v14433_v36 = vld [vmem:[#allocation11 + $0xc40] sm:$0xff] }
 0x23c   : > { %11168 = vmatprep.subr.bf16.mxu0 %v11167_v59  ;;  %v14442_v45 = vld [vmem:[#allocation11 + $0x1460] sm:$0xff]  ;;  %v14444_v59 = vld [vmem:[#allocation11 + $0xc88] sm:$0xff] }
 0x23d   : > { %10654 = vmatpush1.bf16.msra.mxu1 %v10653_v12  ;;  %v14429_v12 = vld [vmem:[#allocation11 + $0x1448] sm:$0xff]  ;;  %v14469_v4 = vld [vmem:[#allocation11 + $0xca0] sm:$0xff] }
 0x23e   : > { %10656 = vmatprep.subr.bf16.mxu1 %v10655_v8  ;;  %v14454_v52 = vld [vmem:[#allocation11 + $0x1488] sm:$0xff]  ;;  %v14473_v33 = vld [vmem:[#allocation11 + $0x14a0] sm:$0xff] }
 0x23f   : > { %11170 = vmatpush1.bf16.msra.mxu0 %v11169_v31  ;;  %v14480_v42 = vld [vmem:[#allocation11 + $0xce8] sm:$0xff] }
 0x240   : > { %11172 = vmatprep.subr.bf16.mxu0 %v11171_v54  ;;  %v14484_v55 = vld [vmem:[#allocation11 + $0x14c8] sm:$0xff] }
 0x241   : > { %10658 = vmatpush1.bf16.msra.mxu1 %v10657_v29  ;;  %v14446_v29 = vld [vmem:[#allocation11 + $0xca8] sm:$0xff] }
 0x242   : > { %10660 = vmatprep.subr.bf16.mxu1 %v10659_v47  ;;  %v14456_v47 = vld [vmem:[#allocation11 + $0x14a8] sm:$0xff] }
 0x243   : > { %11174 = vmatpush1.bf16.msra.mxu0 %v11173_v49 }
 0x244   : > { %11176 = vmatprep.subr.bf16.mxu0 %v11175_v20 }
 0x245   : > { %10662 = vmatpush1.bf16.msra.mxu1 %v10661_v3  ;;  %v14463_v3 = vld [vmem:[#allocation11 + $0xc80] sm:$0xff] }
 0x246   : > { %10664 = vmatprep.subr.bf16.mxu1 %v10663_v50  ;;  %v14471_v50 = vld [vmem:[#allocation11 + $0x1480] sm:$0xff] }
 0x247   : > { %11178 = vmatpush1.bf16.msra.mxu0 %v11177_v34  ;;  %v14478_v34 = vld [vmem:[#allocation11 + $0xcc8] sm:$0xff] }
 0x248   : > { %11180 = vmatprep.subr.bf16.mxu0 %v11179_v15 }
 0x249   : > { %10666 = vmatpush1.bf16.msra.mxu1 %v10665_v13 }
 0x24a   : > { %10668 = vmatprep.subr.bf16.mxu1 %v10667_v2 }
 0x2dd   : > { %v1771_v30 = vpop.f32.mrb[0].mxu0 }
 0x2de   : > { %v1985_v40 = vadd.f32 %v14404_v26, %v1771_v30  ;;  %v1773_v39 = vpop.f32.mrb[1].mxu0  ;;  %v14486_v30 = vld [vmem:[#allocation11 + $0x14e8] sm:$0xff] }
 0x2df   : > { %v1884_v8 = vpop.f32.mrb[0].mxu1  ;;  %v1986_v11 = vadd.f32 %v14415_v23, %v1773_v39 }
 0x2e0   : > { %v1987_v46 = vadd.f32 %v14412_v27, %v1884_v8  ;;  %v1886_v31 = vpop.f32.mrb[1].mxu1  ;;  %v2017_v53 = vmax.f32 %v1985_v40, 0.0 }
 0x2e1   : > { %v1988_v57 = vadd.f32 %v14425_v51, %v1886_v31  ;;  %v2018_v32 = vmax.f32 %v1986_v11, 0.0  ;;  %v1777_v49 = vpop.f32.mrb[2].mxu0 }
 0x2e2   : > { %v2019_v37 = vmax.f32 %v1987_v46, 0.0  ;;  %v2088_v58 = vrot.slane %v2017_v53, 7  ;;  %v1989_v20 = vadd.f32 %v14404_v26, %v1777_v49  ;;  %v1779_v14 = vpop.f32.mrb[3].mxu0 }
 0x2e3   : > { %v2020_v5 = vmax.f32 %v1988_v57, 0.0  ;;  %v1890_v13 = vpop.f32.mrb[2].mxu1  ;;  %v2089_v2 = vrot.slane %v2018_v32, 7  ;;  %v1990_v38 = vadd.f32 %v14415_v23, %v1779_v14 }
 0x2e4   : > { %v2090_v16 = vrot.slane %v2019_v37, 7  ;;  %v1991_v17 = vadd.f32 %v14412_v27, %v1890_v13  ;;  %v1892_v15 = vpop.f32.mrb[3].mxu1  ;;  %2184 = vst [vmem:[#allocation3] sm:$0xfe] %v2088_v58  ;;  %v2021_v8 = vmax.f32 %v1989_v20, 0.0 }
 0x2e5   : > { %v2091_v40 = vrot.slane %v2020_v5, 7  ;;  %v1992_v39 = vadd.f32 %v14425_v51, %v1892_v15  ;;  %2185 = vst [vmem:[#allocation3 + $0x8] sm:$0xfe] %v2089_v2  ;;  %v2022_v31 = vmax.f32 %v1990_v38, 0.0  ;;  %v1783_v53 = vpop.f32.mrb[4].mxu0 }
 0x2e6   : > { %2186 = vst [vmem:[#allocation3 + $0x10] sm:$0xfe] %v2090_v16  ;;  %v2023_v11 = vmax.f32 %v1991_v17, 0.0  ;;  %v2092_v32 = vrot.slane %v2021_v8, 7  ;;  %v1993_v5 = vadd.f32 %v14404_v26, %v1783_v53  ;;  %v1785_v13 = vpop.f32.mrb[5].mxu0 }
 0x2e7   : > { %2187 = vst [vmem:[#allocation3 + $0x18] sm:$0xfe] %v2091_v40  ;;  %v2024_v49 = vmax.f32 %v1992_v39, 0.0  ;;  %v1896_v20 = vpop.f32.mrb[4].mxu1  ;;  %v2094_v17 = vrot.slane %v2022_v31, 7  ;;  %v1994_v0 = vadd.f32 %v14415_v23, %v1785_v13 }
 0x2e8   : > { %v2096_v15 = vrot.slane %v2023_v11, 7  ;;  %v1995_v38 = vadd.f32 %v14412_v27, %v1896_v20  ;;  %v1898_v9 = vpop.f32.mrb[5].mxu1  ;;  %v14501_v44 = vsel %vm712_vm1, %v2088_v58, %v2092_v32  ;;  %v2025_v8 = vmax.f32 %v1993_v5, 0.0 }
 0x2e9   : > { %v2098_v1 = vrot.slane %v2024_v49, 7  ;;  %v1996_v39 = vadd.f32 %v14425_v51, %v1898_v9  ;;  %2188 = vst [vmem:[#allocation3 + $0x20] sm:$0xff] %v14501_v44  ;;  %v14507_v14 = vsel %vm712_vm1, %v2089_v2, %v2094_v17  ;;  %v2026_v31 = vmax.f32 %v1994_v0, 0.0  ;;  %v1789_v20 = vpop.f32.mrb[6].mxu0 }
 0x2ea   : > { %v2097_v53 = vsel %vm712_vm1, %v2090_v16, %v2096_v15  ;;  %v2027_v11 = vmax.f32 %v1995_v38, 0.0  ;;  %2189 = vst [vmem:[#allocation3 + $0x28] sm:$0xff] %v14507_v14  ;;  %v2100_v49 = vrot.slane %v2025_v8, 7  ;;  %v1997_v9 = vadd.f32 %v14404_v26, %v1789_v20  ;;  %v1791_v37 = vpop.f32.mrb[7].mxu0 }
 0x2eb   : > { %2190 = vst [vmem:[#allocation3 + $0x30] sm:$0xff] %v2097_v53  ;;  %v14511_v58 = vsel %vm712_vm1, %v2091_v40, %v2098_v1  ;;  %v2028_v5 = vmax.f32 %v1996_v39, 0.0  ;;  %v1902_v13 = vpop.f32.mrb[6].mxu1  ;;  %v2102_v2 = vrot.slane %v2026_v31, 7  ;;  %v1998_v0 = vadd.f32 %v14415_v23, %v1791_v37 }
 0x2ec   : > { %16651 = vst [vmem:[#allocation47_spill] sm:$0xff] %v14511_v58  ;;  %2191 = vst [vmem:[#allocation3 + $0x38] sm:$0xff] %v14511_v58  ;;  %v2104_v16 = vrot.slane %v2027_v11, 7  ;;  %v1999_v38 = vadd.f32 %v14412_v27, %v1902_v13  ;;  %v1904_v53 = vpop.f32.mrb[7].mxu1  ;;  %v14518_v57 = vsel %vm712_vm1, %v2092_v32, %v2100_v49  ;;  %v2029_v46 = vmax.f32 %v1997_v9, 0.0 }
 0x2ed   : > { %v2106_v40 = vrot.slane %v2028_v5, 7  ;;  %v2000_v8 = vadd.f32 %v14425_v51, %v1904_v53  ;;  %2192 = vst [vmem:[#allocation3 + $0x40] sm:$0xff] %v14518_v57  ;;  %v14524_v20 = vsel %vm712_vm1, %v2094_v17, %v2102_v2  ;;  %v2030_v31 = vmax.f32 %v1998_v0, 0.0  ;;  %v1795_v13 = vpop.f32.mrb[8].mxu0 }
 0x2ee   : > { %v2105_v39 = vsel %vm712_vm1, %v2096_v15, %v2104_v16  ;;  %v2031_v11 = vmax.f32 %v1999_v38, 0.0  ;;  %2193 = vst [vmem:[#allocation3 + $0x48] sm:$0xff] %v14524_v20  ;;  %v2108_v32 = vrot.slane %v2029_v46, 7  ;;  %v2001_v9 = vadd.f32 %v14404_v26, %v1795_v13  ;;  %v1797_v63 = vpop.f32.mrb[9].mxu0 }
 0x2ef   : > { %2194 = vst [vmem:[#allocation3 + $0x50] sm:$0xff] %v2105_v39  ;;  %v2107_v37 = vsel %vm712_vm1, %v2098_v1, %v2106_v40  ;;  %v2032_v5 = vmax.f32 %v2000_v8, 0.0  ;;  %v1908_v53 = vpop.f32.mrb[8].mxu1  ;;  %v2110_v15 = vrot.slane %v2030_v31, 7  ;;  %v2002_v38 = vadd.f32 %v14415_v23, %v1797_v63 }
 0x2f0   : > { %2195 = vst [vmem:[#allocation3 + $0x58] sm:$0xff] %v2107_v37  ;;  %v2112_v62 = vrot.slane %v2031_v11, 7  ;;  %v2003_v17 = vadd.f32 %v14412_v27, %v1908_v53  ;;  %v1910_v0 = vpop.f32.mrb[9].mxu1  ;;  %v14532_v39 = vsel %vm712_vm1, %v2100_v49, %v2108_v32  ;;  %v2033_v54 = vmax.f32 %v2001_v9, 0.0 }
 0x2f1   : > { %v2114_v60 = vrot.slane %v2032_v5, 7  ;;  %v2004_v1 = vadd.f32 %v14425_v51, %v1910_v0  ;;  %2196 = vst [vmem:[#allocation3 + $0x60] sm:$0xff] %v14532_v39  ;;  %v14538_v8 = vsel %vm712_vm1, %v2102_v2, %v2110_v15  ;;  %v2034_v31 = vmax.f32 %v2002_v38, 0.0  ;;  %v1801_v13 = vpop.f32.mrb[10].mxu0 }
 0x2f2   : > { %v2113_v46 = vsel %vm712_vm1, %v2104_v16, %v2112_v62  ;;  %v2035_v11 = vmax.f32 %v2003_v17, 0.0  ;;  %2197 = vst [vmem:[#allocation3 + $0x68] sm:$0xff] %v14538_v8  ;;  %v2116_v49 = vrot.slane %v2033_v54, 7  ;;  %v2005_v5 = vadd.f32 %v14404_v26, %v1801_v13  ;;  %v1803_v53 = vpop.f32.mrb[11].mxu0 }
 0x2f3   : > { %2198 = vst [vmem:[#allocation3 + $0x70] sm:$0xff] %v2113_v46  ;;  %v2115_v63 = vsel %vm712_vm1, %v2106_v40, %v2114_v60  ;;  %v2036_v37 = vmax.f32 %v2004_v1, 0.0  ;;  %v1914_v9 = vpop.f32.mrb[10].mxu1  ;;  %v2118_v16 = vrot.slane %v2034_v31, 7  ;;  %v2006_v17 = vadd.f32 %v14415_v23, %v1803_v53  ;;  %v2509_v40 = vld [vmem:[#allocation3 + $0x8] sm:$0xfe] }
 0x2f4   : > { %2199 = vst [vmem:[#allocation3 + $0x78] sm:$0xff] %v2115_v63  ;;  %v2120_v0 = vrot.slane %v2035_v11, 7  ;;  %v2007_v2 = vadd.f32 %v14412_v27, %v1914_v9  ;;  %v1916_v38 = vpop.f32.mrb[11].mxu1  ;;  %v14546_v46 = vsel %vm712_vm1, %v2108_v32, %v2116_v49  ;;  %v2037_v43 = vmax.f32 %v2005_v5, 0.0 }
 0x2f5   : > { %v2122_v35 = vrot.slane %v2036_v37, 7  ;;  %v2008_v54 = vadd.f32 %v14425_v51, %v1916_v38  ;;  %2200 = vst [vmem:[#allocation3 + $0x80] sm:$0xff] %v14546_v46  ;;  %v14552_v11 = vsel %vm712_vm1, %v2110_v15, %v2118_v16  ;;  %v2038_v13 = vmax.f32 %v2006_v17, 0.0  ;;  %v1807_v63 = vpop.f32.mrb[12].mxu0  ;;  %v3814_v38 = vld [vmem:[#allocation3 + $0x8] sm:$0xfc] }
 0x2f6   : > { %v2121_v1 = vsel %vm712_vm1, %v2112_v62, %v2120_v0  ;;  %v2039_v31 = vmax.f32 %v2007_v2, 0.0  ;;  %2201 = vst [vmem:[#allocation3 + $0x88] sm:$0xff] %v14552_v11  ;;  %v2124_v37 = vrot.slane %v2037_v43, 7  ;;  %v2009_v9 = vadd.f32 %v14404_v26, %v1807_v63  ;;  %v1809_v19 = vpop.f32.mrb[13].mxu0 }
 0x2f7   : > { %2202 = vst [vmem:[#allocation3 + $0x90] sm:$0xff] %v2121_v1  ;;  %v2123_v32 = vsel %vm712_vm1, %v2114_v60, %v2122_v35  ;;  %v2040_v5 = vmax.f32 %v2008_v54, 0.0  ;;  %v1920_v53 = vpop.f32.mrb[12].mxu1  ;;  %v2126_v41 = vrot.slane %v2038_v13, 7  ;;  %v2812_v2 = vrot.slane %v2509_v40, 1 }
 0x2f8   : > { %2203 = vst [vmem:[#allocation3 + $0x98] sm:$0xff] %v2123_v32  ;;  %v2128_v62 = vrot.slane %v2039_v31, 7  ;;  %v2011_v15 = vadd.f32 %v14412_v27, %v1920_v53  ;;  %v1922_v17 = vpop.f32.mrb[13].mxu1  ;;  %v14559_v1 = vsel %vm712_vm1, %v2116_v49, %v2124_v37  ;;  %v2041_v25 = vmax.f32 %v2009_v9, 0.0  ;;  %v2508_v60 = vld [vmem:[#allocation3] sm:$0xfe] }
 0x2f9   : > { %v2130_v22 = vrot.slane %v2040_v5, 7  ;;  %v2813_v43 = vrot.slane %v14507_v14, 1  ;;  %2204 = vst [vmem:[#allocation3 + $0xa0] sm:$0xff] %v14559_v1  ;;  %v14565_v63 = vsel %vm712_vm1, %v2118_v16, %v2126_v41  ;;  %v4089_v13 = vrot.slane %v3814_v38, 2  ;;  %v3813_v32 = vld [vmem:[#allocation3] sm:$0xfc] }
 0x2fa   : > { %v2129_v54 = vsel %vm712_vm1, %v2120_v0, %v2128_v62  ;;  %v2043_v31 = vmax.f32 %v2011_v15, 0.0  ;;  %v1813_v40 = vpop.f32.mrb[14].mxu0  ;;  %2205 = vst [vmem:[#allocation3 + $0xa8] sm:$0xff] %v14565_v63  ;;  %v2132_v5 = vrot.slane %v2041_v25, 7  ;;  %v4090_v53 = vrot.slane %v14507_v14, 2 }
 0x2fb   : > { %2206 = vst [vmem:[#allocation3 + $0xb0] sm:$0xff] %v2129_v54  ;;  %v2131_v49 = vsel %vm712_vm1, %v2122_v35, %v2130_v22  ;;  %v14570_v9 = vsel %vm1013_vm4, %v2812_v2, %v2813_v43  ;;  %v1926_v24 = vpop.f32.mrb[14].mxu1  ;;  %v1815_v0 = vpop.f32.mrb[15].mxu0  ;;  %v2010_v38 = vadd.f32 %v14415_v23, %v1809_v19  ;;  %v2012_v15 = vadd.f32 %v14425_v51, %v1922_v17 }
 0x2fc   : > { %16652 = vst [vmem:[#allocation48_spill] sm:$0xff] %v14570_v9  ;;  %2207 = vst [vmem:[#allocation3 + $0xb8] sm:$0xff] %v2131_v49  ;;  %v2136_v16 = vrot.slane %v2043_v31, 7  ;;  %2973 = vmatprep.mubr.f32.mxu1 %v14570_v9  ;;  %v2809_v54 = vrot.slane %v2508_v60, 1  ;;  %v1928_v58 = vpop.f32.mrb[15].mxu1  ;;  %v14577_v35 = vsel %vm712_vm1, %v2124_v37, %v2132_v5  ;;  %v14580_v25 = vsel %vm1646_vm5, %v4089_v13, %v4090_v53 }
 0x2fd   : > { %16653 = vst [vmem:[#allocation49_spill] sm:$0xff] %v14577_v35  ;;  %v2810_v14 = vrot.slane %v14501_v44, 1  ;;  %v4086_v2 = vrot.slane %v3813_v32, 2  ;;  %2208 = vst [vmem:[#allocation3 + $0xc0] sm:$0xff] %v14577_v35  ;;  %4250 = vmatprep.mubr.f32.mxu0 %v14580_v25  ;;  %v2042_v19 = vmax.f32 %v2010_v38, 0.0  ;;  %v2044_v49 = vmax.f32 %v2012_v15, 0.0 }
 0x2fe   : > { %v2137_v31 = vsel %vm712_vm1, %v2128_v62, %v2136_v16  ;;  %v4087_v17 = vrot.slane %v14501_v44, 2  ;;  %v2013_v60 = vadd.f32 %v14404_v26, %v1813_v40  ;;  %v2015_v13 = vadd.f32 %v14412_v27, %v1926_v24 }
 0x2ff   : > { %2210 = vst [vmem:[#allocation3 + $0xd0] sm:$0xff] %v2137_v31  ;;  %v14588_v37 = vsel %vm1013_vm4, %v2809_v54, %v2810_v14  ;;  %v2823_v32 = vrot.slane %v14524_v20, 1  ;;  %v2134_v9 = vrot.slane %v2042_v19, 7  ;;  %v14593_v35 = vrot.slane %v2044_v49, 7  ;;  %v3974_v49 = vld [vmem:[#allocation11 + $0x14c0] sm:$0xff] }
 0x300   : > { %2974 = vmatmul.mubr.f32.vlgmr.msra.gmra.mrb[16].mxu1 %v14588_v37  ;;  %v14597_v62 = vsel %vm1646_vm5, %v4086_v2, %v4087_v17  ;;  %v4100_v44 = vrot.slane %v14524_v20, 2  ;;  %v16654_v38 = vpack.c.bf16 %v14408_v21, %v14406_v10  ;;  %v2045_v26 = vmax.f32 %v2013_v60, 0.0  ;;  %v3978_v60 = vld [vmem:[#allocation11 + $0x14e0] sm:$0xff] }
 0x301   : > { %4251 = vmatmul.mubr.f32.vlgmr.msra.gmra.mrb[16].mxu0 %v14597_v62  ;;  %v2047_v24 = vmax.f32 %v2015_v13, 0.0  ;;  %v14605_v27 = vsel %vm1013_vm4, %v2813_v43, %v2823_v32  ;;  %v2014_v40 = vadd.f32 %v14415_v23, %v1815_v0  ;;  %v14609_v15 = vsel %vm712_vm1, %v2126_v41, %v2134_v9 }
 0x302   : > { %10670 = vmatpush1.bf16.msra.mxu1 %v16654_v38  ;;  %v14613_v54 = vsel %vm712_vm1, %v2130_v22, %v14593_v35  ;;  %v16655_v10 = vpack.c.bf16 %v14419_v7, %v14417_v18  ;;  %2979 = vmatprep.mubr.f32.mxu1 %v14605_v27  ;;  %v14620_v21 = vsel %vm1646_vm5, %v4090_v53, %v4100_v44  ;;  %v2821_v20 = vrot.slane %v14518_v57, 1  ;;  %v2682_v38 = vld [vmem:[#allocation11 + $0xd28] sm:$0xff] }
 0x303   : > { %2209 = vst [vmem:[#allocation3 + $0xc8] sm:$0xff] %v14609_v15  ;;  %2211 = vst [vmem:[#allocation3 + $0xd8] sm:$0xff] %v14613_v54  ;;  %v2140_v23 = vrot.slane %v2045_v26, 7  ;;  %v2144_v41 = vrot.slane %v2047_v24, 7  ;;  %v16656_v22 = vpack.c.bf16 %v14427_v61, %v14421_v28  ;;  %4256 = vmatprep.mubr.f32.mxu0 %v14620_v21  ;;  %v2046_v18 = vmax.f32 %v2014_v40, 0.0 }
 0x304   : > { %11182 = vmatpush1.bf16.msra.mxu0 %v16655_v10  ;;  %v2016_v7 = vadd.f32 %v14425_v51, %v1928_v58  ;;  %v16657_v43 = vpack.c.bf16 %v14431_v56, %v14429_v12  ;;  %v14634_v53 = vsel %vm1013_vm4, %v2810_v14, %v2821_v20  ;;  %v4098_v0 = vrot.slane %v14518_v57, 2  ;;  %v14646_v56 = vld [vmem:[#allocation11 + $0xcc0] sm:$0xff] }
 0x305   : > { %10672 = vmatprep.subr.bf16.mxu1 %v16656_v22  ;;  %v2831_v2 = vrot.slane %v14538_v8, 1  ;;  %v4108_v31 = vrot.slane %v14538_v8, 2  ;;  %v14640_v28 = vsel %vm712_vm1, %v2132_v5, %v2140_v23  ;;  %2216 = vst [vmem:[#allocation3 + $0x100] sm:$0x1] %v2140_v23  ;;  %v14643_v61 = vsel %vm712_vm1, %v2136_v16, %v2144_v41  ;;  %2218 = vst [vmem:[#allocation3 + $0x110] sm:$0x1] %v2144_v41 }
 0x306   : > { %11184 = vmatprep.subr.bf16.mxu0 %v16657_v43  ;;  %v2142_v51 = vrot.slane %v2046_v18, 7  ;;  %v2048_v12 = vmax.f32 %v2016_v7, 0.0  ;;  %2980 = vmatmul.mubr.f32.gmra.mrb[18].mxu1 %v14634_v53  ;;  %v14648_v58 = vld [vmem:[#allocation11 + $0xce0] sm:$0xff]  ;;  %2212 = vst [vmem:[#allocation3 + $0xe0] sm:$0xff] %v14640_v28  ;;  %2214 = vst [vmem:[#allocation3 + $0xf0] sm:$0xff] %v14643_v61  ;;  %v16658_v57 = vpack.c.bf16 %v14435_v48, %v14433_v36  ;;  %v2829_v19 = vrot.slane %v14532_v39, 1 }
 0x307   : > { %v14656_v8 = vsel %vm1646_vm5, %v4087_v17, %v4098_v0  ;;  %v16659_v5 = vpack.c.bf16 %v14442_v45, %v14437_v6  ;;  %v14662_v16 = vsel %vm1013_vm4, %v2823_v32, %v2831_v2  ;;  %v14665_v14 = vsel %vm1646_vm5, %v4100_v44, %v4108_v31  ;;  %v2678_v44 = vld [vmem:[#allocation11 + $0xd08] sm:$0xff]  ;;  %v2677_v22 = vld [vmem:[#allocation11 + $0xd00] sm:$0xff] }
 0x308   : > { %10674 = vmatpush1.bf16.msra.mxu1 %v16658_v57  ;;  %v14669_v36 = vsel %vm712_vm1, %v2134_v9, %v2142_v51  ;;  %2217 = vst [vmem:[#allocation3 + $0x108] sm:$0x1] %v2142_v51  ;;  %v2146_v48 = vrot.slane %v2048_v12, 7  ;;  %4257 = vmatmul.mubr.f32.gmra.mrb[18].mxu0 %v14656_v8  ;;  %v4106_v6 = vrot.slane %v14532_v39, 2  ;;  %v2839_v45 = vrot.slane %v14552_v11, 1  ;;  %v3983_v23 = vld [vmem:[#allocation11 + $0x1508] sm:$0xff] }
 0x309   : > { %11186 = vmatpush1.bf16.msra.mxu0 %v16659_v5  ;;  %2985 = vmatprep.mubr.f32.mxu1 %v14662_v16  ;;  %2213 = vst [vmem:[#allocation3 + $0xe8] sm:$0xff] %v14669_v36  ;;  %v16660_v17 = vpack.c.bf16 %v14446_v29, %v14444_v59  ;;  %v14681_v9 = vsel %vm1013_vm4, %v2821_v20, %v2829_v19  ;;  %v4116_v13 = vrot.slane %v14552_v11, 2  ;;  %v2837_v32 = vrot.slane %v14546_v46, 1  ;;  %v3987_v41 = vld [vmem:[#allocation11 + $0x1528] sm:$0xff]  ;;  %v3982_v18 = vld [vmem:[#allocation11 + $0x1500] sm:$0xff] }
 0x30a   : > { %4262 = vmatprep.mubr.f32.mxu0 %v14665_v14  ;;  %v10681_v39 = vpack.c.bf16 %v14648_v58, %v14646_v56  ;;  %v14689_v26 = vsel %vm712_vm1, %v14593_v35, %v2146_v48  ;;  %2219 = vst [vmem:[#allocation3 + $0x118] sm:$0x1] %v2146_v48  ;;  %v16661_v59 = vpack.c.bf16 %v14456_v47, %v14454_v52  ;;  %v2847_v24 = vrot.slane %v14565_v63, 1  ;;  %v3986_v7 = vld [vmem:[#allocation11 + $0x1520] sm:$0xff]  ;;  %v3991_v5 = vld [vmem:[#allocation11 + $0x1548] sm:$0xff] }
 0x30b   : > { %10676 = vmatprep.subr.bf16.mxu1 %v16660_v17  ;;  %2986 = vmatmul.mubr.f32.gmra.mrb[20].mxu1 %v14681_v9  ;;  %v14696_v29 = vsel %vm1013_vm4, %v2831_v2, %v2839_v45  ;;  %v11193_v11 = vpack.c.bf16 %v3978_v60, %v3974_v49  ;;  %2215 = vst [vmem:[#allocation3 + $0xf8] sm:$0xff] %v14689_v26  ;;  %v4114_v10 = vrot.slane %v14546_v46, 2  ;;  %v4124_v20 = vrot.slane %v14565_v63, 2  ;;  %v2690_v2 = vld [vmem:[#allocation11 + $0xd68] sm:$0xff]  ;;  %v2689_v49 = vld [vmem:[#allocation11 + $0xd60] sm:$0xff] }
 0x30c   : > { %11188 = vmatprep.subr.bf16.mxu0 %v16661_v59  ;;  %v16662_v40 = vpack.c.bf16 %v14469_v4, %v14463_v3  ;;  %v14704_v35 = vsel %vm1646_vm5, %v4098_v0, %v4106_v6  ;;  %v16663_v52 = vpack.c.bf16 %v14473_v33, %v14471_v50  ;;  %v14710_v47 = vsel %vm1646_vm5, %v4108_v31, %v4116_v13  ;;  %v2681_v4 = vld [vmem:[#allocation11 + $0xd20] sm:$0xff]  ;;  %v2686_v0 = vld [vmem:[#allocation11 + $0xd48] sm:$0xff] }
 0x30d   : > { %4263 = vmatmul.mubr.f32.gmra.mrb[20].mxu0 %v14704_v35  ;;  %2991 = vmatprep.mubr.f32.mxu1 %v14696_v29  ;;  %v10683_v3 = vpack.c.bf16 %v2682_v38, %v2678_v44  ;;  %v16664_v50 = vpack.c.bf16 %v14480_v42, %v14478_v34  ;;  %v14721_v33 = vsel %vm1013_vm4, %v2829_v19, %v2837_v32  ;;  %v2845_v63 = vrot.slane %v14559_v1, 1  ;;  %v3990_v60 = vld [vmem:[#allocation11 + $0x1540] sm:$0xff] }
 0x30e   : > { %10678 = vmatpush1.bf16.msra.mxu1 %v16662_v40  ;;  %11190 = vmatpush1.bf16.msra.mxu0 %v16663_v52  ;;  %v14724_v46 = vsel %vm1013_vm4, %v2839_v45, %v2847_v24  ;;  %v2855_v43 = vrot.slane %v14609_v15, 1  ;;  %v16665_v31 = vpack.c.bf16 %v14486_v30, %v14484_v55  ;;  %v14733_v34 = vsel %vm1646_vm5, %v4116_v13, %v4124_v20  ;;  %v3995_v55 = vld [vmem:[#allocation11 + $0x1568] sm:$0xff]  ;;  %v2685_v30 = vld [vmem:[#allocation11 + $0xd40] sm:$0xff] }
 0x30f   : > { %10680 = vmatprep.subr.bf16.mxu1 %v16664_v50  ;;  %4268 = vmatprep.mubr.f32.mxu0 %v14710_v47  ;;  %v11195_v42 = vpack.c.bf16 %v3987_v41, %v3983_v23  ;;  %v4132_v51 = vrot.slane %v14609_v15, 2  ;;  %v14737_v12 = vsel %vm1646_vm5, %v4106_v6, %v4114_v10  ;;  %v10685_v56 = vpack.c.bf16 %v2681_v4, %v2677_v22  ;;  %v3994_v15 = vld [vmem:[#allocation11 + $0x1560] sm:$0xff]  ;;  %v16666_v6 = vld [vmem:[#allocation49_spill] sm:$0xff]  ;;  %v2694_v13 = vld [vmem:[#allocation11 + $0xd88] sm:$0xff] }
 0x310   : > { %11192 = vmatprep.subr.bf16.mxu0 %v16665_v31  ;;  %2992 = vmatmul.mubr.f32.gmra.mrb[22].mxu1 %v14721_v33  ;;  %v4122_v58 = vrot.slane %v14559_v1, 2  ;;  %v11197_v57 = vpack.c.bf16 %v3986_v7, %v3982_v18  ;;  %v10687_v19 = vpack.c.bf16 %v2690_v2, %v2686_v0  ;;  %v14744_v48 = vsel %vm1013_vm4, %v2837_v32, %v2845_v63  ;;  %v3999_v32 = vld [vmem:[#allocation11 + $0x1588] sm:$0xff]  ;;  %v2693_v22 = vld [vmem:[#allocation11 + $0xd80] sm:$0xff] }
 0x311   : > { %4269 = vmatmul.mubr.f32.gmra.mrb[22].mxu0 %v14737_v12  ;;  %2997 = vmatprep.mubr.f32.mxu1 %v14724_v46  ;;  %v14747_v1 = vsel %vm1013_vm4, %v2847_v24, %v2855_v43  ;;  %v2853_v45 = vrot.slane %v16666_v6, 1  ;;  %v2863_v17 = vrot.slane %v14669_v36, 1  ;;  %v14753_v44 = vsel %vm1646_vm5, %v4124_v20, %v4132_v51  ;;  %v4003_v41 = vld [vmem:[#allocation11 + $0x15a8] sm:$0xff]  ;;  %v3998_v4 = vld [vmem:[#allocation11 + $0x1580] sm:$0xff] }
 0x312   : > { %10682 = vmatpush1.bf16.msra.mxu1 %v10681_v39  ;;  %11194 = vmatpush1.bf16.msra.mxu0 %v11193_v11  ;;  %v2698_v39 = vld [vmem:[#allocation11 + $0xda8] sm:$0xff]  ;;  %16667 = vst [vmem:[#allocation49_spill] sm:$0xff] %v14753_v44  ;;  %v11199_v38 = vpack.c.bf16 %v3995_v55, %v3991_v5  ;;  %v4140_v59 = vrot.slane %v14669_v36, 2  ;;  %v2513_v11 = vld [vmem:[#allocation3 + $0x108] sm:$0x1]  ;;  %v14757_v24 = vsel %vm1646_vm5, %v4114_v10, %v4122_v58  ;;  %v4130_v52 = vrot.slane %v16666_v6, 2 }
 0x313   : > { %10684 = vmatprep.subr.bf16.mxu1 %v10683_v3  ;;  %4274 = vmatprep.mubr.f32.mxu0 %v14733_v34  ;;  %v10689_v40 = vpack.c.bf16 %v2689_v49, %v2685_v30  ;;  %v11201_v23 = vpack.c.bf16 %v3994_v15, %v3990_v60  ;;  %v3818_v3 = vld [vmem:[#allocation3 + $0x108] sm:$0x3]  ;;  %v10691_v20 = vpack.c.bf16 %v2698_v39, %v2694_v13  ;;  %v2861_v50 = vrot.slane %v14640_v28, 1  ;;  %v2702_v2 = vld [vmem:[#allocation11 + $0xdc8] sm:$0xff]  ;;  %v2511_v39 = vld [vmem:[#allocation3 + $0x18] sm:$0xfe] }
 0x314   : > { %11196 = vmatprep.subr.bf16.mxu0 %v11195_v42  ;;  %2998 = vmatmul.mubr.f32.gmra.mrb[24].mxu1 %v14744_v48  ;;  %v2697_v36 = vld [vmem:[#allocation11 + $0xda0] sm:$0xff]  ;;  %v14764_v10 = vsel %vm1013_vm4, %v2845_v63, %v2853_v45  ;;  %v14767_v7 = vsel %vm1013_vm4, %v2855_v43, %v2863_v17  ;;  %v2871_v0 = vrot.slane %v2513_v11, 1  ;;  %v2706_v31 = vld [vmem:[#allocation11 + $0xde8] sm:$0xff]  ;;  %v14772_v42 = vsel %vm1646_vm5, %v4132_v51, %v4140_v59  ;;  %v2512_v63 = vld [vmem:[#allocation3 + $0x100] sm:$0x1] }
 0x315   : > { %4275 = vmatmul.mubr.f32.gmra.mrb[24].mxu0 %v14757_v24  ;;  %3003 = vmatprep.mubr.f32.mxu1 %v14747_v1  ;;  %v4002_v18 = vld [vmem:[#allocation11 + $0x15a0] sm:$0xff]  ;;  %16668 = vst [vmem:[#allocation50_spill] sm:$0xff] %v14772_v42  ;;  %v4007_v5 = vld [vmem:[#allocation11 + $0x15c8] sm:$0xff]  ;;  %v14775_v43 = vsel %vm1646_vm5, %v4122_v58, %v4130_v52  ;;  %v10693_v30 = vpack.c.bf16 %v2697_v36, %v2693_v22  ;;  %v3817_v51 = vld [vmem:[#allocation3 + $0x100] sm:$0x3] }
 0x316   : > { %10686 = vmatpush1.bf16.msra.mxu1 %v10685_v56  ;;  %11198 = vmatpush1.bf16.msra.mxu0 %v11197_v57  ;;  %v11203_v56 = vpack.c.bf16 %v4003_v41, %v3999_v32  ;;  %v4148_v57 = vrot.slane %v3818_v3, 2  ;;  %v4011_v55 = vld [vmem:[#allocation11 + $0x15e8] sm:$0xff]  ;;  %16669 = vst [vmem:[#allocation51_spill] sm:$0xff] %v14775_v43  ;;  %v11205_v49 = vpack.c.bf16 %v4002_v18, %v3998_v4  ;;  %v2701_v60 = vld [vmem:[#allocation11 + $0xdc0] sm:$0xff]  ;;  %v2869_v32 = vrot.slane %v2512_v63, 1 }
 0x317   : > { %10688 = vmatprep.subr.bf16.mxu1 %v10687_v19  ;;  %4280 = vmatprep.mubr.f32.mxu0 %v14753_v44  ;;  %v4138_v19 = vrot.slane %v14640_v28, 2  ;;  %v2705_v15 = vld [vmem:[#allocation11 + $0xde0] sm:$0xff]  ;;  %v14782_v58 = vsel %vm1013_vm4, %v2853_v45, %v2861_v50  ;;  %v10695_v28 = vpack.c.bf16 %v2706_v31, %v2702_v2  ;;  %v3816_v11 = vld [vmem:[#allocation3 + $0x18] sm:$0xfc]  ;;  %v2710_v22 = vld [vmem:[#allocation11 + $0xe08] sm:$0xff]  ;;  %v2818_v4 = vrot.slane %v2511_v39, 1 }
 0x318   : > { %11200 = vmatprep.subr.bf16.mxu0 %v11199_v38  ;;  %3004 = vmatmul.mubr.f32.gmra.mrb[26].mxu1 %v14764_v10  ;;  %v4006_v6 = vld [vmem:[#allocation11 + $0x15c0] sm:$0xff]  ;;  %v14785_v38 = vsel %vm1013_vm4, %v2863_v17, %v2871_v0  ;;  %v10697_v41 = vpack.c.bf16 %v2705_v15, %v2701_v60  ;;  %v2714_v3 = vld [vmem:[#allocation11 + $0xe28] sm:$0xff]  ;;  %v4146_v17 = vrot.slane %v3817_v51, 2  ;;  %v2588_v44 = vld [vmem:[#allocation11 + $0xa38] sm:$0xff] }
 0x319   : > { %4281 = vmatmul.mubr.f32.gmra.mrb[26].mxu0 %v14775_v43  ;;  %3009 = vmatprep.mubr.f32.mxu1 %v14767_v7  ;;  %v4010_v13 = vld [vmem:[#allocation11 + $0x15e0] sm:$0xff]  ;;  %v14792_v45 = vsel %vm1646_vm5, %v4130_v52, %v4138_v19  ;;  %v4019_v18 = vld [vmem:[#allocation11 + $0x1628] sm:$0xff]  ;;  %v14798_v52 = vsel %vm1013_vm4, %v2861_v50, %v2869_v32  ;;  %v10699_v63 = vpack.c.bf16 %v2714_v3, %v2710_v22  ;;  %v2584_v43 = vld [vmem:[#allocation11 + $0xa18] sm:$0xff] }
 0x31a   : > { %10690 = vmatpush1.bf16.msra.mxu1 %v10689_v40  ;;  %11202 = vmatpush1.bf16.msra.mxu0 %v11201_v23  ;;  %v14789_v40 = vsel %vm1646_vm5, %v4140_v59, %v4148_v57  ;;  %v11207_v23 = vpack.c.bf16 %v4011_v55, %v4007_v5  ;;  %16671 = vst [vmem:[#allocation53_spill] sm:$0xff] %v14792_v45  ;;  %v2709_v0 = vld [vmem:[#allocation11 + $0xe00] sm:$0xff]  ;;  %v4095_v59 = vrot.slane %v3816_v11, 2  ;;  %v2718_v57 = vld [vmem:[#allocation11 + $0xe48] sm:$0xff] }
 0x31b   : > { %10692 = vmatprep.subr.bf16.mxu1 %v10691_v20  ;;  %4286 = vmatprep.mubr.f32.mxu0 %v14772_v42  ;;  %16670 = vst [vmem:[#allocation52_spill] sm:$0xff] %v14789_v40  ;;  %v4015_v20 = vld [vmem:[#allocation11 + $0x1608] sm:$0xff]  ;;  %v11209_v36 = vpack.c.bf16 %v4010_v13, %v4006_v6  ;;  %v2713_v2 = vld [vmem:[#allocation11 + $0xe20] sm:$0xff]  ;;  %v14804_v13 = vsel %vm1646_vm5, %v4138_v19, %v4146_v17 }
 0x31c   : > { %11204 = vmatprep.subr.bf16.mxu0 %v11203_v56  ;;  %3010 = vmatmul.mubr.f32.gmra.mrb[28].mxu1 %v14782_v58  ;;  %v4014_v31 = vld [vmem:[#allocation11 + $0x1600] sm:$0xff]  ;;  %v4027_v60 = vld [vmem:[#allocation11 + $0x1668] sm:$0xff]  ;;  %v11211_v6 = vpack.c.bf16 %v4019_v18, %v4015_v20  ;;  %v10701_v51 = vpack.c.bf16 %v2713_v2, %v2709_v0 }
 0x31d   : > { %4287 = vmatmul.mubr.f32.gmra.mrb[28].mxu0 %v14792_v45  ;;  %3015 = vmatprep.mubr.f32.mxu1 %v14785_v38  ;;  %v4018_v56 = vld [vmem:[#allocation11 + $0x1620] sm:$0xff]  ;;  %v2726_v3 = vld [vmem:[#allocation11 + $0xe88] sm:$0xff]  ;;  %v2564_v45 = vld [vmem:[#allocation11 + $0x978] sm:$0xff] }
 0x31e   : > { %10694 = vmatpush1.bf16.msra.mxu1 %v10693_v30  ;;  %11206 = vmatpush1.bf16.msra.mxu0 %v11205_v49  ;;  %v16672_v5 = vld [vmem:[#allocation47_spill] sm:$0xff]  ;;  %v11213_v39 = vpack.c.bf16 %v4018_v56, %v4014_v31 }
 0x31f   : > { %4292 = vmatprep.mubr.f32.mxu0 %v14789_v40  ;;  %10696 = vmatprep.subr.bf16.mxu1 %v10695_v28  ;;  %v2819_v55 = vrot.slane %v16672_v5, 1  ;;  %v2722_v30 = vld [vmem:[#allocation11 + $0xe68] sm:$0xff]  ;;  %v16583_v15 = vrot.slane %v16672_v5, 2  ;;  %16673 = vst [vmem:[#allocation47_spill] sm:$0xff] %v14804_v13  ;;  %v2717_v28 = vld [vmem:[#allocation11 + $0xe40] sm:$0xff] }
 0x320   : > { %v4023_v49 = vld [vmem:[#allocation11 + $0x1648] sm:$0xff]  ;;  %11208 = vmatprep.subr.bf16.mxu0 %v11207_v23  ;;  %3016 = vmatmul.mubr.f32.gmra.mrb[30].mxu1 %v14798_v52  ;;  %v2721_v32 = vld [vmem:[#allocation11 + $0xe60] sm:$0xff]  ;;  %v10703_v19 = vpack.c.bf16 %v2722_v30, %v2718_v57 }
 0x321   : > { %v14809_v50 = vsel %vm1013_vm4, %v2818_v4, %v2819_v55  ;;  %4293 = vmatmul.mubr.f32.gmra.mrb[30].mxu0 %v14804_v13  ;;  %v14816_v11 = vsel %vm1646_vm5, %v4095_v59, %v16583_v15  ;;  %v11215_v23 = vpack.c.bf16 %v4027_v60, %v4023_v49  ;;  %v4026_v22 = vld [vmem:[#allocation11 + $0x1660] sm:$0xff]  ;;  %v2730_v20 = vld [vmem:[#allocation11 + $0xea8] sm:$0xff]  ;;  %v10705_v4 = vpack.c.bf16 %v2721_v32, %v2717_v28 }
 0x322   : > { %10698 = vmatpush1.bf16.msra.mxu1 %v10697_v41  ;;  %11210 = vmatpush1.bf16.msra.mxu0 %v11209_v36  ;;  %16674 = vst [vmem:[#allocation54_spill] sm:$0xff] %v14816_v11  ;;  %v4022_v41 = vld [vmem:[#allocation11 + $0x1640] sm:$0xff]  ;;  %v4031_v17 = vld [vmem:[#allocation11 + $0x1688] sm:$0xff]  ;;  %v10707_v59 = vpack.c.bf16 %v2730_v20, %v2726_v3 }
 0x323   : > { %3086 = vmatprep.mubr.f32.mxu1 %v14809_v50  ;;  %4363 = vmatprep.mubr.f32.mxu0 %v14816_v11  ;;  %v4035_v36 = vld [vmem:[#allocation11 + $0x16a8] sm:$0xff]  ;;  %v11217_v18 = vpack.c.bf16 %v4026_v22, %v4022_v41  ;;  %v2725_v0 = vld [vmem:[#allocation11 + $0xe80] sm:$0xff] }
 0x324   : > { %10700 = vmatprep.subr.bf16.mxu1 %v10699_v63  ;;  %11212 = vmatprep.subr.bf16.mxu0 %v11211_v6  ;;  %v2729_v2 = vld [vmem:[#allocation11 + $0xea0] sm:$0xff]  ;;  %v11219_v31 = vpack.c.bf16 %v4035_v36, %v4031_v17  ;;  %v2734_v30 = vld [vmem:[#allocation11 + $0xec8] sm:$0xff] }
 0x325   : > { %v4030_v56 = vld [vmem:[#allocation11 + $0x1680] sm:$0xff]  ;;  %v2738_v49 = vld [vmem:[#allocation11 + $0xee8] sm:$0xff]  ;;  %v10709_v15 = vpack.c.bf16 %v2729_v2, %v2725_v0 }
 0x326   : > { %10702 = vmatpush1.bf16.msra.mxu1 %v10701_v51  ;;  %11214 = vmatpush1.bf16.msra.mxu0 %v11213_v39  ;;  %v4034_v57 = vld [vmem:[#allocation11 + $0x16a0] sm:$0xff]  ;;  %v4039_v60 = vld [vmem:[#allocation11 + $0x16c8] sm:$0xff]  ;;  %v10711_v28 = vpack.c.bf16 %v2738_v49, %v2734_v30 }
 0x327   : > { %10704 = vmatprep.subr.bf16.mxu1 %v10703_v19  ;;  %11216 = vmatprep.subr.bf16.mxu0 %v11215_v23  ;;  %v4043_v63 = vld [vmem:[#allocation11 + $0x16e8] sm:$0xff]  ;;  %v11221_v6 = vpack.c.bf16 %v4034_v57, %v4030_v56  ;;  %v2733_v51 = vld [vmem:[#allocation11 + $0xec0] sm:$0xff] }
 0x328   : > { %v2737_v39 = vld [vmem:[#allocation11 + $0xee0] sm:$0xff]  ;;  %v11223_v32 = vpack.c.bf16 %v4043_v63, %v4039_v60  ;;  %v2742_v41 = vld [vmem:[#allocation11 + $0xf08] sm:$0xff] }
 0x329   : > { %v4038_v19 = vld [vmem:[#allocation11 + $0x16c0] sm:$0xff]  ;;  %v2746_v22 = vld [vmem:[#allocation11 + $0xf28] sm:$0xff]  ;;  %v10713_v17 = vpack.c.bf16 %v2737_v39, %v2733_v51 }
 0x32a   : > { %10706 = vmatpush1.bf16.msra.mxu1 %v10705_v4  ;;  %11218 = vmatpush1.bf16.msra.mxu0 %v11217_v18  ;;  %v4042_v23 = vld [vmem:[#allocation11 + $0x16e0] sm:$0xff]  ;;  %v4047_v3 = vld [vmem:[#allocation11 + $0x1708] sm:$0xff]  ;;  %v10715_v0 = vpack.c.bf16 %v2746_v22, %v2742_v41 }
 0x32b   : > { %10708 = vmatprep.subr.bf16.mxu1 %v10707_v59  ;;  %11220 = vmatprep.subr.bf16.mxu0 %v11219_v31  ;;  %v4051_v20 = vld [vmem:[#allocation11 + $0x1728] sm:$0xff]  ;;  %v11225_v36 = vpack.c.bf16 %v4042_v23, %v4038_v19  ;;  %v2741_v4 = vld [vmem:[#allocation11 + $0xf00] sm:$0xff] }
 0x32c   : > { %v2745_v18 = vld [vmem:[#allocation11 + $0xf20] sm:$0xff]  ;;  %v11227_v2 = vpack.c.bf16 %v4051_v20, %v4047_v3  ;;  %v2750_v56 = vld [vmem:[#allocation11 + $0xf48] sm:$0xff] }
 0x32d   : > { %v4046_v59 = vld [vmem:[#allocation11 + $0x1700] sm:$0xff]  ;;  %v2754_v57 = vld [vmem:[#allocation11 + $0xf68] sm:$0xff]  ;;  %v10717_v60 = vpack.c.bf16 %v2745_v18, %v2741_v4 }
 0x32e   : > { %10710 = vmatpush1.bf16.msra.mxu1 %v10709_v15  ;;  %11222 = vmatpush1.bf16.msra.mxu0 %v11221_v6  ;;  %v4050_v31 = vld [vmem:[#allocation11 + $0x1720] sm:$0xff]  ;;  %v4055_v30 = vld [vmem:[#allocation11 + $0x1748] sm:$0xff]  ;;  %v10719_v51 = vpack.c.bf16 %v2754_v57, %v2750_v56 }
 0x32f   : > { %10712 = vmatprep.subr.bf16.mxu1 %v10711_v28  ;;  %11224 = vmatprep.subr.bf16.mxu0 %v11223_v32  ;;  %v4059_v49 = vld [vmem:[#allocation11 + $0x1768] sm:$0xff]  ;;  %v11229_v63 = vpack.c.bf16 %v4050_v31, %v4046_v59  ;;  %v2749_v15 = vld [vmem:[#allocation11 + $0xf40] sm:$0xff] }
 0x330   : > { %v2753_v6 = vld [vmem:[#allocation11 + $0xf60] sm:$0xff]  ;;  %v11231_v39 = vpack.c.bf16 %v4059_v49, %v4055_v30  ;;  %v2758_v19 = vld [vmem:[#allocation11 + $0xf88] sm:$0xff] }
 0x331   : > { %v4054_v28 = vld [vmem:[#allocation11 + $0x1740] sm:$0xff]  ;;  %v2762_v23 = vld [vmem:[#allocation11 + $0xfa8] sm:$0xff]  ;;  %v10721_v3 = vpack.c.bf16 %v2753_v6, %v2749_v15 }
 0x332   : > { %10714 = vmatpush1.bf16.msra.mxu1 %v10713_v17  ;;  %11226 = vmatpush1.bf16.msra.mxu0 %v11225_v36  ;;  %v4058_v32 = vld [vmem:[#allocation11 + $0x1760] sm:$0xff]  ;;  %v4063_v41 = vld [vmem:[#allocation11 + $0x1788] sm:$0xff]  ;;  %v10723_v4 = vpack.c.bf16 %v2762_v23, %v2758_v19 }
 0x333   : > { %10716 = vmatprep.subr.bf16.mxu1 %v10715_v0  ;;  %11228 = vmatprep.subr.bf16.mxu0 %v11227_v2  ;;  %v4067_v22 = vld [vmem:[#allocation11 + $0x17a8] sm:$0xff]  ;;  %v11233_v20 = vpack.c.bf16 %v4058_v32, %v4054_v28  ;;  %v2757_v17 = vld [vmem:[#allocation11 + $0xf80] sm:$0xff]  ;;  %v2520_v28 = vld [vmem:[#allocation11 + $0x818] sm:$0xff] }
 0x334   : > { %v2761_v36 = vld [vmem:[#allocation11 + $0xfa0] sm:$0xff]  ;;  %v11235_v18 = vpack.c.bf16 %v4067_v22, %v4063_v41  ;;  %v2766_v59 = vld [vmem:[#allocation11 + $0xfc8] sm:$0xff]  ;;  %v2524_v32 = vld [vmem:[#allocation11 + $0x838] sm:$0xff] }
 0x335   : > { %v4062_v0 = vld [vmem:[#allocation11 + $0x1780] sm:$0xff]  ;;  %v2770_v31 = vld [vmem:[#allocation11 + $0xfe8] sm:$0xff]  ;;  %v10725_v30 = vpack.c.bf16 %v2761_v36, %v2757_v17  ;;  %v2231_v22 = vld [vmem:[#allocation3 + $0x58] sm:$0xff]  ;;  %v10731_v17 = vpack.c.bf16 %v2524_v32, %v2520_v28 }
 0x336   : > { %10718 = vmatpush1.bf16.msra.mxu1 %v10717_v60  ;;  %11230 = vmatpush1.bf16.msra.mxu0 %v11229_v63  ;;  %v4066_v2 = vld [vmem:[#allocation11 + $0x17a0] sm:$0xff]  ;;  %v4071_v56 = vld [vmem:[#allocation11 + $0x17c8] sm:$0xff]  ;;  %v10727_v63 = vpack.c.bf16 %v2770_v31, %v2766_v59  ;;  %v2532_v59 = vld [vmem:[#allocation11 + $0x878] sm:$0xff]  ;;  %v2827_v31 = vrot.slane %v2231_v22, 1 }
 0x337   : > { %10720 = vmatprep.subr.bf16.mxu1 %v10719_v51  ;;  %11232 = vmatprep.subr.bf16.mxu0 %v11231_v39  ;;  %v4075_v57 = vld [vmem:[#allocation11 + $0x17e8] sm:$0xff]  ;;  %v11237_v49 = vpack.c.bf16 %v4066_v2, %v4062_v0  ;;  %v2765_v60 = vld [vmem:[#allocation11 + $0xfc0] sm:$0xff]  ;;  %v2528_v2 = vld [vmem:[#allocation11 + $0x858] sm:$0xff] }
 0x338   : > { %v11239_v15 = vpack.c.bf16 %v4075_v57, %v4071_v56  ;;  %v2769_v6 = vld [vmem:[#allocation11 + $0xfe0] sm:$0xff]  ;;  %v2226_v19 = vld [vmem:[#allocation3 + $0x30] sm:$0xff] }
 0x339   : > { %v4070_v51 = vld [vmem:[#allocation11 + $0x17c0] sm:$0xff]  ;;  %v10729_v23 = vpack.c.bf16 %v2769_v6, %v2765_v60  ;;  %v3815_v36 = vld [vmem:[#allocation3 + $0x10] sm:$0xfc]  ;;  %v4093_v0 = vrot.slane %v2226_v19, 2  ;;  %v4104_v60 = vrot.slane %v2231_v22, 2  ;;  %v14819_v6 = vld [vmem:[#allocation3 + $0x78] sm:$0xff]  ;;  %v14832_v22 = vsel %vm1013_vm4, %v2819_v55, %v2827_v31 }
 0x33a   : > { %10722 = vmatpush1.bf16.msra.mxu1 %v10721_v3  ;;  %11234 = vmatpush1.bf16.msra.mxu0 %v11233_v20  ;;  %v4074_v39 = vld [vmem:[#allocation11 + $0x17e0] sm:$0xff]  ;;  %v2519_v3 = vld [vmem:[#allocation11 + $0x810] sm:$0xff] }
 0x33b   : > { %10724 = vmatprep.subr.bf16.mxu1 %v10723_v4  ;;  %11236 = vmatprep.subr.bf16.mxu0 %v11235_v18  ;;  %v11241_v41 = vpack.c.bf16 %v4074_v39, %v4070_v51  ;;  %v2510_v20 = vld [vmem:[#allocation3 + $0x10] sm:$0xfe]  ;;  %v2816_v18 = vrot.slane %v2226_v19, 1 }
 0x33c   : > { %v2523_v4 = vld [vmem:[#allocation11 + $0x830] sm:$0xff]  ;;  %v2815_v57 = vrot.slane %v2510_v20, 1 }
 0x33d   : > { %v2230_v56 = vld [vmem:[#allocation3 + $0x50] sm:$0xff] }
 0x33e   : > { %10726 = vmatpush1.bf16.msra.mxu1 %v10725_v30  ;;  %11238 = vmatpush1.bf16.msra.mxu0 %v11237_v49  ;;  %v4092_v30 = vrot.slane %v3815_v36, 2  ;;  %v10733_v49 = vpack.c.bf16 %v2523_v4, %v2519_v3  ;;  %v2531_v51 = vld [vmem:[#allocation11 + $0x870] sm:$0xff]  ;;  %v14822_v39 = vsel %vm1013_vm4, %v2815_v57, %v2816_v18  ;;  %v2825_v32 = vrot.slane %v2230_v56, 1 }
 0x33f   : > { %10728 = vmatprep.subr.bf16.mxu1 %v10727_v63  ;;  %11240 = vmatprep.subr.bf16.mxu0 %v11239_v15  ;;  %v10735_v63 = vpack.c.bf16 %v2532_v59, %v2528_v2  ;;  %v2527_v15 = vld [vmem:[#allocation11 + $0x850] sm:$0xff]  ;;  %v4102_v19 = vrot.slane %v2230_v56, 2  ;;  %v2835_v3 = vrot.slane %v14819_v6, 1  ;;  %v4112_v2 = vrot.slane %v14819_v6, 2 }
 0x340   : > { %v14825_v28 = vsel %vm1646_vm5, %v4092_v30, %v4093_v0  ;;  %v2234_v20 = vld [vmem:[#allocation3 + $0x70] sm:$0xff]  ;;  %v10737_v4 = vpack.c.bf16 %v2531_v51, %v2527_v15  ;;  %v14842_v59 = vld [vmem:[#allocation3 + $0x98] sm:$0xff]  ;;  %v14846_v30 = vsel %vm1013_vm4, %v2816_v18, %v2825_v32 }
 0x341   : > { %16675 = vst [vmem:[#allocation55_spill] sm:$0xff] %v14825_v28  ;;  %v2535_v56 = vld [vmem:[#allocation11 + $0x890] sm:$0xff]  ;;  %v2548_v15 = vld [vmem:[#allocation11 + $0x8f8] sm:$0xff]  ;;  %v14854_v6 = vsel %vm1013_vm4, %v2827_v31, %v2835_v3  ;;  %v14859_v18 = vsel %vm1646_vm5, %v4104_v60, %v4112_v2 }
 0x342   : > { %10730 = vmatpush1.bf16.msra.mxu1 %v10729_v23  ;;  %11242 = vmatpush1.bf16.msra.mxu0 %v11241_v41  ;;  %v2536_v23 = vld [vmem:[#allocation11 + $0x898] sm:$0xff]  ;;  %v2539_v57 = vld [vmem:[#allocation11 + $0x8b0] sm:$0xff]  ;;  %16679 = vst [vmem:[#allocation58_spill] sm:$0xff] %v14859_v18 }
 0x343   : > { %10732 = vmatprep.subr.bf16.mxu1 %v10731_v17  ;;  %v2540_v41 = vld [vmem:[#allocation11 + $0x8b8] sm:$0xff]  ;;  %v16676_v17 = vrot.slane %v16672_v5, 2  ;;  %v2833_v5 = vrot.slane %v2234_v20, 1  ;;  %v2238_v51 = vld [vmem:[#allocation3 + $0x90] sm:$0xff] }
 0x344   : > { %v10739_v55 = vpack.c.bf16 %v2540_v41, %v2536_v23  ;;  %v4120_v23 = vrot.slane %v14842_v59, 2  ;;  %v2243_v41 = vld [vmem:[#allocation3 + $0xb8] sm:$0xff]  ;;  %v4118_v13 = vrot.slane %v2238_v51, 2 }
 0x345   : > { %3087 = vmatmul.mubr.f32.vlgmr.msra.gmra.mrb[16].mxu1 %v14822_v39  ;;  %4364 = vmatmul.mubr.f32.vlgmr.msra.gmra.mrb[16].mxu0 %v14825_v28  ;;  %v14839_v36 = vsel %vm1646_vm5, %v16676_v17, %v4104_v60  ;;  %v4110_v17 = vrot.slane %v2234_v20, 2  ;;  %v2544_v28 = vld [vmem:[#allocation11 + $0x8d8] sm:$0xff]  ;;  %v2547_v31 = vld [vmem:[#allocation11 + $0x8f0] sm:$0xff] }
 0x346   : > { %3092 = vmatprep.mubr.f32.mxu1 %v14832_v22  ;;  %10734 = vmatpush1.bf16.msra.mxu1 %v10733_v49  ;;  %16677 = vst [vmem:[#allocation56_spill] sm:$0xff] %v14839_v36  ;;  %v14849_v49 = vsel %vm1646_vm5, %v4093_v0, %v4102_v19  ;;  %v10741_v0 = vpack.c.bf16 %v2539_v57, %v2535_v56  ;;  %v14869_v60 = vld [vmem:[#allocation3 + $0xb0] sm:$0xff]  ;;  %v2552_v56 = vld [vmem:[#allocation11 + $0x918] sm:$0xff] }
 0x347   : > { %4369 = vmatprep.mubr.f32.mxu0 %v14839_v36  ;;  %10736 = vmatprep.subr.bf16.mxu1 %v10735_v63  ;;  %16678 = vst [vmem:[#allocation57_spill] sm:$0xff] %v14849_v49  ;;  %v2843_v63 = vrot.slane %v14842_v59, 1  ;;  %v10743_v20 = vpack.c.bf16 %v2548_v15, %v2544_v28  ;;  %v14864_v36 = vsel %vm1013_vm4, %v2825_v32, %v2833_v5  ;;  %v2556_v57 = vld [vmem:[#allocation11 + $0x938] sm:$0xff]  ;;  %v2851_v59 = vrot.slane %v2243_v41, 1 }
 0x348   : > { %v14867_v11 = vsel %vm1646_vm5, %v4102_v19, %v4110_v17  ;;  %v14878_v32 = vsel %vm1646_vm5, %v4112_v2, %v4120_v23  ;;  %v2849_v15 = vrot.slane %v14869_v60, 1  ;;  %v14886_v40 = vsel %vm1646_vm5, %v4110_v17, %v4118_v13  ;;  %v2560_v2 = vld [vmem:[#allocation11 + $0x958] sm:$0xff] }
 0x349   : > { %3093 = vmatmul.mubr.f32.gmra.mrb[18].mxu1 %v14846_v30  ;;  %4370 = vmatmul.mubr.f32.gmra.mrb[18].mxu0 %v14849_v49  ;;  %v2543_v49 = vld [vmem:[#allocation11 + $0x8d0] sm:$0xff]  ;;  %16680 = vst [vmem:[#allocation59_spill] sm:$0xff] %v14867_v11  ;;  %v14874_v28 = vsel %vm1013_vm4, %v2835_v3, %v2843_v63  ;;  %16681 = vst [vmem:[#allocation60_spill] sm:$0xff] %v14878_v32 }
 0x34a   : > { %3098 = vmatprep.mubr.f32.mxu1 %v14854_v6  ;;  %10738 = vmatpush1.bf16.msra.mxu1 %v10737_v4  ;;  %v2841_v4 = vrot.slane %v2238_v51, 1  ;;  %v10745_v19 = vpack.c.bf16 %v2547_v31, %v2543_v49  ;;  %v10747_v51 = vpack.c.bf16 %v2556_v57, %v2552_v56  ;;  %16682 = vst [vmem:[#allocation61_spill] sm:$0xff] %v14886_v40  ;;  %v2859_v31 = vrot.slane %v14613_v54, 1  ;;  %v2559_v56 = vld [vmem:[#allocation11 + $0x950] sm:$0xff] }
 0x34b   : > { %4375 = vmatprep.mubr.f32.mxu0 %v14859_v18  ;;  %10740 = vmatprep.subr.bf16.mxu1 %v10739_v55  ;;  %v4128_v55 = vrot.slane %v2243_v41, 2  ;;  %v2551_v18 = vld [vmem:[#allocation11 + $0x910] sm:$0xff]  ;;  %v14892_v49 = vsel %vm1013_vm4, %v2843_v63, %v2851_v59 }
 0x34c   : > { %v14883_v3 = vsel %vm1013_vm4, %v2833_v5, %v2841_v4  ;;  %v2246_v41 = vld [vmem:[#allocation3 + $0xd0] sm:$0xff] }
 0x34d   : > { %3099 = vmatmul.mubr.f32.gmra.mrb[20].mxu1 %v14864_v36  ;;  %4376 = vmatmul.mubr.f32.gmra.mrb[20].mxu0 %v14867_v11  ;;  %v2555_v11 = vld [vmem:[#allocation11 + $0x930] sm:$0xff]  ;;  %v14896_v5 = vsel %vm1646_vm5, %v4120_v23, %v4128_v55  ;;  %v4134_v23 = vrot.slane %v2246_v41, 2 }
 0x34e   : > { %3104 = vmatprep.mubr.f32.mxu1 %v14874_v28  ;;  %10742 = vmatpush1.bf16.msra.mxu1 %v10741_v0  ;;  %v4126_v0 = vrot.slane %v14869_v60, 2  ;;  %16683 = vst [vmem:[#allocation62_spill] sm:$0xff] %v14896_v5  ;;  %v10749_v17 = vpack.c.bf16 %v2555_v11, %v2551_v18  ;;  %v10751_v60 = vpack.c.bf16 %v2564_v45, %v2560_v2  ;;  %v2563_v63 = vld [vmem:[#allocation11 + $0x970] sm:$0xff]  ;;  %v2572_v11 = vld [vmem:[#allocation11 + $0x9b8] sm:$0xff]  ;;  %v2867_v45 = vrot.slane %v14689_v26, 1 }
 0x34f   : > { %4381 = vmatprep.mubr.f32.mxu0 %v14878_v32  ;;  %10744 = vmatprep.subr.bf16.mxu1 %v10743_v20  ;;  %v14900_v20 = vsel %vm1013_vm4, %v2841_v4, %v2849_v15  ;;  %v2568_v32 = vld [vmem:[#allocation11 + $0x998] sm:$0xff]  ;;  %v14910_v18 = vsel %vm1013_vm4, %v2851_v59, %v2859_v31  ;;  %v4144_v4 = vrot.slane %v14689_v26, 2  ;;  %v2567_v2 = vld [vmem:[#allocation11 + $0x990] sm:$0xff] }
 0x350   : > { %v14904_v57 = vsel %vm1646_vm5, %v4118_v13, %v4126_v0  ;;  %v3820_v59 = vld [vmem:[#allocation3 + $0x118] sm:$0x3]  ;;  %v14923_v42 = vsel %vm1646_vm5, %v4126_v0, %v4134_v23  ;;  %v14928_v26 = vsel %vm1013_vm4, %v2859_v31, %v2867_v45  ;;  %v2865_v0 = vrot.slane %v14643_v61, 1 }
 0x351   : > { %3105 = vmatmul.mubr.f32.gmra.mrb[22].mxu1 %v14883_v3  ;;  %4382 = vmatmul.mubr.f32.gmra.mrb[22].mxu0 %v14886_v40  ;;  %16684 = vst [vmem:[#allocation63_spill] sm:$0xff] %v14904_v57  ;;  %v2857_v40 = vrot.slane %v2246_v41, 1  ;;  %v2571_v41 = vld [vmem:[#allocation11 + $0x9b0] sm:$0xff]  ;;  %16686 = vst [vmem:[#allocation65_spill] sm:$0xff] %v14923_v42 }
 0x352   : > { %3110 = vmatprep.mubr.f32.mxu1 %v14892_v49  ;;  %10746 = vmatpush1.bf16.msra.mxu1 %v10745_v19  ;;  %v4136_v19 = vrot.slane %v14613_v54, 2  ;;  %v10753_v54 = vpack.c.bf16 %v2563_v63, %v2559_v56  ;;  %v10757_v63 = vpack.c.bf16 %v2571_v41, %v2567_v2 }
 0x353   : > { %4387 = vmatprep.mubr.f32.mxu0 %v14896_v5  ;;  %10748 = vmatprep.subr.bf16.mxu1 %v10747_v51  ;;  %v2515_v51 = vld [vmem:[#allocation3 + $0x118] sm:$0x1]  ;;  %v14920_v5 = vsel %vm1013_vm4, %v2849_v15, %v2857_v40  ;;  %v14938_v2 = vsel %vm1013_vm4, %v2857_v40, %v2865_v0 }
 0x354   : > { %v14915_v13 = vsel %vm1646_vm5, %v4128_v55, %v4136_v19  ;;  %v2580_v55 = vld [vmem:[#allocation11 + $0x9f8] sm:$0xff]  ;;  %v2875_v56 = vrot.slane %v2515_v51, 1  ;;  %v14932_v15 = vsel %vm1646_vm5, %v4136_v19, %v4144_v4  ;;  %v2579_v51 = vld [vmem:[#allocation11 + $0x9f0] sm:$0xff] }
 0x355   : > { %3111 = vmatmul.mubr.f32.gmra.mrb[24].mxu1 %v14900_v20  ;;  %4388 = vmatmul.mubr.f32.gmra.mrb[24].mxu0 %v14904_v57  ;;  %16685 = vst [vmem:[#allocation64_spill] sm:$0xff] %v14915_v13  ;;  %v10755_v57 = vpack.c.bf16 %v2572_v11, %v2568_v32  ;;  %v3819_v32 = vld [vmem:[#allocation3 + $0x110] sm:$0x3]  ;;  %16687 = vst [vmem:[#allocation66_spill] sm:$0xff] %v14932_v15  ;;  %v4142_v11 = vrot.slane %v14643_v61, 2 }
 0x356   : > { %3116 = vmatprep.mubr.f32.mxu1 %v14910_v18  ;;  %10750 = vmatpush1.bf16.msra.mxu1 %v10749_v17  ;;  %v2576_v17 = vld [vmem:[#allocation11 + $0x9d8] sm:$0xff]  ;;  %v4150_v19 = vrot.slane %v3819_v32, 2  ;;  %v14946_v61 = vsel %vm1013_vm4, %v2867_v45, %v2875_v56 }
 0x357   : > { %4393 = vmatprep.mubr.f32.mxu0 %v14915_v13  ;;  %10752 = vmatprep.subr.bf16.mxu1 %v10751_v60  ;;  %v2514_v60 = vld [vmem:[#allocation3 + $0x110] sm:$0x1]  ;;  %v4152_v13 = vrot.slane %v3820_v59, 2  ;;  %v10759_v31 = vpack.c.bf16 %v2580_v55, %v2576_v17  ;;  %v14941_v41 = vsel %vm1646_vm5, %v4134_v23, %v4142_v11  ;;  %v10763_v23 = vpack.c.bf16 %v2588_v44, %v2584_v43  ;;  %v2583_v59 = vld [vmem:[#allocation11 + $0xa10] sm:$0xff]  ;;  %v2592_v45 = vld [vmem:[#allocation11 + $0xa58] sm:$0xff] }
 0x358   : > { %16688 = vst [vmem:[#allocation67_spill] sm:$0xff] %v14941_v41  ;;  %v2587_v17 = vld [vmem:[#allocation11 + $0xa30] sm:$0xff]  ;;  %v2596_v56 = vld [vmem:[#allocation11 + $0xa78] sm:$0xff] }
 0x359   : > { %3117 = vmatmul.mubr.f32.gmra.mrb[26].mxu1 %v14920_v5  ;;  %4394 = vmatmul.mubr.f32.gmra.mrb[26].mxu0 %v14923_v42  ;;  %v2575_v42 = vld [vmem:[#allocation11 + $0x9d0] sm:$0xff]  ;;  %v14950_v40 = vsel %vm1646_vm5, %v4144_v4, %v4152_v13  ;;  %v10765_v13 = vpack.c.bf16 %v2587_v17, %v2583_v59  ;;  %v10767_v44 = vpack.c.bf16 %v2596_v56, %v2592_v45  ;;  %v2600_v32 = vld [vmem:[#allocation11 + $0xa98] sm:$0xff] }
 0x35a   : > { %3122 = vmatprep.mubr.f32.mxu1 %v14928_v26  ;;  %10754 = vmatpush1.bf16.msra.mxu1 %v10753_v54  ;;  %v2873_v54 = vrot.slane %v2514_v60, 1  ;;  %16689 = vst [vmem:[#allocation68_spill] sm:$0xff] %v14950_v40  ;;  %v14957_v60 = vsel %vm1646_vm5, %v4142_v11, %v4150_v19  ;;  %v2591_v43 = vld [vmem:[#allocation11 + $0xa50] sm:$0xff]  ;;  %v2608_v19 = vld [vmem:[#allocation11 + $0xad8] sm:$0xff] }
 0x35b   : > { %4399 = vmatprep.mubr.f32.mxu0 %v14932_v15  ;;  %10756 = vmatprep.subr.bf16.mxu1 %v10755_v57  ;;  %v10761_v57 = vpack.c.bf16 %v2579_v51, %v2575_v42  ;;  %16690 = vst [vmem:[#allocation69_spill] sm:$0xff] %v14957_v60  ;;  %v16691_v42 = vld [vmem:[#allocation48_spill] sm:$0xff]  ;;  %v2616_v45 = vld [vmem:[#allocation11 + $0xb18] sm:$0xff] }
 0x35c   : > { %v14954_v55 = vsel %vm1013_vm4, %v2865_v0, %v2873_v54  ;;  %v2595_v4 = vld [vmem:[#allocation11 + $0xa70] sm:$0xff]  ;;  %v2604_v0 = vld [vmem:[#allocation11 + $0xab8] sm:$0xff] }
 0x35d   : > { %3123 = vmatmul.mubr.f32.gmra.mrb[28].mxu1 %v14938_v2  ;;  %4400 = vmatmul.mubr.f32.gmra.mrb[28].mxu0 %v14941_v41  ;;  %v10769_v11 = vpack.c.bf16 %v2595_v4, %v2591_v43  ;;  %v2599_v51 = vld [vmem:[#allocation11 + $0xa90] sm:$0xff]  ;;  %v2620_v56 = vld [vmem:[#allocation11 + $0xb38] sm:$0xff] }
 0x35e   : > { %3128 = vmatprep.mubr.f32.mxu1 %v14946_v61  ;;  %10758 = vmatpush1.bf16.msra.mxu1 %v10757_v63  ;;  %v16692_v63 = vmov 0.0   ;;  %v2603_v54 = vld [vmem:[#allocation11 + $0xab0] sm:$0xff]  ;;  %v2628_v4 = vld [vmem:[#allocation11 + $0xb78] sm:$0xff] }
 0x35f   : > { %4405 = vmatprep.mubr.f32.mxu0 %v14950_v40  ;;  %10760 = vmatprep.subr.bf16.mxu1 %v10759_v31  ;;  %v10771_v31 = vpack.c.bf16 %v2604_v0, %v2600_v32  ;;  %v2611_v17 = vld [vmem:[#allocation11 + $0xaf0] sm:$0xff]  ;;  %v10779_v40 = vpack.c.bf16 %v2620_v56, %v2616_v45 }
 0x360   : > { %v2619_v43 = vld [vmem:[#allocation11 + $0xb30] sm:$0xff] }
 0x361   : > { %3129 = vmatmul.mubr.f32.gmra.mrb[30].mxu1 %v14954_v55  ;;  %4406 = vmatmul.mubr.f32.gmra.mrb[30].mxu0 %v14957_v60  ;;  %v2612_v60 = vld [vmem:[#allocation11 + $0xaf8] sm:$0xff] }
 0x362   : > { %10762 = vmatpush1.bf16.msra.mxu1 %v10761_v57  ;;  %3199 = vmatprep.mubr.f32.mxu1 %v16691_v42  ;;  %v10773_v57 = vpack.c.bf16 %v2603_v54, %v2599_v51  ;;  %v10775_v59 = vpack.c.bf16 %v2612_v60, %v2608_v19  ;;  %v2627_v51 = vld [vmem:[#allocation11 + $0xb70] sm:$0xff]  ;;  %v2636_v60 = vld [vmem:[#allocation11 + $0xbb8] sm:$0xff] }
 0x363   : > { %10764 = vmatprep.subr.bf16.mxu1 %v10763_v23  ;;  %4836 = vmatprep.mubr.f32.mxu0 %v16692_v63  ;;  %v2607_v23 = vld [vmem:[#allocation11 + $0xad0] sm:$0xff] }
 0x364   : > { %v10777_v42 = vpack.c.bf16 %v2611_v17, %v2607_v23  ;;  %v2635_v23 = vld [vmem:[#allocation11 + $0xbb0] sm:$0xff]  ;;  %v2644_v17 = vld [vmem:[#allocation11 + $0xbf8] sm:$0xff] }
 0x366   : > { %10766 = vmatpush1.bf16.msra.mxu1 %v10765_v13  ;;  %v2615_v13 = vld [vmem:[#allocation11 + $0xb10] sm:$0xff] }
 0x367   : > { %10768 = vmatprep.subr.bf16.mxu1 %v10767_v44  ;;  %v2624_v44 = vld [vmem:[#allocation11 + $0xb58] sm:$0xff]  ;;  %v10781_v32 = vpack.c.bf16 %v2619_v43, %v2615_v13  ;;  %v2643_v13 = vld [vmem:[#allocation11 + $0xbf0] sm:$0xff] }
 0x368   : > { %v10783_v0 = vpack.c.bf16 %v2628_v4, %v2624_v44  ;;  %v2652_v43 = vld [vmem:[#allocation11 + $0xc38] sm:$0xff] }
 0x36a   : > { %10770 = vmatpush1.bf16.msra.mxu1 %v10769_v11  ;;  %v2623_v11 = vld [vmem:[#allocation11 + $0xb50] sm:$0xff] }
 0x36b   : > { %10772 = vmatprep.subr.bf16.mxu1 %v10771_v31  ;;  %v2632_v31 = vld [vmem:[#allocation11 + $0xb98] sm:$0xff]  ;;  %v10785_v54 = vpack.c.bf16 %v2627_v51, %v2623_v11  ;;  %v2651_v11 = vld [vmem:[#allocation11 + $0xc30] sm:$0xff] }
 0x36c   : > { %v10787_v19 = vpack.c.bf16 %v2636_v60, %v2632_v31  ;;  %v2660_v51 = vld [vmem:[#allocation11 + $0xc78] sm:$0xff] }
 0x36e   : > { %10774 = vmatpush1.bf16.msra.mxu1 %v10773_v57  ;;  %v2631_v57 = vld [vmem:[#allocation11 + $0xb90] sm:$0xff] }
 0x36f   : > { %10776 = vmatprep.subr.bf16.mxu1 %v10775_v59  ;;  %v2640_v59 = vld [vmem:[#allocation11 + $0xbd8] sm:$0xff]  ;;  %v10789_v45 = vpack.c.bf16 %v2635_v23, %v2631_v57  ;;  %v2659_v57 = vld [vmem:[#allocation11 + $0xc70] sm:$0xff] }
 0x370   : > { %v10791_v56 = vpack.c.bf16 %v2644_v17, %v2640_v59  ;;  %v2668_v23 = vld [vmem:[#allocation11 + $0xcb8] sm:$0xff] }
 0x372   : > { %10778 = vmatpush1.bf16.msra.mxu1 %v10777_v42  ;;  %v2639_v42 = vld [vmem:[#allocation11 + $0xbd0] sm:$0xff] }
 0x373   : > { %10780 = vmatprep.subr.bf16.mxu1 %v10779_v40  ;;  %v2648_v40 = vld [vmem:[#allocation11 + $0xc18] sm:$0xff]  ;;  %v10793_v44 = vpack.c.bf16 %v2643_v13, %v2639_v42 }
 0x374   : > { %v10795_v4 = vpack.c.bf16 %v2652_v43, %v2648_v40  ;;  %v2672_v42 = vld [vmem:[#allocation11 + $0xcd8] sm:$0xff] }
 0x375   : > { %v2676_v13 = vld [vmem:[#allocation11 + $0xcf8] sm:$0xff] }
 0x376   : > { %10782 = vmatpush1.bf16.msra.mxu1 %v10781_v32  ;;  %v2647_v32 = vld [vmem:[#allocation11 + $0xc10] sm:$0xff]  ;;  %v10807_v43 = vpack.c.bf16 %v2676_v13, %v2672_v42  ;;  %v2712_v13 = vld [vmem:[#allocation11 + $0xe18] sm:$0xff] }
 0x377   : > { %10784 = vmatprep.subr.bf16.mxu1 %v10783_v0  ;;  %v2656_v0 = vld [vmem:[#allocation11 + $0xc58] sm:$0xff]  ;;  %v10797_v31 = vpack.c.bf16 %v2651_v11, %v2647_v32  ;;  %v2703_v42 = vld [vmem:[#allocation11 + $0xdd0] sm:$0xff] }
 0x378   : > { %v10799_v60 = vpack.c.bf16 %v2660_v51, %v2656_v0  ;;  %v2679_v0 = vld [vmem:[#allocation11 + $0xd10] sm:$0xff]  ;;  %v2688_v51 = vld [vmem:[#allocation11 + $0xd58] sm:$0xff] }
 0x37a   : > { %10786 = vmatpush1.bf16.msra.mxu1 %v10785_v54  ;;  %v2655_v54 = vld [vmem:[#allocation11 + $0xc50] sm:$0xff] }
 0x37b   : > { %10788 = vmatprep.subr.bf16.mxu1 %v10787_v19  ;;  %v2664_v19 = vld [vmem:[#allocation11 + $0xc98] sm:$0xff]  ;;  %v10801_v59 = vpack.c.bf16 %v2659_v57, %v2655_v54  ;;  %v2687_v54 = vld [vmem:[#allocation11 + $0xd50] sm:$0xff] }
 0x37c   : > { %v10803_v17 = vpack.c.bf16 %v2668_v23, %v2664_v19  ;;  %v2696_v57 = vld [vmem:[#allocation11 + $0xd98] sm:$0xff] }
 0x37e   : > { %10790 = vmatpush1.bf16.msra.mxu1 %v10789_v45  ;;  %v2663_v45 = vld [vmem:[#allocation11 + $0xc90] sm:$0xff] }
 0x37f   : > { %10792 = vmatprep.subr.bf16.mxu1 %v10791_v56  ;;  %v2667_v56 = vld [vmem:[#allocation11 + $0xcb0] sm:$0xff] }
 0x380   : > { %v10805_v40 = vpack.c.bf16 %v2667_v56, %v2663_v45 }
 0x382   : > { %10794 = vmatpush1.bf16.msra.mxu1 %v10793_v44  ;;  %v2671_v44 = vld [vmem:[#allocation11 + $0xcd0] sm:$0xff] }
 0x383   : > { %10796 = vmatprep.subr.bf16.mxu1 %v10795_v4  ;;  %v2680_v4 = vld [vmem:[#allocation11 + $0xd18] sm:$0xff] }
 0x385   : > { %3200 = vmatmul.mubr.f32.vlgmr.msra.gmra.mrb[32].mxu1 %v14588_v37  ;;  %v2675_v37 = vld [vmem:[#allocation11 + $0xcf0] sm:$0xff] }
 0x386   : > { %3205 = vmatprep.mubr.f32.mxu1 %v14605_v27  ;;  %10798 = vmatpush1.bf16.msra.mxu1 %v10797_v31  ;;  %v2684_v27 = vld [vmem:[#allocation11 + $0xd38] sm:$0xff]  ;;  %v10809_v32 = vpack.c.bf16 %v2675_v37, %v2671_v44  ;;  %v2711_v44 = vld [vmem:[#allocation11 + $0xe10] sm:$0xff] }
 0x387   : > { %10800 = vmatprep.subr.bf16.mxu1 %v10799_v60  ;;  %v10811_v11 = vpack.c.bf16 %v2684_v27, %v2680_v4  ;;  %v2720_v37 = vld [vmem:[#allocation11 + $0xe58] sm:$0xff] }
 0x389   : > { %3206 = vmatmul.mubr.f32.gmra.mrb[34].mxu1 %v14634_v53  ;;  %v2683_v53 = vld [vmem:[#allocation11 + $0xd30] sm:$0xff] }
 0x38a   : > { %3211 = vmatprep.mubr.f32.mxu1 %v14662_v16  ;;  %10802 = vmatpush1.bf16.msra.mxu1 %v10801_v59  ;;  %v2692_v16 = vld [vmem:[#allocation11 + $0xd78] sm:$0xff]  ;;  %v10813_v31 = vpack.c.bf16 %v2683_v53, %v2679_v0  ;;  %v2695_v59 = vld [vmem:[#allocation11 + $0xd90] sm:$0xff] }
 0x38b   : > { %10804 = vmatprep.subr.bf16.mxu1 %v10803_v17  ;;  %v10815_v60 = vpack.c.bf16 %v2692_v16, %v2688_v51  ;;  %v2704_v17 = vld [vmem:[#allocation11 + $0xdd8] sm:$0xff]  ;;  %v2727_v51 = vld [vmem:[#allocation11 + $0xe90] sm:$0xff] }
 0x38c   : > { %v2731_v16 = vld [vmem:[#allocation11 + $0xeb0] sm:$0xff] }
 0x38d   : > { %3212 = vmatmul.mubr.f32.gmra.mrb[36].mxu1 %v14681_v9  ;;  %v2691_v9 = vld [vmem:[#allocation11 + $0xd70] sm:$0xff] }
 0x38e   : > { %3217 = vmatprep.mubr.f32.mxu1 %v14696_v29  ;;  %10806 = vmatpush1.bf16.msra.mxu1 %v10805_v40  ;;  %v2700_v29 = vld [vmem:[#allocation11 + $0xdb8] sm:$0xff]  ;;  %v10817_v19 = vpack.c.bf16 %v2691_v9, %v2687_v54  ;;  %v2739_v9 = vld [vmem:[#allocation11 + $0xef0] sm:$0xff] }
 0x38f   : > { %10808 = vmatprep.subr.bf16.mxu1 %v10807_v43  ;;  %v10819_v23 = vpack.c.bf16 %v2700_v29, %v2696_v57  ;;  %v2744_v57 = vld [vmem:[#allocation11 + $0xf18] sm:$0xff] }
 0x390   : > { %v2748_v29 = vld [vmem:[#allocation11 + $0xf38] sm:$0xff] }
 0x391   : > { %3218 = vmatmul.mubr.f32.gmra.mrb[38].mxu1 %v14721_v33  ;;  %v2699_v33 = vld [vmem:[#allocation11 + $0xdb0] sm:$0xff] }
 0x392   : > { %3223 = vmatprep.mubr.f32.mxu1 %v14724_v46  ;;  %10810 = vmatpush1.bf16.msra.mxu1 %v10809_v32  ;;  %v2708_v46 = vld [vmem:[#allocation11 + $0xdf8] sm:$0xff]  ;;  %v10821_v45 = vpack.c.bf16 %v2699_v33, %v2695_v59  ;;  %v2719_v32 = vld [vmem:[#allocation11 + $0xe50] sm:$0xff] }
 0x393   : > { %10812 = vmatprep.subr.bf16.mxu1 %v10811_v11  ;;  %v10823_v56 = vpack.c.bf16 %v2708_v46, %v2704_v17  ;;  %v2728_v11 = vld [vmem:[#allocation11 + $0xe98] sm:$0xff]  ;;  %v2743_v59 = vld [vmem:[#allocation11 + $0xf10] sm:$0xff] }
 0x394   : > { %v2747_v33 = vld [vmem:[#allocation11 + $0xf30] sm:$0xff]  ;;  %v2752_v17 = vld [vmem:[#allocation11 + $0xf58] sm:$0xff] }
 0x395   : > { %3224 = vmatmul.mubr.f32.gmra.mrb[40].mxu1 %v14744_v48  ;;  %v2707_v48 = vld [vmem:[#allocation11 + $0xdf0] sm:$0xff]  ;;  %v2756_v46 = vld [vmem:[#allocation11 + $0xf78] sm:$0xff] }
 0x396   : > { %3229 = vmatprep.mubr.f32.mxu1 %v14747_v1  ;;  %10814 = vmatpush1.bf16.msra.mxu1 %v10813_v31  ;;  %v2716_v1 = vld [vmem:[#allocation11 + $0xe38] sm:$0xff]  ;;  %v10825_v40 = vpack.c.bf16 %v2707_v48, %v2703_v42  ;;  %v2751_v42 = vld [vmem:[#allocation11 + $0xf50] sm:$0xff] }
 0x397   : > { %10816 = vmatprep.subr.bf16.mxu1 %v10815_v60  ;;  %v10827_v43 = vpack.c.bf16 %v2716_v1, %v2712_v13  ;;  %v2736_v31 = vld [vmem:[#allocation11 + $0xed8] sm:$0xff]  ;;  %v2755_v48 = vld [vmem:[#allocation11 + $0xf70] sm:$0xff] }
 0x398   : > { %v2740_v60 = vld [vmem:[#allocation11 + $0xef8] sm:$0xff] }
 0x399   : > { %3230 = vmatmul.mubr.f32.gmra.mrb[42].mxu1 %v14764_v10  ;;  %v2715_v10 = vld [vmem:[#allocation11 + $0xe30] sm:$0xff]  ;;  %v10839_v54 = vpack.c.bf16 %v2740_v60, %v2736_v31  ;;  %v2760_v13 = vld [vmem:[#allocation11 + $0xf98] sm:$0xff]  ;;  %v2261_v31 = vld [vmem:[#allocation11 + $0x48] sm:$0xff] }
 0x39a   : > { %3235 = vmatprep.mubr.f32.mxu1 %v14767_v7  ;;  %10818 = vmatpush1.bf16.msra.mxu1 %v10817_v19  ;;  %v2724_v7 = vld [vmem:[#allocation11 + $0xe78] sm:$0xff]  ;;  %v10829_v4 = vpack.c.bf16 %v2715_v10, %v2711_v44  ;;  %v2759_v44 = vld [vmem:[#allocation11 + $0xf90] sm:$0xff]  ;;  %v2265_v60 = vld [vmem:[#allocation11 + $0x68] sm:$0xff] }
 0x39b   : > { %10820 = vmatprep.subr.bf16.mxu1 %v10819_v23  ;;  %v10831_v27 = vpack.c.bf16 %v2724_v7, %v2720_v37  ;;  %v10843_v23 = vpack.c.bf16 %v2748_v29, %v2744_v57  ;;  %v2764_v1 = vld [vmem:[#allocation11 + $0xfb8] sm:$0xff]  ;;  %v2763_v10 = vld [vmem:[#allocation11 + $0xfb0] sm:$0xff]  ;;  %v2269_v57 = vld [vmem:[#allocation11 + $0x88] sm:$0xff] }
 0x39c   : > { %v2768_v37 = vld [vmem:[#allocation11 + $0xfd8] sm:$0xff]  ;;  %v2273_v29 = vld [vmem:[#allocation11 + $0xa8] sm:$0xff] }
 0x39d   : > { %3236 = vmatmul.mubr.f32.gmra.mrb[44].mxu1 %v14782_v58  ;;  %v2723_v58 = vld [vmem:[#allocation11 + $0xe70] sm:$0xff]  ;;  %v2772_v7 = vld [vmem:[#allocation11 + $0xff8] sm:$0xff] }
 0x39e   : > { %3241 = vmatprep.mubr.f32.mxu1 %v14785_v38  ;;  %10822 = vmatpush1.bf16.msra.mxu1 %v10821_v45  ;;  %v2732_v38 = vld [vmem:[#allocation11 + $0xeb8] sm:$0xff]  ;;  %v10833_v0 = vpack.c.bf16 %v2723_v58, %v2719_v32  ;;  %v10845_v45 = vpack.c.bf16 %v2747_v33, %v2743_v59  ;;  %v2767_v32 = vld [vmem:[#allocation11 + $0xfd0] sm:$0xff]  ;;  %v2268_v59 = vld [vmem:[#allocation11 + $0x80] sm:$0xff] }
 0x39f   : > { %10824 = vmatprep.subr.bf16.mxu1 %v10823_v56  ;;  %v10835_v53 = vpack.c.bf16 %v2732_v38, %v2728_v11  ;;  %v10847_v56 = vpack.c.bf16 %v2756_v46, %v2752_v17  ;;  %v2771_v58 = vld [vmem:[#allocation11 + $0xff0] sm:$0xff]  ;;  %v2253_v11 = vld [vmem:[#allocation11 + $0x8] sm:$0xff]  ;;  %v2272_v33 = vld [vmem:[#allocation11 + $0xa0] sm:$0xff] }
 0x3a0   : > { %v2257_v38 = vld [vmem:[#allocation11 + $0x28] sm:$0xff] }
 0x3a1   : > { %3242 = vmatmul.mubr.f32.gmra.mrb[46].mxu1 %v14798_v52  ;;  %v10837_v52 = vpack.c.bf16 %v2731_v16, %v2727_v51  ;;  %v2252_v51 = vld [vmem:[#allocation11] sm:$0xff]  ;;  %v2277_v17 = vld [vmem:[#allocation11 + $0xc8] sm:$0xff] }
 0x3a2   : > { %10826 = vmatpush1.bf16.msra.mxu1 %v10825_v40  ;;  %3312 = vmatprep.mubr.f32.mxu1 %v14809_v50  ;;  %v2735_v50 = vld [vmem:[#allocation11 + $0xed0] sm:$0xff]  ;;  %v10849_v40 = vpack.c.bf16 %v2755_v48, %v2751_v42  ;;  %v2256_v16 = vld [vmem:[#allocation11 + $0x20] sm:$0xff]  ;;  %v2281_v46 = vld [vmem:[#allocation11 + $0xe8] sm:$0xff] }
 0x3a3   : > { %10828 = vmatprep.subr.bf16.mxu1 %v10827_v43  ;;  %v10841_v19 = vpack.c.bf16 %v2739_v9, %v2735_v50  ;;  %v10851_v43 = vpack.c.bf16 %v2764_v1, %v2760_v13  ;;  %v2260_v50 = vld [vmem:[#allocation11 + $0x40] sm:$0xff]  ;;  %v2285_v48 = vld [vmem:[#allocation11 + $0x108] sm:$0xff] }
 0x3a4   : > { %v2264_v9 = vld [vmem:[#allocation11 + $0x60] sm:$0xff] }
 0x3a5   : > { %v2276_v42 = vld [vmem:[#allocation11 + $0xc0] sm:$0xff] }
 0x3a6   : > { %10830 = vmatpush1.bf16.msra.mxu1 %v10829_v4  ;;  %v10853_v4 = vpack.c.bf16 %v2763_v10, %v2759_v44 }
 0x3a7   : > { %10832 = vmatprep.subr.bf16.mxu1 %v10831_v27  ;;  %v10855_v27 = vpack.c.bf16 %v2772_v7, %v2768_v37  ;;  %v2292_v37 = vld [vmem:[#allocation11 + $0x140] sm:$0xff]  ;;  %v2301_v7 = vld [vmem:[#allocation11 + $0x188] sm:$0xff] }
 0x3aa   : > { %10834 = vmatpush1.bf16.msra.mxu1 %v10833_v0  ;;  %v10857_v0 = vpack.c.bf16 %v2771_v58, %v2767_v32  ;;  %v2300_v32 = vld [vmem:[#allocation11 + $0x180] sm:$0xff]  ;;  %v2309_v58 = vld [vmem:[#allocation11 + $0x1c8] sm:$0xff] }
 0x3ab   : > { %10836 = vmatprep.subr.bf16.mxu1 %v10835_v53  ;;  %v10859_v53 = vpack.c.bf16 %v2257_v38, %v2253_v11 }
 0x3ae   : > { %10838 = vmatpush1.bf16.msra.mxu1 %v10837_v52  ;;  %v10861_v52 = vpack.c.bf16 %v2256_v16, %v2252_v51 }
 0x3af   : > { %10840 = vmatprep.subr.bf16.mxu1 %v10839_v54  ;;  %v10863_v54 = vpack.c.bf16 %v2265_v60, %v2261_v31  ;;  %v2316_v31 = vld [vmem:[#allocation11 + $0x200] sm:$0xff]  ;;  %v2325_v60 = vld [vmem:[#allocation11 + $0x248] sm:$0xff] }
 0x3b2   : > { %10842 = vmatpush1.bf16.msra.mxu1 %v10841_v19  ;;  %v10865_v19 = vpack.c.bf16 %v2264_v9, %v2260_v50  ;;  %v2324_v50 = vld [vmem:[#allocation11 + $0x240] sm:$0xff]  ;;  %v2333_v9 = vld [vmem:[#allocation11 + $0x288] sm:$0xff] }
 0x3b3   : > { %10844 = vmatprep.subr.bf16.mxu1 %v10843_v23  ;;  %v10867_v23 = vpack.c.bf16 %v2273_v29, %v2269_v57  ;;  %v2337_v57 = vld [vmem:[#allocation11 + $0x2a8] sm:$0xff] }
 0x3b6   : > { %10846 = vmatpush1.bf16.msra.mxu1 %v10845_v45  ;;  %v10869_v45 = vpack.c.bf16 %v2272_v33, %v2268_v59  ;;  %v2336_v59 = vld [vmem:[#allocation11 + $0x2a0] sm:$0xff]  ;;  %v2341_v33 = vld [vmem:[#allocation11 + $0x2c8] sm:$0xff] }
 0x3b7   : > { %10848 = vmatprep.subr.bf16.mxu1 %v10847_v56  ;;  %v10871_v56 = vpack.c.bf16 %v2281_v46, %v2277_v17 }
 0x3ba   : > { %10850 = vmatpush1.bf16.msra.mxu1 %v10849_v40  ;;  %v2284_v40 = vld [vmem:[#allocation11 + $0x100] sm:$0xff] }
 0x3bb   : > { %10852 = vmatprep.subr.bf16.mxu1 %v10851_v43  ;;  %v2293_v43 = vld [vmem:[#allocation11 + $0x148] sm:$0xff] }
 0x3be   : > { %10854 = vmatpush1.bf16.msra.mxu1 %v10853_v4 }
 0x3bf   : > { %10856 = vmatprep.subr.bf16.mxu1 %v10855_v27 }
 0x3c2   : > { %10858 = vmatpush1.bf16.msra.mxu1 %v10857_v0  ;;  %v2308_v0 = vld [vmem:[#allocation11 + $0x1c0] sm:$0xff] }
 0x3c3   : > { %10860 = vmatprep.subr.bf16.mxu1 %v10859_v53  ;;  %v2317_v53 = vld [vmem:[#allocation11 + $0x208] sm:$0xff] }
 0x3c5   : > { %3313 = vmatmul.mubr.f32.vlgmr.msra.gmra.mrb[32].mxu1 %v14822_v39  ;;  %v2280_v39 = vld [vmem:[#allocation11 + $0xe0] sm:$0xff] }
 0x3c6   : > { %3318 = vmatprep.mubr.f32.mxu1 %v14832_v22  ;;  %10862 = vmatpush1.bf16.msra.mxu1 %v10861_v52  ;;  %v2289_v22 = vld [vmem:[#allocation11 + $0x128] sm:$0xff]  ;;  %v10873_v13 = vpack.c.bf16 %v2280_v39, %v2276_v42 }
 0x3c7   : > { %10864 = vmatprep.subr.bf16.mxu1 %v10863_v54  ;;  %v10875_v1 = vpack.c.bf16 %v2289_v22, %v2285_v48  ;;  %v14994_v52 = vld [vmem:[#allocation3 + $0x8] sm:$0xff] }
 0x3c8   : > { %v2349_v42 = vld [vmem:[#allocation11 + $0x308] sm:$0xff] }
 0x3c9   : > { %3319 = vmatmul.mubr.f32.gmra.mrb[34].mxu1 %v14846_v30  ;;  %v2288_v30 = vld [vmem:[#allocation11 + $0x120] sm:$0xff]  ;;  %v2353_v39 = vld [vmem:[#allocation11 + $0x328] sm:$0xff] }
 0x3ca   : > { %3324 = vmatprep.mubr.f32.mxu1 %v14854_v6  ;;  %10866 = vmatpush1.bf16.msra.mxu1 %v10865_v19  ;;  %v2297_v6 = vld [vmem:[#allocation11 + $0x168] sm:$0xff]  ;;  %v10877_v44 = vpack.c.bf16 %v2288_v30, %v2284_v40  ;;  %v10899_v19 = vpack.c.bf16 %v2337_v57, %v2333_v9  ;;  %v10907_v22 = vpack.c.bf16 %v2353_v39, %v2349_v42  ;;  %v2404_v42 = vld [vmem:[#allocation11 + $0x4c0] sm:$0xff] }
 0x3cb   : > { %10868 = vmatprep.subr.bf16.mxu1 %v10867_v23  ;;  %v10879_v10 = vpack.c.bf16 %v2297_v6, %v2293_v43  ;;  %v2332_v23 = vld [vmem:[#allocation11 + $0x280] sm:$0xff]  ;;  %v2357_v40 = vld [vmem:[#allocation11 + $0x348] sm:$0xff] }
 0x3cc   : > { %v10901_v17 = vpack.c.bf16 %v2336_v59, %v2332_v23  ;;  %v2361_v30 = vld [vmem:[#allocation11 + $0x368] sm:$0xff]  ;;  %v2396_v23 = vld [vmem:[#allocation11 + $0x480] sm:$0xff] }
 0x3cd   : > { %3325 = vmatmul.mubr.f32.gmra.mrb[36].mxu1 %v14864_v36  ;;  %v2296_v36 = vld [vmem:[#allocation11 + $0x160] sm:$0xff]  ;;  %v10911_v6 = vpack.c.bf16 %v2361_v30, %v2357_v40  ;;  %v2401_v9 = vld [vmem:[#allocation11 + $0x4a8] sm:$0xff] }
 0x3ce   : > { %3330 = vmatprep.mubr.f32.mxu1 %v14874_v28  ;;  %10870 = vmatpush1.bf16.msra.mxu1 %v10869_v45  ;;  %v2305_v28 = vld [vmem:[#allocation11 + $0x1a8] sm:$0xff]  ;;  %v10881_v4 = vpack.c.bf16 %v2296_v36, %v2292_v37  ;;  %v2340_v45 = vld [vmem:[#allocation11 + $0x2c0] sm:$0xff] }
 0x3cf   : > { %10872 = vmatprep.subr.bf16.mxu1 %v10871_v56  ;;  %v10883_v27 = vpack.c.bf16 %v2305_v28, %v2301_v7  ;;  %v2344_v56 = vld [vmem:[#allocation11 + $0x2e0] sm:$0xff]  ;;  %v2365_v37 = vld [vmem:[#allocation11 + $0x388] sm:$0xff] }
 0x3d0   : > { %v10905_v48 = vpack.c.bf16 %v2344_v56, %v2340_v45  ;;  %v2369_v36 = vld [vmem:[#allocation11 + $0x3a8] sm:$0xff]  ;;  %v2400_v59 = vld [vmem:[#allocation11 + $0x4a0] sm:$0xff] }
 0x3d1   : > { %3331 = vmatmul.mubr.f32.gmra.mrb[38].mxu1 %v14883_v3  ;;  %v2304_v3 = vld [vmem:[#allocation11 + $0x1a0] sm:$0xff]  ;;  %v10915_v28 = vpack.c.bf16 %v2369_v36, %v2365_v37  ;;  %v10933_v45 = vpack.c.bf16 %v2400_v59, %v2396_v23 }
 0x3d2   : > { %3336 = vmatprep.mubr.f32.mxu1 %v14892_v49  ;;  %10874 = vmatpush1.bf16.msra.mxu1 %v10873_v13  ;;  %v2313_v49 = vld [vmem:[#allocation11 + $0x1e8] sm:$0xff]  ;;  %v10885_v11 = vpack.c.bf16 %v2304_v3, %v2300_v32  ;;  %v2348_v13 = vld [vmem:[#allocation11 + $0x300] sm:$0xff] }
 0x3d3   : > { %10876 = vmatprep.subr.bf16.mxu1 %v10875_v1  ;;  %v10887_v38 = vpack.c.bf16 %v2313_v49, %v2309_v58  ;;  %v2352_v1 = vld [vmem:[#allocation11 + $0x320] sm:$0xff]  ;;  %v2373_v32 = vld [vmem:[#allocation11 + $0x3c8] sm:$0xff] }
 0x3d4   : > { %v10909_v43 = vpack.c.bf16 %v2352_v1, %v2348_v13  ;;  %v2377_v3 = vld [vmem:[#allocation11 + $0x3e8] sm:$0xff]  ;;  %v2408_v39 = vld [vmem:[#allocation11 + $0x4e0] sm:$0xff] }
 0x3d5   : > { %3337 = vmatmul.mubr.f32.gmra.mrb[40].mxu1 %v14900_v20  ;;  %v2312_v20 = vld [vmem:[#allocation11 + $0x1e0] sm:$0xff]  ;;  %v10919_v49 = vpack.c.bf16 %v2377_v3, %v2373_v32  ;;  %v10937_v40 = vpack.c.bf16 %v2408_v39, %v2404_v42  ;;  %v2429_v32 = vld [vmem:[#allocation11 + $0x588] sm:$0xff] }
 0x3d6   : > { %3342 = vmatprep.mubr.f32.mxu1 %v14910_v18  ;;  %10878 = vmatpush1.bf16.msra.mxu1 %v10877_v44  ;;  %v2321_v18 = vld [vmem:[#allocation11 + $0x228] sm:$0xff]  ;;  %v10889_v51 = vpack.c.bf16 %v2312_v20, %v2308_v0  ;;  %v2356_v44 = vld [vmem:[#allocation11 + $0x340] sm:$0xff] }
 0x3d7   : > { %10880 = vmatprep.subr.bf16.mxu1 %v10879_v10  ;;  %v10891_v16 = vpack.c.bf16 %v2321_v18, %v2317_v53  ;;  %v2360_v10 = vld [vmem:[#allocation11 + $0x360] sm:$0xff]  ;;  %v2381_v0 = vld [vmem:[#allocation11 + $0x408] sm:$0xff] }
 0x3d8   : > { %v10913_v7 = vpack.c.bf16 %v2360_v10, %v2356_v44  ;;  %v2385_v20 = vld [vmem:[#allocation11 + $0x428] sm:$0xff]  ;;  %v15009_v13 = vld [vmem:[#allocation3 + $0x40] sm:$0xff] }
 0x3d9   : > { %3343 = vmatmul.mubr.f32.gmra.mrb[42].mxu1 %v14920_v5  ;;  %v2320_v5 = vld [vmem:[#allocation11 + $0x220] sm:$0xff]  ;;  %v10923_v18 = vpack.c.bf16 %v2385_v20, %v2381_v0  ;;  %v2421_v44 = vld [vmem:[#allocation11 + $0x548] sm:$0xff] }
 0x3da   : > { %3348 = vmatprep.mubr.f32.mxu1 %v14928_v26  ;;  %10882 = vmatpush1.bf16.msra.mxu1 %v10881_v4  ;;  %v2329_v26 = vld [vmem:[#allocation11 + $0x268] sm:$0xff]  ;;  %v10893_v54 = vpack.c.bf16 %v2320_v5, %v2316_v31  ;;  %v2364_v4 = vld [vmem:[#allocation11 + $0x380] sm:$0xff] }
 0x3db   : > { %10884 = vmatprep.subr.bf16.mxu1 %v10883_v27  ;;  %v2368_v27 = vld [vmem:[#allocation11 + $0x3a0] sm:$0xff]  ;;  %v2389_v31 = vld [vmem:[#allocation11 + $0x448] sm:$0xff] }
 0x3dc   : > { %v10917_v58 = vpack.c.bf16 %v2368_v27, %v2364_v4  ;;  %v2393_v5 = vld [vmem:[#allocation11 + $0x468] sm:$0xff]  ;;  %v15015_v37 = vld [vmem:[#allocation3 + $0x60] sm:$0xff] }
 0x3dd   : > { %3349 = vmatmul.mubr.f32.gmra.mrb[44].mxu1 %v14938_v2  ;;  %v10895_v2 = vpack.c.bf16 %v2329_v26, %v2325_v60  ;;  %v10927_v26 = vpack.c.bf16 %v2393_v5, %v2389_v31  ;;  %v15000_v57 = vld [vmem:[#allocation3 + $0x28] sm:$0xff] }
 0x3de   : > { %3354 = vmatprep.mubr.f32.mxu1 %v14946_v61  ;;  %10886 = vmatpush1.bf16.msra.mxu1 %v10885_v11  ;;  %v2328_v61 = vld [vmem:[#allocation11 + $0x260] sm:$0xff]  ;;  %v2425_v10 = vld [vmem:[#allocation11 + $0x568] sm:$0xff] }
 0x3df   : > { %10888 = vmatprep.subr.bf16.mxu1 %v10887_v38  ;;  %v10897_v29 = vpack.c.bf16 %v2328_v61, %v2324_v50  ;;  %v2372_v11 = vld [vmem:[#allocation11 + $0x3c0] sm:$0xff]  ;;  %v2397_v61 = vld [vmem:[#allocation11 + $0x488] sm:$0xff] }
 0x3e0   : > { %v2376_v38 = vld [vmem:[#allocation11 + $0x3e0] sm:$0xff]  ;;  %v2433_v3 = vld [vmem:[#allocation11 + $0x5a8] sm:$0xff] }
 0x3e1   : > { %3355 = vmatmul.mubr.f32.gmra.mrb[46].mxu1 %v14954_v55  ;;  %v2345_v55 = vld [vmem:[#allocation11 + $0x2e8] sm:$0xff]  ;;  %v10921_v53 = vpack.c.bf16 %v2376_v38, %v2372_v11  ;;  %v14997_v50 = vld [vmem:[#allocation3] sm:$0xff]  ;;  %v10947_v38 = vpack.c.bf16 %v2433_v3, %v2429_v32 }
 0x3e2   : > { %10890 = vmatpush1.bf16.msra.mxu1 %v10889_v51  ;;  %3425 = vmatprep.mubr.f32.mxu1 %v14994_v52  ;;  %v10903_v46 = vpack.c.bf16 %v2345_v55, %v2341_v33  ;;  %v2380_v51 = vld [vmem:[#allocation11 + $0x400] sm:$0xff]  ;;  %v2405_v33 = vld [vmem:[#allocation11 + $0x4c8] sm:$0xff] }
 0x3e3   : > { %10892 = vmatprep.subr.bf16.mxu1 %v10891_v16  ;;  %v2384_v16 = vld [vmem:[#allocation11 + $0x420] sm:$0xff]  ;;  %v2409_v55 = vld [vmem:[#allocation11 + $0x4e8] sm:$0xff] }
 0x3e4   : > { %v10925_v60 = vpack.c.bf16 %v2384_v16, %v2380_v51  ;;  %v10935_v56 = vpack.c.bf16 %v2409_v55, %v2405_v33  ;;  %v15012_v1 = vld [vmem:[#allocation3 + $0x68] sm:$0xff]  ;;  %v15029_v16 = vld [vmem:[#allocation3 + $0xa0] sm:$0xff] }
 0x3e5   : > { %v15018_v36 = vld [vmem:[#allocation3 + $0x88] sm:$0xff] }
 0x3e6   : > { %10894 = vmatpush1.bf16.msra.mxu1 %v10893_v54  ;;  %v2388_v54 = vld [vmem:[#allocation11 + $0x440] sm:$0xff]  ;;  %v2441_v51 = vld [vmem:[#allocation11 + $0x5e8] sm:$0xff] }
 0x3e7   : > { %10896 = vmatprep.subr.bf16.mxu1 %v10895_v2  ;;  %v2392_v2 = vld [vmem:[#allocation11 + $0x460] sm:$0xff]  ;;  %v2453_v39 = vld [vmem:[#allocation11 + $0x648] sm:$0xff] }
 0x3e8   : > { %v2420_v4 = vld [vmem:[#allocation11 + $0x540] sm:$0xff] }
 0x3e9   : > { %v2424_v27 = vld [vmem:[#allocation11 + $0x560] sm:$0xff] }
 0x3ea   : > { %10898 = vmatpush1.bf16.msra.mxu1 %v10897_v29  ;;  %v10929_v29 = vpack.c.bf16 %v2392_v2, %v2388_v54  ;;  %v10945_v11 = vpack.c.bf16 %v2424_v27, %v2420_v4  ;;  %v2428_v0 = vld [vmem:[#allocation11 + $0x580] sm:$0xff]  ;;  %v2465_v4 = vld [vmem:[#allocation11 + $0x6a8] sm:$0xff] }
 0x3eb   : > { %10900 = vmatprep.subr.bf16.mxu1 %v10899_v19  ;;  %v10931_v19 = vpack.c.bf16 %v2401_v9, %v2397_v61  ;;  %v2432_v20 = vld [vmem:[#allocation11 + $0x5a0] sm:$0xff]  ;;  %v2445_v9 = vld [vmem:[#allocation11 + $0x608] sm:$0xff] }
 0x3ec   : > { %v15034_v5 = vld [vmem:[#allocation3 + $0xc8] sm:$0xff] }
 0x3ed   : > { %v2436_v54 = vld [vmem:[#allocation11 + $0x5c0] sm:$0xff] }
 0x3ee   : > { %10902 = vmatpush1.bf16.msra.mxu1 %v10901_v17  ;;  %v15003_v17 = vld [vmem:[#allocation3 + $0x20] sm:$0xff]  ;;  %v15044_v59 = vld [vmem:[#allocation3 + $0xe8] sm:$0xff] }
 0x3ef   : > { %10904 = vmatprep.subr.bf16.mxu1 %v10903_v46  ;;  %v15006_v46 = vld [vmem:[#allocation3 + $0x48] sm:$0xff] }
 0x3f0   : > { %v2440_v2 = vld [vmem:[#allocation11 + $0x5e0] sm:$0xff] }
 0x3f1   : > { %v10953_v33 = vpack.c.bf16 %v2440_v2, %v2436_v54  ;;  %v2468_v54 = vld [vmem:[#allocation11 + $0x6c0] sm:$0xff] }
 0x3f2   : > { %10906 = vmatpush1.bf16.msra.mxu1 %v10905_v48  ;;  %v2413_v48 = vld [vmem:[#allocation11 + $0x508] sm:$0xff]  ;;  %v2472_v2 = vld [vmem:[#allocation11 + $0x6e0] sm:$0xff] }
 0x3f3   : > { %10908 = vmatprep.subr.bf16.mxu1 %v10907_v22  ;;  %v2417_v22 = vld [vmem:[#allocation11 + $0x528] sm:$0xff] }
 0x3f4   : > { %v10939_v30 = vpack.c.bf16 %v2417_v22, %v2413_v48  ;;  %v2457_v48 = vld [vmem:[#allocation11 + $0x668] sm:$0xff]  ;;  %v15049_v22 = vld [vmem:[#allocation3 + $0xe0] sm:$0xff] }
 0x3f6   : > { %10910 = vmatpush1.bf16.msra.mxu1 %v10909_v43  ;;  %v2412_v43 = vld [vmem:[#allocation11 + $0x500] sm:$0xff] }
 0x3f7   : > { %10912 = vmatprep.subr.bf16.mxu1 %v10911_v6  ;;  %v2416_v6 = vld [vmem:[#allocation11 + $0x520] sm:$0xff] }
 0x3fa   : > { %10914 = vmatpush1.bf16.msra.mxu1 %v10913_v7  ;;  %v10941_v7 = vpack.c.bf16 %v2416_v6, %v2412_v43  ;;  %v10959_v6 = vpack.c.bf16 %v2457_v48, %v2453_v39  ;;  %v2476_v39 = vld [vmem:[#allocation11 + $0x700] sm:$0xff] }
 0x3fb   : > { %10916 = vmatprep.subr.bf16.mxu1 %v10915_v28  ;;  %v10943_v28 = vpack.c.bf16 %v2425_v10, %v2421_v44  ;;  %v2452_v44 = vld [vmem:[#allocation11 + $0x640] sm:$0xff] }
 0x3fc   : > { %v2456_v10 = vld [vmem:[#allocation11 + $0x660] sm:$0xff] }
 0x3fd   : > { %v10961_v32 = vpack.c.bf16 %v2456_v10, %v2452_v44  ;;  %v2480_v48 = vld [vmem:[#allocation11 + $0x720] sm:$0xff]  ;;  %v2489_v44 = vld [vmem:[#allocation11 + $0x768] sm:$0xff] }
 0x3fe   : > { %10918 = vmatpush1.bf16.msra.mxu1 %v10917_v58  ;;  %v15021_v58 = vld [vmem:[#allocation3 + $0x80] sm:$0xff] }
 0x3ff   : > { %10920 = vmatprep.subr.bf16.mxu1 %v10919_v49  ;;  %v15024_v49 = vld [vmem:[#allocation3 + $0xa8] sm:$0xff] }
 0x402   : > { %10922 = vmatpush1.bf16.msra.mxu1 %v10921_v53 }
 0x403   : > { %10924 = vmatprep.subr.bf16.mxu1 %v10923_v18  ;;  %v2437_v18 = vld [vmem:[#allocation11 + $0x5c8] sm:$0xff] }
 0x405   : > { %3426 = vmatmul.mubr.f32.vlgmr.msra.gmra.mrb[16].mxu1 %v14997_v50 }
 0x406   : > { %3431 = vmatprep.mubr.f32.mxu1 %v15000_v57  ;;  %10926 = vmatpush1.bf16.msra.mxu1 %v10925_v60  ;;  %v10949_v60 = vpack.c.bf16 %v2432_v20, %v2428_v0  ;;  %v2469_v20 = vld [vmem:[#allocation11 + $0x6c8] sm:$0xff] }
 0x407   : > { %10928 = vmatprep.subr.bf16.mxu1 %v10927_v26  ;;  %v10951_v26 = vpack.c.bf16 %v2441_v51, %v2437_v18  ;;  %v2473_v18 = vld [vmem:[#allocation11 + $0x6e8] sm:$0xff] }
 0x409   : > { %3432 = vmatmul.mubr.f32.gmra.mrb[18].mxu1 %v15003_v17 }
 0x40a   : > { %3437 = vmatprep.mubr.f32.mxu1 %v15006_v46  ;;  %10930 = vmatpush1.bf16.msra.mxu1 %v10929_v29  ;;  %v2449_v29 = vld [vmem:[#allocation11 + $0x628] sm:$0xff] }
 0x40b   : > { %10932 = vmatprep.subr.bf16.mxu1 %v10931_v19  ;;  %v15039_v19 = vld [vmem:[#allocation3 + $0xc0] sm:$0xff]  ;;  %v10955_v55 = vpack.c.bf16 %v2449_v29, %v2445_v9  ;;  %v2477_v29 = vld [vmem:[#allocation11 + $0x708] sm:$0xff] }
 0x40d   : > { %3438 = vmatmul.mubr.f32.gmra.mrb[20].mxu1 %v15009_v13 }
 0x40e   : > { %3443 = vmatprep.mubr.f32.mxu1 %v15012_v1  ;;  %10934 = vmatpush1.bf16.msra.mxu1 %v10933_v45  ;;  %v2444_v45 = vld [vmem:[#allocation11 + $0x600] sm:$0xff] }
 0x40f   : > { %10936 = vmatprep.subr.bf16.mxu1 %v10935_v56  ;;  %v2448_v56 = vld [vmem:[#allocation11 + $0x620] sm:$0xff] }
 0x410   : > { %v10957_v43 = vpack.c.bf16 %v2448_v56, %v2444_v45  ;;  %v10969_v45 = vpack.c.bf16 %v2472_v2, %v2468_v54  ;;  %v2492_v54 = vld [vmem:[#allocation11 + $0x780] sm:$0xff] }
 0x411   : > { %3444 = vmatmul.mubr.f32.gmra.mrb[22].mxu1 %v15015_v37  ;;  %v2496_v2 = vld [vmem:[#allocation11 + $0x7a0] sm:$0xff] }
 0x412   : > { %3449 = vmatprep.mubr.f32.mxu1 %v15018_v36  ;;  %10938 = vmatpush1.bf16.msra.mxu1 %v10937_v40 }
 0x413   : > { %10940 = vmatprep.subr.bf16.mxu1 %v10939_v30  ;;  %v15054_v30 = vld [vmem:[#allocation3 + $0x18] sm:$0xff] }
 0x415   : > { %3450 = vmatmul.mubr.f32.gmra.mrb[24].mxu1 %v15021_v58 }
 0x416   : > { %3455 = vmatprep.mubr.f32.mxu1 %v15024_v49  ;;  %10942 = vmatpush1.bf16.msra.mxu1 %v10941_v7 }
 0x417   : > { %10944 = vmatprep.subr.bf16.mxu1 %v10943_v28  ;;  %v2461_v28 = vld [vmem:[#allocation11 + $0x688] sm:$0xff] }
 0x418   : > { %v15027_v53 = vpop.f32.mrb[16].mxu0  ;;  %v10963_v3 = vpack.c.bf16 %v2465_v4, %v2461_v28  ;;  %v10973_v28 = vpack.c.bf16 %v2480_v48, %v2476_v39  ;;  %v2500_v39 = vld [vmem:[#allocation11 + $0x7c0] sm:$0xff] }
 0x419   : > { %3456 = vmatmul.mubr.f32.gmra.mrb[26].mxu1 %v15029_v16  ;;  %v15032_v31 = vpop.f32.mrb[17].mxu0  ;;  %v2504_v48 = vld [vmem:[#allocation11 + $0x7e0] sm:$0xff] }
 0x41a   : > { %3461 = vmatprep.mubr.f32.mxu1 %v15034_v5  ;;  %10946 = vmatpush1.bf16.msra.mxu1 %v10945_v11  ;;  %v2460_v11 = vld [vmem:[#allocation11 + $0x680] sm:$0xff]  ;;  %v10985_v41 = vpack.c.bf16 %v2504_v48, %v2500_v39  ;;  %v2274_v39 = vld [vmem:[#allocation11 + $0xb0] sm:$0xff]  ;;  %v2283_v48 = vld [vmem:[#allocation11 + $0xf8] sm:$0xff] }
 0x41b   : > { %10948 = vmatprep.subr.bf16.mxu1 %v10947_v38  ;;  %v2464_v38 = vld [vmem:[#allocation11 + $0x6a0] sm:$0xff] }
 0x41c   : > { %v15037_v61 = vpop.f32.mrb[18].mxu0 }
 0x41d   : > { %3462 = vmatmul.mubr.f32.gmra.mrb[28].mxu1 %v15039_v19  ;;  %v15042_v23 = vpop.f32.mrb[19].mxu0 }
 0x41e   : > { %16693 = vst [vmem:[#allocation48_spill] sm:$0xff] %v15042_v23  ;;  %3467 = vmatprep.mubr.f32.mxu1 %v15044_v59  ;;  %10950 = vmatpush1.bf16.msra.mxu1 %v10949_v60  ;;  %v10965_v60 = vpack.c.bf16 %v2464_v38, %v2460_v11  ;;  %v2493_v38 = vld [vmem:[#allocation11 + $0x788] sm:$0xff] }
 0x41f   : > { %10952 = vmatprep.subr.bf16.mxu1 %v10951_v26  ;;  %v10967_v26 = vpack.c.bf16 %v2473_v18, %v2469_v20  ;;  %v2497_v20 = vld [vmem:[#allocation11 + $0x7a8] sm:$0xff] }
 0x420   : > { %v15047_v42 = vpop.f32.mrb[20].mxu0 }
 0x421   : > { %16694 = vst [vmem:[#allocation70_spill] sm:$0xff] %v15047_v42  ;;  %3468 = vmatmul.mubr.f32.gmra.mrb[30].mxu1 %v15049_v22  ;;  %v15052_v40 = vpop.f32.mrb[21].mxu0  ;;  %v2347_v42 = vld [vmem:[#allocation11 + $0x2f8] sm:$0xff] }
 0x422   : > { %16695 = vst [vmem:[#allocation71_spill] sm:$0xff] %v15052_v40  ;;  %10954 = vmatpush1.bf16.msra.mxu1 %v10953_v33  ;;  %3538 = vmatprep.mubr.f32.mxu1 %v15054_v30  ;;  %v2481_v33 = vld [vmem:[#allocation11 + $0x728] sm:$0xff]  ;;  %v2343_v40 = vld [vmem:[#allocation11 + $0x2d8] sm:$0xff] }
 0x423   : > { %10956 = vmatprep.subr.bf16.mxu1 %v10955_v55  ;;  %v10971_v56 = vpack.c.bf16 %v2481_v33, %v2477_v29  ;;  %v2501_v29 = vld [vmem:[#allocation11 + $0x7c8] sm:$0xff] }
 0x424   : > { %v15057_v7 = vpop.f32.mrb[22].mxu0  ;;  %v2505_v33 = vld [vmem:[#allocation11 + $0x7e8] sm:$0xff] }
 0x425   : > { %16696 = vst [vmem:[#allocation72_spill] sm:$0xff] %v15057_v7  ;;  %v15059_v27 = vpop.f32.mrb[23].mxu0  ;;  %v2330_v7 = vld [vmem:[#allocation11 + $0x270] sm:$0xff] }
 0x426   : > { %16697 = vst [vmem:[#allocation73_spill] sm:$0xff] %v15059_v27  ;;  %10958 = vmatpush1.bf16.msra.mxu1 %v10957_v43  ;;  %v2326_v27 = vld [vmem:[#allocation11 + $0x250] sm:$0xff] }
 0x427   : > { %10960 = vmatprep.subr.bf16.mxu1 %v10959_v6  ;;  %v2485_v6 = vld [vmem:[#allocation11 + $0x748] sm:$0xff] }
 0x428   : > { %v15061_v0 = vpop.f32.mrb[24].mxu0  ;;  %v10975_v4 = vpack.c.bf16 %v2489_v44, %v2485_v6  ;;  %v2255_v6 = vld [vmem:[#allocation11 + $0x18] sm:$0xff] }
 0x429   : > { %16698 = vst [vmem:[#allocation74_spill] sm:$0xff] %v15061_v0  ;;  %v15063_v51 = vpop.f32.mrb[25].mxu0  ;;  %v2259_v44 = vld [vmem:[#allocation11 + $0x38] sm:$0xff] }
 0x42a   : > { %16699 = vst [vmem:[#allocation75_spill] sm:$0xff] %v15063_v51  ;;  %10962 = vmatpush1.bf16.msra.mxu1 %v10961_v32  ;;  %v2484_v32 = vld [vmem:[#allocation11 + $0x740] sm:$0xff]  ;;  %v10987_v15 = vpack.c.bf16 %v2259_v44, %v2255_v6  ;;  %v15083_v6 = vld [vmem:[#allocation3 + $0x30] sm:$0xff]  ;;  %v15086_v44 = vld [vmem:[#allocation3 + $0x58] sm:$0xff] }
 0x42b   : > { %10964 = vmatprep.subr.bf16.mxu1 %v10963_v3  ;;  %v2488_v3 = vld [vmem:[#allocation11 + $0x760] sm:$0xff] }
 0x42c   : > { %v15065_v9 = vpop.f32.mrb[26].mxu0 }
 0x42d   : > { %16700 = vst [vmem:[#allocation76_spill] sm:$0xff] %v15065_v9  ;;  %v15067_v55 = vpop.f32.mrb[27].mxu0 }
 0x42e   : > { %16701 = vst [vmem:[#allocation77_spill] sm:$0xff] %v15067_v55  ;;  %10966 = vmatpush1.bf16.msra.mxu1 %v10965_v60  ;;  %v10977_v60 = vpack.c.bf16 %v2488_v3, %v2484_v32  ;;  %v2258_v32 = vld [vmem:[#allocation11 + $0x30] sm:$0xff]  ;;  %v2267_v3 = vld [vmem:[#allocation11 + $0x78] sm:$0xff] }
 0x42f   : > { %10968 = vmatprep.subr.bf16.mxu1 %v10967_v26  ;;  %v10979_v26 = vpack.c.bf16 %v2497_v20, %v2493_v38 }
 0x430   : > { %v15069_v43 = vpop.f32.mrb[28].mxu0 }
 0x431   : > { %16702 = vst [vmem:[#allocation78_spill] sm:$0xff] %v15069_v43  ;;  %v15071_v10 = vpop.f32.mrb[29].mxu0 }
 0x432   : > { %16703 = vst [vmem:[#allocation79_spill] sm:$0xff] %v15071_v10  ;;  %10970 = vmatpush1.bf16.msra.mxu1 %v10969_v45  ;;  %v10981_v45 = vpack.c.bf16 %v2496_v2, %v2492_v54  ;;  %v2266_v54 = vld [vmem:[#allocation11 + $0x70] sm:$0xff]  ;;  %v2271_v2 = vld [vmem:[#allocation11 + $0x98] sm:$0xff] }
 0x433   : > { %10972 = vmatprep.subr.bf16.mxu1 %v10971_v56  ;;  %v10983_v56 = vpack.c.bf16 %v2505_v33, %v2501_v29  ;;  %v2275_v29 = vld [vmem:[#allocation11 + $0xb8] sm:$0xff] }
 0x434   : > { %v15073_v11 = vpop.f32.mrb[30].mxu0  ;;  %v15080_v33 = vld [vmem:[#allocation3 + $0x38] sm:$0xff] }
 0x435   : > { %16704 = vst [vmem:[#allocation80_spill] sm:$0xff] %v15073_v11  ;;  %v15075_v18 = vpop.f32.mrb[31].mxu0 }
 0x436   : > { %16705 = vst [vmem:[#allocation81_spill] sm:$0xff] %v15075_v18  ;;  %10974 = vmatpush1.bf16.msra.mxu1 %v10973_v28  ;;  %v2254_v28 = vld [vmem:[#allocation11 + $0x10] sm:$0xff] }
 0x437   : > { %10976 = vmatprep.subr.bf16.mxu1 %v10975_v4  ;;  %v2263_v4 = vld [vmem:[#allocation11 + $0x58] sm:$0xff]  ;;  %v10989_v38 = vpack.c.bf16 %v2258_v32, %v2254_v28 }
 0x438   : > { %v10991_v20 = vpack.c.bf16 %v2267_v3, %v2263_v4  ;;  %v2278_v4 = vld [vmem:[#allocation11 + $0xd0] sm:$0xff] }
 0x439   : > { %v2282_v3 = vld [vmem:[#allocation11 + $0xf0] sm:$0xff] }
 0x43a   : > { %10978 = vmatpush1.bf16.msra.mxu1 %v10977_v60  ;;  %v2262_v60 = vld [vmem:[#allocation11 + $0x50] sm:$0xff] }
 0x43b   : > { %10980 = vmatprep.subr.bf16.mxu1 %v10979_v26  ;;  %v15077_v26 = vld [vmem:[#allocation3 + $0x10] sm:$0xff] }
 0x43e   : > { %10982 = vmatpush1.bf16.msra.mxu1 %v10981_v45  ;;  %v10993_v45 = vpack.c.bf16 %v2266_v54, %v2262_v60  ;;  %v15089_v60 = vld [vmem:[#allocation3 + $0x50] sm:$0xff]  ;;  %v15092_v54 = vld [vmem:[#allocation3 + $0x78] sm:$0xff] }
 0x43f   : > { %10984 = vmatprep.subr.bf16.mxu1 %v10983_v56  ;;  %v10995_v56 = vpack.c.bf16 %v2275_v29, %v2271_v2  ;;  %v11001_v2 = vpack.c.bf16 %v2282_v3, %v2278_v4  ;;  %v2298_v4 = vld [vmem:[#allocation11 + $0x170] sm:$0xff]  ;;  %v2307_v3 = vld [vmem:[#allocation11 + $0x1b8] sm:$0xff] }
 0x442   : > { %10986 = vmatpush1.bf16.msra.mxu1 %v10985_v41  ;;  %v2270_v41 = vld [vmem:[#allocation11 + $0x90] sm:$0xff] }
 0x443   : > { %10988 = vmatprep.subr.bf16.mxu1 %v10987_v15  ;;  %v2279_v15 = vld [vmem:[#allocation11 + $0xd8] sm:$0xff]  ;;  %v10997_v28 = vpack.c.bf16 %v2274_v39, %v2270_v41  ;;  %v2290_v41 = vld [vmem:[#allocation11 + $0x130] sm:$0xff] }
 0x444   : > { %v10999_v32 = vpack.c.bf16 %v2283_v48, %v2279_v15  ;;  %v2299_v39 = vld [vmem:[#allocation11 + $0x178] sm:$0xff]  ;;  %v15095_v15 = vld [vmem:[#allocation3 + $0x70] sm:$0xff] }
 0x445   : > { %3539 = vmatmul.mubr.f32.vlgmr.msra.gmra.mrb[16].mxu1 %v15077_v26  ;;  %v15098_v48 = vld [vmem:[#allocation3 + $0x98] sm:$0xff] }
 0x446   : > { %3544 = vmatprep.mubr.f32.mxu1 %v15080_v33  ;;  %10990 = vmatpush1.bf16.msra.mxu1 %v10989_v38  ;;  %v2287_v38 = vld [vmem:[#allocation11 + $0x118] sm:$0xff] }
 0x447   : > { %10992 = vmatprep.subr.bf16.mxu1 %v10991_v20  ;;  %v2291_v20 = vld [vmem:[#allocation11 + $0x138] sm:$0xff] }
 0x448   : > { %v11003_v29 = vpack.c.bf16 %v2291_v20, %v2287_v38  ;;  %v15101_v38 = vld [vmem:[#allocation3 + $0x90] sm:$0xff]  ;;  %v15104_v20 = vld [vmem:[#allocation3 + $0xb8] sm:$0xff] }
 0x449   : > { %3545 = vmatmul.mubr.f32.gmra.mrb[18].mxu1 %v15083_v6 }
 0x44a   : > { %3550 = vmatprep.mubr.f32.mxu1 %v15086_v44  ;;  %10994 = vmatpush1.bf16.msra.mxu1 %v10993_v45  ;;  %v2286_v45 = vld [vmem:[#allocation11 + $0x110] sm:$0xff] }
 0x44b   : > { %10996 = vmatprep.subr.bf16.mxu1 %v10995_v56  ;;  %v2295_v56 = vld [vmem:[#allocation11 + $0x158] sm:$0xff]  ;;  %v11005_v63 = vpack.c.bf16 %v2290_v41, %v2286_v45  ;;  %v2306_v45 = vld [vmem:[#allocation11 + $0x1b0] sm:$0xff] }
 0x44c   : > { %v11007_v18 = vpack.c.bf16 %v2299_v39, %v2295_v56  ;;  %v2315_v41 = vld [vmem:[#allocation11 + $0x1f8] sm:$0xff]  ;;  %v15107_v56 = vld [vmem:[#allocation3 + $0xb0] sm:$0xff] }
 0x44d   : > { %3551 = vmatmul.mubr.f32.gmra.mrb[20].mxu1 %v15089_v60  ;;  %v15110_v39 = vld [vmem:[#allocation3 + $0xd8] sm:$0xff] }
 0x44e   : > { %3556 = vmatprep.mubr.f32.mxu1 %v15092_v54  ;;  %10998 = vmatpush1.bf16.msra.mxu1 %v10997_v28  ;;  %v2294_v28 = vld [vmem:[#allocation11 + $0x150] sm:$0xff] }
 0x44f   : > { %11000 = vmatprep.subr.bf16.mxu1 %v10999_v32  ;;  %v2303_v32 = vld [vmem:[#allocation11 + $0x198] sm:$0xff]  ;;  %v11009_v11 = vpack.c.bf16 %v2298_v4, %v2294_v28  ;;  %v2314_v28 = vld [vmem:[#allocation11 + $0x1f0] sm:$0xff] }
 0x450   : > { %v11011_v10 = vpack.c.bf16 %v2307_v3, %v2303_v32  ;;  %v2323_v4 = vld [vmem:[#allocation11 + $0x238] sm:$0xff]  ;;  %v15113_v32 = vld [vmem:[#allocation3 + $0xd0] sm:$0xff] }
 0x451   : > { %3557 = vmatmul.mubr.f32.gmra.mrb[22].mxu1 %v15095_v15  ;;  %v15116_v3 = vld [vmem:[#allocation3 + $0xf8] sm:$0xff] }
 0x452   : > { %3562 = vmatprep.mubr.f32.mxu1 %v15098_v48  ;;  %11002 = vmatpush1.bf16.msra.mxu1 %v11001_v2  ;;  %v2302_v2 = vld [vmem:[#allocation11 + $0x190] sm:$0xff] }
 0x453   : > { %11004 = vmatprep.subr.bf16.mxu1 %v11003_v29  ;;  %v2311_v29 = vld [vmem:[#allocation11 + $0x1d8] sm:$0xff]  ;;  %v11013_v43 = vpack.c.bf16 %v2306_v45, %v2302_v2  ;;  %v2322_v2 = vld [vmem:[#allocation11 + $0x230] sm:$0xff] }
 0x454   : > { %v11015_v55 = vpack.c.bf16 %v2315_v41, %v2311_v29  ;;  %v2331_v45 = vld [vmem:[#allocation11 + $0x278] sm:$0xff]  ;;  %v15119_v29 = vld [vmem:[#allocation3 + $0xf0] sm:$0xff] }
 0x455   : > { %3563 = vmatmul.mubr.f32.gmra.mrb[24].mxu1 %v15101_v38 }
 0x456   : > { %3568 = vmatprep.mubr.f32.mxu1 %v15104_v20  ;;  %11006 = vmatpush1.bf16.msra.mxu1 %v11005_v63  ;;  %v2310_v63 = vld [vmem:[#allocation11 + $0x1d0] sm:$0xff] }
 0x457   : > { %11008 = vmatprep.subr.bf16.mxu1 %v11007_v18  ;;  %v2319_v18 = vld [vmem:[#allocation11 + $0x218] sm:$0xff]  ;;  %v11017_v9 = vpack.c.bf16 %v2314_v28, %v2310_v63 }
 0x458   : > { %v11019_v51 = vpack.c.bf16 %v2323_v4, %v2319_v18  ;;  %v2339_v63 = vld [vmem:[#allocation11 + $0x2b8] sm:$0xff]  ;;  %v2334_v18 = vld [vmem:[#allocation11 + $0x290] sm:$0xff] }
 0x459   : > { %3569 = vmatmul.mubr.f32.gmra.mrb[26].mxu1 %v15107_v56  ;;  %v2338_v4 = vld [vmem:[#allocation11 + $0x2b0] sm:$0xff] }
 0x45a   : > { %3574 = vmatprep.mubr.f32.mxu1 %v15110_v39  ;;  %11010 = vmatpush1.bf16.msra.mxu1 %v11009_v11  ;;  %v2318_v11 = vld [vmem:[#allocation11 + $0x210] sm:$0xff]  ;;  %v11029_v23 = vpack.c.bf16 %v2338_v4, %v2334_v18 }
 0x45b   : > { %11012 = vmatprep.subr.bf16.mxu1 %v11011_v10  ;;  %v2327_v10 = vld [vmem:[#allocation11 + $0x258] sm:$0xff]  ;;  %v11021_v41 = vpack.c.bf16 %v2322_v2, %v2318_v11  ;;  %v2346_v11 = vld [vmem:[#allocation11 + $0x2f0] sm:$0xff] }
 0x45c   : > { %v11023_v0 = vpack.c.bf16 %v2331_v45, %v2327_v10  ;;  %v2355_v2 = vld [vmem:[#allocation11 + $0x338] sm:$0xff]  ;;  %v2362_v18 = vld [vmem:[#allocation11 + $0x370] sm:$0xff] }
 0x45d   : > { %3575 = vmatmul.mubr.f32.gmra.mrb[28].mxu1 %v15113_v32 }
 0x45e   : > { %3580 = vmatprep.mubr.f32.mxu1 %v15116_v3  ;;  %11014 = vmatpush1.bf16.msra.mxu1 %v11013_v43  ;;  %v2335_v43 = vld [vmem:[#allocation11 + $0x298] sm:$0xff] }
 0x45f   : > { %11016 = vmatprep.subr.bf16.mxu1 %v11015_v55  ;;  %v11025_v55 = vpack.c.bf16 %v2330_v7, %v2326_v27  ;;  %v11027_v28 = vpack.c.bf16 %v2339_v63, %v2335_v43  ;;  %v2354_v7 = vld [vmem:[#allocation11 + $0x330] sm:$0xff]  ;;  %v2359_v27 = vld [vmem:[#allocation11 + $0x358] sm:$0xff] }
 0x461   : > { %3581 = vmatmul.mubr.f32.gmra.mrb[30].mxu1 %v15119_v29 }
 0x462   : > { %11018 = vmatpush1.bf16.msra.mxu1 %v11017_v9  ;;  %3651 = vmatprep.mubr.f32.mxu1 %v14994_v52  ;;  %v11031_v9 = vpack.c.bf16 %v2347_v42, %v2343_v40  ;;  %v2342_v52 = vld [vmem:[#allocation11 + $0x2d0] sm:$0xff]  ;;  %v2371_v42 = vld [vmem:[#allocation11 + $0x3b8] sm:$0xff] }
 0x463   : > { %11020 = vmatprep.subr.bf16.mxu1 %v11019_v51  ;;  %v2351_v51 = vld [vmem:[#allocation11 + $0x318] sm:$0xff]  ;;  %v11033_v10 = vpack.c.bf16 %v2346_v11, %v2342_v52  ;;  %v2370_v52 = vld [vmem:[#allocation11 + $0x3b0] sm:$0xff] }
 0x464   : > { %v11035_v45 = vpack.c.bf16 %v2355_v2, %v2351_v51  ;;  %v2379_v11 = vld [vmem:[#allocation11 + $0x3f8] sm:$0xff] }
 0x466   : > { %11022 = vmatpush1.bf16.msra.mxu1 %v11021_v41  ;;  %v2350_v41 = vld [vmem:[#allocation11 + $0x310] sm:$0xff] }
 0x467   : > { %11024 = vmatprep.subr.bf16.mxu1 %v11023_v0  ;;  %v2363_v0 = vld [vmem:[#allocation11 + $0x378] sm:$0xff]  ;;  %v11037_v43 = vpack.c.bf16 %v2354_v7, %v2350_v41  ;;  %v2378_v41 = vld [vmem:[#allocation11 + $0x3f0] sm:$0xff] }
 0x468   : > { %v11039_v63 = vpack.c.bf16 %v2363_v0, %v2359_v27  ;;  %v2387_v7 = vld [vmem:[#allocation11 + $0x438] sm:$0xff] }
 0x46a   : > { %11026 = vmatpush1.bf16.msra.mxu1 %v11025_v55  ;;  %v2358_v55 = vld [vmem:[#allocation11 + $0x350] sm:$0xff] }
 0x46b   : > { %11028 = vmatprep.subr.bf16.mxu1 %v11027_v28  ;;  %v2367_v28 = vld [vmem:[#allocation11 + $0x398] sm:$0xff]  ;;  %v11041_v40 = vpack.c.bf16 %v2362_v18, %v2358_v55  ;;  %v2386_v55 = vld [vmem:[#allocation11 + $0x430] sm:$0xff] }
 0x46c   : > { %v11043_v4 = vpack.c.bf16 %v2371_v42, %v2367_v28  ;;  %v2395_v18 = vld [vmem:[#allocation11 + $0x478] sm:$0xff] }
 0x46e   : > { %11030 = vmatpush1.bf16.msra.mxu1 %v11029_v23  ;;  %v2366_v23 = vld [vmem:[#allocation11 + $0x390] sm:$0xff] }
 0x46f   : > { %11032 = vmatprep.subr.bf16.mxu1 %v11031_v9  ;;  %v2375_v9 = vld [vmem:[#allocation11 + $0x3d8] sm:$0xff]  ;;  %v11045_v51 = vpack.c.bf16 %v2370_v52, %v2366_v23  ;;  %v2394_v23 = vld [vmem:[#allocation11 + $0x470] sm:$0xff] }
 0x470   : > { %v11047_v2 = vpack.c.bf16 %v2379_v11, %v2375_v9  ;;  %v2403_v52 = vld [vmem:[#allocation11 + $0x4b8] sm:$0xff] }
 0x472   : > { %11034 = vmatpush1.bf16.msra.mxu1 %v11033_v10  ;;  %v2374_v10 = vld [vmem:[#allocation11 + $0x3d0] sm:$0xff] }
 0x473   : > { %11036 = vmatprep.subr.bf16.mxu1 %v11035_v45  ;;  %v2383_v45 = vld [vmem:[#allocation11 + $0x418] sm:$0xff]  ;;  %v11049_v27 = vpack.c.bf16 %v2378_v41, %v2374_v10 }
 0x474   : > { %v11051_v0 = vpack.c.bf16 %v2387_v7, %v2383_v45  ;;  %v2407_v10 = vld [vmem:[#allocation11 + $0x4d8] sm:$0xff] }
 0x475   : > { %v2411_v41 = vld [vmem:[#allocation11 + $0x4f8] sm:$0xff] }
 0x476   : > { %11038 = vmatpush1.bf16.msra.mxu1 %v11037_v43  ;;  %v2382_v43 = vld [vmem:[#allocation11 + $0x410] sm:$0xff]  ;;  %v11063_v7 = vpack.c.bf16 %v2411_v41, %v2407_v10  ;;  %v2447_v41 = vld [vmem:[#allocation11 + $0x618] sm:$0xff] }
 0x477   : > { %11040 = vmatprep.subr.bf16.mxu1 %v11039_v63  ;;  %v2391_v63 = vld [vmem:[#allocation11 + $0x458] sm:$0xff]  ;;  %v11053_v28 = vpack.c.bf16 %v2386_v55, %v2382_v43  ;;  %v2438_v10 = vld [vmem:[#allocation11 + $0x5d0] sm:$0xff] }
 0x478   : > { %v11055_v42 = vpack.c.bf16 %v2395_v18, %v2391_v63  ;;  %v2414_v63 = vld [vmem:[#allocation11 + $0x510] sm:$0xff]  ;;  %v2423_v18 = vld [vmem:[#allocation11 + $0x558] sm:$0xff] }
 0x47a   : > { %11042 = vmatpush1.bf16.msra.mxu1 %v11041_v40  ;;  %v2390_v40 = vld [vmem:[#allocation11 + $0x450] sm:$0xff] }
 0x47b   : > { %11044 = vmatprep.subr.bf16.mxu1 %v11043_v4  ;;  %v2399_v4 = vld [vmem:[#allocation11 + $0x498] sm:$0xff]  ;;  %v11057_v9 = vpack.c.bf16 %v2394_v23, %v2390_v40  ;;  %v2422_v40 = vld [vmem:[#allocation11 + $0x550] sm:$0xff] }
 0x47c   : > { %v11059_v11 = vpack.c.bf16 %v2403_v52, %v2399_v4  ;;  %v2431_v23 = vld [vmem:[#allocation11 + $0x598] sm:$0xff] }
 0x47e   : > { %11046 = vmatpush1.bf16.msra.mxu1 %v11045_v51  ;;  %v2398_v51 = vld [vmem:[#allocation11 + $0x490] sm:$0xff] }
 0x47f   : > { %11048 = vmatprep.subr.bf16.mxu1 %v11047_v2  ;;  %v2402_v2 = vld [vmem:[#allocation11 + $0x4b0] sm:$0xff] }
 0x480   : > { %v11061_v45 = vpack.c.bf16 %v2402_v2, %v2398_v51 }
 0x482   : > { %11050 = vmatpush1.bf16.msra.mxu1 %v11049_v27  ;;  %v2406_v27 = vld [vmem:[#allocation11 + $0x4d0] sm:$0xff] }
 0x483   : > { %11052 = vmatprep.subr.bf16.mxu1 %v11051_v0  ;;  %v2415_v0 = vld [vmem:[#allocation11 + $0x518] sm:$0xff] }
 0x485   : > { %3652 = vmatmul.mubr.f32.vlgmr.msra.gmra.mrb[32].mxu1 %v14997_v50  ;;  %v2410_v50 = vld [vmem:[#allocation11 + $0x4f0] sm:$0xff] }
 0x486   : > { %3657 = vmatprep.mubr.f32.mxu1 %v15000_v57  ;;  %11054 = vmatpush1.bf16.msra.mxu1 %v11053_v28  ;;  %v2419_v57 = vld [vmem:[#allocation11 + $0x538] sm:$0xff]  ;;  %v11065_v43 = vpack.c.bf16 %v2410_v50, %v2406_v27  ;;  %v2446_v27 = vld [vmem:[#allocation11 + $0x610] sm:$0xff] }
 0x487   : > { %11056 = vmatprep.subr.bf16.mxu1 %v11055_v42  ;;  %v11067_v55 = vpack.c.bf16 %v2419_v57, %v2415_v0  ;;  %v2455_v50 = vld [vmem:[#allocation11 + $0x658] sm:$0xff] }
 0x489   : > { %3658 = vmatmul.mubr.f32.gmra.mrb[34].mxu1 %v15003_v17  ;;  %v2418_v17 = vld [vmem:[#allocation11 + $0x530] sm:$0xff] }
 0x48a   : > { %3663 = vmatprep.mubr.f32.mxu1 %v15006_v46  ;;  %11058 = vmatpush1.bf16.msra.mxu1 %v11057_v9  ;;  %v2427_v46 = vld [vmem:[#allocation11 + $0x578] sm:$0xff]  ;;  %v11069_v28 = vpack.c.bf16 %v2418_v17, %v2414_v63  ;;  %v2430_v9 = vld [vmem:[#allocation11 + $0x590] sm:$0xff] }
 0x48b   : > { %11060 = vmatprep.subr.bf16.mxu1 %v11059_v11  ;;  %v11071_v42 = vpack.c.bf16 %v2427_v46, %v2423_v18  ;;  %v2439_v11 = vld [vmem:[#allocation11 + $0x5d8] sm:$0xff]  ;;  %v2462_v18 = vld [vmem:[#allocation11 + $0x690] sm:$0xff] }
 0x48c   : > { %v2466_v46 = vld [vmem:[#allocation11 + $0x6b0] sm:$0xff] }
 0x48d   : > { %3664 = vmatmul.mubr.f32.gmra.mrb[36].mxu1 %v15009_v13  ;;  %v2426_v13 = vld [vmem:[#allocation11 + $0x570] sm:$0xff] }
 0x48e   : > { %3669 = vmatprep.mubr.f32.mxu1 %v15012_v1  ;;  %11062 = vmatpush1.bf16.msra.mxu1 %v11061_v45  ;;  %v2435_v1 = vld [vmem:[#allocation11 + $0x5b8] sm:$0xff]  ;;  %v11073_v4 = vpack.c.bf16 %v2426_v13, %v2422_v40  ;;  %v2474_v13 = vld [vmem:[#allocation11 + $0x6f0] sm:$0xff] }
 0x48f   : > { %11064 = vmatprep.subr.bf16.mxu1 %v11063_v7  ;;  %v11075_v52 = vpack.c.bf16 %v2435_v1, %v2431_v23  ;;  %v2479_v23 = vld [vmem:[#allocation11 + $0x718] sm:$0xff] }
 0x490   : > { %v2483_v1 = vld [vmem:[#allocation11 + $0x738] sm:$0xff] }
 0x491   : > { %3670 = vmatmul.mubr.f32.gmra.mrb[38].mxu1 %v15015_v37  ;;  %v2434_v37 = vld [vmem:[#allocation11 + $0x5b0] sm:$0xff] }
 0x492   : > { %3675 = vmatprep.mubr.f32.mxu1 %v15018_v36  ;;  %11066 = vmatpush1.bf16.msra.mxu1 %v11065_v43  ;;  %v2443_v36 = vld [vmem:[#allocation11 + $0x5f8] sm:$0xff]  ;;  %v11077_v51 = vpack.c.bf16 %v2434_v37, %v2430_v9  ;;  %v2454_v43 = vld [vmem:[#allocation11 + $0x650] sm:$0xff] }
 0x493   : > { %11068 = vmatprep.subr.bf16.mxu1 %v11067_v55  ;;  %v11079_v2 = vpack.c.bf16 %v2443_v36, %v2439_v11  ;;  %v2463_v55 = vld [vmem:[#allocation11 + $0x698] sm:$0xff]  ;;  %v2478_v9 = vld [vmem:[#allocation11 + $0x710] sm:$0xff] }
 0x494   : > { %v2482_v37 = vld [vmem:[#allocation11 + $0x730] sm:$0xff]  ;;  %v2487_v11 = vld [vmem:[#allocation11 + $0x758] sm:$0xff] }
 0x495   : > { %3676 = vmatmul.mubr.f32.gmra.mrb[40].mxu1 %v15021_v58  ;;  %v2442_v58 = vld [vmem:[#allocation11 + $0x5f0] sm:$0xff]  ;;  %v2491_v36 = vld [vmem:[#allocation11 + $0x778] sm:$0xff] }
 0x496   : > { %3681 = vmatprep.mubr.f32.mxu1 %v15024_v49  ;;  %11070 = vmatpush1.bf16.msra.mxu1 %v11069_v28  ;;  %v2451_v49 = vld [vmem:[#allocation11 + $0x638] sm:$0xff]  ;;  %v11081_v45 = vpack.c.bf16 %v2442_v58, %v2438_v10  ;;  %v2486_v10 = vld [vmem:[#allocation11 + $0x750] sm:$0xff] }
 0x497   : > { %11072 = vmatprep.subr.bf16.mxu1 %v11071_v42  ;;  %v11083_v7 = vpack.c.bf16 %v2451_v49, %v2447_v41  ;;  %v2471_v28 = vld [vmem:[#allocation11 + $0x6d8] sm:$0xff]  ;;  %v2490_v58 = vld [vmem:[#allocation11 + $0x770] sm:$0xff] }
 0x498   : > { %v2475_v42 = vld [vmem:[#allocation11 + $0x6f8] sm:$0xff] }
 0x499   : > { %3682 = vmatmul.mubr.f32.gmra.mrb[42].mxu1 %v15029_v16  ;;  %v2450_v16 = vld [vmem:[#allocation11 + $0x630] sm:$0xff]  ;;  %v11095_v40 = vpack.c.bf16 %v2475_v42, %v2471_v28  ;;  %v2495_v41 = vld [vmem:[#allocation11 + $0x798] sm:$0xff] }
 0x49a   : > { %3687 = vmatprep.mubr.f32.mxu1 %v15034_v5  ;;  %11074 = vmatpush1.bf16.msra.mxu1 %v11073_v4  ;;  %v2459_v5 = vld [vmem:[#allocation11 + $0x678] sm:$0xff]  ;;  %v11085_v0 = vpack.c.bf16 %v2450_v16, %v2446_v27  ;;  %v2494_v27 = vld [vmem:[#allocation11 + $0x790] sm:$0xff] }
 0x49b   : > { %11076 = vmatprep.subr.bf16.mxu1 %v11075_v52  ;;  %v11087_v57 = vpack.c.bf16 %v2459_v5, %v2455_v50  ;;  %v11099_v52 = vpack.c.bf16 %v2483_v1, %v2479_v23  ;;  %v2499_v49 = vld [vmem:[#allocation11 + $0x7b8] sm:$0xff]  ;;  %v2498_v16 = vld [vmem:[#allocation11 + $0x7b0] sm:$0xff] }
 0x49c   : > { %v2503_v50 = vld [vmem:[#allocation11 + $0x7d8] sm:$0xff] }
 0x49d   : > { %3688 = vmatmul.mubr.f32.gmra.mrb[44].mxu1 %v15039_v19  ;;  %v2458_v19 = vld [vmem:[#allocation11 + $0x670] sm:$0xff]  ;;  %v2507_v5 = vld [vmem:[#allocation11 + $0x7f8] sm:$0xff] }
 0x49e   : > { %3693 = vmatprep.mubr.f32.mxu1 %v15044_v59  ;;  %11078 = vmatpush1.bf16.msra.mxu1 %v11077_v51  ;;  %v2467_v59 = vld [vmem:[#allocation11 + $0x6b8] sm:$0xff]  ;;  %v11089_v63 = vpack.c.bf16 %v2458_v19, %v2454_v43  ;;  %v11101_v51 = vpack.c.bf16 %v2482_v37, %v2478_v9  ;;  %v2502_v43 = vld [vmem:[#allocation11 + $0x7d0] sm:$0xff] }
 0x49f   : > { %11080 = vmatprep.subr.bf16.mxu1 %v11079_v2  ;;  %v11091_v17 = vpack.c.bf16 %v2467_v59, %v2463_v55  ;;  %v11103_v2 = vpack.c.bf16 %v2491_v36, %v2487_v11  ;;  %v2506_v19 = vld [vmem:[#allocation11 + $0x7f0] sm:$0xff]  ;;  %v3825_v55 = vld [vmem:[#allocation11 + $0x1018] sm:$0xff] }
 0x4a0   : > { %v3829_v59 = vld [vmem:[#allocation11 + $0x1038] sm:$0xff]  ;;  %v3840_v9 = vld [vmem:[#allocation11 + $0x1090] sm:$0xff] }
 0x4a1   : > { %3694 = vmatmul.mubr.f32.gmra.mrb[46].mxu1 %v15049_v22  ;;  %v11093_v22 = vpack.c.bf16 %v2466_v46, %v2462_v18  ;;  %v3824_v18 = vld [vmem:[#allocation11 + $0x1010] sm:$0xff]  ;;  %v3833_v28 = vld [vmem:[#allocation11 + $0x1058] sm:$0xff] }
 0x4a2   : > { %11082 = vmatpush1.bf16.msra.mxu1 %v11081_v45  ;;  %3764 = vmatprep.mubr.f32.mxu1 %v15054_v30  ;;  %v2470_v30 = vld [vmem:[#allocation11 + $0x6d0] sm:$0xff]  ;;  %v11105_v45 = vpack.c.bf16 %v2490_v58, %v2486_v10  ;;  %v3837_v42 = vld [vmem:[#allocation11 + $0x1078] sm:$0xff] }
 0x4a3   : > { %11084 = vmatprep.subr.bf16.mxu1 %v11083_v7  ;;  %v11097_v4 = vpack.c.bf16 %v2474_v13, %v2470_v30  ;;  %v11107_v7 = vpack.c.bf16 %v2499_v49, %v2495_v41  ;;  %v3828_v46 = vld [vmem:[#allocation11 + $0x1030] sm:$0xff]  ;;  %v3841_v23 = vld [vmem:[#allocation11 + $0x1098] sm:$0xff] }
 0x4a4   : > { %v3832_v30 = vld [vmem:[#allocation11 + $0x1050] sm:$0xff]  ;;  %v3845_v1 = vld [vmem:[#allocation11 + $0x10b8] sm:$0xff] }
 0x4a5   : > { %v3836_v13 = vld [vmem:[#allocation11 + $0x1070] sm:$0xff]  ;;  %v3849_v11 = vld [vmem:[#allocation11 + $0x10d8] sm:$0xff] }
 0x4a6   : > { %11086 = vmatpush1.bf16.msra.mxu1 %v11085_v0  ;;  %v11109_v0 = vpack.c.bf16 %v2498_v16, %v2494_v27  ;;  %v3844_v37 = vld [vmem:[#allocation11 + $0x10b0] sm:$0xff]  ;;  %v3853_v36 = vld [vmem:[#allocation11 + $0x10f8] sm:$0xff] }
 0x4a7   : > { %11088 = vmatprep.subr.bf16.mxu1 %v11087_v57  ;;  %v11111_v57 = vpack.c.bf16 %v2507_v5, %v2503_v50  ;;  %v3848_v10 = vld [vmem:[#allocation11 + $0x10d0] sm:$0xff]  ;;  %v3857_v58 = vld [vmem:[#allocation11 + $0x1118] sm:$0xff] }
 0x4a8   : > { %v3864_v50 = vld [vmem:[#allocation11 + $0x1150] sm:$0xff]  ;;  %v3873_v5 = vld [vmem:[#allocation11 + $0x1198] sm:$0xff] }
 0x4aa   : > { %11090 = vmatpush1.bf16.msra.mxu1 %v11089_v63  ;;  %v11113_v63 = vpack.c.bf16 %v2506_v19, %v2502_v43  ;;  %v3872_v43 = vld [vmem:[#allocation11 + $0x1190] sm:$0xff]  ;;  %v3881_v19 = vld [vmem:[#allocation11 + $0x11d8] sm:$0xff] }
 0x4ab   : > { %11092 = vmatprep.subr.bf16.mxu1 %v11091_v17  ;;  %v11243_v17 = vpack.c.bf16 %v3829_v59, %v3825_v55 }
 0x4ae   : > { %11094 = vmatpush1.bf16.msra.mxu1 %v11093_v22  ;;  %v11245_v22 = vpack.c.bf16 %v3828_v46, %v3824_v18 }
 0x4af   : > { %11096 = vmatprep.subr.bf16.mxu1 %v11095_v40  ;;  %v11247_v40 = vpack.c.bf16 %v3837_v42, %v3833_v28  ;;  %v3888_v28 = vld [vmem:[#allocation11 + $0x1210] sm:$0xff]  ;;  %v3897_v42 = vld [vmem:[#allocation11 + $0x1258] sm:$0xff] }
 0x4b2   : > { %11098 = vmatpush1.bf16.msra.mxu1 %v11097_v4  ;;  %v11249_v4 = vpack.c.bf16 %v3836_v13, %v3832_v30  ;;  %v3896_v30 = vld [vmem:[#allocation11 + $0x1250] sm:$0xff]  ;;  %v3905_v13 = vld [vmem:[#allocation11 + $0x1298] sm:$0xff] }
 0x4b3   : > { %11100 = vmatprep.subr.bf16.mxu1 %v11099_v52  ;;  %v11251_v52 = vpack.c.bf16 %v3845_v1, %v3841_v23 }
 0x4b6   : > { %11102 = vmatpush1.bf16.msra.mxu1 %v11101_v51  ;;  %v11253_v51 = vpack.c.bf16 %v3844_v37, %v3840_v9  ;;  %v3913_v9 = vld [vmem:[#allocation11 + $0x12d8] sm:$0xff] }
 0x4b7   : > { %11104 = vmatprep.subr.bf16.mxu1 %v11103_v2  ;;  %v11255_v2 = vpack.c.bf16 %v3853_v36, %v3849_v11  ;;  %v3917_v37 = vld [vmem:[#allocation11 + $0x12f8] sm:$0xff]  ;;  %v3916_v36 = vld [vmem:[#allocation11 + $0x12f0] sm:$0xff] }
 0x4b8   : > { %v11287_v11 = vpack.c.bf16 %v3917_v37, %v3913_v9  ;;  %v3976_v9 = vld [vmem:[#allocation11 + $0x14d0] sm:$0xff]  ;;  %v3985_v37 = vld [vmem:[#allocation11 + $0x1518] sm:$0xff] }
 0x4ba   : > { %11106 = vmatpush1.bf16.msra.mxu1 %v11105_v45  ;;  %v3856_v45 = vld [vmem:[#allocation11 + $0x1110] sm:$0xff] }
 0x4bb   : > { %11108 = vmatprep.subr.bf16.mxu1 %v11107_v7  ;;  %v3865_v7 = vld [vmem:[#allocation11 + $0x1158] sm:$0xff] }
 0x4be   : > { %11110 = vmatpush1.bf16.msra.mxu1 %v11109_v0 }
 0x4bf   : > { %11112 = vmatprep.subr.bf16.mxu1 %v11111_v57 }
 0x4c2   : > { %11114 = vmatpush1.bf16.msra.mxu1 %v11113_v63  ;;  %v3880_v63 = vld [vmem:[#allocation11 + $0x11d0] sm:$0xff] }
 0x4c3   : > { %11244 = vmatprep.subr.bf16.mxu1 %v11243_v17  ;;  %v3889_v17 = vld [vmem:[#allocation11 + $0x1218] sm:$0xff] }
 0x4c5   : > { %3765 = vmatmul.mubr.f32.vlgmr.msra.gmra.mrb[32].mxu1 %v15077_v26  ;;  %v3852_v26 = vld [vmem:[#allocation11 + $0x10f0] sm:$0xff] }
 0x4c6   : > { %3770 = vmatprep.mubr.f32.mxu1 %v15080_v33  ;;  %11246 = vmatpush1.bf16.msra.mxu1 %v11245_v22  ;;  %v3861_v33 = vld [vmem:[#allocation11 + $0x1138] sm:$0xff]  ;;  %v11257_v41 = vpack.c.bf16 %v3852_v26, %v3848_v10 }
 0x4c7   : > { %11248 = vmatprep.subr.bf16.mxu1 %v11247_v40  ;;  %v11259_v49 = vpack.c.bf16 %v3861_v33, %v3857_v58  ;;  %v3920_v58 = vld [vmem:[#allocation11 + $0x1310] sm:$0xff] }
 0x4c8   : > { %v3924_v33 = vld [vmem:[#allocation11 + $0x1330] sm:$0xff] }
 0x4c9   : > { %3771 = vmatmul.mubr.f32.gmra.mrb[34].mxu1 %v15083_v6  ;;  %v3860_v6 = vld [vmem:[#allocation11 + $0x1130] sm:$0xff] }
 0x4ca   : > { %3776 = vmatprep.mubr.f32.mxu1 %v15086_v44  ;;  %11250 = vmatpush1.bf16.msra.mxu1 %v11249_v4  ;;  %v3869_v44 = vld [vmem:[#allocation11 + $0x1178] sm:$0xff]  ;;  %v11261_v27 = vpack.c.bf16 %v3860_v6, %v3856_v45  ;;  %v3904_v4 = vld [vmem:[#allocation11 + $0x1290] sm:$0xff]  ;;  %v11293_v45 = vpack.c.bf16 %v3924_v33, %v3920_v58  ;;  %v15165_v33 = vld [vmem:[#allocation12] sm:$0xf] }
 0x4cb   : > { %11252 = vmatprep.subr.bf16.mxu1 %v11251_v52  ;;  %v11263_v16 = vpack.c.bf16 %v3869_v44, %v3865_v7  ;;  %v3908_v52 = vld [vmem:[#allocation11 + $0x12b0] sm:$0xff] }
 0x4cc   : > { %v3928_v7 = vld [vmem:[#allocation11 + $0x1350] sm:$0xff] }
 0x4cd   : > { %3777 = vmatmul.mubr.f32.gmra.mrb[36].mxu1 %v15089_v60  ;;  %v3868_v60 = vld [vmem:[#allocation11 + $0x1170] sm:$0xff] }
 0x4ce   : > { %3782 = vmatprep.mubr.f32.mxu1 %v15092_v54  ;;  %11254 = vmatpush1.bf16.msra.mxu1 %v11253_v51  ;;  %v3877_v54 = vld [vmem:[#allocation11 + $0x11b8] sm:$0xff]  ;;  %v11265_v0 = vpack.c.bf16 %v3868_v60, %v3864_v50  ;;  %v3932_v44 = vld [vmem:[#allocation11 + $0x1370] sm:$0xff] }
 0x4cf   : > { %11256 = vmatprep.subr.bf16.mxu1 %v11255_v2  ;;  %v11267_v57 = vpack.c.bf16 %v3877_v54, %v3873_v5  ;;  %v3921_v51 = vld [vmem:[#allocation11 + $0x1318] sm:$0xff]  ;;  %v11297_v50 = vpack.c.bf16 %v3932_v44, %v3928_v7  ;;  %v3936_v5 = vld [vmem:[#allocation11 + $0x1390] sm:$0xff] }
 0x4d0   : > { %v3925_v2 = vld [vmem:[#allocation11 + $0x1338] sm:$0xff]  ;;  %v3940_v54 = vld [vmem:[#allocation11 + $0x13b0] sm:$0xff] }
 0x4d1   : > { %3783 = vmatmul.mubr.f32.gmra.mrb[38].mxu1 %v15095_v15  ;;  %v3876_v15 = vld [vmem:[#allocation11 + $0x11b0] sm:$0xff]  ;;  %v11291_v26 = vpack.c.bf16 %v3925_v2, %v3921_v51  ;;  %v4013_v7 = vld [vmem:[#allocation11 + $0x15f8] sm:$0xff] }
 0x4d2   : > { %3788 = vmatprep.mubr.f32.mxu1 %v15098_v48  ;;  %11258 = vmatpush1.bf16.msra.mxu1 %v11257_v41  ;;  %v3885_v48 = vld [vmem:[#allocation11 + $0x11f8] sm:$0xff]  ;;  %v11269_v55 = vpack.c.bf16 %v3876_v15, %v3872_v43  ;;  %v11301_v43 = vpack.c.bf16 %v3940_v54, %v3936_v5 }
 0x4d3   : > { %11260 = vmatprep.subr.bf16.mxu1 %v11259_v49  ;;  %v11271_v59 = vpack.c.bf16 %v3885_v48, %v3881_v19  ;;  %v3929_v41 = vld [vmem:[#allocation11 + $0x1358] sm:$0xff]  ;;  %v3944_v19 = vld [vmem:[#allocation11 + $0x13d0] sm:$0xff] }
 0x4d4   : > { %v3933_v49 = vld [vmem:[#allocation11 + $0x1378] sm:$0xff]  ;;  %v3948_v48 = vld [vmem:[#allocation11 + $0x13f0] sm:$0xff] }
 0x4d5   : > { %3789 = vmatmul.mubr.f32.gmra.mrb[40].mxu1 %v15101_v38  ;;  %v3884_v38 = vld [vmem:[#allocation11 + $0x11f0] sm:$0xff]  ;;  %v11295_v6 = vpack.c.bf16 %v3933_v49, %v3929_v41  ;;  %v16709_v5 = vld [vmem:[#allocation46_spill] sm:$0xff] }
 0x4d6   : > { %3794 = vmatprep.mubr.f32.mxu1 %v15104_v20  ;;  %11262 = vmatpush1.bf16.msra.mxu1 %v11261_v27  ;;  %v3893_v20 = vld [vmem:[#allocation11 + $0x1238] sm:$0xff]  ;;  %v11273_v18 = vpack.c.bf16 %v3884_v38, %v3880_v63  ;;  %v11305_v63 = vpack.c.bf16 %v3948_v48, %v3944_v19  ;;  %v4000_v49 = vld [vmem:[#allocation11 + $0x1590] sm:$0xff]  ;;  %v15176_v54 = vrot.slane %v15165_v33, %v16709_v5 }
 0x4d7   : > { %11264 = vmatprep.subr.bf16.mxu1 %v11263_v16  ;;  %v11275_v46 = vpack.c.bf16 %v3893_v20, %v3889_v17  ;;  %v3937_v27 = vld [vmem:[#allocation11 + $0x1398] sm:$0xff]  ;;  %v3952_v17 = vld [vmem:[#allocation11 + $0x1410] sm:$0xff] }
 0x4d8   : > { %v3941_v16 = vld [vmem:[#allocation11 + $0x13b8] sm:$0xff]  ;;  %v3956_v20 = vld [vmem:[#allocation11 + $0x1430] sm:$0xff] }
 0x4d9   : > { %3795 = vmatmul.mubr.f32.gmra.mrb[42].mxu1 %v15107_v56  ;;  %v3892_v56 = vld [vmem:[#allocation11 + $0x1230] sm:$0xff]  ;;  %v11299_v60 = vpack.c.bf16 %v3941_v16, %v3937_v27  ;;  %v4017_v48 = vld [vmem:[#allocation11 + $0x1618] sm:$0xff] }
 0x4da   : > { %3800 = vmatprep.mubr.f32.mxu1 %v15110_v39  ;;  %11266 = vmatpush1.bf16.msra.mxu1 %v11265_v0  ;;  %v3901_v39 = vld [vmem:[#allocation11 + $0x1278] sm:$0xff]  ;;  %v11277_v22 = vpack.c.bf16 %v3892_v56, %v3888_v28  ;;  %v11309_v28 = vpack.c.bf16 %v3956_v20, %v3952_v17  ;;  %v16712_v20 = vld [vmem:[#allocation48_spill] sm:$0xff] }
 0x4db   : > { %11268 = vmatprep.subr.bf16.mxu1 %v11267_v57  ;;  %v11279_v40 = vpack.c.bf16 %v3901_v39, %v3897_v42  ;;  %v3945_v0 = vld [vmem:[#allocation11 + $0x13d8] sm:$0xff]  ;;  %v3960_v42 = vld [vmem:[#allocation11 + $0x1450] sm:$0xff] }
 0x4dc   : > { %v3949_v57 = vld [vmem:[#allocation11 + $0x13f8] sm:$0xff]  ;;  %v3964_v39 = vld [vmem:[#allocation11 + $0x1470] sm:$0xff] }
 0x4dd   : > { %3801 = vmatmul.mubr.f32.gmra.mrb[44].mxu1 %v15113_v32  ;;  %v3900_v32 = vld [vmem:[#allocation11 + $0x1270] sm:$0xff]  ;;  %v11303_v15 = vpack.c.bf16 %v3949_v57, %v3945_v0  ;;  %v16710_v0 = vld [vmem:[#allocation50_spill] sm:$0xff] }
 0x4de   : > { %3806 = vmatprep.mubr.f32.mxu1 %v15116_v3  ;;  %11270 = vmatpush1.bf16.msra.mxu1 %v11269_v55  ;;  %v3909_v3 = vld [vmem:[#allocation11 + $0x12b8] sm:$0xff]  ;;  %v11281_v23 = vpack.c.bf16 %v3900_v32, %v3896_v30  ;;  %v11313_v30 = vpack.c.bf16 %v3964_v39, %v3960_v42  ;;  %v4016_v39 = vld [vmem:[#allocation11 + $0x1610] sm:$0xff] }
 0x4df   : > { %11272 = vmatprep.subr.bf16.mxu1 %v11271_v59  ;;  %v11283_v1 = vpack.c.bf16 %v3909_v3, %v3905_v13  ;;  %v3953_v55 = vld [vmem:[#allocation11 + $0x1418] sm:$0xff]  ;;  %v3968_v13 = vld [vmem:[#allocation11 + $0x1490] sm:$0xff] }
 0x4e0   : > { %v3957_v59 = vld [vmem:[#allocation11 + $0x1438] sm:$0xff]  ;;  %v3972_v3 = vld [vmem:[#allocation11 + $0x14b0] sm:$0xff] }
 0x4e1   : > { %3807 = vmatmul.mubr.f32.gmra.mrb[46].mxu1 %v15119_v29  ;;  %v11285_v29 = vpack.c.bf16 %v3908_v52, %v3904_v4  ;;  %v11307_v38 = vpack.c.bf16 %v3957_v59, %v3953_v55  ;;  %v11317_v4 = vpack.c.bf16 %v3972_v3, %v3968_v13  ;;  %v16706_v58 = vld [vmem:[#allocation49_spill] sm:$0xff] }
 0x4e2   : > { %11274 = vmatpush1.bf16.msra.mxu1 %v11273_v18  ;;  %4476 = vmatprep.mubr.f32.mxu1 %v14580_v25  ;;  %v3912_v25 = vld [vmem:[#allocation11 + $0x12d0] sm:$0xff]  ;;  %v3961_v18 = vld [vmem:[#allocation11 + $0x1458] sm:$0xff] }
 0x4e3   : > { %11276 = vmatprep.subr.bf16.mxu1 %v11275_v46  ;;  %v11289_v10 = vpack.c.bf16 %v3916_v36, %v3912_v25  ;;  %v3965_v46 = vld [vmem:[#allocation11 + $0x1478] sm:$0xff]  ;;  %v3984_v25 = vld [vmem:[#allocation11 + $0x1510] sm:$0xff] }
 0x4e4   : > { %v11311_v56 = vpack.c.bf16 %v3965_v46, %v3961_v18  ;;  %v3993_v36 = vld [vmem:[#allocation11 + $0x1558] sm:$0xff]  ;;  %v16713_v46 = vld [vmem:[#allocation52_spill] sm:$0xff] }
 0x4e5   : > { %v16707_v27 = vld [vmem:[#allocation45_spill] sm:$0xff] }
 0x4e6   : > { %11278 = vmatpush1.bf16.msra.mxu1 %v11277_v22  ;;  %v3969_v22 = vld [vmem:[#allocation11 + $0x1498] sm:$0xff]  ;;  %v15170_v16 = vrot.slane %v15165_v33, %v16707_v27 }
 0x4e7   : > { %11280 = vmatprep.subr.bf16.mxu1 %v11279_v40  ;;  %v3973_v40 = vld [vmem:[#allocation11 + $0x14b8] sm:$0xff] }
 0x4e8   : > { %v11315_v32 = vpack.c.bf16 %v3973_v40, %v3969_v22  ;;  %v4021_v55 = vld [vmem:[#allocation11 + $0x1638] sm:$0xff]  ;;  %v4020_v22 = vld [vmem:[#allocation11 + $0x1630] sm:$0xff] }
 0x4e9   : > { %v11339_v42 = vpack.c.bf16 %v4021_v55, %v4017_v48 }
 0x4ea   : > { %11282 = vmatpush1.bf16.msra.mxu1 %v11281_v23  ;;  %v3977_v23 = vld [vmem:[#allocation11 + $0x14d8] sm:$0xff] }
 0x4eb   : > { %11284 = vmatprep.subr.bf16.mxu1 %v11283_v1  ;;  %v3981_v1 = vld [vmem:[#allocation11 + $0x14f8] sm:$0xff] }
 0x4ec   : > { %v11319_v52 = vpack.c.bf16 %v3981_v1, %v3977_v23  ;;  %v16714_v23 = vld [vmem:[#allocation70_spill] sm:$0xff] }
 0x4ee   : > { %11286 = vmatpush1.bf16.msra.mxu1 %v11285_v29 }
 0x4ef   : > { %11288 = vmatprep.subr.bf16.mxu1 %v11287_v11 }
 0x4f2   : > { %11290 = vmatpush1.bf16.msra.mxu1 %v11289_v10  ;;  %v3992_v10 = vld [vmem:[#allocation11 + $0x1550] sm:$0xff] }
 0x4f3   : > { %11292 = vmatprep.subr.bf16.mxu1 %v11291_v26  ;;  %v4001_v26 = vld [vmem:[#allocation11 + $0x1598] sm:$0xff] }
 0x4f6   : > { %11294 = vmatpush1.bf16.msra.mxu1 %v11293_v45 }
 0x4f7   : > { %11296 = vmatprep.subr.bf16.mxu1 %v11295_v6  ;;  %v4009_v6 = vld [vmem:[#allocation11 + $0x15d8] sm:$0xff] }
 0x4fa   : > { %11298 = vmatpush1.bf16.msra.mxu1 %v11297_v50  ;;  %v16708_v50 = vld [vmem:[#allocation51_spill] sm:$0xff] }
 0x4fb   : > { %11300 = vmatprep.subr.bf16.mxu1 %v11299_v60 }
 0x4fe   : > { %11302 = vmatpush1.bf16.msra.mxu1 %v11301_v43  ;;  %v11335_v43 = vpack.c.bf16 %v4013_v7, %v4009_v6 }
 0x4ff   : > { %11304 = vmatprep.subr.bf16.mxu1 %v11303_v15  ;;  %v4012_v15 = vld [vmem:[#allocation11 + $0x15f0] sm:$0xff] }
 0x502   : > { %11306 = vmatpush1.bf16.msra.mxu1 %v11305_v63 }
 0x503   : > { %11308 = vmatprep.subr.bf16.mxu1 %v11307_v38  ;;  %v16711_v38 = vld [vmem:[#allocation53_spill] sm:$0xff] }
 0x505   : > { %4477 = vmatmul.mubr.f32.vlgmr.msra.gmra.mrb[32].mxu1 %v14597_v62  ;;  %v3980_v62 = vld [vmem:[#allocation11 + $0x14f0] sm:$0xff] }
 0x506   : > { %4482 = vmatprep.mubr.f32.mxu1 %v14620_v21  ;;  %11310 = vmatpush1.bf16.msra.mxu1 %v11309_v28  ;;  %v3989_v21 = vld [vmem:[#allocation11 + $0x1538] sm:$0xff]  ;;  %v11321_v29 = vpack.c.bf16 %v3980_v62, %v3976_v9 }
 0x507   : > { %11312 = vmatprep.subr.bf16.mxu1 %v11311_v56  ;;  %v11323_v11 = vpack.c.bf16 %v3989_v21, %v3985_v37  ;;  %v16716_v37 = vld [vmem:[#allocation71_spill] sm:$0xff] }
 0x509   : > { %4483 = vmatmul.mubr.f32.gmra.mrb[34].mxu1 %v14656_v8  ;;  %v3988_v8 = vld [vmem:[#allocation11 + $0x1530] sm:$0xff] }
 0x50a   : > { %4488 = vmatprep.mubr.f32.mxu1 %v14665_v14  ;;  %11314 = vmatpush1.bf16.msra.mxu1 %v11313_v30  ;;  %v3997_v14 = vld [vmem:[#allocation11 + $0x1578] sm:$0xff]  ;;  %v11325_v51 = vpack.c.bf16 %v3988_v8, %v3984_v25 }
 0x50b   : > { %11316 = vmatprep.subr.bf16.mxu1 %v11315_v32  ;;  %v11327_v2 = vpack.c.bf16 %v3997_v14, %v3993_v36  ;;  %v4025_v30 = vld [vmem:[#allocation11 + $0x1658] sm:$0xff]  ;;  %v4024_v36 = vld [vmem:[#allocation11 + $0x1650] sm:$0xff] }
 0x50c   : > { %v4029_v32 = vld [vmem:[#allocation11 + $0x1678] sm:$0xff]  ;;  %v4028_v14 = vld [vmem:[#allocation11 + $0x1670] sm:$0xff] }
 0x50d   : > { %4489 = vmatmul.mubr.f32.gmra.mrb[36].mxu1 %v14704_v35  ;;  %v3996_v35 = vld [vmem:[#allocation11 + $0x1570] sm:$0xff]  ;;  %v11343_v8 = vpack.c.bf16 %v4029_v32, %v4025_v30 }
 0x50e   : > { %4494 = vmatprep.mubr.f32.mxu1 %v14710_v47  ;;  %11318 = vmatpush1.bf16.msra.mxu1 %v11317_v4  ;;  %v4005_v47 = vld [vmem:[#allocation11 + $0x15b8] sm:$0xff]  ;;  %v11329_v41 = vpack.c.bf16 %v3996_v35, %v3992_v10 }
 0x50f   : > { %11320 = vmatprep.subr.bf16.mxu1 %v11319_v52  ;;  %v16715_v52 = vld [vmem:[#allocation47_spill] sm:$0xff]  ;;  %v4033_v10 = vld [vmem:[#allocation11 + $0x1698] sm:$0xff] }
 0x510   : > { %v4037_v35 = vld [vmem:[#allocation11 + $0x16b8] sm:$0xff] }
 0x511   : > { %4495 = vmatmul.mubr.f32.gmra.mrb[38].mxu1 %v14737_v12  ;;  %v11331_v12 = vpack.c.bf16 %v4005_v47, %v4001_v26  ;;  %v16718_v47 = vld [vmem:[#allocation72_spill] sm:$0xff]  ;;  %v11347_v7 = vpack.c.bf16 %v4037_v35, %v4033_v10 }
 0x512   : > { %4500 = vmatprep.mubr.f32.mxu1 %v14733_v34  ;;  %11322 = vmatpush1.bf16.msra.mxu1 %v11321_v29  ;;  %v4004_v34 = vld [vmem:[#allocation11 + $0x15b0] sm:$0xff]  ;;  %v16717_v29 = vld [vmem:[#allocation54_spill] sm:$0xff] }
 0x513   : > { %11324 = vmatprep.subr.bf16.mxu1 %v11323_v11  ;;  %v11333_v57 = vpack.c.bf16 %v4004_v34, %v4000_v49  ;;  %v11341_v11 = vpack.c.bf16 %v4020_v22, %v4016_v39  ;;  %v16719_v49 = vld [vmem:[#allocation73_spill] sm:$0xff] }
 0x514   : > { %v4053_v39 = vld [vmem:[#allocation11 + $0x1738] sm:$0xff] }
 0x515   : > { %4501 = vmatmul.mubr.f32.gmra.mrb[40].mxu1 %v14757_v24 }
 0x516   : > { %4506 = vmatprep.mubr.f32.mxu1 %v16706_v58  ;;  %11326 = vmatpush1.bf16.msra.mxu1 %v11325_v51 }
 0x517   : > { %11328 = vmatprep.subr.bf16.mxu1 %v11327_v2 }
 0x518   : > { %v3540_v45 = vpop.f32.mrb[16].mxu1 }
 0x519   : > { %v12539_v44 = vadd.f32 %v15027_v53, %v3540_v45  ;;  %v3542_v24 = vpop.f32.mrb[17].mxu1  ;;  %4507 = vmatmul.mubr.f32.gmra.mrb[42].mxu1 %v16708_v50  ;;  %v4008_v53 = vld [vmem:[#allocation11 + $0x15d0] sm:$0xff]  ;;  %v11345_v45 = vpack.c.bf16 %v4028_v14, %v4024_v36  ;;  %v16724_v36 = vld [vmem:[#allocation78_spill] sm:$0xff] }
 0x51a   : > { %v12540_v60 = vadd.f32 %v15032_v31, %v3542_v24  ;;  %4512 = vmatprep.mubr.f32.mxu1 %v16710_v0  ;;  %11330 = vmatpush1.bf16.msra.mxu1 %v11329_v41  ;;  %v11337_v28 = vpack.c.bf16 %v4012_v15, %v4008_v53  ;;  %v4036_v24 = vld [vmem:[#allocation11 + $0x16b0] sm:$0xff]  ;;  %v4041_v0 = vld [vmem:[#allocation11 + $0x16d8] sm:$0xff] }
 0x51b   : > { %11332 = vmatprep.subr.bf16.mxu1 %v11331_v12  ;;  %v4692_v59 = vadd.f32 %v12539_v44, %v15170_v16  ;;  %v4032_v44 = vld [vmem:[#allocation11 + $0x1690] sm:$0xff]  ;;  %v16720_v15 = vld [vmem:[#allocation74_spill] sm:$0xff] }
 0x51c   : > { %v3546_v19 = vpop.f32.mrb[18].mxu1  ;;  %v4693_v17 = vadd.f32 %v12540_v60, %v15176_v54 }
 0x51d   : > { %v12541_v63 = vadd.f32 %v15037_v61, %v3546_v19  ;;  %v3548_v31 = vpop.f32.mrb[19].mxu1  ;;  %4513 = vmatmul.mubr.f32.gmra.mrb[44].mxu1 %v16711_v38  ;;  %v4724_v13 = vmax.f32 %v4692_v59, 0.0  ;;  %v11349_v38 = vpack.c.bf16 %v4036_v24, %v4032_v44  ;;  %v4069_v44 = vld [vmem:[#allocation11 + $0x17b8] sm:$0xff] }
 0x51e   : > { %v12542_v18 = vadd.f32 %v16712_v20, %v3548_v31  ;;  %4518 = vmatprep.mubr.f32.mxu1 %v16713_v46  ;;  %11334 = vmatpush1.bf16.msra.mxu1 %v11333_v57  ;;  %v4725_v9 = vmax.f32 %v4693_v17, 0.0  ;;  %v4045_v57 = vld [vmem:[#allocation11 + $0x16f8] sm:$0xff]  ;;  %v4044_v46 = vld [vmem:[#allocation11 + $0x16f0] sm:$0xff] }
 0x51f   : > { %v4696_v56 = vadd.f32 %v12541_v63, %v15170_v16  ;;  %11336 = vmatprep.subr.bf16.mxu1 %v11335_v43  ;;  %v16721_v63 = vld [vmem:[#allocation75_spill] sm:$0xff]  ;;  %v11351_v20 = vpack.c.bf16 %v4045_v57, %v4041_v0 }
 0x520   : > { %v4697_v40 = vadd.f32 %v12542_v18, %v15176_v54  ;;  %v3552_v61 = vpop.f32.mrb[20].mxu1  ;;  %v4040_v18 = vld [vmem:[#allocation11 + $0x16d0] sm:$0xff] }
 0x521   : > { %v4728_v3 = vmax.f32 %v4696_v56, 0.0  ;;  %v12543_v1 = vadd.f32 %v16714_v23, %v3552_v61  ;;  %v3554_v4 = vpop.f32.mrb[21].mxu1  ;;  %4519 = vmatmul.mubr.f32.gmra.mrb[46].mxu1 %v16715_v52  ;;  %v11353_v23 = vpack.c.bf16 %v4044_v46, %v4040_v18  ;;  %v4048_v52 = vld [vmem:[#allocation11 + $0x1710] sm:$0xff] }
 0x522   : > { %v4729_v62 = vmax.f32 %v4697_v40, 0.0  ;;  %v12544_v21 = vadd.f32 %v16716_v37, %v3554_v4  ;;  %11338 = vmatpush1.bf16.msra.mxu1 %v11337_v28  ;;  %4589 = vmatprep.mubr.f32.mxu1 %v16717_v29  ;;  %v16722_v40 = vld [vmem:[#allocation76_spill] sm:$0xff]  ;;  %v4061_v29 = vld [vmem:[#allocation11 + $0x1778] sm:$0xff] }
 0x523   : > { %v15191_v25 = vpack.c.bf16 %v4728_v3, %v4724_v13  ;;  %11340 = vmatprep.subr.bf16.mxu1 %v11339_v42  ;;  %v4700_v26 = vadd.f32 %v12543_v1, %v15170_v16  ;;  %v4049_v42 = vld [vmem:[#allocation11 + $0x1718] sm:$0xff] }
 0x524   : > { %v3558_v51 = vpop.f32.mrb[22].mxu1  ;;  %v15193_v2 = vpack.c.bf16 %v4729_v62, %v4725_v9  ;;  %v4701_v12 = vadd.f32 %v12544_v21, %v15176_v54  ;;  %v16723_v13 = vld [vmem:[#allocation77_spill] sm:$0xff]  ;;  %v11355_v4 = vpack.c.bf16 %v4053_v39, %v4049_v42 }
 0x525   : > { %v12545_v58 = vadd.f32 %v16718_v47, %v3558_v51  ;;  %v3560_v41 = vpop.f32.mrb[23].mxu1  ;;  %v4732_v43 = vmax.f32 %v4700_v26, 0.0  ;;  %v4052_v9 = vld [vmem:[#allocation11 + $0x1730] sm:$0xff]  ;;  %v4057_v21 = vld [vmem:[#allocation11 + $0x1758] sm:$0xff]  ;;  %v16725_v26 = vld [vmem:[#allocation79_spill] sm:$0xff] }
 0x526   : > { %v12546_v34 = vadd.f32 %v16719_v49, %v3560_v41  ;;  %11342 = vmatpush1.bf16.msra.mxu1 %v11341_v11  ;;  %11372 = vmatprep.subr.bf16.mxu0 %v15193_v2  ;;  %v4733_v55 = vmax.f32 %v4701_v12, 0.0  ;;  %v11359_v12 = vpack.c.bf16 %v4061_v29, %v4057_v21  ;;  %v4056_v49 = vld [vmem:[#allocation11 + $0x1750] sm:$0xff]  ;;  %v16737_v21 = vld [vmem:[#allocation63_spill] sm:$0xff] }
 0x527   : > { %v4704_v6 = vadd.f32 %v12545_v58, %v15170_v16  ;;  %11374 = vmatpush1.bf16.msra.mxu0 %v15191_v25  ;;  %11344 = vmatprep.subr.bf16.mxu1 %v11343_v8  ;;  %v11357_v58 = vpack.c.bf16 %v4052_v9, %v4048_v52  ;;  %v15255_v52 = vld [vmem:[#allocation14 + $0x20] sm:$0xff]  ;;  %v16735_v9 = vld [vmem:[#allocation61_spill] sm:$0xff]  ;;  %v16738_v29 = vld [vmem:[#allocation64_spill] sm:$0xff] }
 0x528   : > { %v4705_v50 = vadd.f32 %v12546_v34, %v15176_v54  ;;  %v3564_v60 = vpop.f32.mrb[24].mxu1  ;;  %v4060_v34 = vld [vmem:[#allocation11 + $0x1770] sm:$0xff] }
 0x529   : > { %v4736_v53 = vmax.f32 %v4704_v6, 0.0  ;;  %v12547_v19 = vadd.f32 %v16720_v15, %v3564_v60  ;;  %v3566_v48 = vpop.f32.mrb[25].mxu1  ;;  %v11361_v15 = vpack.c.bf16 %v4060_v34, %v4056_v49  ;;  %v5166_v34 = vld [vmem:[#allocation15 + $0x28] sm:$0xff] }
 0x52a   : > { %v4737_v59 = vmax.f32 %v4705_v50, 0.0  ;;  %v12548_v31 = vadd.f32 %v16721_v63, %v3566_v48  ;;  %11346 = vmatpush1.bf16.msra.mxu1 %v11345_v45  ;;  %v16726_v50 = vld [vmem:[#allocation80_spill] sm:$0xff] }
 0x52b   : > { %v15205_v17 = vpack.c.bf16 %v4736_v53, %v4732_v43  ;;  %11348 = vmatprep.subr.bf16.mxu1 %v11347_v7  ;;  %v4708_v22 = vadd.f32 %v12547_v19, %v15170_v16  ;;  %v4065_v7 = vld [vmem:[#allocation11 + $0x1798] sm:$0xff] }
 0x52c   : > { %v3570_v28 = vpop.f32.mrb[26].mxu1  ;;  %v15207_v56 = vpack.c.bf16 %v4737_v59, %v4733_v55  ;;  %v4709_v32 = vadd.f32 %v12548_v31, %v15176_v54  ;;  %v16727_v43 = vld [vmem:[#allocation81_spill] sm:$0xff]  ;;  %v11363_v48 = vpack.c.bf16 %v4069_v44, %v4065_v7  ;;  %v5165_v7 = vld [vmem:[#allocation15 + $0x20] sm:$0xff] }
 0x52d   : > { %v12549_v61 = vadd.f32 %v16722_v40, %v3570_v28  ;;  %v3572_v30 = vpop.f32.mrb[27].mxu1  ;;  %v4740_v11 = vmax.f32 %v4708_v22, 0.0  ;;  %v4064_v55 = vld [vmem:[#allocation11 + $0x1790] sm:$0xff]  ;;  %v4073_v31 = vld [vmem:[#allocation11 + $0x17d8] sm:$0xff] }
 0x52e   : > { %v12550_v3 = vadd.f32 %v16723_v13, %v3572_v30  ;;  %11350 = vmatpush1.bf16.msra.mxu1 %v11349_v38  ;;  %11376 = vmatprep.subr.bf16.mxu0 %v15207_v56  ;;  %v4741_v10 = vmax.f32 %v4709_v32, 0.0  ;;  %v4068_v59 = vld [vmem:[#allocation11 + $0x17b0] sm:$0xff]  ;;  %v4077_v38 = vld [vmem:[#allocation11 + $0x17f8] sm:$0xff]  ;;  %v16728_v32 = vmov 0.0  }
 0x52f   : > { %v4712_v1 = vadd.f32 %v12549_v61, %v15170_v16  ;;  %11378 = vmatpush1.bf16.msra.mxu0 %v15205_v17  ;;  %11352 = vmatprep.subr.bf16.mxu1 %v11351_v20  ;;  %v11365_v42 = vpack.c.bf16 %v4068_v59, %v4064_v55  ;;  %v11367_v22 = vpack.c.bf16 %v4077_v38, %v4073_v31  ;;  %v4072_v40 = vld [vmem:[#allocation11 + $0x17d0] sm:$0xff]  ;;  %v5173_v55 = vld [vmem:[#allocation15 + $0x60] sm:$0xff]  ;;  %v5180_v31 = vld [vmem:[#allocation15 + $0x98] sm:$0xff] }
 0x530   : > { %v4713_v62 = vadd.f32 %v12550_v3, %v15176_v54  ;;  %v3576_v37 = vpop.f32.mrb[28].mxu1  ;;  %v15232_v13 = vld [vmem:[#allocation14 + $0x8] sm:$0xff]  ;;  %v16729_v3 = vld [vmem:[#allocation55_spill] sm:$0xff]  ;;  %v5167_v44 = vld [vmem:[#allocation15 + $0x30] sm:$0xff] }
 0x531   : > { %v4744_v8 = vmax.f32 %v4712_v1, 0.0  ;;  %v12551_v14 = vadd.f32 %v16724_v36, %v3576_v37  ;;  %v3578_v51 = vpop.f32.mrb[29].mxu1  ;;  %v16732_v1 = vld [vmem:[#allocation58_spill] sm:$0xff]  ;;  %v15262_v37 = vld [vmem:[#allocation14 + $0x28] sm:$0xff]  ;;  %v5175_v59 = vld [vmem:[#allocation15 + $0x70] sm:$0xff] }
 0x532   : > { %v4745_v35 = vmax.f32 %v4713_v62, 0.0  ;;  %v12552_v47 = vadd.f32 %v16725_v26, %v3578_v51  ;;  %11354 = vmatpush1.bf16.msra.mxu1 %v11353_v23  ;;  %v16730_v23 = vld [vmem:[#allocation56_spill] sm:$0xff]  ;;  %v16736_v62 = vld [vmem:[#allocation62_spill] sm:$0xff]  ;;  %v16741_v51 = vld [vmem:[#allocation67_spill] sm:$0xff]  ;;  %v11449_v38 = vpack.c.bf16 %v5175_v59, %v5173_v55 }
 0x533   : > { %v11381_v41 = vpack.c.bf16 %v4744_v8, %v4740_v11  ;;  %11356 = vmatprep.subr.bf16.mxu1 %v11355_v4  ;;  %v4716_v24 = vadd.f32 %v12551_v14, %v15170_v16  ;;  %v16733_v4 = vld [vmem:[#allocation59_spill] sm:$0xff]  ;;  %v15269_v11 = vld [vmem:[#allocation14 + $0x30] sm:$0xff]  ;;  %v16740_v36 = vld [vmem:[#allocation66_spill] sm:$0xff] }
 0x534   : > { %v3582_v45 = vpop.f32.mrb[30].mxu1  ;;  %v11379_v6 = vpack.c.bf16 %v4745_v35, %v4741_v10  ;;  %v4717_v57 = vadd.f32 %v12552_v47, %v15176_v54  ;;  %v16739_v8 = vld [vmem:[#allocation65_spill] sm:$0xff]  ;;  %v15276_v14 = vld [vmem:[#allocation14 + $0x38] sm:$0xff]  ;;  %v16742_v10 = vld [vmem:[#allocation68_spill] sm:$0xff] }
 0x535   : > { %v12553_v60 = vadd.f32 %v16726_v50, %v3582_v45  ;;  %v3584_v0 = vpop.f32.mrb[31].mxu1  ;;  %v4748_v20 = vmax.f32 %v4716_v24, 0.0  ;;  %v16743_v35 = vld [vmem:[#allocation69_spill] sm:$0xff]  ;;  %v5162_v26 = vld [vmem:[#allocation15 + $0x8] sm:$0xff]  ;;  %v5164_v47 = vld [vmem:[#allocation15 + $0x18] sm:$0xff]  ;;  %v11441_v24 = vpack.c.bf16 %v5167_v44, %v5165_v7 }
 0x536   : > { %v12554_v53 = vadd.f32 %v16727_v43, %v3584_v0  ;;  %11358 = vmatpush1.bf16.msra.mxu1 %v11357_v58  ;;  %11380 = vmatprep.subr.bf16.mxu0 %v11379_v6  ;;  %v4749_v46 = vmax.f32 %v4717_v57, 0.0  ;;  %v11435_v58 = vpack.c.bf16 %v5164_v47, %v5162_v26  ;;  %v5168_v45 = vld [vmem:[#allocation15 + $0x38] sm:$0xff]  ;;  %v5170_v50 = vld [vmem:[#allocation15 + $0x48] sm:$0xff]  ;;  %v5169_v57 = vld [vmem:[#allocation15 + $0x40] sm:$0xff] }
 0x537   : > { %v4720_v19 = vadd.f32 %v12553_v60, %v15170_v16  ;;  %11382 = vmatpush1.bf16.msra.mxu0 %v11381_v41  ;;  %11360 = vmatprep.subr.bf16.mxu1 %v11359_v12  ;;  %v4076_v16 = vld [vmem:[#allocation11 + $0x17f0] sm:$0xff]  ;;  %v5172_v60 = vld [vmem:[#allocation15 + $0x58] sm:$0xff] }
 0x538   : > { %v4721_v63 = vadd.f32 %v12554_v53, %v15176_v54  ;;  %v11369_v30 = vpack.c.bf16 %v4076_v16, %v4072_v40  ;;  %v15225_v54 = vld [vmem:[#allocation14] sm:$0xff]  ;;  %v5163_v12 = vld [vmem:[#allocation15 + $0x10] sm:$0xff]  ;;  %v11443_v0 = vpack.c.bf16 %v5172_v60, %v5170_v50  ;;  %v5198_v47 = vld [vmem:[#allocation15 + $0x128] sm:$0xff] }
 0x539   : > { %v4752_v18 = vmax.f32 %v4720_v19, 0.0  ;;  %v5171_v43 = vld [vmem:[#allocation15 + $0x50] sm:$0xff]  ;;  %v5176_v19 = vld [vmem:[#allocation15 + $0x78] sm:$0xff]  ;;  %v5181_v40 = vld [vmem:[#allocation15 + $0xa0] sm:$0xff] }
 0x53a   : > { %v4753_v28 = vmax.f32 %v4721_v63, 0.0  ;;  %11362 = vmatpush1.bf16.msra.mxu1 %v11361_v15  ;;  %v11445_v53 = vpack.c.bf16 %v5171_v43, %v5169_v57  ;;  %v5174_v15 = vld [vmem:[#allocation15 + $0x68] sm:$0xff]  ;;  %v5183_v16 = vld [vmem:[#allocation15 + $0xb0] sm:$0xff] }
 0x53b   : > { %v11385_v39 = vpack.c.bf16 %v4752_v18, %v4748_v20  ;;  %11364 = vmatprep.subr.bf16.mxu1 %v11363_v48  ;;  %v11447_v48 = vpack.c.bf16 %v5176_v19, %v5174_v15  ;;  %v5178_v63 = vld [vmem:[#allocation15 + $0x88] sm:$0xff]  ;;  %v5177_v18 = vld [vmem:[#allocation15 + $0x80] sm:$0xff]  ;;  %v5195_v26 = vld [vmem:[#allocation15 + $0x110] sm:$0xff] }
 0x53c   : > { %v11383_v61 = vpack.c.bf16 %v4753_v28, %v4749_v46  ;;  %v11451_v20 = vpack.c.bf16 %v5180_v31, %v5178_v63  ;;  %v5179_v46 = vld [vmem:[#allocation15 + $0x90] sm:$0xff]  ;;  %v5182_v28 = vld [vmem:[#allocation15 + $0xa8] sm:$0xff]  ;;  %v5209_v63 = vld [vmem:[#allocation15 + $0x180] sm:$0xff] }
 0x53d   : > { %v5203_v50 = vld [vmem:[#allocation15 + $0x150] sm:$0xff]  ;;  %v5206_v60 = vld [vmem:[#allocation15 + $0x168] sm:$0xff] }
 0x53e   : > { %11366 = vmatpush1.bf16.msra.mxu1 %v11365_v42  ;;  %11384 = vmatprep.subr.bf16.mxu0 %v11383_v61  ;;  %v5184_v42 = vld [vmem:[#allocation15 + $0xb8] sm:$0xff]  ;;  %v5207_v15 = vld [vmem:[#allocation15 + $0x170] sm:$0xff]  ;;  %v5210_v19 = vld [vmem:[#allocation15 + $0x188] sm:$0xff] }
 0x53f   : > { %11386 = vmatpush1.bf16.msra.mxu0 %v11385_v39  ;;  %11368 = vmatprep.subr.bf16.mxu1 %v11367_v22  ;;  %v11455_v22 = vpack.c.bf16 %v5184_v42, %v5182_v28  ;;  %v5211_v31 = vld [vmem:[#allocation15 + $0x190] sm:$0xff]  ;;  %v5213_v28 = vld [vmem:[#allocation15 + $0x1a0] sm:$0xff] }
 0x540   : > { %11404 = vmatprep.subr.bf16.mxu0 %v15193_v2  ;;  %v15241_v2 = vld [vmem:[#allocation14 + $0x10] sm:$0xff] }
 0x541   : > { %v5215_v42 = vld [vmem:[#allocation15 + $0x1b0] sm:$0xff] }
 0x542   : > { %11370 = vmatpush1.bf16.msra.mxu1 %v11369_v30  ;;  %9143 = vmatmul.mubr.msk.f32.vlgmr.msra.gmra.mrb[32].mxu0 %vm765_vm3, %v15225_v54  ;;  %v5188_v30 = vld [vmem:[#allocation15 + $0xd8] sm:$0xff] }
 0x543   : > { %11406 = vmatpush1.bf16.msra.mxu0 %v15191_v25  ;;  %4842 = vmatprep.mubr.f32.mxu0 %v16728_v32  ;;  %v16731_v25 = vld [vmem:[#allocation57_spill] sm:$0xff] }
 0x544   : > { %11408 = vmatprep.subr.bf16.mxu0 %v15207_v56  ;;  %v15248_v56 = vld [vmem:[#allocation14 + $0x18] sm:$0xff] }
 0x545   : > { %4590 = vmatmul.mubr.f32.vlgmr.msra.gmra.mrb[32].mxu1 %v16729_v3  ;;  %v11457_v3 = vpack.c.bf16 %v5183_v16, %v5181_v40  ;;  %v11489_v40 = vpack.c.bf16 %v5215_v42, %v5213_v28 }
 0x546   : > { %4595 = vmatprep.mubr.f32.mxu1 %v16730_v23  ;;  %9144 = vmatmul.mubr.msk.f32.gmra.mrb[34].mxu0 %vm765_vm3, %v15232_v13 }
 0x547   : > { %11410 = vmatpush1.bf16.msra.mxu0 %v15205_v17  ;;  %4848 = vmatprep.mubr.f32.mxu0 %v16728_v32  ;;  %v16734_v17 = vld [vmem:[#allocation60_spill] sm:$0xff] }
 0x548   : > { %11412 = vmatprep.subr.bf16.mxu0 %v11379_v6  ;;  %v11439_v6 = vpack.c.bf16 %v5168_v45, %v5166_v34  ;;  %v5199_v34 = vld [vmem:[#allocation15 + $0x130] sm:$0xff]  ;;  %v5202_v45 = vld [vmem:[#allocation15 + $0x148] sm:$0xff] }
 0x549   : > { %4596 = vmatmul.mubr.f32.gmra.mrb[34].mxu1 %v16731_v25  ;;  %v5185_v25 = vld [vmem:[#allocation15 + $0xc0] sm:$0xff] }
 0x54a   : > { %4601 = vmatprep.mubr.f32.mxu1 %v16732_v1  ;;  %9145 = vmatmul.mubr.msk.f32.gmra.mrb[36].mxu0 %vm765_vm3, %v15241_v2  ;;  %v5187_v1 = vld [vmem:[#allocation15 + $0xd0] sm:$0xff] }
 0x54b   : > { %11414 = vmatpush1.bf16.msra.mxu0 %v11381_v41  ;;  %4854 = vmatprep.mubr.f32.mxu0 %v16728_v32  ;;  %v5161_v41 = vld [vmem:[#allocation15] sm:$0xff] }
 0x54c   : > { %11416 = vmatprep.subr.bf16.mxu0 %v11383_v61  ;;  %v11437_v49 = vpack.c.bf16 %v5163_v12, %v5161_v41  ;;  %v5186_v61 = vld [vmem:[#allocation15 + $0xc8] sm:$0xff] }
 0x54d   : > { %4602 = vmatmul.mubr.f32.gmra.mrb[36].mxu1 %v16733_v4  ;;  %v11459_v23 = vpack.c.bf16 %v5188_v30, %v5186_v61  ;;  %v5190_v4 = vld [vmem:[#allocation15 + $0xe8] sm:$0xff]  ;;  %v5217_v61 = vld [vmem:[#allocation15 + $0x1c0] sm:$0xff]  ;;  %v5219_v30 = vld [vmem:[#allocation15 + $0x1d0] sm:$0xff] }
 0x54e   : > { %4607 = vmatprep.mubr.f32.mxu1 %v16734_v17  ;;  %9146 = vmatmul.mubr.msk.f32.gmra.mrb[38].mxu0 %vm765_vm3, %v15248_v56  ;;  %v5192_v17 = vld [vmem:[#allocation15 + $0xf8] sm:$0xff] }
 0x54f   : > { %11418 = vmatpush1.bf16.msra.mxu0 %v11385_v39  ;;  %5031 = vmatprep.mubr.f32.mxu0 %v16728_v32  ;;  %v11453_v39 = vpack.c.bf16 %v5179_v46, %v5177_v18  ;;  %v11485_v18 = vpack.c.bf16 %v5211_v31, %v5209_v63 }
 0x550   : > { %11436 = vmatprep.subr.bf16.mxu0 %v11435_v58  ;;  %v5200_v58 = vld [vmem:[#allocation15 + $0x138] sm:$0xff] }
 0x551   : > { %4608 = vmatmul.mubr.f32.gmra.mrb[38].mxu1 %v16735_v9  ;;  %v11461_v9 = vpack.c.bf16 %v5187_v1, %v5185_v25  ;;  %v11471_v12 = vpack.c.bf16 %v5200_v58, %v5198_v47  ;;  %v11493_v25 = vpack.c.bf16 %v5219_v30, %v5217_v61 }
 0x552   : > { %4613 = vmatprep.mubr.f32.mxu1 %v16736_v62  ;;  %9151 = vmatmul.mubr.msk.f32.vlgmr.msra.gmra.mrb[40].mxu0 %vm765_vm3, %v15255_v52  ;;  %v11463_v62 = vpack.c.bf16 %v5192_v17, %v5190_v4  ;;  %v5221_v17 = vld [vmem:[#allocation15 + $0x1e0] sm:$0xff] }
 0x553   : > { %5037 = vmatprep.mubr.f32.mxu0 %v16728_v32  ;;  %11438 = vmatpush1.bf16.msra.mxu0 %v11437_v49  ;;  %v5197_v49 = vld [vmem:[#allocation15 + $0x120] sm:$0xff] }
 0x554   : > { %11440 = vmatprep.subr.bf16.mxu0 %v11439_v6  ;;  %v5204_v6 = vld [vmem:[#allocation15 + $0x158] sm:$0xff]  ;;  %v11473_v7 = vpack.c.bf16 %v5199_v34, %v5197_v49  ;;  %v5226_v34 = vld [vmem:[#allocation15 + $0x208] sm:$0xff] }
 0x555   : > { %4614 = vmatmul.mubr.f32.gmra.mrb[40].mxu1 %v16737_v21  ;;  %v5189_v21 = vld [vmem:[#allocation15 + $0xe0] sm:$0xff]  ;;  %v11475_v44 = vpack.c.bf16 %v5204_v6, %v5202_v45  ;;  %v5228_v45 = vld [vmem:[#allocation15 + $0x218] sm:$0xff] }
 0x556   : > { %4619 = vmatprep.mubr.f32.mxu1 %v16738_v29  ;;  %9152 = vmatmul.mubr.msk.f32.gmra.mrb[42].mxu0 %vm765_vm3, %v15262_v37  ;;  %v5191_v29 = vld [vmem:[#allocation15 + $0xf0] sm:$0xff] }
 0x557   : > { %5043 = vmatprep.mubr.f32.mxu0 %v16728_v32  ;;  %11442 = vmatpush1.bf16.msra.mxu0 %v11441_v24  ;;  %v5201_v24 = vld [vmem:[#allocation15 + $0x140] sm:$0xff] }
 0x558   : > { %11444 = vmatprep.subr.bf16.mxu0 %v11443_v0  ;;  %v5208_v0 = vld [vmem:[#allocation15 + $0x178] sm:$0xff]  ;;  %v11477_v57 = vpack.c.bf16 %v5203_v50, %v5201_v24 }
 0x559   : > { %4620 = vmatmul.mubr.f32.gmra.mrb[42].mxu1 %v16739_v8  ;;  %v5194_v8 = vld [vmem:[#allocation15 + $0x108] sm:$0xff]  ;;  %v11479_v43 = vpack.c.bf16 %v5208_v0, %v5206_v60 }
 0x55a   : > { %4625 = vmatprep.mubr.f32.mxu1 %v16740_v36  ;;  %9153 = vmatmul.mubr.msk.f32.gmra.mrb[44].mxu0 %vm765_vm3, %v15269_v11  ;;  %v5196_v36 = vld [vmem:[#allocation15 + $0x118] sm:$0xff] }
 0x55b   : > { %5049 = vmatprep.mubr.f32.mxu0 %v16728_v32  ;;  %11446 = vmatpush1.bf16.msra.mxu0 %v11445_v53  ;;  %v5205_v53 = vld [vmem:[#allocation15 + $0x160] sm:$0xff] }
 0x55c   : > { %11448 = vmatprep.subr.bf16.mxu0 %v11447_v48  ;;  %v5212_v48 = vld [vmem:[#allocation15 + $0x198] sm:$0xff]  ;;  %v11481_v55 = vpack.c.bf16 %v5207_v15, %v5205_v53 }
 0x55d   : > { %4626 = vmatmul.mubr.f32.gmra.mrb[44].mxu1 %v16741_v51  ;;  %v11465_v51 = vpack.c.bf16 %v5191_v29, %v5189_v21  ;;  %v11483_v59 = vpack.c.bf16 %v5212_v48, %v5210_v19  ;;  %v16744_v21 = vld [vmem:[#allocation44_spill] sm:$0xff] }
 0x55e   : > { %4631 = vmatprep.mubr.f32.mxu1 %v16742_v10  ;;  %9154 = vmatmul.mubr.msk.f32.gmra.mrb[46].mxu0 %vm765_vm3, %v15276_v14  ;;  %v11467_v10 = vpack.c.bf16 %v5196_v36, %v5194_v8  ;;  %v16745_v29 = vsub.s32 2, %v16744_v21 }
 0x55f   : > { %11450 = vmatpush1.bf16.msra.mxu0 %v11449_v38  ;;  %v5214_v38 = vld [vmem:[#allocation15 + $0x1a8] sm:$0xff] }
 0x560   : > { %11452 = vmatprep.subr.bf16.mxu0 %v11451_v20  ;;  %v5216_v20 = vld [vmem:[#allocation15 + $0x1b8] sm:$0xff]  ;;  %v15287_v8 = vrot.slane %v15165_v33, %v16745_v29  ;;  %v5229_v29 = vld [vmem:[#allocation15 + $0x220] sm:$0xff] }
 0x561   : > { %4632 = vmatmul.mubr.f32.gmra.mrb[46].mxu1 %v16743_v35  ;;  %v5193_v35 = vld [vmem:[#allocation15 + $0x100] sm:$0xff]  ;;  %v11487_v46 = vpack.c.bf16 %v5216_v20, %v5214_v38 }
 0x562   : > { %4925 = vmatprep.mubr.f32.mxu1 %v16728_v32  ;;  %v11469_v41 = vpack.c.bf16 %v5195_v26, %v5193_v35  ;;  %v5225_v20 = vld [vmem:[#allocation15 + $0x200] sm:$0xff] }
 0x563   : > { %11454 = vmatpush1.bf16.msra.mxu0 %v11453_v39  ;;  %v5218_v39 = vld [vmem:[#allocation15 + $0x1c8] sm:$0xff] }
 0x564   : > { %11456 = vmatprep.subr.bf16.mxu0 %v11455_v22  ;;  %v5220_v22 = vld [vmem:[#allocation15 + $0x1d8] sm:$0xff] }
 0x565   : > { %v11491_v16 = vpack.c.bf16 %v5220_v22, %v5218_v39  ;;  %v5230_v39 = vld [vmem:[#allocation15 + $0x228] sm:$0xff]  ;;  %v5232_v22 = vld [vmem:[#allocation15 + $0x238] sm:$0xff] }
 0x567   : > { %11458 = vmatpush1.bf16.msra.mxu0 %v11457_v3  ;;  %v5222_v3 = vld [vmem:[#allocation15 + $0x1e8] sm:$0xff] }
 0x568   : > { %11460 = vmatprep.subr.bf16.mxu0 %v11459_v23  ;;  %v5224_v23 = vld [vmem:[#allocation15 + $0x1f8] sm:$0xff] }
 0x569   : > { %v11495_v4 = vpack.c.bf16 %v5224_v23, %v5222_v3 }
 0x56b   : > { %11462 = vmatpush1.bf16.msra.mxu0 %v11461_v9  ;;  %v5223_v9 = vld [vmem:[#allocation15 + $0x1f0] sm:$0xff] }
 0x56c   : > { %11464 = vmatprep.subr.bf16.mxu0 %v11463_v62  ;;  %v11497_v35 = vpack.c.bf16 %v5223_v9, %v5221_v17 }
 0x56f   : > { %11466 = vmatpush1.bf16.msra.mxu0 %v11465_v51  ;;  %v16746_v51 = vsub.s32 3, %v16744_v21  ;;  %v11503_v21 = vpack.c.bf16 %v5232_v22, %v5230_v39 }
 0x570   : > { %11468 = vmatprep.subr.bf16.mxu0 %v11467_v10 }
 0x571   : > { %v15292_v10 = vrot.slane %v15165_v33, %v16746_v51  ;;  %v11499_v33 = vpack.c.bf16 %v5228_v45, %v5226_v34 }
 0x573   : > { %11470 = vmatpush1.bf16.msra.mxu0 %v11469_v41 }
 0x574   : > { %11472 = vmatprep.subr.bf16.mxu0 %v11471_v12 }
 0x577   : > { %11474 = vmatpush1.bf16.msra.mxu0 %v11473_v7 }
 0x578   : > { %11476 = vmatprep.subr.bf16.mxu0 %v11475_v44 }
 0x57b   : > { %11478 = vmatpush1.bf16.msra.mxu0 %v11477_v57 }
 0x57c   : > { %11480 = vmatprep.subr.bf16.mxu0 %v11479_v43 }
 0x57f   : > { %11482 = vmatpush1.bf16.msra.mxu0 %v11481_v55 }
 0x580   : > { %11484 = vmatprep.subr.bf16.mxu0 %v11483_v59 }
 0x583   : > { %11486 = vmatpush1.bf16.msra.mxu0 %v11485_v18  ;;  %v5227_v18 = vld [vmem:[#allocation15 + $0x210] sm:$0xff] }
 0x584   : > { %11488 = vmatprep.subr.bf16.mxu0 %v11487_v46 }
 0x587   : > { %11490 = vmatpush1.bf16.msra.mxu0 %v11489_v40 }
 0x588   : > { %11492 = vmatprep.subr.bf16.mxu0 %v11491_v16 }
 0x58b   : > { %11494 = vmatpush1.bf16.msra.mxu0 %v11493_v25  ;;  %v11501_v25 = vpack.c.bf16 %v5227_v18, %v5225_v20 }
 0x58c   : > { %11496 = vmatprep.subr.bf16.mxu0 %v11495_v4 }
 0x58f   : > { %11498 = vmatpush1.bf16.msra.mxu0 %v11497_v35 }
 0x590   : > { %11500 = vmatprep.subr.bf16.mxu0 %v11499_v33 }
 0x615   : > { %v4838_v1 = vpop.f32.mrb[32].mxu0 }
 0x616   : > { %v4840_v62 = vpop.f32.mrb[33].mxu0 }
 0x618   : > { %v4591_v36 = vpop.f32.mrb[32].mxu1 }
 0x619   : > { %v4593_v26 = vpop.f32.mrb[33].mxu1  ;;  %v4844_v47 = vpop.f32.mrb[34].mxu0  ;;  %v4694_v41 = vadd.f32 %v15287_v8, %v4591_v36  ;;  %v5231_v36 = vld [vmem:[#allocation15 + $0x230] sm:$0xff] }
 0x61a   : > { %v4846_v58 = vpop.f32.mrb[35].mxu0  ;;  %v4695_v12 = vadd.f32 %v15292_v10, %v4593_v26 }
 0x61b   : > { %v4726_v60 = vmax.f32 %v4694_v41, 0.0  ;;  %v5236_v41 = vld [vmem:[#allocation15 + $0x258] sm:$0xff] }
 0x61c   : > { %v4597_v49 = vpop.f32.mrb[34].mxu1  ;;  %v4727_v57 = vmax.f32 %v4695_v12, 0.0 }
 0x61d   : > { %v4698_v6 = vadd.f32 %v15287_v8, %v4597_v49  ;;  %v4599_v7 = vpop.f32.mrb[35].mxu1  ;;  %v15297_v44 = vpop.f32.mrb[36].mxu0 }
 0x61e   : > { %v4699_v24 = vadd.f32 %v15292_v10, %v4599_v7  ;;  %v15300_v50 = vpop.f32.mrb[37].mxu0 }
 0x61f   : > { %v4730_v0 = vmax.f32 %v4698_v6, 0.0  ;;  %v11505_v6 = vpack.c.bf16 %v5231_v36, %v5229_v29 }
 0x620   : > { %v4731_v43 = vmax.f32 %v4699_v24, 0.0  ;;  %v4603_v53 = vpop.f32.mrb[36].mxu1 }
 0x621   : > { %v15302_v15 = vpack.c.bf16 %v4730_v0, %v4726_v60  ;;  %v4605_v19 = vpop.f32.mrb[37].mxu1  ;;  %v15304_v48 = vpop.f32.mrb[38].mxu0  ;;  %v4702_v63 = vadd.f32 %v15287_v8, %v4603_v53  ;;  %v5233_v60 = vld [vmem:[#allocation15 + $0x240] sm:$0xff]  ;;  %v5235_v0 = vld [vmem:[#allocation15 + $0x250] sm:$0xff]  ;;  %v5240_v53 = vld [vmem:[#allocation15 + $0x278] sm:$0xff] }
 0x622   : > { %v15306_v55 = vpack.c.bf16 %v4731_v43, %v4727_v57  ;;  %v15308_v59 = vpop.f32.mrb[39].mxu0  ;;  %v4703_v31 = vadd.f32 %v15292_v10, %v4605_v19 }
 0x623   : > { %v4734_v30 = vmax.f32 %v4702_v63, 0.0 }
 0x624   : > { %v4609_v38 = vpop.f32.mrb[38].mxu1  ;;  %11388 = vmatprep.subr.bf16.mxu1 %v15306_v55  ;;  %v4735_v4 = vmax.f32 %v4703_v31, 0.0 }
 0x625   : > { %v4706_v46 = vadd.f32 %v15287_v8, %v4609_v38  ;;  %v4611_v28 = vpop.f32.mrb[39].mxu1  ;;  %11390 = vmatpush1.bf16.msra.mxu1 %v15302_v15  ;;  %v5033_v42 = vpop.f32.mrb[40].mxu0 }
 0x626   : > { %v4707_v40 = vadd.f32 %v15292_v10, %v4611_v28  ;;  %v15316_v16 = vmax.f32 %v4838_v1, %v5033_v42  ;;  %v5035_v61 = vpop.f32.mrb[41].mxu0  ;;  %v5234_v1 = vld [vmem:[#allocation15 + $0x248] sm:$0xff] }
 0x627   : > { %v4738_v3 = vmax.f32 %v4706_v46, 0.0  ;;  %v15318_v23 = vmax.f32 %v4840_v62, %v5035_v61  ;;  %v11507_v24 = vpack.c.bf16 %v5236_v41, %v5234_v1  ;;  %v11509_v46 = vpack.c.bf16 %v5235_v0, %v5233_v60  ;;  %v5239_v61 = vld [vmem:[#allocation15 + $0x270] sm:$0xff]  ;;  %v5241_v41 = vld [vmem:[#allocation15 + $0x280] sm:$0xff] }
 0x628   : > { %v4739_v17 = vmax.f32 %v4707_v40, 0.0  ;;  %v4615_v9 = vpop.f32.mrb[40].mxu1  ;;  %v5237_v40 = vld [vmem:[#allocation15 + $0x260] sm:$0xff] }
 0x629   : > { %v15320_v51 = vpack.c.bf16 %v4738_v3, %v4734_v30  ;;  %v4617_v35 = vpop.f32.mrb[41].mxu1  ;;  %v5039_v26 = vpop.f32.mrb[42].mxu0  ;;  %5353 = vmatprep.mubr.f32.mxu0 %v15318_v23  ;;  %v4710_v34 = vadd.f32 %v15287_v8, %v4615_v9  ;;  %v11513_v36 = vpack.c.bf16 %v5239_v61, %v5237_v40  ;;  %v5253_v40 = vld [vmem:[#allocation15 + $0x2e0] sm:$0xff]  ;;  %v5255_v61 = vld [vmem:[#allocation15 + $0x2f0] sm:$0xff] }
 0x62a   : > { %v15323_v12 = vpack.c.bf16 %v4739_v17, %v4735_v4  ;;  %v15325_v49 = vmax.f32 %v4844_v47, %v5039_v26  ;;  %v5041_v62 = vpop.f32.mrb[43].mxu0  ;;  %5354 = vmatmul.mubr.f32.vlgmr.msra.gmra.mrb[48].mxu0 %v15316_v16  ;;  %v4711_v7 = vadd.f32 %v15292_v10, %v4617_v35  ;;  %v5244_v4 = vld [vmem:[#allocation15 + $0x298] sm:$0xff] }
 0x62b   : > { %v15329_v45 = vmax.f32 %v4846_v58, %v5041_v62  ;;  %11502 = vmatpush1.bf16.msra.mxu0 %v11501_v25  ;;  %v5238_v58 = vld [vmem:[#allocation15 + $0x268] sm:$0xff]  ;;  %v4742_v38 = vmax.f32 %v4710_v34, 0.0 }
 0x62c   : > { %v4621_v33 = vpop.f32.mrb[42].mxu1  ;;  %11392 = vmatprep.subr.bf16.mxu1 %v15323_v12  ;;  %11504 = vmatprep.subr.bf16.mxu0 %v11503_v21  ;;  %v4743_v28 = vmax.f32 %v4711_v7, 0.0  ;;  %v11511_v22 = vpack.c.bf16 %v5240_v53, %v5238_v58  ;;  %v5242_v25 = vld [vmem:[#allocation15 + $0x288] sm:$0xff] }
 0x62d   : > { %v4714_v47 = vadd.f32 %v15287_v8, %v4621_v33  ;;  %v4623_v57 = vpop.f32.mrb[43].mxu1  ;;  %11394 = vmatpush1.bf16.msra.mxu1 %v15320_v51  ;;  %v5045_v43 = vpop.f32.mrb[44].mxu0  ;;  %5359 = vmatprep.mubr.f32.mxu0 %v15329_v45  ;;  %v11515_v1 = vpack.c.bf16 %v5244_v4, %v5242_v25  ;;  %v5250_v53 = vld [vmem:[#allocation15 + $0x2c8] sm:$0xff]  ;;  %v11529_v25 = vpack.c.bf16 %v5255_v61, %v5253_v40  ;;  %v5259_v4 = vld [vmem:[#allocation15 + $0x310] sm:$0xff]  ;;  %v5491_v40 = vld [vmem:[#allocation15 + $0x4b8] sm:$0xff] }
 0x62e   : > { %v4715_v19 = vadd.f32 %v15292_v10, %v4623_v57  ;;  %v15338_v63 = vmax.f32 %v15297_v44, %v5045_v43  ;;  %v5047_v31 = vpop.f32.mrb[45].mxu0  ;;  %5360 = vmatmul.mubr.f32.gmra.mrb[50].mxu0 %v15325_v49  ;;  %v5247_v43 = vld [vmem:[#allocation15 + $0x2b0] sm:$0xff] }
 0x62f   : > { %v4746_v20 = vmax.f32 %v4714_v47, 0.0  ;;  %v15342_v18 = vmax.f32 %v15300_v50, %v5047_v31  ;;  %11506 = vmatpush1.bf16.msra.mxu0 %v11505_v6  ;;  %v5248_v6 = vld [vmem:[#allocation15 + $0x2b8] sm:$0xff] }
 0x630   : > { %v4747_v42 = vmax.f32 %v4715_v19, 0.0  ;;  %v4627_v39 = vpop.f32.mrb[44].mxu1  ;;  %11508 = vmatprep.subr.bf16.mxu0 %v11507_v24  ;;  %v5252_v19 = vld [vmem:[#allocation15 + $0x2d8] sm:$0xff] }
 0x631   : > { %v15344_v30 = vpack.c.bf16 %v4746_v20, %v4742_v38  ;;  %v4629_v44 = vpop.f32.mrb[45].mxu1  ;;  %v5051_v3 = vpop.f32.mrb[46].mxu0  ;;  %5365 = vmatprep.mubr.f32.mxu0 %v15342_v18  ;;  %v4718_v21 = vadd.f32 %v15287_v8, %v4627_v39  ;;  %v5249_v20 = vld [vmem:[#allocation15 + $0x2c0] sm:$0xff] }
 0x632   : > { %v15347_v17 = vpack.c.bf16 %v4747_v42, %v4743_v28  ;;  %v15350_v50 = vmax.f32 %v15304_v48, %v5051_v3  ;;  %v5053_v9 = vpop.f32.mrb[47].mxu0  ;;  %5366 = vmatmul.mubr.f32.gmra.mrb[52].mxu0 %v15338_v63  ;;  %v4719_v35 = vadd.f32 %v15292_v10, %v4629_v44  ;;  %v5243_v48 = vld [vmem:[#allocation15 + $0x290] sm:$0xff]  ;;  %v5254_v28 = vld [vmem:[#allocation15 + $0x2e8] sm:$0xff]  ;;  %v5256_v42 = vld [vmem:[#allocation15 + $0x2f8] sm:$0xff] }
 0x633   : > { %v15355_v29 = vmax.f32 %v15308_v59, %v5053_v9  ;;  %11510 = vmatpush1.bf16.msra.mxu0 %v11509_v46  ;;  %v5246_v59 = vld [vmem:[#allocation15 + $0x2a8] sm:$0xff]  ;;  %v4750_v33 = vmax.f32 %v4718_v21, 0.0  ;;  %v11517_v60 = vpack.c.bf16 %v5243_v48, %v5241_v41  ;;  %v5251_v46 = vld [vmem:[#allocation15 + $0x2d0] sm:$0xff]  ;;  %v5260_v3 = vld [vmem:[#allocation15 + $0x318] sm:$0xff] }
 0x634   : > { %v4633_v26 = vpop.f32.mrb[46].mxu1  ;;  %11396 = vmatprep.subr.bf16.mxu1 %v15347_v17  ;;  %11512 = vmatprep.subr.bf16.mxu0 %v11511_v22  ;;  %v4751_v0 = vmax.f32 %v4719_v35, 0.0  ;;  %v11519_v57 = vpack.c.bf16 %v5248_v6, %v5246_v59  ;;  %v11525_v39 = vpack.c.bf16 %v5251_v46, %v5249_v20  ;;  %v11527_v22 = vpack.c.bf16 %v5256_v42, %v5254_v28  ;;  %v5258_v44 = vld [vmem:[#allocation15 + $0x308] sm:$0xff]  ;;  %v5264_v9 = vld [vmem:[#allocation15 + $0x338] sm:$0xff]  ;;  %v5261_v35 = vld [vmem:[#allocation15 + $0x320] sm:$0xff] }
 0x635   : > { %v4722_v62 = vadd.f32 %v15287_v8, %v4633_v26  ;;  %v4635_v34 = vpop.f32.mrb[47].mxu1  ;;  %11398 = vmatpush1.bf16.msra.mxu1 %v15344_v30  ;;  %5371 = vmatprep.mubr.f32.mxu0 %v15355_v29  ;;  %v5245_v8 = vld [vmem:[#allocation15 + $0x2a0] sm:$0xff]  ;;  %v5469_v21 = vld [vmem:[#allocation15 + $0x408] sm:$0xff]  ;;  %v5263_v26 = vld [vmem:[#allocation15 + $0x330] sm:$0xff] }
 0x636   : > { %v4723_v7 = vadd.f32 %v15292_v10, %v4635_v34  ;;  %5372 = vmatmul.mubr.f32.gmra.mrb[54].mxu0 %v15350_v50  ;;  %v11521_v38 = vpack.c.bf16 %v5247_v43, %v5245_v8  ;;  %v11523_v10 = vpack.c.bf16 %v5252_v19, %v5250_v53  ;;  %v5470_v48 = vld [vmem:[#allocation15 + $0x410] sm:$0xff]  ;;  %v5475_v34 = vld [vmem:[#allocation15 + $0x438] sm:$0xff]  ;;  %v11537_v59 = vpack.c.bf16 %v5263_v26, %v5261_v35  ;;  %v5265_v6 = vld [vmem:[#allocation15 + $0x340] sm:$0xff] }
 0x637   : > { %v4754_v24 = vmax.f32 %v4722_v62, 0.0  ;;  %11514 = vmatpush1.bf16.msra.mxu0 %v11513_v36  ;;  %v5471_v36 = vld [vmem:[#allocation15 + $0x418] sm:$0xff]  ;;  %v5473_v62 = vld [vmem:[#allocation15 + $0x428] sm:$0xff]  ;;  %v5476_v43 = vld [vmem:[#allocation15 + $0x440] sm:$0xff] }
 0x638   : > { %v4755_v47 = vmax.f32 %v4723_v7, 0.0  ;;  %11516 = vmatprep.subr.bf16.mxu0 %v11515_v1  ;;  %v5268_v1 = vld [vmem:[#allocation15 + $0x358] sm:$0xff]  ;;  %v11563_v41 = vpack.c.bf16 %v5471_v36, %v5469_v21  ;;  %v5267_v7 = vld [vmem:[#allocation15 + $0x350] sm:$0xff]  ;;  %v5481_v53 = vld [vmem:[#allocation15 + $0x468] sm:$0xff] }
 0x639   : > { %v15364_v58 = vpack.c.bf16 %v4754_v24, %v4750_v33  ;;  %v11567_v33 = vpack.c.bf16 %v5475_v34, %v5473_v62  ;;  %v5472_v24 = vld [vmem:[#allocation15 + $0x420] sm:$0xff]  ;;  %v5483_v19 = vld [vmem:[#allocation15 + $0x478] sm:$0xff]  ;;  %v5485_v20 = vld [vmem:[#allocation15 + $0x488] sm:$0xff] }
 0x63a   : > { %v11399_v31 = vpack.c.bf16 %v4755_v47, %v4751_v0  ;;  %v5477_v0 = vld [vmem:[#allocation15 + $0x448] sm:$0xff]  ;;  %v5479_v47 = vld [vmem:[#allocation15 + $0x458] sm:$0xff] }
 0x63b   : > { %11518 = vmatpush1.bf16.msra.mxu0 %v11517_v60  ;;  %v5474_v60 = vld [vmem:[#allocation15 + $0x430] sm:$0xff]  ;;  %v11571_v8 = vpack.c.bf16 %v5479_v47, %v5477_v0  ;;  %v5487_v46 = vld [vmem:[#allocation15 + $0x498] sm:$0xff]  ;;  %v5497_v21 = vld [vmem:[#allocation15 + $0x4e8] sm:$0xff] }
 0x63c   : > { %11400 = vmatprep.subr.bf16.mxu1 %v11399_v31  ;;  %11520 = vmatprep.subr.bf16.mxu0 %v11519_v57  ;;  %v11541_v57 = vpack.c.bf16 %v5267_v7, %v5265_v6  ;;  %v11579_v42 = vpack.c.bf16 %v5487_v46, %v5485_v20  ;;  %v5499_v36 = vld [vmem:[#allocation15 + $0x4f8] sm:$0xff]  ;;  %v5501_v35 = vld [vmem:[#allocation15 + $0x508] sm:$0xff]  ;;  %v5506_v6 = vld [vmem:[#allocation15 + $0x530] sm:$0xff] }
 0x63d   : > { %11402 = vmatpush1.bf16.msra.mxu1 %v15364_v58  ;;  %v5503_v26 = vld [vmem:[#allocation15 + $0x518] sm:$0xff]  ;;  %v5509_v7 = vld [vmem:[#allocation15 + $0x548] sm:$0xff]  ;;  %v5510_v0 = vld [vmem:[#allocation15 + $0x550] sm:$0xff] }
 0x63e   : > { %11420 = vmatprep.subr.bf16.mxu1 %v15306_v55  ;;  %v11531_v55 = vpack.c.bf16 %v5260_v3, %v5258_v44  ;;  %v5490_v3 = vld [vmem:[#allocation15 + $0x4b0] sm:$0xff]  ;;  %v5507_v62 = vld [vmem:[#allocation15 + $0x538] sm:$0xff]  ;;  %v5513_v47 = vld [vmem:[#allocation15 + $0x568] sm:$0xff] }
 0x63f   : > { %11522 = vmatpush1.bf16.msra.mxu0 %v11521_v38  ;;  %v5480_v38 = vld [vmem:[#allocation15 + $0x460] sm:$0xff]  ;;  %v5521_v20 = vld [vmem:[#allocation15 + $0x5a8] sm:$0xff]  ;;  %v5523_v46 = vld [vmem:[#allocation15 + $0x5b8] sm:$0xff] }
 0x640   : > { %9147 = vmatmul.mubr.msk.f32.vlgmr.msra.gmra.mrb[48].mxu1 %vm765_vm3, %v15225_v54  ;;  %11524 = vmatprep.subr.bf16.mxu0 %v11523_v10  ;;  %v5257_v54 = vld [vmem:[#allocation15 + $0x300] sm:$0xff]  ;;  %v5482_v10 = vld [vmem:[#allocation15 + $0x470] sm:$0xff] }
 0x641   : > { %11422 = vmatpush1.bf16.msra.mxu1 %v15302_v15  ;;  %4931 = vmatprep.mubr.f32.mxu1 %v16728_v32  ;;  %v5262_v15 = vld [vmem:[#allocation15 + $0x328] sm:$0xff]  ;;  %v11577_v28 = vpack.c.bf16 %v5482_v10, %v5480_v38  ;;  %v5516_v38 = vld [vmem:[#allocation15 + $0x580] sm:$0xff]  ;;  %v5518_v10 = vld [vmem:[#allocation15 + $0x590] sm:$0xff] }
 0x642   : > { %11424 = vmatprep.subr.bf16.mxu1 %v15323_v12  ;;  %v11533_v12 = vpack.c.bf16 %v5259_v4, %v5257_v54 }
 0x643   : > { %11526 = vmatpush1.bf16.msra.mxu0 %v11525_v39  ;;  %v5486_v39 = vld [vmem:[#allocation15 + $0x490] sm:$0xff] }
 0x644   : > { %9148 = vmatmul.mubr.msk.f32.gmra.mrb[50].mxu1 %vm765_vm3, %v15232_v13  ;;  %11528 = vmatprep.subr.bf16.mxu0 %v11527_v22  ;;  %v11535_v13 = vpack.c.bf16 %v5264_v9, %v5262_v15  ;;  %v5489_v22 = vld [vmem:[#allocation15 + $0x4a8] sm:$0xff]  ;;  %v5492_v15 = vld [vmem:[#allocation15 + $0x4c0] sm:$0xff]  ;;  %v5494_v9 = vld [vmem:[#allocation15 + $0x4d0] sm:$0xff] }
 0x645   : > { %11426 = vmatpush1.bf16.msra.mxu1 %v15320_v51  ;;  %4937 = vmatprep.mubr.f32.mxu1 %v16728_v32  ;;  %v5266_v51 = vld [vmem:[#allocation15 + $0x348] sm:$0xff]  ;;  %v11583_v44 = vpack.c.bf16 %v5491_v40, %v5489_v22  ;;  %v5527_v40 = vld [vmem:[#allocation15 + $0x5d8] sm:$0xff] }
 0x646   : > { %11428 = vmatprep.subr.bf16.mxu1 %v15347_v17  ;;  %v5468_v17 = vld [vmem:[#allocation15 + $0x400] sm:$0xff]  ;;  %v5525_v22 = vld [vmem:[#allocation15 + $0x5c8] sm:$0xff] }
 0x647   : > { %11530 = vmatpush1.bf16.msra.mxu0 %v11529_v25  ;;  %v5493_v25 = vld [vmem:[#allocation15 + $0x4c8] sm:$0xff] }
 0x648   : > { %9149 = vmatmul.mubr.msk.f32.gmra.mrb[52].mxu1 %vm765_vm3, %v15241_v2  ;;  %11532 = vmatprep.subr.bf16.mxu0 %v11531_v55  ;;  %v11539_v2 = vpack.c.bf16 %v5268_v1, %v5266_v51  ;;  %v5495_v55 = vld [vmem:[#allocation15 + $0x4d8] sm:$0xff]  ;;  %v11595_v1 = vpack.c.bf16 %v5503_v26, %v5501_v35  ;;  %v5537_v35 = vld [vmem:[#allocation15 + $0x628] sm:$0xff] }
 0x649   : > { %11430 = vmatpush1.bf16.msra.mxu1 %v15344_v30  ;;  %4943 = vmatprep.mubr.f32.mxu1 %v16728_v32  ;;  %v11565_v30 = vpack.c.bf16 %v5470_v48, %v5468_v17  ;;  %v11587_v4 = vpack.c.bf16 %v5495_v55, %v5493_v25  ;;  %v5502_v17 = vld [vmem:[#allocation15 + $0x510] sm:$0xff]  ;;  %v5505_v48 = vld [vmem:[#allocation15 + $0x528] sm:$0xff]  ;;  %v5531_v55 = vld [vmem:[#allocation15 + $0x5f8] sm:$0xff] }
 0x64a   : > { %11432 = vmatprep.subr.bf16.mxu1 %v11399_v31  ;;  %v5529_v25 = vld [vmem:[#allocation15 + $0x5e8] sm:$0xff]  ;;  %v5539_v26 = vld [vmem:[#allocation15 + $0x638] sm:$0xff] }
 0x64b   : > { %11534 = vmatpush1.bf16.msra.mxu0 %v11533_v12  ;;  %v11591_v12 = vpack.c.bf16 %v5499_v36, %v5497_v21  ;;  %v5533_v21 = vld [vmem:[#allocation15 + $0x608] sm:$0xff]  ;;  %v5535_v36 = vld [vmem:[#allocation15 + $0x618] sm:$0xff] }
 0x64c   : > { %9150 = vmatmul.mubr.msk.f32.gmra.mrb[54].mxu1 %vm765_vm3, %v15248_v56  ;;  %11536 = vmatprep.subr.bf16.mxu0 %v11535_v13  ;;  %v11569_v56 = vpack.c.bf16 %v5474_v60, %v5472_v24  ;;  %v5496_v13 = vld [vmem:[#allocation15 + $0x4e0] sm:$0xff] }
 0x64d   : > { %11434 = vmatpush1.bf16.msra.mxu1 %v15364_v58  ;;  %5120 = vmatprep.mubr.f32.mxu1 %v16728_v32  ;;  %v5478_v58 = vld [vmem:[#allocation15 + $0x450] sm:$0xff]  ;;  %v5508_v60 = vld [vmem:[#allocation15 + $0x540] sm:$0xff] }
 0x64e   : > { %11564 = vmatprep.subr.bf16.mxu1 %v11563_v41  ;;  %v11573_v31 = vpack.c.bf16 %v5478_v58, %v5476_v43  ;;  %v5500_v41 = vld [vmem:[#allocation15 + $0x500] sm:$0xff]  ;;  %v5514_v58 = vld [vmem:[#allocation15 + $0x570] sm:$0xff] }
 0x64f   : > { %11538 = vmatpush1.bf16.msra.mxu0 %v11537_v59  ;;  %v11597_v34 = vpack.c.bf16 %v5502_v17, %v5500_v41  ;;  %v11599_v59 = vpack.c.bf16 %v5507_v62, %v5505_v48  ;;  %v5512_v43 = vld [vmem:[#allocation15 + $0x560] sm:$0xff]  ;;  %v5538_v17 = vld [vmem:[#allocation15 + $0x630] sm:$0xff]  ;;  %v5541_v48 = vld [vmem:[#allocation15 + $0x648] sm:$0xff] }
 0x650   : > { %9155 = vmatmul.mubr.msk.f32.vlgmr.msra.gmra.mrb[56].mxu1 %vm765_vm3, %v15255_v52  ;;  %11540 = vmatprep.subr.bf16.mxu0 %v11539_v2  ;;  %v11575_v52 = vpack.c.bf16 %v5483_v19, %v5481_v53  ;;  %v5504_v2 = vld [vmem:[#allocation15 + $0x520] sm:$0xff]  ;;  %v5517_v53 = vld [vmem:[#allocation15 + $0x588] sm:$0xff]  ;;  %v5519_v19 = vld [vmem:[#allocation15 + $0x598] sm:$0xff] }
 0x651   : > { %5126 = vmatprep.mubr.f32.mxu1 %v16728_v32  ;;  %11566 = vmatpush1.bf16.msra.mxu1 %v11565_v30  ;;  %v5511_v30 = vld [vmem:[#allocation15 + $0x558] sm:$0xff]  ;;  %v5536_v41 = vld [vmem:[#allocation15 + $0x620] sm:$0xff] }
 0x652   : > { %11568 = vmatprep.subr.bf16.mxu1 %v11567_v33  ;;  %v11601_v33 = vpack.c.bf16 %v5506_v6, %v5504_v2  ;;  %v11603_v24 = vpack.c.bf16 %v5511_v30, %v5509_v7  ;;  %v5543_v62 = vld [vmem:[#allocation15 + $0x658] sm:$0xff]  ;;  %v5540_v2 = vld [vmem:[#allocation15 + $0x640] sm:$0xff]  ;;  %v5542_v6 = vld [vmem:[#allocation15 + $0x650] sm:$0xff] }
 0x653   : > { %11542 = vmatpush1.bf16.msra.mxu0 %v11541_v57  ;;  %v5515_v57 = vld [vmem:[#allocation15 + $0x578] sm:$0xff]  ;;  %v5545_v7 = vld [vmem:[#allocation15 + $0x668] sm:$0xff] }
 0x654   : > { %9156 = vmatmul.mubr.msk.f32.gmra.mrb[58].mxu1 %vm765_vm3, %v15262_v37  ;;  %v5484_v37 = vld [vmem:[#allocation15 + $0x480] sm:$0xff]  ;;  %v5547_v30 = vld [vmem:[#allocation15 + $0x678] sm:$0xff] }
 0x655   : > { %5132 = vmatprep.mubr.f32.mxu1 %v16728_v32  ;;  %11570 = vmatpush1.bf16.msra.mxu1 %v11569_v56  ;;  %v11581_v61 = vpack.c.bf16 %v5486_v39, %v5484_v37  ;;  %v11605_v56 = vpack.c.bf16 %v5510_v0, %v5508_v60  ;;  %v5520_v37 = vld [vmem:[#allocation15 + $0x5a0] sm:$0xff]  ;;  %v5522_v39 = vld [vmem:[#allocation15 + $0x5b0] sm:$0xff]  ;;  %v11637_v60 = vpack.c.bf16 %v5542_v6, %v5540_v2  ;;  %v5565_v2 = vld [vmem:[#allocation15 + $0x708] sm:$0xff] }
 0x656   : > { %11572 = vmatprep.subr.bf16.mxu1 %v11571_v8  ;;  %v11607_v8 = vpack.c.bf16 %v5515_v57, %v5513_v47  ;;  %v5271_v47 = vld [vmem:[#allocation15 + $0x370] sm:$0xff]  ;;  %v5544_v57 = vld [vmem:[#allocation15 + $0x660] sm:$0xff]  ;;  %v5567_v6 = vld [vmem:[#allocation15 + $0x718] sm:$0xff] }
 0x658   : > { %9157 = vmatmul.mubr.msk.f32.gmra.mrb[60].mxu1 %vm765_vm3, %v15269_v11  ;;  %v5488_v11 = vld [vmem:[#allocation15 + $0x4a0] sm:$0xff] }
 0x659   : > { %5138 = vmatprep.mubr.f32.mxu1 %v16728_v32  ;;  %11574 = vmatpush1.bf16.msra.mxu1 %v11573_v31  ;;  %v11585_v54 = vpack.c.bf16 %v5490_v3, %v5488_v11  ;;  %v11609_v31 = vpack.c.bf16 %v5514_v58, %v5512_v43  ;;  %v5524_v11 = vld [vmem:[#allocation15 + $0x5c0] sm:$0xff]  ;;  %v5526_v3 = vld [vmem:[#allocation15 + $0x5d0] sm:$0xff]  ;;  %v5549_v43 = vld [vmem:[#allocation15 + $0x688] sm:$0xff] }
 0x65a   : > { %11576 = vmatprep.subr.bf16.mxu1 %v11575_v52  ;;  %v11611_v52 = vpack.c.bf16 %v5519_v19, %v5517_v53  ;;  %v5551_v58 = vld [vmem:[#allocation15 + $0x698] sm:$0xff] }
 0x65b   : > { %v5276_v53 = vld [vmem:[#allocation15 + $0x398] sm:$0xff] }
 0x65c   : > { %9158 = vmatmul.mubr.msk.f32.gmra.mrb[62].mxu1 %vm765_vm3, %v15276_v14  ;;  %v11589_v14 = vpack.c.bf16 %v5494_v9, %v5492_v15  ;;  %v5528_v15 = vld [vmem:[#allocation15 + $0x5e0] sm:$0xff]  ;;  %v5530_v9 = vld [vmem:[#allocation15 + $0x5f0] sm:$0xff] }
 0x65d   : > { %11578 = vmatpush1.bf16.msra.mxu1 %v11577_v28  ;;  %5660 = vmatprep.mubr.f32.mxu1 %v15318_v23  ;;  %v5498_v23 = vld [vmem:[#allocation15 + $0x4f0] sm:$0xff]  ;;  %v11613_v28 = vpack.c.bf16 %v5518_v10, %v5516_v38  ;;  %v11643_v38 = vpack.c.bf16 %v5551_v58, %v5549_v43  ;;  %v5548_v10 = vld [vmem:[#allocation15 + $0x680] sm:$0xff]  ;;  %v5575_v43 = vld [vmem:[#allocation15 + $0x758] sm:$0xff] }
 0x65e   : > { %11580 = vmatprep.subr.bf16.mxu1 %v11579_v42  ;;  %v11593_v51 = vpack.c.bf16 %v5498_v23, %v5496_v13  ;;  %v11615_v42 = vpack.c.bf16 %v5523_v46, %v5521_v20  ;;  %v5532_v13 = vld [vmem:[#allocation15 + $0x600] sm:$0xff]  ;;  %v5534_v23 = vld [vmem:[#allocation15 + $0x610] sm:$0xff] }
 0x65f   : > { %v5550_v20 = vld [vmem:[#allocation15 + $0x690] sm:$0xff] }
 0x661   : > { %11582 = vmatpush1.bf16.msra.mxu1 %v11581_v61  ;;  %v11617_v61 = vpack.c.bf16 %v5522_v39, %v5520_v37  ;;  %v5280_v37 = vld [vmem:[#allocation15 + $0x3b8] sm:$0xff] }
 0x662   : > { %11584 = vmatprep.subr.bf16.mxu1 %v11583_v44  ;;  %v11619_v44 = vpack.c.bf16 %v5527_v40, %v5525_v22  ;;  %v5277_v22 = vld [vmem:[#allocation15 + $0x3a0] sm:$0xff]  ;;  %v5279_v40 = vld [vmem:[#allocation15 + $0x3b0] sm:$0xff] }
 0x665   : > { %11586 = vmatpush1.bf16.msra.mxu1 %v11585_v54  ;;  %v11621_v54 = vpack.c.bf16 %v5526_v3, %v5524_v11  ;;  %v5554_v11 = vld [vmem:[#allocation15 + $0x6b0] sm:$0xff]  ;;  %v11553_v3 = vpack.c.bf16 %v5279_v40, %v5277_v22  ;;  %v5580_v22 = vld [vmem:[#allocation15 + $0x780] sm:$0xff] }
 0x666   : > { %11588 = vmatprep.subr.bf16.mxu1 %v11587_v4  ;;  %v11623_v4 = vpack.c.bf16 %v5531_v55, %v5529_v25  ;;  %v5557_v25 = vld [vmem:[#allocation15 + $0x6c8] sm:$0xff]  ;;  %v5559_v55 = vld [vmem:[#allocation15 + $0x6d8] sm:$0xff]  ;;  %v5582_v40 = vld [vmem:[#allocation15 + $0x790] sm:$0xff] }
 0x669   : > { %11590 = vmatpush1.bf16.msra.mxu1 %v11589_v14  ;;  %v11625_v14 = vpack.c.bf16 %v5530_v9, %v5528_v15  ;;  %v5281_v9 = vld [vmem:[#allocation15 + $0x3c0] sm:$0xff] }
 0x66a   : > { %11592 = vmatprep.subr.bf16.mxu1 %v11591_v12  ;;  %v11627_v12 = vpack.c.bf16 %v5535_v36, %v5533_v21  ;;  %v5283_v21 = vld [vmem:[#allocation15 + $0x3d0] sm:$0xff]  ;;  %v11651_v36 = vpack.c.bf16 %v5559_v55, %v5557_v25  ;;  %v5584_v25 = vld [vmem:[#allocation15 + $0x7a0] sm:$0xff] }
 0x66b   : > { %v5586_v55 = vld [vmem:[#allocation15 + $0x7b0] sm:$0xff] }
 0x66d   : > { %11594 = vmatpush1.bf16.msra.mxu1 %v11593_v51  ;;  %v11629_v51 = vpack.c.bf16 %v5534_v23, %v5532_v13  ;;  %v11557_v13 = vpack.c.bf16 %v5283_v21, %v5281_v9  ;;  %v5561_v23 = vld [vmem:[#allocation15 + $0x6e8] sm:$0xff]  ;;  %v5588_v9 = vld [vmem:[#allocation15 + $0x7c0] sm:$0xff]  ;;  %v5590_v21 = vld [vmem:[#allocation15 + $0x7d0] sm:$0xff] }
 0x66e   : > { %11596 = vmatprep.subr.bf16.mxu1 %v11595_v1  ;;  %v11631_v1 = vpack.c.bf16 %v5539_v26, %v5537_v35  ;;  %v5563_v35 = vld [vmem:[#allocation15 + $0x6f8] sm:$0xff] }
 0x671   : > { %11598 = vmatpush1.bf16.msra.mxu1 %v11597_v34  ;;  %v11633_v34 = vpack.c.bf16 %v5538_v17, %v5536_v41  ;;  %v5288_v41 = vld [vmem:[#allocation15 + $0x3f8] sm:$0xff]  ;;  %v11655_v17 = vpack.c.bf16 %v5563_v35, %v5561_v23  ;;  %v5592_v23 = vld [vmem:[#allocation15 + $0x7e0] sm:$0xff]  ;;  %v5594_v35 = vld [vmem:[#allocation15 + $0x7f0] sm:$0xff] }
 0x672   : > { %11600 = vmatprep.subr.bf16.mxu1 %v11599_v59  ;;  %v11635_v59 = vpack.c.bf16 %v5543_v62, %v5541_v48  ;;  %v5562_v48 = vld [vmem:[#allocation15 + $0x6f0] sm:$0xff] }
 0x675   : > { %11602 = vmatpush1.bf16.msra.mxu1 %v11601_v33  ;;  %v5270_v33 = vld [vmem:[#allocation15 + $0x368] sm:$0xff] }
 0x676   : > { %11604 = vmatprep.subr.bf16.mxu1 %v11603_v24  ;;  %v5272_v24 = vld [vmem:[#allocation15 + $0x378] sm:$0xff] }
 0x677   : > { %v11543_v0 = vpack.c.bf16 %v5272_v24, %v5270_v33  ;;  %v11659_v33 = vpack.c.bf16 %v5567_v6, %v5565_v2  ;;  %v5564_v24 = vld [vmem:[#allocation15 + $0x700] sm:$0xff]  ;;  %v5910_v6 = vld [vmem:[#allocation17 + $0x210] sm:$0xff] }
 0x678   : > { %v5908_v2 = vld [vmem:[#allocation17 + $0x200] sm:$0xff] }
 0x679   : > { %11606 = vmatpush1.bf16.msra.mxu1 %v11605_v56  ;;  %v5546_v56 = vld [vmem:[#allocation15 + $0x670] sm:$0xff]  ;;  %11544 = vmatprep.subr.bf16.mxu0 %v11543_v0  ;;  %v5569_v0 = vld [vmem:[#allocation15 + $0x728] sm:$0xff] }
 0x67a   : > { %11608 = vmatprep.subr.bf16.mxu1 %v11607_v8 }
 0x67d   : > { %11610 = vmatpush1.bf16.msra.mxu1 %v11609_v31  ;;  %v5273_v31 = vld [vmem:[#allocation15 + $0x380] sm:$0xff] }
 0x67e   : > { %11612 = vmatprep.subr.bf16.mxu1 %v11611_v52  ;;  %v5275_v52 = vld [vmem:[#allocation15 + $0x390] sm:$0xff] }
 0x67f   : > { %v11549_v46 = vpack.c.bf16 %v5275_v52, %v5273_v31  ;;  %v5579_v31 = vld [vmem:[#allocation15 + $0x778] sm:$0xff]  ;;  %v5909_v52 = vld [vmem:[#allocation17 + $0x208] sm:$0xff] }
 0x681   : > { %11614 = vmatpush1.bf16.msra.mxu1 %v11613_v28  ;;  %v5553_v28 = vld [vmem:[#allocation15 + $0x6a8] sm:$0xff] }
 0x682   : > { %11616 = vmatprep.subr.bf16.mxu1 %v11615_v42  ;;  %v5555_v42 = vld [vmem:[#allocation15 + $0x6b8] sm:$0xff] }
 0x685   : > { %11618 = vmatpush1.bf16.msra.mxu1 %v11617_v61  ;;  %v11647_v61 = vpack.c.bf16 %v5555_v42, %v5553_v28  ;;  %v5576_v28 = vld [vmem:[#allocation15 + $0x760] sm:$0xff]  ;;  %v5578_v42 = vld [vmem:[#allocation15 + $0x770] sm:$0xff] }
 0x686   : > { %11620 = vmatprep.subr.bf16.mxu1 %v11619_v44  ;;  %v5552_v44 = vld [vmem:[#allocation15 + $0x6a0] sm:$0xff] }
 0x689   : > { %11622 = vmatpush1.bf16.msra.mxu1 %v11621_v54  ;;  %v5282_v54 = vld [vmem:[#allocation15 + $0x3c8] sm:$0xff] }
 0x68a   : > { %11624 = vmatprep.subr.bf16.mxu1 %v11623_v4  ;;  %v5284_v4 = vld [vmem:[#allocation15 + $0x3d8] sm:$0xff] }
 0x68b   : > { %v11555_v15 = vpack.c.bf16 %v5284_v4, %v5282_v54  ;;  %v5589_v54 = vld [vmem:[#allocation15 + $0x7c8] sm:$0xff]  ;;  %v5591_v4 = vld [vmem:[#allocation15 + $0x7d8] sm:$0xff] }
 0x68d   : > { %11626 = vmatpush1.bf16.msra.mxu1 %v11625_v14  ;;  %v5556_v14 = vld [vmem:[#allocation15 + $0x6c0] sm:$0xff] }
 0x68e   : > { %11628 = vmatprep.subr.bf16.mxu1 %v11627_v12  ;;  %v5558_v12 = vld [vmem:[#allocation15 + $0x6d0] sm:$0xff] }
 0x68f   : > { %v11653_v26 = vpack.c.bf16 %v5558_v12, %v5556_v14  ;;  %v5595_v14 = vld [vmem:[#allocation15 + $0x7f8] sm:$0xff]  ;;  %v11685_v12 = vpack.c.bf16 %v5590_v21, %v5588_v9 }
 0x690   : > { %5661 = vmatmul.mubr.f32.vlgmr.msra.gmra.mrb[64].mxu1 %v15316_v16  ;;  %v5269_v16 = vld [vmem:[#allocation15 + $0x360] sm:$0xff] }
 0x691   : > { %5666 = vmatprep.mubr.f32.mxu1 %v15329_v45  ;;  %11630 = vmatpush1.bf16.msra.mxu1 %v11629_v51  ;;  %v11639_v45 = vpack.c.bf16 %v5547_v30, %v5545_v7  ;;  %v11545_v8 = vpack.c.bf16 %v5271_v47, %v5269_v16  ;;  %v5560_v51 = vld [vmem:[#allocation15 + $0x6e0] sm:$0xff]  ;;  %v5571_v16 = vld [vmem:[#allocation15 + $0x738] sm:$0xff] }
 0x692   : > { %11632 = vmatprep.subr.bf16.mxu1 %v11631_v1  ;;  %v5286_v1 = vld [vmem:[#allocation15 + $0x3e8] sm:$0xff]  ;;  %v11657_v30 = vpack.c.bf16 %v5562_v48, %v5560_v51 }
 0x693   : > { %11546 = vmatpush1.bf16.msra.mxu0 %v11545_v8  ;;  %v11559_v62 = vpack.c.bf16 %v5288_v41, %v5286_v1  ;;  %v5573_v8 = vld [vmem:[#allocation15 + $0x748] sm:$0xff] }
 0x694   : > { %5667 = vmatmul.mubr.f32.gmra.mrb[66].mxu1 %v15325_v49  ;;  %v5274_v49 = vld [vmem:[#allocation15 + $0x388] sm:$0xff] }
 0x695   : > { %5672 = vmatprep.mubr.f32.mxu1 %v15342_v18  ;;  %11634 = vmatpush1.bf16.msra.mxu1 %v11633_v34  ;;  %v11641_v18 = vpack.c.bf16 %v5546_v56, %v5544_v57  ;;  %v11547_v19 = vpack.c.bf16 %v5276_v53, %v5274_v49  ;;  %v5285_v34 = vld [vmem:[#allocation15 + $0x3e0] sm:$0xff]  ;;  %v5570_v56 = vld [vmem:[#allocation15 + $0x730] sm:$0xff]  ;;  %v11667_v49 = vpack.c.bf16 %v5575_v43, %v5573_v8  ;;  %v5917_v8 = vld [vmem:[#allocation17 + $0x248] sm:$0xff] }
 0x696   : > { %11636 = vmatprep.subr.bf16.mxu1 %v11635_v59  ;;  %v5287_v59 = vld [vmem:[#allocation15 + $0x3f0] sm:$0xff]  ;;  %v5568_v57 = vld [vmem:[#allocation15 + $0x720] sm:$0xff]  ;;  %v5919_v43 = vld [vmem:[#allocation17 + $0x258] sm:$0xff] }
 0x697   : > { %11548 = vmatprep.subr.bf16.mxu0 %v11547_v19  ;;  %v11561_v7 = vpack.c.bf16 %v5287_v59, %v5285_v34  ;;  %v11665_v58 = vpack.c.bf16 %v5570_v56, %v5568_v57  ;;  %v5572_v53 = vld [vmem:[#allocation15 + $0x740] sm:$0xff]  ;;  %v5577_v19 = vld [vmem:[#allocation15 + $0x768] sm:$0xff]  ;;  %v5914_v57 = vld [vmem:[#allocation17 + $0x230] sm:$0xff] }
 0x698   : > { %5673 = vmatmul.mubr.f32.gmra.mrb[68].mxu1 %v15338_v63  ;;  %11550 = vmatpush1.bf16.msra.mxu0 %v11549_v46  ;;  %v5278_v63 = vld [vmem:[#allocation15 + $0x3a8] sm:$0xff]  ;;  %v11671_v46 = vpack.c.bf16 %v5579_v31, %v5577_v19  ;;  %v11699_v19 = vpack.c.bf16 %v5919_v43, %v5917_v8  ;;  %v5916_v31 = vld [vmem:[#allocation17 + $0x240] sm:$0xff] }
 0x699   : > { %5678 = vmatprep.mubr.f32.mxu1 %v15355_v29  ;;  %11638 = vmatpush1.bf16.msra.mxu1 %v11637_v60  ;;  %v11645_v29 = vpack.c.bf16 %v5550_v20, %v5548_v10  ;;  %v11551_v39 = vpack.c.bf16 %v5280_v37, %v5278_v63  ;;  %v5566_v60 = vld [vmem:[#allocation15 + $0x710] sm:$0xff]  ;;  %v5581_v63 = vld [vmem:[#allocation15 + $0x788] sm:$0xff]  ;;  %v5583_v37 = vld [vmem:[#allocation15 + $0x798] sm:$0xff] }
 0x69a   : > { %11640 = vmatprep.subr.bf16.mxu1 %v11639_v45  ;;  %v11661_v47 = vpack.c.bf16 %v5566_v60, %v5564_v24  ;;  %v11663_v45 = vpack.c.bf16 %v5571_v16, %v5569_v0  ;;  %v11693_v16 = vpack.c.bf16 %v5910_v6, %v5908_v2  ;;  %v5943_v2 = vld [vmem:[#allocation17 + $0x318] sm:$0xff] }
 0x69b   : > { %11552 = vmatprep.subr.bf16.mxu0 %v11551_v39  ;;  %v11675_v39 = vpack.c.bf16 %v5583_v37, %v5581_v63 }
 0x69c   : > { %5679 = vmatmul.mubr.f32.gmra.mrb[70].mxu1 %v15350_v50  ;;  %11554 = vmatpush1.bf16.msra.mxu0 %v11553_v3  ;;  %v11649_v50 = vpack.c.bf16 %v5554_v11, %v5552_v44  ;;  %v5587_v44 = vld [vmem:[#allocation15 + $0x7b8] sm:$0xff]  ;;  %v11677_v11 = vpack.c.bf16 %v5582_v40, %v5580_v22  ;;  %v5925_v40 = vld [vmem:[#allocation17 + $0x288] sm:$0xff] }
 0x69d   : > { %11642 = vmatpush1.bf16.msra.mxu1 %v11641_v18  ;;  %11556 = vmatprep.subr.bf16.mxu0 %v11555_v15  ;;  %v5574_v18 = vld [vmem:[#allocation15 + $0x750] sm:$0xff]  ;;  %v11683_v15 = vpack.c.bf16 %v5591_v4, %v5589_v54  ;;  %v5924_v54 = vld [vmem:[#allocation17 + $0x280] sm:$0xff] }
 0x69e   : > { %11644 = vmatprep.subr.bf16.mxu1 %v11643_v38  ;;  %v5911_v38 = vld [vmem:[#allocation17 + $0x218] sm:$0xff]  ;;  %v11669_v10 = vpack.c.bf16 %v5574_v18, %v5572_v53  ;;  %v5926_v4 = vld [vmem:[#allocation17 + $0x290] sm:$0xff] }
 0x69f   : > { %v11691_v20 = vpack.c.bf16 %v5911_v38, %v5909_v52  ;;  %v5918_v52 = vld [vmem:[#allocation17 + $0x250] sm:$0xff]  ;;  %v11709_v9 = vpack.c.bf16 %v5926_v4, %v5924_v54  ;;  %v5969_v4 = vld [vmem:[#allocation17 + $0x3e8] sm:$0xff] }
 0x6a0   : > { %11558 = vmatpush1.bf16.msra.mxu0 %v11557_v13  ;;  %v11701_v63 = vpack.c.bf16 %v5918_v52, %v5916_v31  ;;  %v5952_v31 = vld [vmem:[#allocation17 + $0x360] sm:$0xff]  ;;  %v5966_v54 = vld [vmem:[#allocation17 + $0x3d0] sm:$0xff] }
 0x6a1   : > { %11646 = vmatpush1.bf16.msra.mxu1 %v11645_v29  ;;  %11560 = vmatprep.subr.bf16.mxu0 %v11559_v62  ;;  %v11673_v29 = vpack.c.bf16 %v5578_v42, %v5576_v28 }
 0x6a2   : > { %11648 = vmatprep.subr.bf16.mxu1 %v11647_v61  ;;  %v5585_v61 = vld [vmem:[#allocation15 + $0x7a8] sm:$0xff] }
 0x6a3   : > { %v11679_v3 = vpack.c.bf16 %v5587_v44, %v5585_v61  ;;  %v5927_v61 = vld [vmem:[#allocation17 + $0x298] sm:$0xff] }
 0x6a4   : > { %11562 = vmatpush1.bf16.msra.mxu0 %v11561_v7 }
 0x6a5   : > { %11650 = vmatpush1.bf16.msra.mxu1 %v11649_v50  ;;  %11692 = vmatprep.subr.bf16.mxu0 %v11691_v20  ;;  %v11681_v50 = vpack.c.bf16 %v5586_v55, %v5584_v25  ;;  %v5923_v20 = vld [vmem:[#allocation17 + $0x278] sm:$0xff]  ;;  %v11707_v55 = vpack.c.bf16 %v5927_v61, %v5925_v40  ;;  %v5962_v61 = vld [vmem:[#allocation17 + $0x3b0] sm:$0xff] }
 0x6a6   : > { %11652 = vmatprep.subr.bf16.mxu1 %v11651_v36  ;;  %v5593_v36 = vld [vmem:[#allocation15 + $0x7e8] sm:$0xff] }
 0x6a7   : > { %v11687_v13 = vpack.c.bf16 %v5595_v14, %v5593_v36  ;;  %v5928_v36 = vld [vmem:[#allocation17 + $0x2a0] sm:$0xff]  ;;  %v5930_v14 = vld [vmem:[#allocation17 + $0x2b0] sm:$0xff] }
 0x6a9   : > { %11654 = vmatpush1.bf16.msra.mxu1 %v11653_v26  ;;  %v11689_v26 = vpack.c.bf16 %v5594_v35, %v5592_v23  ;;  %v11713_v23 = vpack.c.bf16 %v5930_v14, %v5928_v36  ;;  %v5970_v36 = vld [vmem:[#allocation17 + $0x3f0] sm:$0xff]  ;;  %v5840_v14 = vld [vmem:[#allocation17 + $0x8] sm:$0xff] }
 0x6aa   : > { %11656 = vmatprep.subr.bf16.mxu1 %v11655_v17 }
 0x6ad   : > { %11658 = vmatpush1.bf16.msra.mxu1 %v11657_v30  ;;  %v5913_v30 = vld [vmem:[#allocation17 + $0x228] sm:$0xff] }
 0x6ae   : > { %11660 = vmatprep.subr.bf16.mxu1 %v11659_v33  ;;  %v5915_v33 = vld [vmem:[#allocation17 + $0x238] sm:$0xff] }
 0x6b1   : > { %11662 = vmatpush1.bf16.msra.mxu1 %v11661_v47  ;;  %v11695_v47 = vpack.c.bf16 %v5915_v33, %v5913_v30  ;;  %v5940_v30 = vld [vmem:[#allocation17 + $0x300] sm:$0xff]  ;;  %v5942_v33 = vld [vmem:[#allocation17 + $0x310] sm:$0xff] }
 0x6b2   : > { %11664 = vmatprep.subr.bf16.mxu1 %v11663_v45  ;;  %v5912_v45 = vld [vmem:[#allocation17 + $0x220] sm:$0xff] }
 0x6b3   : > { %v11697_v18 = vpack.c.bf16 %v5914_v57, %v5912_v45  ;;  %v5946_v45 = vld [vmem:[#allocation17 + $0x330] sm:$0xff]  ;;  %v5949_v57 = vld [vmem:[#allocation17 + $0x348] sm:$0xff] }
 0x6b5   : > { %11666 = vmatpush1.bf16.msra.mxu1 %v11665_v58 }
 0x6b6   : > { %11668 = vmatprep.subr.bf16.mxu1 %v11667_v49 }
 0x6b9   : > { %11670 = vmatpush1.bf16.msra.mxu1 %v11669_v10  ;;  %v5921_v10 = vld [vmem:[#allocation17 + $0x268] sm:$0xff] }
 0x6ba   : > { %11672 = vmatprep.subr.bf16.mxu1 %v11671_v46  ;;  %v11703_v37 = vpack.c.bf16 %v5923_v20, %v5921_v10  ;;  %v5957_v20 = vld [vmem:[#allocation17 + $0x388] sm:$0xff] }
 0x6bd   : > { %11674 = vmatpush1.bf16.msra.mxu1 %v11673_v29  ;;  %v5920_v29 = vld [vmem:[#allocation17 + $0x260] sm:$0xff] }
 0x6be   : > { %11676 = vmatprep.subr.bf16.mxu1 %v11675_v39  ;;  %v5922_v39 = vld [vmem:[#allocation17 + $0x270] sm:$0xff] }
 0x6bf   : > { %v11705_v25 = vpack.c.bf16 %v5922_v39, %v5920_v29  ;;  %v5961_v29 = vld [vmem:[#allocation17 + $0x3a8] sm:$0xff]  ;;  %v5963_v39 = vld [vmem:[#allocation17 + $0x3b8] sm:$0xff] }
 0x6c0   : > { %v11743_v40 = vpack.c.bf16 %v5963_v39, %v5961_v29 }
 0x6c1   : > { %11678 = vmatpush1.bf16.msra.mxu1 %v11677_v11 }
 0x6c2   : > { %11680 = vmatprep.subr.bf16.mxu1 %v11679_v3 }
 0x6c5   : > { %11682 = vmatpush1.bf16.msra.mxu1 %v11681_v50  ;;  %v5929_v50 = vld [vmem:[#allocation17 + $0x2a8] sm:$0xff] }
 0x6c6   : > { %11684 = vmatprep.subr.bf16.mxu1 %v11683_v15  ;;  %v5931_v15 = vld [vmem:[#allocation17 + $0x2b8] sm:$0xff] }
 0x6c7   : > { %v11711_v21 = vpack.c.bf16 %v5931_v15, %v5929_v50  ;;  %v5971_v50 = vld [vmem:[#allocation17 + $0x3f8] sm:$0xff] }
 0x6c9   : > { %11686 = vmatpush1.bf16.msra.mxu1 %v11685_v12  ;;  %v5933_v12 = vld [vmem:[#allocation17 + $0x2c8] sm:$0xff] }
 0x6ca   : > { %11688 = vmatprep.subr.bf16.mxu1 %v11687_v13  ;;  %v5935_v13 = vld [vmem:[#allocation17 + $0x2d8] sm:$0xff] }
 0x6cb   : > { %v11715_v35 = vpack.c.bf16 %v5935_v13, %v5933_v12  ;;  %v5842_v12 = vld [vmem:[#allocation17 + $0x18] sm:$0xff] }
 0x6cd   : > { %11690 = vmatpush1.bf16.msra.mxu1 %v11689_v26  ;;  %v5932_v26 = vld [vmem:[#allocation17 + $0x2c0] sm:$0xff] }
 0x713   : > { %v4927_v51 = vpop.f32.mrb[48].mxu1 }
 0x714   : > { %v4929_v1 = vpop.f32.mrb[49].mxu1 }
 0x717   : > { %v4933_v41 = vpop.f32.mrb[50].mxu1 }
 0x718   : > { %v4935_v17 = vpop.f32.mrb[51].mxu1 }
 0x71b   : > { %v4939_v48 = vpop.f32.mrb[52].mxu1 }
 0x71c   : > { %v4941_v62 = vpop.f32.mrb[53].mxu1 }
 0x71f   : > { %v4945_v34 = vpop.f32.mrb[54].mxu1 }
 0x720   : > { %v4947_v59 = vpop.f32.mrb[55].mxu1 }
 0x723   : > { %v5122_v7 = vpop.f32.mrb[56].mxu1 }
 0x724   : > { %v5147_v24 = vmax.f32 %v4927_v51, %v5122_v7  ;;  %v5124_v60 = vpop.f32.mrb[57].mxu1  ;;  %v5934_v51 = vld [vmem:[#allocation17 + $0x2d0] sm:$0xff] }
 0x725   : > { %v5148_v0 = vmax.f32 %v4929_v1, %v5124_v60  ;;  %v5937_v1 = vld [vmem:[#allocation17 + $0x2e8] sm:$0xff]  ;;  %v5947_v60 = vld [vmem:[#allocation17 + $0x338] sm:$0xff] }
 0x727   : > { %v5128_v56 = vpop.f32.mrb[58].mxu1  ;;  %5442 = vmatprep.mubr.f32.mxu0 %v5148_v0  ;;  %5749 = vmatprep.mubr.f32.mxu1 %v5148_v0  ;;  %v11725_v0 = vpack.c.bf16 %v5942_v33, %v5940_v30 }
 0x728   : > { %v5151_v58 = vmax.f32 %v4933_v41, %v5128_v56  ;;  %v5130_v49 = vpop.f32.mrb[59].mxu1  ;;  %5443 = vmatmul.mubr.f32.vlgmr.msra.gmra.mrb[48].mxu0 %v5147_v24  ;;  %5750 = vmatmul.mubr.f32.vlgmr.msra.gmra.mrb[64].mxu1 %v5147_v24  ;;  %v5939_v41 = vld [vmem:[#allocation17 + $0x2f8] sm:$0xff]  ;;  %v5945_v24 = vld [vmem:[#allocation17 + $0x328] sm:$0xff] }
 0x729   : > { %v5152_v53 = vmax.f32 %v4935_v17, %v5130_v49  ;;  %11694 = vmatpush1.bf16.msra.mxu0 %v11693_v16  ;;  %v11717_v17 = vpack.c.bf16 %v5934_v51, %v5932_v26  ;;  %v11727_v16 = vpack.c.bf16 %v5947_v60, %v5945_v24  ;;  %v5951_v56 = vld [vmem:[#allocation17 + $0x358] sm:$0xff]  ;;  %v5950_v49 = vld [vmem:[#allocation17 + $0x350] sm:$0xff] }
 0x72a   : > { %11696 = vmatprep.subr.bf16.mxu0 %v11695_v47  ;;  %v5944_v47 = vld [vmem:[#allocation17 + $0x320] sm:$0xff]  ;;  %v11731_v43 = vpack.c.bf16 %v5951_v56, %v5949_v57 }
 0x72b   : > { %v5134_v38 = vpop.f32.mrb[60].mxu1  ;;  %5448 = vmatprep.mubr.f32.mxu0 %v5152_v53  ;;  %5755 = vmatprep.mubr.f32.mxu1 %v5152_v53  ;;  %v11729_v8 = vpack.c.bf16 %v5946_v45, %v5944_v47 }
 0x72c   : > { %v5155_v46 = vmax.f32 %v4939_v48, %v5134_v38  ;;  %v5136_v28 = vpop.f32.mrb[61].mxu1  ;;  %5449 = vmatmul.mubr.f32.gmra.mrb[50].mxu0 %v5151_v58  ;;  %5756 = vmatmul.mubr.f32.gmra.mrb[66].mxu1 %v5151_v58  ;;  %v11719_v48 = vpack.c.bf16 %v5939_v41, %v5937_v1  ;;  %v5948_v58 = vld [vmem:[#allocation17 + $0x340] sm:$0xff]  ;;  %v5954_v38 = vld [vmem:[#allocation17 + $0x370] sm:$0xff] }
 0x72d   : > { %v5156_v42 = vmax.f32 %v4941_v62, %v5136_v28  ;;  %11698 = vmatpush1.bf16.msra.mxu0 %v11697_v18  ;;  %v5936_v62 = vld [vmem:[#allocation17 + $0x2e0] sm:$0xff]  ;;  %v11733_v53 = vpack.c.bf16 %v5950_v49, %v5948_v58  ;;  %v5953_v18 = vld [vmem:[#allocation17 + $0x368] sm:$0xff]  ;;  %v11737_v10 = vpack.c.bf16 %v5954_v38, %v5952_v31 }
 0x72e   : > { %11700 = vmatprep.subr.bf16.mxu0 %v11699_v19  ;;  %v5955_v19 = vld [vmem:[#allocation17 + $0x378] sm:$0xff]  ;;  %v5956_v28 = vld [vmem:[#allocation17 + $0x380] sm:$0xff]  ;;  %v5844_v38 = vld [vmem:[#allocation17 + $0x28] sm:$0xff] }
 0x72f   : > { %v5140_v22 = vpop.f32.mrb[62].mxu1  ;;  %5454 = vmatprep.mubr.f32.mxu0 %v5156_v42  ;;  %5761 = vmatprep.mubr.f32.mxu1 %v5156_v42  ;;  %v11735_v52 = vpack.c.bf16 %v5955_v19, %v5953_v18  ;;  %v5839_v49 = vld [vmem:[#allocation17] sm:$0xff] }
 0x730   : > { %v5159_v44 = vmax.f32 %v4945_v34, %v5140_v22  ;;  %v5142_v11 = vpop.f32.mrb[63].mxu1  ;;  %5455 = vmatmul.mubr.f32.gmra.mrb[52].mxu0 %v5155_v46  ;;  %5762 = vmatmul.mubr.f32.gmra.mrb[68].mxu1 %v5155_v46  ;;  %v5938_v34 = vld [vmem:[#allocation17 + $0x2f0] sm:$0xff]  ;;  %v5959_v46 = vld [vmem:[#allocation17 + $0x398] sm:$0xff]  ;;  %v5960_v22 = vld [vmem:[#allocation17 + $0x3a0] sm:$0xff] }
 0x731   : > { %v5160_v3 = vmax.f32 %v4947_v59, %v5142_v11  ;;  %11702 = vmatpush1.bf16.msra.mxu0 %v11701_v63  ;;  %v5941_v59 = vld [vmem:[#allocation17 + $0x308] sm:$0xff]  ;;  %v11721_v6 = vpack.c.bf16 %v5938_v34, %v5936_v62  ;;  %v11739_v42 = vpack.c.bf16 %v5959_v46, %v5957_v20  ;;  %v5958_v63 = vld [vmem:[#allocation17 + $0x390] sm:$0xff] }
 0x732   : > { %11704 = vmatprep.subr.bf16.mxu0 %v11703_v37  ;;  %v11723_v7 = vpack.c.bf16 %v5943_v2, %v5941_v59  ;;  %v11741_v37 = vpack.c.bf16 %v5958_v63, %v5956_v28  ;;  %v5965_v11 = vld [vmem:[#allocation17 + $0x3c8] sm:$0xff] }
 0x733   : > { %5460 = vmatprep.mubr.f32.mxu0 %v5160_v3  ;;  %5767 = vmatprep.mubr.f32.mxu1 %v5160_v3  ;;  %v5967_v3 = vld [vmem:[#allocation17 + $0x3d8] sm:$0xff] }
 0x734   : > { %5461 = vmatmul.mubr.f32.gmra.mrb[54].mxu0 %v5159_v44  ;;  %5768 = vmatmul.mubr.f32.gmra.mrb[70].mxu1 %v5159_v44  ;;  %v11745_v44 = vpack.c.bf16 %v5962_v61, %v5960_v22 }
 0x735   : > { %11706 = vmatpush1.bf16.msra.mxu0 %v11705_v25  ;;  %v5964_v25 = vld [vmem:[#allocation17 + $0x3c0] sm:$0xff] }
 0x736   : > { %11708 = vmatprep.subr.bf16.mxu0 %v11707_v55  ;;  %v11747_v55 = vpack.c.bf16 %v5967_v3, %v5965_v11  ;;  %v11749_v15 = vpack.c.bf16 %v5966_v54, %v5964_v25 }
 0x739   : > { %11710 = vmatpush1.bf16.msra.mxu0 %v11709_v9  ;;  %v11751_v9 = vpack.c.bf16 %v5971_v50, %v5969_v4  ;;  %v5843_v4 = vld [vmem:[#allocation17 + $0x20] sm:$0xff]  ;;  %v5845_v50 = vld [vmem:[#allocation17 + $0x30] sm:$0xff] }
 0x73a   : > { %11712 = vmatprep.subr.bf16.mxu0 %v11711_v21  ;;  %v5968_v21 = vld [vmem:[#allocation17 + $0x3e0] sm:$0xff] }
 0x73b   : > { %v11753_v13 = vpack.c.bf16 %v5970_v36, %v5968_v21 }
 0x73d   : > { %11714 = vmatpush1.bf16.msra.mxu0 %v11713_v23  ;;  %v11755_v23 = vpack.c.bf16 %v5842_v12, %v5840_v14  ;;  %v5848_v14 = vld [vmem:[#allocation17 + $0x48] sm:$0xff]  ;;  %v5850_v12 = vld [vmem:[#allocation17 + $0x58] sm:$0xff] }
 0x73e   : > { %11716 = vmatprep.subr.bf16.mxu0 %v11715_v35  ;;  %v16747_v35 = vlaneseq }
 0x740   : > { %vm5782_vm8 = vcmp.lt.s32.totalorder %v16747_v35, 256 }
 0x741   : > { %11718 = vmatpush1.bf16.msra.mxu0 %v11717_v17  ;;  %5784 = vst.msk [vmem:[#allocation4] ss:$8 sm:$0x3] %vm5782_vm8, %v16728_v32  ;;  %5787 = vst.msk [vmem:[#allocation4 + $0x41] ss:$8 sm:$0x3] %vm5782_vm8, %v16728_v32 }
 0x742   : > { %11720 = vmatprep.subr.bf16.mxu0 %v11719_v48  ;;  %6410 = vst.msk [vmem:[#allocation5] ss:$8 sm:$0x3] %vm5782_vm8, %v16728_v32  ;;  %6413 = vst.msk [vmem:[#allocation5 + $0x41] ss:$8 sm:$0x3] %vm5782_vm8, %v16728_v32 }
 0x745   : > { %11722 = vmatpush1.bf16.msra.mxu0 %v11721_v6 }
 0x746   : > { %11724 = vmatprep.subr.bf16.mxu0 %v11723_v7 }
 0x749   : > { %11726 = vmatpush1.bf16.msra.mxu0 %v11725_v0 }
 0x74a   : > { %11728 = vmatprep.subr.bf16.mxu0 %v11727_v16 }
 0x74d   : > { %11730 = vmatpush1.bf16.msra.mxu0 %v11729_v8 }
 0x74e   : > { %11732 = vmatprep.subr.bf16.mxu0 %v11731_v43 }
 0x751   : > { %11734 = vmatpush1.bf16.msra.mxu0 %v11733_v53  ;;  %v5841_v53 = vld [vmem:[#allocation17 + $0x10] sm:$0xff] }
 0x752   : > { %11736 = vmatprep.subr.bf16.mxu0 %v11735_v52  ;;  %v11757_v11 = vpack.c.bf16 %v5841_v53, %v5839_v49  ;;  %v5857_v49 = vld [vmem:[#allocation17 + $0x90] sm:$0xff] }
 0x755   : > { %11738 = vmatpush1.bf16.msra.mxu0 %v11737_v10 }
 0x756   : > { %11740 = vmatprep.subr.bf16.mxu0 %v11739_v42 }
 0x759   : > { %11742 = vmatpush1.bf16.msra.mxu0 %v11741_v37  ;;  %v5846_v37 = vld [vmem:[#allocation17 + $0x38] sm:$0xff] }
 0x75a   : > { %11744 = vmatprep.subr.bf16.mxu0 %v11743_v40  ;;  %v11759_v54 = vpack.c.bf16 %v5846_v37, %v5844_v38  ;;  %v5861_v38 = vld [vmem:[#allocation17 + $0xb0] sm:$0xff] }
 0x75b   : > { %v6536_v37 = vld [vmem:[#allocation20 + $0x210] sm:$0xff] }
 0x75d   : > { %11746 = vmatpush1.bf16.msra.mxu0 %v11745_v44 }
 0x75e   : > { %11748 = vmatprep.subr.bf16.mxu0 %v11747_v55 }
 0x761   : > { %11750 = vmatpush1.bf16.msra.mxu0 %v11749_v15 }
 0x762   : > { %11752 = vmatprep.subr.bf16.mxu0 %v11751_v9 }
 0x765   : > { %11754 = vmatpush1.bf16.msra.mxu0 %v11753_v13 }
 0x766   : > { %11756 = vmatprep.subr.bf16.mxu0 %v11755_v23  ;;  %v11761_v23 = vpack.c.bf16 %v5845_v50, %v5843_v4  ;;  %v6545_v4 = vld [vmem:[#allocation20 + $0x258] sm:$0xff] }
 0x7fb   : > { %v5444_v26 = vpop.f32.mrb[48].mxu0  ;;  %v5751_v51 = vpop.f32.mrb[64].mxu1 }
 0x7fc   : > { %v5774_v1 = vmax.f32 %v5444_v26, %v5751_v51  ;;  %v5446_v41 = vpop.f32.mrb[49].mxu0  ;;  %v5753_v17 = vpop.f32.mrb[65].mxu1  ;;  %v11763_v26 = vpack.c.bf16 %v5850_v12, %v5848_v14  ;;  %v5847_v51 = vld [vmem:[#allocation17 + $0x40] sm:$0xff]  ;;  %v6544_v12 = vld [vmem:[#allocation20 + $0x250] sm:$0xff] }
 0x7fd   : > { %v5775_v48 = vmax.f32 %v5446_v41, %v5753_v17  ;;  %v6542_v14 = vld [vmem:[#allocation20 + $0x240] sm:$0xff] }
 0x7fe   : > { %v5797_v62 = vrot.slane %v5774_v1, 7  ;;  %v5849_v1 = vld [vmem:[#allocation17 + $0x50] sm:$0xff] }
 0x7ff   : > { %v5798_v34 = vrot.slane %v5775_v48, 7  ;;  %v5450_v59 = vpop.f32.mrb[50].mxu0  ;;  %v5757_v2 = vpop.f32.mrb[66].mxu1 }
 0x800   : > { %5821 = vst [vmem:[#allocation4] sm:$0xfe] %v5797_v62  ;;  %v5776_v6 = vmax.f32 %v5450_v59, %v5757_v2  ;;  %v5452_v7 = vpop.f32.mrb[51].mxu0  ;;  %v5759_v30 = vpop.f32.mrb[67].mxu1  ;;  %v11765_v59 = vpack.c.bf16 %v5849_v1, %v5847_v51  ;;  %v6549_v51 = vld [vmem:[#allocation20 + $0x278] sm:$0xff]  ;;  %v5868_v1 = vld [vmem:[#allocation17 + $0xe8] sm:$0xff] }
 0x801   : > { %5822 = vst [vmem:[#allocation4 + $0x8] sm:$0xfe] %v5798_v34  ;;  %v5777_v33 = vmax.f32 %v5452_v7, %v5759_v30  ;;  %v5851_v7 = vld [vmem:[#allocation17 + $0x60] sm:$0xff]  ;;  %v5853_v30 = vld [vmem:[#allocation17 + $0x70] sm:$0xff] }
 0x802   : > { %v5799_v24 = vrot.slane %v5776_v6, 7 }
 0x803   : > { %v5801_v60 = vrot.slane %v5777_v33, 7  ;;  %v5456_v0 = vpop.f32.mrb[52].mxu0  ;;  %v5763_v16 = vpop.f32.mrb[68].mxu1 }
 0x804   : > { %v15411_v47 = vsel %vm712_vm1, %v5797_v62, %v5799_v24  ;;  %v5778_v45 = vmax.f32 %v5456_v0, %v5763_v16  ;;  %v5458_v57 = vpop.f32.mrb[53].mxu0  ;;  %v5765_v56 = vpop.f32.mrb[69].mxu1  ;;  %v5852_v62 = vld [vmem:[#allocation17 + $0x68] sm:$0xff]  ;;  %v5858_v16 = vld [vmem:[#allocation17 + $0x98] sm:$0xff] }
 0x805   : > { %v15414_v8 = vsel %vm712_vm1, %v5798_v34, %v5801_v60  ;;  %v5779_v43 = vmax.f32 %v5458_v57, %v5765_v56  ;;  %v5983_v44 = vrot.slane %v15411_v47, 1  ;;  %v5854_v34 = vld [vmem:[#allocation17 + $0x78] sm:$0xff]  ;;  %v5856_v0 = vld [vmem:[#allocation17 + $0x88] sm:$0xff]  ;;  %v11769_v57 = vpack.c.bf16 %v5853_v30, %v5851_v7  ;;  %v5869_v7 = vld [vmem:[#allocation17 + $0xf0] sm:$0xff] }
 0x806   : > { %v5803_v58 = vrot.slane %v5778_v45, 7  ;;  %v5986_v40 = vrot.slane %v15414_v8, 1  ;;  %v11767_v2 = vpack.c.bf16 %v5854_v34, %v5852_v62  ;;  %v5867_v62 = vld [vmem:[#allocation17 + $0xe0] sm:$0xff]  ;;  %v6551_v30 = vld [vmem:[#allocation20 + $0x288] sm:$0xff] }
 0x807   : > { %v5805_v18 = vrot.slane %v5779_v43, 7  ;;  %v5462_v19 = vpop.f32.mrb[54].mxu0  ;;  %v5769_v31 = vpop.f32.mrb[70].mxu1  ;;  %v5903_v52 = vld [vmem:[#allocation4] sm:$0xfe]  ;;  %v11771_v43 = vpack.c.bf16 %v5858_v16, %v5856_v0  ;;  %v11785_v16 = vpack.c.bf16 %v5869_v7, %v5867_v62  ;;  %v5887_v7 = vld [vmem:[#allocation17 + $0x180] sm:$0xff] }
 0x808   : > { %v15417_v10 = vsel %vm712_vm1, %v5799_v24, %v5803_v58  ;;  %v5780_v20 = vmax.f32 %v5462_v19, %v5769_v31  ;;  %v5464_v46 = vpop.f32.mrb[55].mxu0  ;;  %v5771_v28 = vpop.f32.mrb[71].mxu1  ;;  %v5904_v42 = vld [vmem:[#allocation4 + $0x8] sm:$0xfe]  ;;  %v5982_v63 = vrot.slane %v5903_v52, 1  ;;  %v5860_v19 = vld [vmem:[#allocation17 + $0xa8] sm:$0xff] }
 0x809   : > { %v15420_v29 = vsel %vm712_vm1, %v5801_v60, %v5805_v18  ;;  %v5781_v39 = vmax.f32 %v5464_v46, %v5771_v28  ;;  %v5985_v22 = vrot.slane %v5904_v42, 1  ;;  %v5988_v36 = vrot.slane %v15417_v10, 1  ;;  %v5862_v31 = vld [vmem:[#allocation17 + $0xb8] sm:$0xff]  ;;  %v5859_v52 = vld [vmem:[#allocation17 + $0xa0] sm:$0xff] }
 0x80a   : > { %v5807_v61 = vrot.slane %v5780_v20, 7  ;;  %v5990_v3 = vrot.slane %v15420_v29, 1  ;;  %v5984_v9 = vsel %vm1013_vm4, %v5982_v63, %v5983_v44  ;;  %v6535_v20 = vld [vmem:[#allocation20 + $0x208] sm:$0xff]  ;;  %v6537_v46 = vld [vmem:[#allocation20 + $0x218] sm:$0xff]  ;;  %v6534_v28 = vld [vmem:[#allocation20 + $0x200] sm:$0xff] }
 0x80b   : > { %v5809_v25 = vrot.slane %v5781_v39, 7  ;;  %v5987_v55 = vsel %vm1013_vm4, %v5985_v22, %v5986_v40  ;;  %v5989_v41 = vsel %vm1013_vm4, %v5983_v44, %v5988_v36  ;;  %v11883_v63 = vpack.c.bf16 %v6537_v46, %v6535_v20  ;;  %v6539_v39 = vld [vmem:[#allocation20 + $0x228] sm:$0xff]  ;;  %v6541_v22 = vld [vmem:[#allocation20 + $0x238] sm:$0xff] }
 0x80c   : > { %v15427_v15 = vsel %vm712_vm1, %v5803_v58, %v5807_v61  ;;  %5829 = vst [vmem:[#allocation4 + $0x40] sm:$0x1] %v5807_v61  ;;  %6072 = vmatprep.mubr.f32.mxu0 %v5987_v55  ;;  %v5991_v21 = vsel %vm1013_vm4, %v5986_v40, %v5990_v3  ;;  %v5855_v58 = vld [vmem:[#allocation17 + $0x80] sm:$0xff]  ;;  %v11775_v40 = vpack.c.bf16 %v5862_v31, %v5860_v19  ;;  %v5864_v55 = vld [vmem:[#allocation17 + $0xc8] sm:$0xff]  ;;  %v5878_v31 = vld [vmem:[#allocation17 + $0x138] sm:$0xff] }
 0x80d   : > { %v15433_v13 = vsel %vm712_vm1, %v5805_v18, %v5809_v25  ;;  %5830 = vst [vmem:[#allocation4 + $0x48] sm:$0x1] %v5809_v25  ;;  %6073 = vmatmul.mubr.f32.vlgmr.msra.gmra.mrb[56].mxu0 %v5984_v9  ;;  %v5992_v48 = vrot.slane %v15427_v15, 1  ;;  %v5832_v18 = vld [vmem:[#allocation4 + $0x8] sm:$0xff]  ;;  %v11773_v42 = vpack.c.bf16 %v5857_v49, %v5855_v58  ;;  %v11885_v61 = vpack.c.bf16 %v6536_v37, %v6534_v28  ;;  %v6543_v25 = vld [vmem:[#allocation20 + $0x248] sm:$0xff] }
 0x80e   : > { %11758 = vmatpush1.bf16.msra.mxu0 %v11757_v11  ;;  %6078 = vmatprep.mubr.f32.mxu0 %v5991_v21  ;;  %v5994_v35 = vrot.slane %v15433_v13, 1  ;;  %v11887_v44 = vpack.c.bf16 %v6541_v22, %v6539_v39  ;;  %v6538_v11 = vld [vmem:[#allocation20 + $0x220] sm:$0xff]  ;;  %v11777_v9 = vpack.c.bf16 %v5861_v38, %v5859_v52  ;;  %v5873_v49 = vld [vmem:[#allocation17 + $0x110] sm:$0xff]  ;;  %v6561_v22 = vld [vmem:[#allocation20 + $0x2d8] sm:$0xff] }
 0x80f   : > { %11760 = vmatprep.subr.bf16.mxu0 %v11759_v54  ;;  %v5993_v33 = vsel %vm1013_vm4, %v5988_v36, %v5992_v48  ;;  %v5866_v54 = vld [vmem:[#allocation17 + $0xd8] sm:$0xff]  ;;  %11884 = vmatprep.subr.bf16.mxu1 %v11883_v63  ;;  %v5863_v21 = vld [vmem:[#allocation17 + $0xc0] sm:$0xff]  ;;  %v11891_v36 = vpack.c.bf16 %v6545_v4, %v6543_v25  ;;  %v5876_v19 = vld [vmem:[#allocation17 + $0x128] sm:$0xff] }
 0x810   : > { %v5995_v17 = vsel %vm1013_vm4, %v5990_v3, %v5994_v35  ;;  %v6540_v3 = vld [vmem:[#allocation20 + $0x230] sm:$0xff]  ;;  %11886 = vmatpush1.bf16.msra.mxu1 %v11885_v61  ;;  %v5875_v20 = vld [vmem:[#allocation17 + $0x120] sm:$0xff]  ;;  %v11791_v63 = vpack.c.bf16 %v5878_v31, %v5876_v19  ;;  %v6559_v39 = vld [vmem:[#allocation20 + $0x2c8] sm:$0xff] }
 0x811   : > { %6079 = vmatmul.mubr.f32.gmra.mrb[58].mxu0 %v5989_v41  ;;  %v11889_v50 = vpack.c.bf16 %v6540_v3, %v6538_v11  ;;  %11888 = vmatprep.subr.bf16.mxu1 %v11887_v44  ;;  %v5870_v41 = vld [vmem:[#allocation17 + $0xf8] sm:$0xff]  ;;  %v6554_v28 = vld [vmem:[#allocation20 + $0x2a0] sm:$0xff]  ;;  %v5877_v37 = vld [vmem:[#allocation17 + $0x130] sm:$0xff]  ;;  %v11907_v25 = vpack.c.bf16 %v6561_v22, %v6559_v39 }
 0x812   : > { %11762 = vmatpush1.bf16.msra.mxu0 %v11761_v23  ;;  %6084 = vmatprep.mubr.f32.mxu0 %v5995_v17  ;;  %v11779_v23 = vpack.c.bf16 %v5866_v54, %v5864_v55  ;;  %v11893_v17 = vpack.c.bf16 %v6544_v12, %v6542_v14  ;;  %v5882_v61 = vld [vmem:[#allocation17 + $0x158] sm:$0xff]  ;;  %v11793_v11 = vpack.c.bf16 %v5877_v37, %v5875_v20  ;;  %v5879_v3 = vld [vmem:[#allocation17 + $0x140] sm:$0xff]  ;;  %v5897_v37 = vld [vmem:[#allocation17 + $0x1d0] sm:$0xff] }
 0x813   : > { %11764 = vmatprep.subr.bf16.mxu0 %v11763_v26  ;;  %v5905_v6 = vld [vmem:[#allocation4 + $0x40] sm:$0x1]  ;;  %v6547_v26 = vld [vmem:[#allocation20 + $0x268] sm:$0xff]  ;;  %v6558_v55 = vld [vmem:[#allocation20 + $0x2c0] sm:$0xff] }
 0x814   : > { %v5906_v24 = vld [vmem:[#allocation4 + $0x48] sm:$0x1]  ;;  %v5996_v60 = vrot.slane %v5905_v6, 1  ;;  %11890 = vmatpush1.bf16.msra.mxu1 %v11889_v50  ;;  %v11895_v34 = vpack.c.bf16 %v6549_v51, %v6547_v26  ;;  %v11783_v6 = vpack.c.bf16 %v5870_v41, %v5868_v1  ;;  %v6560_v54 = vld [vmem:[#allocation20 + $0x2d0] sm:$0xff]  ;;  %v6562_v51 = vld [vmem:[#allocation20 + $0x2e0] sm:$0xff] }
 0x815   : > { %6085 = vmatmul.mubr.f32.gmra.mrb[60].mxu0 %v5993_v33  ;;  %v5998_v45 = vrot.slane %v5906_v24, 1  ;;  %11892 = vmatprep.subr.bf16.mxu1 %v11891_v36  ;;  %v6553_v33 = vld [vmem:[#allocation20 + $0x298] sm:$0xff]  ;;  %v5872_v24 = vld [vmem:[#allocation17 + $0x108] sm:$0xff]  ;;  %v5881_v50 = vld [vmem:[#allocation17 + $0x150] sm:$0xff]  ;;  %v11909_v12 = vpack.c.bf16 %v6560_v54, %v6558_v55 }
 0x816   : > { %11766 = vmatpush1.bf16.msra.mxu0 %v11765_v59  ;;  %v5997_v53 = vsel %vm1013_vm4, %v5992_v48, %v5996_v60  ;;  %v6546_v59 = vld [vmem:[#allocation20 + $0x260] sm:$0xff]  ;;  %v5874_v60 = vld [vmem:[#allocation17 + $0x118] sm:$0xff] }
 0x817   : > { %v5999_v56 = vsel %vm1013_vm4, %v5994_v35, %v5998_v45  ;;  %11768 = vmatprep.subr.bf16.mxu0 %v11767_v2  ;;  %v5865_v35 = vld [vmem:[#allocation17 + $0xd0] sm:$0xff]  ;;  %v5871_v45 = vld [vmem:[#allocation17 + $0x100] sm:$0xff]  ;;  %v11787_v58 = vpack.c.bf16 %v5874_v60, %v5872_v24  ;;  %v5884_v36 = vld [vmem:[#allocation17 + $0x168] sm:$0xff] }
 0x818   : > { %6090 = vmatprep.mubr.f32.mxu0 %v5999_v56  ;;  %v11781_v48 = vpack.c.bf16 %v5865_v35, %v5863_v21  ;;  %v6548_v2 = vld [vmem:[#allocation20 + $0x270] sm:$0xff]  ;;  %11894 = vmatpush1.bf16.msra.mxu1 %v11893_v17  ;;  %v6550_v56 = vld [vmem:[#allocation20 + $0x280] sm:$0xff]  ;;  %v11789_v38 = vpack.c.bf16 %v5873_v49, %v5871_v45  ;;  %v6565_v21 = vld [vmem:[#allocation20 + $0x2f8] sm:$0xff] }
 0x819   : > { %6091 = vmatmul.mubr.f32.gmra.mrb[62].mxu0 %v5997_v53  ;;  %v11897_v0 = vpack.c.bf16 %v6548_v2, %v6546_v59  ;;  %11896 = vmatprep.subr.bf16.mxu1 %v11895_v34  ;;  %v6555_v53 = vld [vmem:[#allocation20 + $0x2a8] sm:$0xff]  ;;  %v5886_v14 = vld [vmem:[#allocation17 + $0x178] sm:$0xff]  ;;  %v5883_v35 = vld [vmem:[#allocation17 + $0x160] sm:$0xff] }
 0x81a   : > { %11770 = vmatpush1.bf16.msra.mxu0 %v11769_v57  ;;  %6161 = vmatprep.mubr.f32.mxu0 %v5832_v18  ;;  %v11899_v57 = vpack.c.bf16 %v6553_v33, %v6551_v30  ;;  %v6557_v18 = vld [vmem:[#allocation20 + $0x2b8] sm:$0xff]  ;;  %v6564_v1 = vld [vmem:[#allocation20 + $0x2f0] sm:$0xff]  ;;  %v11799_v41 = vpack.c.bf16 %v5886_v14, %v5884_v36  ;;  %v5888_v34 = vld [vmem:[#allocation17 + $0x188] sm:$0xff] }
 0x81b   : > { %11772 = vmatprep.subr.bf16.mxu0 %v11771_v43  ;;  %v6552_v43 = vld [vmem:[#allocation20 + $0x290] sm:$0xff]  ;;  %v11903_v46 = vpack.c.bf16 %v6557_v18, %v6555_v53  ;;  %v6569_v62 = vld [vmem:[#allocation20 + $0x318] sm:$0xff]  ;;  %v11913_v2 = vpack.c.bf16 %v6564_v1, %v6562_v51  ;;  %v6566_v33 = vld [vmem:[#allocation20 + $0x300] sm:$0xff] }
 0x81c   : > { %11898 = vmatpush1.bf16.msra.mxu1 %v11897_v0  ;;  %v11901_v52 = vpack.c.bf16 %v6552_v43, %v6550_v56  ;;  %v5885_v17 = vld [vmem:[#allocation17 + $0x170] sm:$0xff]  ;;  %v5890_v59 = vld [vmem:[#allocation17 + $0x198] sm:$0xff]  ;;  %v6570_v53 = vld [vmem:[#allocation20 + $0x320] sm:$0xff] }
 0x81d   : > { %11900 = vmatprep.subr.bf16.mxu1 %v11899_v57  ;;  %v6568_v24 = vld [vmem:[#allocation20 + $0x310] sm:$0xff]  ;;  %v11803_v60 = vpack.c.bf16 %v5890_v59, %v5888_v34  ;;  %v6573_v45 = vld [vmem:[#allocation20 + $0x338] sm:$0xff]  ;;  %v5892_v57 = vld [vmem:[#allocation17 + $0x1a8] sm:$0xff] }
 0x81e   : > { %11774 = vmatpush1.bf16.msra.mxu0 %v11773_v42  ;;  %v6556_v42 = vld [vmem:[#allocation20 + $0x2b0] sm:$0xff]  ;;  %v11917_v43 = vpack.c.bf16 %v6568_v24, %v6566_v33  ;;  %v5891_v31 = vld [vmem:[#allocation17 + $0x1a0] sm:$0xff]  ;;  %v5900_v39 = vld [vmem:[#allocation17 + $0x1e8] sm:$0xff] }
 0x81f   : > { %11776 = vmatprep.subr.bf16.mxu0 %v11775_v40  ;;  %v5880_v40 = vld [vmem:[#allocation17 + $0x148] sm:$0xff]  ;;  %v11905_v44 = vpack.c.bf16 %v6556_v42, %v6554_v28  ;;  %v5889_v0 = vld [vmem:[#allocation17 + $0x190] sm:$0xff]  ;;  %v5894_v56 = vld [vmem:[#allocation17 + $0x1b8] sm:$0xff] }
 0x820   : > { %11902 = vmatpush1.bf16.msra.mxu1 %v11901_v52  ;;  %v11795_v4 = vpack.c.bf16 %v5882_v61, %v5880_v40  ;;  %v6572_v18 = vld [vmem:[#allocation20 + $0x330] sm:$0xff]  ;;  %v11807_v19 = vpack.c.bf16 %v5894_v56, %v5892_v57  ;;  %v6208_v33 = vld [vmem:[#allocation17 + $0x488] sm:$0xff]  ;;  %v6207_v57 = vld [vmem:[#allocation17 + $0x480] sm:$0xff] }
 0x821   : > { %11904 = vmatprep.subr.bf16.mxu1 %v11903_v46  ;;  %v5893_v52 = vld [vmem:[#allocation17 + $0x1b0] sm:$0xff]  ;;  %v5898_v20 = vld [vmem:[#allocation17 + $0x1d8] sm:$0xff]  ;;  %v11921_v46 = vpack.c.bf16 %v6572_v18, %v6570_v53 }
 0x822   : > { %11778 = vmatpush1.bf16.msra.mxu0 %v11777_v9  ;;  %v6563_v9 = vld [vmem:[#allocation20 + $0x2e8] sm:$0xff]  ;;  %v11809_v28 = vpack.c.bf16 %v5893_v52, %v5891_v31  ;;  %v5902_v22 = vld [vmem:[#allocation17 + $0x1f8] sm:$0xff] }
 0x823   : > { %11780 = vmatprep.subr.bf16.mxu0 %v11779_v23  ;;  %v11797_v23 = vpack.c.bf16 %v5881_v50, %v5879_v3  ;;  %v11911_v26 = vpack.c.bf16 %v6565_v21, %v6563_v9  ;;  %v11815_v61 = vpack.c.bf16 %v5902_v22, %v5900_v39  ;;  %v6192_v3 = vld [vmem:[#allocation17 + $0x408] sm:$0xff]  ;;  %v6193_v50 = vld [vmem:[#allocation17 + $0x410] sm:$0xff]  ;;  %v6198_v21 = vld [vmem:[#allocation17 + $0x438] sm:$0xff] }
 0x824   : > { %11906 = vmatpush1.bf16.msra.mxu1 %v11905_v44  ;;  %v5899_v44 = vld [vmem:[#allocation17 + $0x1e0] sm:$0xff]  ;;  %v6196_v9 = vld [vmem:[#allocation17 + $0x428] sm:$0xff]  ;;  %v6202_v51 = vld [vmem:[#allocation17 + $0x458] sm:$0xff] }
 0x825   : > { %11908 = vmatprep.subr.bf16.mxu1 %v11907_v25  ;;  %v6194_v25 = vld [vmem:[#allocation17 + $0x418] sm:$0xff]  ;;  %v11823_v14 = vpack.c.bf16 %v6198_v21, %v6196_v9  ;;  %v6209_v56 = vld [vmem:[#allocation17 + $0x490] sm:$0xff]  ;;  %v6216_v52 = vld [vmem:[#allocation17 + $0x4c8] sm:$0xff] }
 0x826   : > { %11782 = vmatpush1.bf16.msra.mxu0 %v11781_v48  ;;  %v6567_v48 = vld [vmem:[#allocation20 + $0x308] sm:$0xff]  ;;  %v11819_v54 = vpack.c.bf16 %v6194_v25, %v6192_v3  ;;  %v6206_v34 = vld [vmem:[#allocation17 + $0x478] sm:$0xff]  ;;  %v11837_v53 = vpack.c.bf16 %v6209_v56, %v6207_v57  ;;  %v6243_v56 = vld [vmem:[#allocation17 + $0x5a0] sm:$0xff] }
 0x827   : > { %11784 = vmatprep.subr.bf16.mxu0 %v11783_v6  ;;  %v11801_v6 = vpack.c.bf16 %v5885_v17, %v5883_v35  ;;  %v11915_v30 = vpack.c.bf16 %v6569_v62, %v6567_v48  ;;  %v5831_v35 = vld [vmem:[#allocation4] sm:$0xff]  ;;  %v6199_v17 = vld [vmem:[#allocation17 + $0x440] sm:$0xff]  ;;  %v6201_v48 = vld [vmem:[#allocation17 + $0x450] sm:$0xff] }
 0x828   : > { %11910 = vmatpush1.bf16.msra.mxu1 %v11909_v12  ;;  %v6195_v12 = vld [vmem:[#allocation17 + $0x420] sm:$0xff]  ;;  %v6204_v62 = vld [vmem:[#allocation17 + $0x468] sm:$0xff]  ;;  %v11829_v59 = vpack.c.bf16 %v6201_v48, %v6199_v17  ;;  %v6210_v24 = vld [vmem:[#allocation17 + $0x498] sm:$0xff] }
 0x829   : > { %11912 = vmatprep.subr.bf16.mxu1 %v11911_v26  ;;  %v6200_v26 = vld [vmem:[#allocation17 + $0x448] sm:$0xff]  ;;  %v6213_v31 = vld [vmem:[#allocation17 + $0x4b0] sm:$0xff]  ;;  %v6238_v17 = vld [vmem:[#allocation17 + $0x578] sm:$0xff] }
 0x82a   : > { %11786 = vmatpush1.bf16.msra.mxu0 %v11785_v16  ;;  %v6571_v16 = vld [vmem:[#allocation20 + $0x328] sm:$0xff] }
 0x82b   : > { %11788 = vmatprep.subr.bf16.mxu0 %v11787_v58  ;;  %v11805_v58 = vpack.c.bf16 %v5889_v0, %v5887_v7  ;;  %v11919_v49 = vpack.c.bf16 %v6573_v45, %v6571_v16  ;;  %v6203_v7 = vld [vmem:[#allocation17 + $0x460] sm:$0xff]  ;;  %v6263_v16 = vrot.slane %v15414_v8, 2  ;;  %v11835_v45 = vpack.c.bf16 %v6210_v24, %v6208_v33  ;;  %v6241_v24 = vld [vmem:[#allocation17 + $0x590] sm:$0xff] }
 0x82c   : > { %11914 = vmatpush1.bf16.msra.mxu1 %v11913_v2  ;;  %v6187_v2 = vld [vmem:[#allocation4 + $0x8] sm:$0xfc] }
 0x82d   : > { %11916 = vmatprep.subr.bf16.mxu1 %v11915_v30  ;;  %v6205_v30 = vld [vmem:[#allocation17 + $0x470] sm:$0xff]  ;;  %v6239_v33 = vld [vmem:[#allocation17 + $0x580] sm:$0xff] }
 0x82e   : > { %11790 = vmatpush1.bf16.msra.mxu0 %v11789_v38  ;;  %v5896_v38 = vld [vmem:[#allocation17 + $0x1c8] sm:$0xff]  ;;  %v11833_v0 = vpack.c.bf16 %v6205_v30, %v6203_v7 }
 0x82f   : > { %11792 = vmatprep.subr.bf16.mxu0 %v11791_v63  ;;  %v11811_v42 = vpack.c.bf16 %v5898_v20, %v5896_v38  ;;  %v5895_v63 = vld [vmem:[#allocation17 + $0x1c0] sm:$0xff]  ;;  %v6218_v38 = vld [vmem:[#allocation17 + $0x4d8] sm:$0xff] }
 0x830   : > { %11918 = vmatpush1.bf16.msra.mxu1 %v11917_v43  ;;  %v11813_v40 = vpack.c.bf16 %v5897_v37, %v5895_v63  ;;  %v6212_v43 = vld [vmem:[#allocation17 + $0x4a8] sm:$0xff]  ;;  %v6222_v37 = vld [vmem:[#allocation17 + $0x4f8] sm:$0xff] }
 0x831   : > { %11920 = vmatprep.subr.bf16.mxu1 %v11919_v49  ;;  %v6220_v63 = vld [vmem:[#allocation17 + $0x4e8] sm:$0xff] }
 0x832   : > { %11794 = vmatpush1.bf16.msra.mxu0 %v11793_v11  ;;  %v5901_v11 = vld [vmem:[#allocation17 + $0x1f0] sm:$0xff]  ;;  %v11847_v22 = vpack.c.bf16 %v6222_v37, %v6220_v63  ;;  %v6186_v63 = vld [vmem:[#allocation4] sm:$0xfc] }
 0x833   : > { %11796 = vmatprep.subr.bf16.mxu0 %v11795_v4  ;;  %v11817_v55 = vpack.c.bf16 %v5901_v11, %v5899_v44  ;;  %v6191_v4 = vld [vmem:[#allocation17 + $0x400] sm:$0xff]  ;;  %v6224_v44 = vld [vmem:[#allocation17 + $0x508] sm:$0xff]  ;;  %v6226_v11 = vld [vmem:[#allocation17 + $0x518] sm:$0xff] }
 0x834   : > { %11922 = vmatpush1.bf16.msra.mxu1 %v11921_v46  ;;  %v11821_v36 = vpack.c.bf16 %v6193_v50, %v6191_v4  ;;  %v11843_v46 = vpack.c.bf16 %v6218_v38, %v6216_v52  ;;  %v11851_v25 = vpack.c.bf16 %v6226_v11, %v6224_v44  ;;  %v6228_v4 = vld [vmem:[#allocation17 + $0x528] sm:$0xff]  ;;  %v6230_v50 = vld [vmem:[#allocation17 + $0x538] sm:$0xff]  ;;  %v6265_v44 = vrot.slane %v15417_v10, 2 }
 0x835   : > { %v11855_v21 = vpack.c.bf16 %v6230_v50, %v6228_v4  ;;  %v6252_v52 = vld [vmem:[#allocation17 + $0x5e8] sm:$0xff]  ;;  %v6254_v38 = vld [vmem:[#allocation17 + $0x5f8] sm:$0xff] }
 0x836   : > { %11798 = vmatpush1.bf16.msra.mxu0 %v11797_v23  ;;  %v6197_v23 = vld [vmem:[#allocation17 + $0x430] sm:$0xff]  ;;  %v6188_v4 = vld [vmem:[#allocation4 + $0x40] sm:$0x3] }
 0x837   : > { %11800 = vmatprep.subr.bf16.mxu0 %v11799_v41  ;;  %v11825_v1 = vpack.c.bf16 %v6197_v23, %v6195_v12  ;;  %v11827_v41 = vpack.c.bf16 %v6202_v51, %v6200_v26  ;;  %v6232_v12 = vld [vmem:[#allocation17 + $0x548] sm:$0xff]  ;;  %v6234_v23 = vld [vmem:[#allocation17 + $0x558] sm:$0xff]  ;;  %v6231_v51 = vld [vmem:[#allocation17 + $0x540] sm:$0xff]  ;;  %v6273_v50 = vrot.slane %v6188_v4, 2 }
 0x838   : > { %v11859_v26 = vpack.c.bf16 %v6234_v23, %v6232_v12  ;;  %v6579_v12 = vld [vmem:[#allocation20 + $0x368] sm:$0xff]  ;;  %v6581_v23 = vld [vmem:[#allocation20 + $0x378] sm:$0xff] }
 0x83a   : > { %11802 = vmatpush1.bf16.msra.mxu0 %v11801_v6  ;;  %v11831_v6 = vpack.c.bf16 %v6206_v34, %v6204_v62  ;;  %v6235_v34 = vld [vmem:[#allocation17 + $0x560] sm:$0xff] }
 0x83b   : > { %11804 = vmatprep.subr.bf16.mxu0 %v11803_v60  ;;  %v6262_v60 = vrot.slane %v6187_v2, 2  ;;  %v6240_v2 = vld [vmem:[#allocation17 + $0x588] sm:$0xff] }
 0x83d   : > { %v6264_v49 = vsel %vm1646_vm5, %v6262_v60, %v6263_v16  ;;  %v6244_v60 = vld [vmem:[#allocation17 + $0x5a8] sm:$0xff] }
 0x83e   : > { %11806 = vmatpush1.bf16.msra.mxu0 %v11805_v58  ;;  %v6214_v58 = vld [vmem:[#allocation17 + $0x4b8] sm:$0xff] }
 0x83f   : > { %11808 = vmatprep.subr.bf16.mxu0 %v11807_v19  ;;  %v11839_v18 = vpack.c.bf16 %v6214_v58, %v6212_v43  ;;  %v6211_v19 = vld [vmem:[#allocation17 + $0x4a0] sm:$0xff]  ;;  %v6245_v43 = vld [vmem:[#allocation17 + $0x5b0] sm:$0xff]  ;;  %v6248_v58 = vld [vmem:[#allocation17 + $0x5c8] sm:$0xff] }
 0x840   : > { %v11841_v20 = vpack.c.bf16 %v6213_v31, %v6211_v19  ;;  %v6247_v19 = vld [vmem:[#allocation17 + $0x5c0] sm:$0xff]  ;;  %v6249_v31 = vld [vmem:[#allocation17 + $0x5d0] sm:$0xff] }
 0x842   : > { %11810 = vmatpush1.bf16.msra.mxu0 %v11809_v28  ;;  %v6215_v28 = vld [vmem:[#allocation17 + $0x4c0] sm:$0xff] }
 0x843   : > { %11812 = vmatprep.subr.bf16.mxu0 %v11811_v42  ;;  %v6217_v42 = vld [vmem:[#allocation17 + $0x4d0] sm:$0xff] }
 0x844   : > { %v11845_v39 = vpack.c.bf16 %v6217_v42, %v6215_v28  ;;  %v6251_v28 = vld [vmem:[#allocation17 + $0x5e0] sm:$0xff]  ;;  %v6253_v42 = vld [vmem:[#allocation17 + $0x5f0] sm:$0xff] }
 0x845   : > { %v11881_v37 = vpack.c.bf16 %v6253_v42, %v6251_v28 }
 0x846   : > { %11814 = vmatpush1.bf16.msra.mxu0 %v11813_v40  ;;  %v6219_v40 = vld [vmem:[#allocation17 + $0x4e0] sm:$0xff] }
 0x847   : > { %11816 = vmatprep.subr.bf16.mxu0 %v11815_v61  ;;  %v6221_v61 = vld [vmem:[#allocation17 + $0x4f0] sm:$0xff] }
 0x848   : > { %v11849_v3 = vpack.c.bf16 %v6221_v61, %v6219_v40  ;;  %v6260_v40 = vrot.slane %v15411_v47, 2 }
 0x84a   : > { %11818 = vmatpush1.bf16.msra.mxu0 %v11817_v55  ;;  %v6223_v55 = vld [vmem:[#allocation17 + $0x500] sm:$0xff] }
 0x84b   : > { %11820 = vmatprep.subr.bf16.mxu0 %v11819_v54  ;;  %v6225_v54 = vld [vmem:[#allocation17 + $0x510] sm:$0xff] }
 0x84c   : > { %v11853_v9 = vpack.c.bf16 %v6225_v54, %v6223_v55  ;;  %v6266_v55 = vsel %vm1646_vm5, %v6260_v40, %v6265_v44 }
 0x84d   : > { %6162 = vmatmul.mubr.f32.vlgmr.msra.gmra.mrb[56].mxu0 %v5831_v35 }
 0x84e   : > { %6167 = vmatprep.mubr.f32.mxu0 %v15414_v8  ;;  %11822 = vmatpush1.bf16.msra.mxu0 %v11821_v36  ;;  %v6227_v36 = vld [vmem:[#allocation17 + $0x520] sm:$0xff] }
 0x84f   : > { %11824 = vmatprep.subr.bf16.mxu0 %v11823_v14  ;;  %v6229_v14 = vld [vmem:[#allocation17 + $0x530] sm:$0xff] }
 0x850   : > { %v11857_v35 = vpack.c.bf16 %v6229_v14, %v6227_v36  ;;  %v6576_v36 = vld [vmem:[#allocation20 + $0x350] sm:$0xff] }
 0x851   : > { %6168 = vmatmul.mubr.f32.gmra.mrb[58].mxu0 %v15411_v47 }
 0x852   : > { %6173 = vmatprep.mubr.f32.mxu0 %v15420_v29  ;;  %11826 = vmatpush1.bf16.msra.mxu0 %v11825_v1  ;;  %v6233_v1 = vld [vmem:[#allocation17 + $0x550] sm:$0xff] }
 0x853   : > { %11828 = vmatprep.subr.bf16.mxu0 %v11827_v41  ;;  %v6236_v41 = vld [vmem:[#allocation17 + $0x568] sm:$0xff]  ;;  %v11861_v48 = vpack.c.bf16 %v6233_v1, %v6231_v51  ;;  %v6580_v51 = vld [vmem:[#allocation20 + $0x370] sm:$0xff] }
 0x854   : > { %v11863_v62 = vpack.c.bf16 %v6238_v17, %v6236_v41  ;;  %v6583_v41 = vld [vmem:[#allocation20 + $0x388] sm:$0xff]  ;;  %v6585_v17 = vld [vmem:[#allocation20 + $0x398] sm:$0xff] }
 0x855   : > { %6174 = vmatmul.mubr.f32.gmra.mrb[60].mxu0 %v15417_v10 }
 0x856   : > { %6179 = vmatprep.mubr.f32.mxu0 %v15433_v13  ;;  %11830 = vmatpush1.bf16.msra.mxu0 %v11829_v59  ;;  %v6237_v59 = vld [vmem:[#allocation17 + $0x570] sm:$0xff] }
 0x857   : > { %11832 = vmatprep.subr.bf16.mxu0 %v11831_v6  ;;  %v6242_v6 = vld [vmem:[#allocation17 + $0x598] sm:$0xff]  ;;  %v11865_v7 = vpack.c.bf16 %v6237_v59, %v6235_v34 }
 0x858   : > { %v11867_v30 = vpack.c.bf16 %v6242_v6, %v6240_v2  ;;  %v6584_v34 = vld [vmem:[#allocation20 + $0x390] sm:$0xff]  ;;  %v6587_v2 = vld [vmem:[#allocation20 + $0x3a8] sm:$0xff]  ;;  %v6589_v6 = vld [vmem:[#allocation20 + $0x3b8] sm:$0xff] }
 0x859   : > { %6180 = vmatmul.mubr.f32.gmra.mrb[62].mxu0 %v15427_v15 }
 0x85a   : > { %11834 = vmatpush1.bf16.msra.mxu0 %v11833_v0  ;;  %6349 = vmatprep.mubr.f32.mxu0 %v6264_v49  ;;  %v6246_v0 = vld [vmem:[#allocation17 + $0x5b8] sm:$0xff] }
 0x85b   : > { %11836 = vmatprep.subr.bf16.mxu0 %v11835_v45  ;;  %v11869_v45 = vpack.c.bf16 %v6241_v24, %v6239_v33  ;;  %v11871_v57 = vpack.c.bf16 %v6246_v0, %v6244_v60  ;;  %v6250_v49 = vld [vmem:[#allocation17 + $0x5d8] sm:$0xff]  ;;  %v6591_v24 = vld [vmem:[#allocation20 + $0x3c8] sm:$0xff] }
 0x85c   : > { %v6588_v33 = vld [vmem:[#allocation20 + $0x3b0] sm:$0xff]  ;;  %v6593_v0 = vld [vmem:[#allocation20 + $0x3d8] sm:$0xff] }
 0x85e   : > { %11838 = vmatpush1.bf16.msra.mxu0 %v11837_v53  ;;  %v11873_v53 = vpack.c.bf16 %v6245_v43, %v6243_v56  ;;  %v11939_v56 = vpack.c.bf16 %v6593_v0, %v6591_v24  ;;  %v6595_v43 = vld [vmem:[#allocation20 + $0x3e8] sm:$0xff] }
 0x85f   : > { %11840 = vmatprep.subr.bf16.mxu0 %v11839_v18  ;;  %v11875_v18 = vpack.c.bf16 %v6250_v49, %v6248_v58  ;;  %v6597_v58 = vld [vmem:[#allocation20 + $0x3f8] sm:$0xff] }
 0x862   : > { %11842 = vmatpush1.bf16.msra.mxu0 %v11841_v20  ;;  %v11877_v20 = vpack.c.bf16 %v6249_v31, %v6247_v19  ;;  %v6596_v19 = vld [vmem:[#allocation20 + $0x3f0] sm:$0xff]  ;;  %v6466_v31 = vld [vmem:[#allocation20 + $0x8] sm:$0xff] }
 0x863   : > { %11844 = vmatprep.subr.bf16.mxu0 %v11843_v46  ;;  %v11879_v46 = vpack.c.bf16 %v6254_v38, %v6252_v52  ;;  %v6468_v52 = vld [vmem:[#allocation20 + $0x18] sm:$0xff] }
 0x866   : > { %11846 = vmatpush1.bf16.msra.mxu0 %v11845_v39  ;;  %v6259_v39 = vrot.slane %v6186_v63, 2 }
 0x867   : > { %11848 = vmatprep.subr.bf16.mxu0 %v11847_v22  ;;  %v6267_v22 = vrot.slane %v15420_v29, 2  ;;  %v6269_v29 = vrot.slane %v15427_v15, 2  ;;  %v6577_v15 = vld [vmem:[#allocation20 + $0x358] sm:$0xff] }
 0x868   : > { %v6261_v61 = vsel %vm1646_vm5, %v6259_v39, %v6260_v40 }
 0x869   : > { %v6268_v11 = vsel %vm1646_vm5, %v6263_v16, %v6267_v22  ;;  %v6270_v10 = vsel %vm1646_vm5, %v6265_v44, %v6269_v29  ;;  %v6575_v16 = vld [vmem:[#allocation20 + $0x348] sm:$0xff] }
 0x86a   : > { %11850 = vmatpush1.bf16.msra.mxu0 %v11849_v3  ;;  %v6271_v3 = vrot.slane %v15433_v13, 2  ;;  %v6274_v13 = vsel %vm1646_vm5, %v6269_v29, %v6273_v50 }
 0x86b   : > { %11852 = vmatprep.subr.bf16.mxu0 %v11851_v25  ;;  %v6189_v25 = vld [vmem:[#allocation4 + $0x48] sm:$0x3] }
 0x86c   : > { %v6272_v47 = vsel %vm1646_vm5, %v6267_v22, %v6271_v3  ;;  %v6275_v54 = vrot.slane %v6189_v25, 2 }
 0x86e   : > { %11854 = vmatpush1.bf16.msra.mxu0 %v11853_v9  ;;  %v6276_v8 = vsel %vm1646_vm5, %v6271_v3, %v6275_v54  ;;  %v11923_v9 = vpack.c.bf16 %v6577_v15, %v6575_v16 }
 0x86f   : > { %11856 = vmatprep.subr.bf16.mxu0 %v11855_v21  ;;  %v6574_v21 = vld [vmem:[#allocation20 + $0x340] sm:$0xff] }
 0x870   : > { %v11925_v14 = vpack.c.bf16 %v6576_v36, %v6574_v21  ;;  %11924 = vmatprep.subr.bf16.mxu1 %v11923_v9 }
 0x872   : > { %11858 = vmatpush1.bf16.msra.mxu0 %v11857_v35  ;;  %11926 = vmatpush1.bf16.msra.mxu1 %v11925_v14  ;;  %v11927_v35 = vpack.c.bf16 %v6581_v23, %v6579_v12 }
 0x873   : > { %11860 = vmatprep.subr.bf16.mxu0 %v11859_v26  ;;  %v6578_v26 = vld [vmem:[#allocation20 + $0x360] sm:$0xff] }
 0x874   : > { %v11929_v1 = vpack.c.bf16 %v6580_v51, %v6578_v26  ;;  %11928 = vmatprep.subr.bf16.mxu1 %v11927_v35 }
 0x876   : > { %11862 = vmatpush1.bf16.msra.mxu0 %v11861_v48  ;;  %11930 = vmatpush1.bf16.msra.mxu1 %v11929_v1  ;;  %v11931_v48 = vpack.c.bf16 %v6585_v17, %v6583_v41  ;;  %v6465_v41 = vld [vmem:[#allocation20] sm:$0xff]  ;;  %v6467_v17 = vld [vmem:[#allocation20 + $0x10] sm:$0xff] }
 0x877   : > { %11864 = vmatprep.subr.bf16.mxu0 %v11863_v62  ;;  %v6582_v62 = vld [vmem:[#allocation20 + $0x380] sm:$0xff] }
 0x878   : > { %v11933_v59 = vpack.c.bf16 %v6584_v34, %v6582_v62  ;;  %11932 = vmatprep.subr.bf16.mxu1 %v11931_v48 }
 0x87a   : > { %11866 = vmatpush1.bf16.msra.mxu0 %v11865_v7  ;;  %11934 = vmatpush1.bf16.msra.mxu1 %v11933_v59  ;;  %v11935_v7 = vpack.c.bf16 %v6589_v6, %v6587_v2  ;;  %v6470_v2 = vld [vmem:[#allocation20 + $0x28] sm:$0xff]  ;;  %v6472_v6 = vld [vmem:[#allocation20 + $0x38] sm:$0xff] }
 0x87b   : > { %11868 = vmatprep.subr.bf16.mxu0 %v11867_v30  ;;  %v6586_v30 = vld [vmem:[#allocation20 + $0x3a0] sm:$0xff] }
 0x87c   : > { %v11937_v60 = vpack.c.bf16 %v6588_v33, %v6586_v30  ;;  %11936 = vmatprep.subr.bf16.mxu1 %v11935_v7 }
 0x87e   : > { %11870 = vmatpush1.bf16.msra.mxu0 %v11869_v45  ;;  %v6590_v45 = vld [vmem:[#allocation20 + $0x3c0] sm:$0xff]  ;;  %11938 = vmatpush1.bf16.msra.mxu1 %v11937_v60 }
 0x87f   : > { %11872 = vmatprep.subr.bf16.mxu0 %v11871_v57  ;;  %v6592_v57 = vld [vmem:[#allocation20 + $0x3d0] sm:$0xff]  ;;  %11940 = vmatprep.subr.bf16.mxu1 %v11939_v56 }
 0x880   : > { %v11941_v49 = vpack.c.bf16 %v6592_v57, %v6590_v45  ;;  %v11949_v45 = vpack.c.bf16 %v6467_v17, %v6465_v41  ;;  %v6485_v17 = vld [vmem:[#allocation20 + $0xa0] sm:$0xff] }
 0x882   : > { %11874 = vmatpush1.bf16.msra.mxu0 %v11873_v53  ;;  %v11943_v53 = vpack.c.bf16 %v6597_v58, %v6595_v43  ;;  %11942 = vmatpush1.bf16.msra.mxu1 %v11941_v49  ;;  %v11951_v58 = vpack.c.bf16 %v6472_v6, %v6470_v2  ;;  %v6469_v49 = vld [vmem:[#allocation20 + $0x20] sm:$0xff] }
 0x883   : > { %11876 = vmatprep.subr.bf16.mxu0 %v11875_v18  ;;  %v6594_v18 = vld [vmem:[#allocation20 + $0x3e0] sm:$0xff] }
 0x884   : > { %v11945_v38 = vpack.c.bf16 %v6596_v19, %v6594_v18  ;;  %11944 = vmatprep.subr.bf16.mxu1 %v11943_v53  ;;  %v6471_v53 = vld [vmem:[#allocation20 + $0x30] sm:$0xff] }
 0x886   : > { %11878 = vmatpush1.bf16.msra.mxu0 %v11877_v20  ;;  %v11947_v20 = vpack.c.bf16 %v6468_v52, %v6466_v31  ;;  %11946 = vmatpush1.bf16.msra.mxu1 %v11945_v38  ;;  %v6474_v38 = vld [vmem:[#allocation20 + $0x48] sm:$0xff] }
 0x887   : > { %11880 = vmatprep.subr.bf16.mxu0 %v11879_v46  ;;  %v6382_v46 = vld [vmem:[#allocation18] sm:$0x3] }
 0x888   : > { %11948 = vmatprep.subr.bf16.mxu1 %v11947_v20  ;;  %v6387_v28 = vrot.slane %v6382_v46, %v16707_v27  ;;  %v6391_v42 = vrot.slane %v6382_v46, %v16709_v5  ;;  %v6476_v20 = vld [vmem:[#allocation20 + $0x58] sm:$0xff] }
 0x88a   : > { %11882 = vmatpush1.bf16.msra.mxu0 %v11881_v37 }
 0x88d   : > { %6350 = vmatmul.mubr.f32.vlgmr.msra.gmra.mrb[56].mxu0 %v6261_v61 }
 0x88e   : > { %6355 = vmatprep.mubr.f32.mxu0 %v6268_v11 }
 0x891   : > { %6356 = vmatmul.mubr.f32.gmra.mrb[58].mxu0 %v6266_v55 }
 0x892   : > { %6361 = vmatprep.mubr.f32.mxu0 %v6272_v47 }
 0x895   : > { %6362 = vmatmul.mubr.f32.gmra.mrb[60].mxu0 %v6270_v10 }
 0x896   : > { %6367 = vmatprep.mubr.f32.mxu0 %v6276_v8 }
 0x899   : > { %6368 = vmatmul.mubr.f32.gmra.mrb[62].mxu0 %v6274_v13 }
 0x89a   : > { %7109 = vmatprep.mubr.f32.mxu0 %v16728_v32 }
 0x960   : > { %v6351_v63 = vpop.f32.mrb[56].mxu0 }
 0x961   : > { %v6394_v37 = vadd.f32 %v6387_v28, %v6351_v63  ;;  %v6353_v39 = vpop.f32.mrb[57].mxu0  ;;  %v11955_v63 = vpack.c.bf16 %v6476_v20, %v6474_v38  ;;  %v6504_v38 = vld [vmem:[#allocation20 + $0x138] sm:$0xff] }
 0x962   : > { %v6395_v22 = vadd.f32 %v6391_v42, %v6353_v39  ;;  %v6475_v39 = vld [vmem:[#allocation20 + $0x50] sm:$0xff] }
 0x963   : > { %v6402_v40 = vmax.f32 %v6394_v37, 0.0  ;;  %v6473_v37 = vld [vmem:[#allocation20 + $0x40] sm:$0xff] }
 0x964   : > { %v6403_v61 = vmax.f32 %v6395_v22, 0.0  ;;  %v6357_v44 = vpop.f32.mrb[58].mxu0 }
 0x965   : > { %v6423_v11 = vrot.slane %v6402_v40, 7  ;;  %v6396_v3 = vadd.f32 %v6387_v28, %v6357_v44  ;;  %v6359_v25 = vpop.f32.mrb[59].mxu0  ;;  %v6478_v44 = vld [vmem:[#allocation20 + $0x68] sm:$0xff] }
 0x966   : > { %v6424_v55 = vrot.slane %v6403_v61, 7  ;;  %v6397_v29 = vadd.f32 %v6391_v42, %v6359_v25 }
 0x967   : > { %6447 = vst [vmem:[#allocation5] sm:$0xfe] %v6423_v11  ;;  %v6404_v47 = vmax.f32 %v6396_v3, 0.0  ;;  %v11957_v3 = vpack.c.bf16 %v6475_v39, %v6473_v37  ;;  %v6506_v37 = vld [vmem:[#allocation20 + $0x148] sm:$0xff]  ;;  %v6508_v39 = vld [vmem:[#allocation20 + $0x158] sm:$0xff] }
 0x968   : > { %6448 = vst [vmem:[#allocation5 + $0x8] sm:$0xfe] %v6424_v55  ;;  %v6405_v54 = vmax.f32 %v6397_v29, 0.0  ;;  %v6363_v4 = vpop.f32.mrb[60].mxu0  ;;  %v6477_v29 = vld [vmem:[#allocation20 + $0x60] sm:$0xff] }
 0x969   : > { %v6425_v10 = vrot.slane %v6404_v47, 7  ;;  %v6398_v50 = vadd.f32 %v6387_v28, %v6363_v4  ;;  %v6365_v8 = vpop.f32.mrb[61].mxu0  ;;  %v6479_v47 = vld [vmem:[#allocation20 + $0x70] sm:$0xff] }
 0x96a   : > { %v6427_v13 = vrot.slane %v6405_v54, 7  ;;  %v6399_v16 = vadd.f32 %v6391_v42, %v6365_v8  ;;  %v6484_v8 = vld [vmem:[#allocation20 + $0x98] sm:$0xff] }
 0x96b   : > { %v15470_v15 = vsel %vm712_vm1, %v6423_v11, %v6425_v10  ;;  %v6406_v9 = vmax.f32 %v6398_v50, 0.0  ;;  %v6480_v11 = vld [vmem:[#allocation20 + $0x78] sm:$0xff]  ;;  %v6482_v50 = vld [vmem:[#allocation20 + $0x88] sm:$0xff] }
 0x96c   : > { %v15473_v21 = vsel %vm712_vm1, %v6424_v55, %v6427_v13  ;;  %v6407_v36 = vmax.f32 %v6399_v16, 0.0  ;;  %v6369_v14 = vpop.f32.mrb[62].mxu0  ;;  %v6609_v0 = vrot.slane %v15470_v15, 1  ;;  %v11959_v25 = vpack.c.bf16 %v6480_v11, %v6478_v44  ;;  %v6507_v44 = vld [vmem:[#allocation20 + $0x150] sm:$0xff]  ;;  %v6510_v11 = vld [vmem:[#allocation20 + $0x168] sm:$0xff] }
 0x96d   : > { %v6429_v12 = vrot.slane %v6406_v9, 7  ;;  %v6400_v23 = vadd.f32 %v6387_v28, %v6369_v14  ;;  %v6371_v35 = vpop.f32.mrb[63].mxu0  ;;  %v6612_v24 = vrot.slane %v15473_v21, 1  ;;  %v11953_v28 = vpack.c.bf16 %v6471_v53, %v6469_v49  ;;  %v6481_v14 = vld [vmem:[#allocation20 + $0x80] sm:$0xff] }
 0x96e   : > { %v6431_v26 = vrot.slane %v6407_v36, 7  ;;  %v6401_v51 = vadd.f32 %v6391_v42, %v6371_v35  ;;  %v6529_v1 = vld [vmem:[#allocation5] sm:$0xfe]  ;;  %v11961_v16 = vpack.c.bf16 %v6479_v47, %v6477_v29  ;;  %v11963_v36 = vpack.c.bf16 %v6484_v8, %v6482_v50  ;;  %v6511_v47 = vld [vmem:[#allocation20 + $0x170] sm:$0xff] }
 0x96f   : > { %v15476_v48 = vsel %vm712_vm1, %v6425_v10, %v6429_v12  ;;  %v6408_v62 = vmax.f32 %v6400_v23, 0.0  ;;  %v6530_v34 = vld [vmem:[#allocation5 + $0x8] sm:$0xfe]  ;;  %v6608_v59 = vrot.slane %v6529_v1, 1  ;;  %v6509_v29 = vld [vmem:[#allocation20 + $0x160] sm:$0xff] }
 0x970   : > { %v15479_v7 = vsel %vm712_vm1, %v6427_v13, %v6431_v26  ;;  %v6409_v30 = vmax.f32 %v6401_v51, 0.0  ;;  %v6611_v33 = vrot.slane %v6530_v34, 1  ;;  %v6614_v52 = vrot.slane %v15476_v48, 1  ;;  %v6486_v35 = vld [vmem:[#allocation20 + $0xa8] sm:$0xff]  ;;  %v6513_v8 = vld [vmem:[#allocation20 + $0x180] sm:$0xff] }
 0x971   : > { %v6433_v60 = vrot.slane %v6408_v62, 7  ;;  %v6616_v57 = vrot.slane %v15479_v7, 1  ;;  %v6610_v19 = vsel %vm1013_vm4, %v6608_v59, %v6609_v0  ;;  %v6458_v51 = vld [vmem:[#allocation5 + $0x8] sm:$0xff]  ;;  %v6492_v59 = vld [vmem:[#allocation20 + $0xd8] sm:$0xff] }
 0x972   : > { %v6435_v56 = vrot.slane %v6409_v30, 7  ;;  %v6613_v43 = vsel %vm1013_vm4, %v6611_v33, %v6612_v24  ;;  %v6615_v22 = vsel %vm1013_vm4, %v6609_v0, %v6614_v52  ;;  %v6487_v62 = vld [vmem:[#allocation20 + $0xb0] sm:$0xff]  ;;  %v6490_v34 = vld [vmem:[#allocation20 + $0xc8] sm:$0xff]  ;;  %v6489_v30 = vld [vmem:[#allocation20 + $0xc0] sm:$0xff] }
 0x973   : > { %v15486_v18 = vsel %vm712_vm1, %v6429_v12, %v6433_v60  ;;  %6455 = vst [vmem:[#allocation5 + $0x40] sm:$0x1] %v6433_v60  ;;  %6698 = vmatprep.mubr.f32.mxu1 %v6613_v43  ;;  %v6617_v31 = vsel %vm1013_vm4, %v6612_v24, %v6616_v57  ;;  %v6483_v12 = vld [vmem:[#allocation20 + $0x90] sm:$0xff]  ;;  %v11969_v2 = vpack.c.bf16 %v6487_v62, %v6485_v17  ;;  %v6494_v24 = vld [vmem:[#allocation20 + $0xe8] sm:$0xff]  ;;  %v6496_v60 = vld [vmem:[#allocation20 + $0xf8] sm:$0xff] }
 0x974   : > { %v15492_v46 = vsel %vm712_vm1, %v6431_v26, %v6435_v56  ;;  %6456 = vst [vmem:[#allocation5 + $0x48] sm:$0x1] %v6435_v56  ;;  %6699 = vmatmul.mubr.f32.vlgmr.msra.gmra.mrb[72].mxu1 %v6610_v19  ;;  %v6618_v61 = vrot.slane %v15486_v18, 1  ;;  %v6488_v26 = vld [vmem:[#allocation20 + $0xb8] sm:$0xff]  ;;  %v11965_v1 = vpack.c.bf16 %v6483_v12, %v6481_v14  ;;  %v11971_v6 = vpack.c.bf16 %v6492_v59, %v6490_v34  ;;  %v6491_v33 = vld [vmem:[#allocation20 + $0xd0] sm:$0xff]  ;;  %v6498_v43 = vld [vmem:[#allocation20 + $0x108] sm:$0xff] }
 0x975   : > { %11950 = vmatpush1.bf16.msra.mxu1 %v11949_v45  ;;  %6704 = vmatprep.mubr.f32.mxu1 %v6617_v31  ;;  %v6620_v42 = vrot.slane %v15492_v46, 1  ;;  %v11967_v41 = vpack.c.bf16 %v6488_v26, %v6486_v35  ;;  %v11973_v0 = vpack.c.bf16 %v6491_v33, %v6489_v30  ;;  %v11975_v45 = vpack.c.bf16 %v6496_v60, %v6494_v24  ;;  %v6495_v56 = vld [vmem:[#allocation20 + $0xf0] sm:$0xff]  ;;  %v6497_v19 = vld [vmem:[#allocation20 + $0x100] sm:$0xff]  ;;  %v6522_v35 = vld [vmem:[#allocation20 + $0x1c8] sm:$0xff] }
 0x976   : > { %11952 = vmatprep.subr.bf16.mxu1 %v11951_v58  ;;  %v6619_v54 = vsel %vm1013_vm4, %v6614_v52, %v6618_v61  ;;  %v6500_v58 = vld [vmem:[#allocation20 + $0x118] sm:$0xff]  ;;  %v6499_v31 = vld [vmem:[#allocation20 + $0x110] sm:$0xff]  ;;  %v6502_v52 = vld [vmem:[#allocation20 + $0x128] sm:$0xff] }
 0x977   : > { %v6621_v40 = vsel %vm1013_vm4, %v6616_v57, %v6620_v42  ;;  %v6493_v57 = vld [vmem:[#allocation20 + $0xe0] sm:$0xff]  ;;  %v11979_v53 = vpack.c.bf16 %v6500_v58, %v6498_v43  ;;  %v11981_v20 = vpack.c.bf16 %v6499_v31, %v6497_v19  ;;  %v6524_v26 = vld [vmem:[#allocation20 + $0x1d8] sm:$0xff]  ;;  %v6523_v17 = vld [vmem:[#allocation20 + $0x1d0] sm:$0xff] }
 0x978   : > { %6705 = vmatmul.mubr.f32.gmra.mrb[74].mxu1 %v6615_v22  ;;  %v11977_v49 = vpack.c.bf16 %v6495_v56, %v6493_v57  ;;  %v6517_v12 = vld [vmem:[#allocation20 + $0x1a0] sm:$0xff]  ;;  %v6526_v62 = vld [vmem:[#allocation20 + $0x1e8] sm:$0xff]  ;;  %v6528_v34 = vld [vmem:[#allocation20 + $0x1f8] sm:$0xff] }
 0x979   : > { %11954 = vmatpush1.bf16.msra.mxu1 %v11953_v28  ;;  %6710 = vmatprep.mubr.f32.mxu1 %v6621_v40  ;;  %v11983_v28 = vpack.c.bf16 %v6504_v38, %v6502_v52  ;;  %v11987_v40 = vpack.c.bf16 %v6508_v39, %v6506_v37  ;;  %v6527_v30 = vld [vmem:[#allocation20 + $0x1f0] sm:$0xff]  ;;  %v6818_v33 = vld [vmem:[#allocation20 + $0x408] sm:$0xff]  ;;  %v6820_v24 = vld [vmem:[#allocation20 + $0x418] sm:$0xff] }
 0x97a   : > { %11956 = vmatprep.subr.bf16.mxu1 %v11955_v63  ;;  %v6531_v55 = vld [vmem:[#allocation5 + $0x40] sm:$0x1]  ;;  %v6503_v63 = vld [vmem:[#allocation20 + $0x130] sm:$0xff]  ;;  %v6822_v56 = vld [vmem:[#allocation20 + $0x428] sm:$0xff] }
 0x97b   : > { %v6532_v4 = vld [vmem:[#allocation5 + $0x48] sm:$0x1]  ;;  %v6622_v10 = vrot.slane %v6531_v55, 1  ;;  %v6819_v57 = vld [vmem:[#allocation20 + $0x410] sm:$0xff]  ;;  %v6824_v43 = vld [vmem:[#allocation20 + $0x438] sm:$0xff] }
 0x97c   : > { %6711 = vmatmul.mubr.f32.gmra.mrb[76].mxu1 %v6619_v54  ;;  %v6624_v13 = vrot.slane %v6532_v4, 1  ;;  %v6514_v54 = vld [vmem:[#allocation20 + $0x188] sm:$0xff]  ;;  %v6516_v4 = vld [vmem:[#allocation20 + $0x198] sm:$0xff]  ;;  %v6823_v19 = vld [vmem:[#allocation20 + $0x430] sm:$0xff] }
 0x97d   : > { %11958 = vmatpush1.bf16.msra.mxu1 %v11957_v3  ;;  %v6623_v23 = vsel %vm1013_vm4, %v6618_v61, %v6622_v10  ;;  %v6505_v61 = vld [vmem:[#allocation20 + $0x140] sm:$0xff]  ;;  %v6512_v3 = vld [vmem:[#allocation20 + $0x178] sm:$0xff]  ;;  %v11993_v10 = vpack.c.bf16 %v6511_v47, %v6509_v29  ;;  %v11995_v50 = vpack.c.bf16 %v6516_v4, %v6514_v54  ;;  %v6826_v52 = vld [vmem:[#allocation20 + $0x448] sm:$0xff]  ;;  %v6889_v47 = vrot.slane %v15473_v21, 2 }
 0x97e   : > { %v6625_v9 = vsel %vm1013_vm4, %v6620_v42, %v6624_v13  ;;  %11960 = vmatprep.subr.bf16.mxu1 %v11959_v25  ;;  %v6501_v42 = vld [vmem:[#allocation20 + $0x120] sm:$0xff]  ;;  %v11989_v25 = vpack.c.bf16 %v6507_v44, %v6505_v61  ;;  %v11991_v55 = vpack.c.bf16 %v6512_v3, %v6510_v11  ;;  %v6515_v13 = vld [vmem:[#allocation20 + $0x190] sm:$0xff]  ;;  %v6828_v38 = vld [vmem:[#allocation20 + $0x458] sm:$0xff] }
 0x97f   : > { %6716 = vmatprep.mubr.f32.mxu1 %v6625_v9  ;;  %v11985_v22 = vpack.c.bf16 %v6503_v63, %v6501_v42  ;;  %v6520_v9 = vld [vmem:[#allocation20 + $0x1b8] sm:$0xff]  ;;  %v6457_v31 = vld [vmem:[#allocation5] sm:$0xff]  ;;  %v6827_v63 = vld [vmem:[#allocation20 + $0x450] sm:$0xff] }
 0x980   : > { %6717 = vmatmul.mubr.f32.gmra.mrb[78].mxu1 %v6623_v23  ;;  %v6519_v23 = vld [vmem:[#allocation20 + $0x1b0] sm:$0xff]  ;;  %v6825_v42 = vld [vmem:[#allocation20 + $0x440] sm:$0xff]  ;;  %v6830_v37 = vld [vmem:[#allocation20 + $0x468] sm:$0xff] }
 0x981   : > { %11962 = vmatpush1.bf16.msra.mxu1 %v11961_v16  ;;  %6787 = vmatprep.mubr.f32.mxu1 %v6458_v51  ;;  %v6518_v16 = vld [vmem:[#allocation20 + $0x1a8] sm:$0xff]  ;;  %v12001_v51 = vpack.c.bf16 %v6519_v23, %v6517_v12  ;;  %v6832_v39 = vld [vmem:[#allocation20 + $0x478] sm:$0xff]  ;;  %v6829_v44 = vld [vmem:[#allocation20 + $0x460] sm:$0xff] }
 0x982   : > { %11964 = vmatprep.subr.bf16.mxu1 %v11963_v36  ;;  %v11997_v36 = vpack.c.bf16 %v6515_v13, %v6513_v8  ;;  %v11999_v14 = vpack.c.bf16 %v6520_v9, %v6518_v16  ;;  %v12023_v61 = vpack.c.bf16 %v6832_v39, %v6830_v37  ;;  %v6831_v11 = vld [vmem:[#allocation20 + $0x470] sm:$0xff]  ;;  %v6834_v3 = vld [vmem:[#allocation20 + $0x488] sm:$0xff]  ;;  %v6833_v4 = vld [vmem:[#allocation20 + $0x480] sm:$0xff] }
 0x983   : > { %v12025_v29 = vpack.c.bf16 %v6831_v11, %v6829_v44  ;;  %v6840_v8 = vld [vmem:[#allocation20 + $0x4b8] sm:$0xff]  ;;  %v6842_v12 = vld [vmem:[#allocation20 + $0x4c8] sm:$0xff]  ;;  %v6861_v39 = vld [vmem:[#allocation20 + $0x560] sm:$0xff] }
 0x984   : > { %v6844_v23 = vld [vmem:[#allocation20 + $0x4d8] sm:$0xff] }
 0x985   : > { %11966 = vmatpush1.bf16.msra.mxu1 %v11965_v1  ;;  %v12003_v1 = vpack.c.bf16 %v6524_v26, %v6522_v35  ;;  %v12035_v26 = vpack.c.bf16 %v6844_v23, %v6842_v12  ;;  %v6878_v12 = vld [vmem:[#allocation20 + $0x5e8] sm:$0xff]  ;;  %v6880_v23 = vld [vmem:[#allocation20 + $0x5f8] sm:$0xff] }
 0x986   : > { %11968 = vmatprep.subr.bf16.mxu1 %v11967_v41  ;;  %v6521_v41 = vld [vmem:[#allocation20 + $0x1c0] sm:$0xff] }
 0x987   : > { %v12005_v59 = vpack.c.bf16 %v6523_v17, %v6521_v41  ;;  %v6846_v41 = vld [vmem:[#allocation20 + $0x4e8] sm:$0xff]  ;;  %v6848_v17 = vld [vmem:[#allocation20 + $0x4f8] sm:$0xff] }
 0x989   : > { %11970 = vmatpush1.bf16.msra.mxu1 %v11969_v2  ;;  %v12007_v2 = vpack.c.bf16 %v6528_v34, %v6526_v62  ;;  %v12039_v34 = vpack.c.bf16 %v6848_v17, %v6846_v41  ;;  %v6812_v41 = vld [vmem:[#allocation5] sm:$0xfc] }
 0x98a   : > { %11972 = vmatprep.subr.bf16.mxu1 %v11971_v6  ;;  %v6525_v6 = vld [vmem:[#allocation20 + $0x1e0] sm:$0xff] }
 0x98b   : > { %v12009_v60 = vpack.c.bf16 %v6527_v30, %v6525_v6  ;;  %v6850_v6 = vld [vmem:[#allocation20 + $0x508] sm:$0xff]  ;;  %v6852_v30 = vld [vmem:[#allocation20 + $0x518] sm:$0xff] }
 0x98d   : > { %11974 = vmatpush1.bf16.msra.mxu1 %v11973_v0  ;;  %v12011_v0 = vpack.c.bf16 %v6820_v24, %v6818_v33  ;;  %v12043_v24 = vpack.c.bf16 %v6852_v30, %v6850_v6  ;;  %v6891_v6 = vrot.slane %v15476_v48, 2 }
 0x98e   : > { %11976 = vmatprep.subr.bf16.mxu1 %v11975_v45  ;;  %v6817_v45 = vld [vmem:[#allocation20 + $0x400] sm:$0xff] }
 0x98f   : > { %v12013_v58 = vpack.c.bf16 %v6819_v57, %v6817_v45  ;;  %v6854_v45 = vld [vmem:[#allocation20 + $0x528] sm:$0xff]  ;;  %v6856_v57 = vld [vmem:[#allocation20 + $0x538] sm:$0xff] }
 0x991   : > { %11978 = vmatpush1.bf16.msra.mxu1 %v11977_v49  ;;  %v12015_v49 = vpack.c.bf16 %v6824_v43, %v6822_v56  ;;  %v12047_v43 = vpack.c.bf16 %v6856_v57, %v6854_v45  ;;  %v6814_v45 = vld [vmem:[#allocation5 + $0x40] sm:$0x3] }
 0x992   : > { %11980 = vmatprep.subr.bf16.mxu1 %v11979_v53  ;;  %v6821_v53 = vld [vmem:[#allocation20 + $0x420] sm:$0xff]  ;;  %v6899_v57 = vrot.slane %v6814_v45, 2  ;;  %v7341_v45 = vld [vmem:[#allocation24 + $0x1a8] sm:$0xff] }
 0x995   : > { %11982 = vmatpush1.bf16.msra.mxu1 %v11981_v20  ;;  %v12017_v20 = vpack.c.bf16 %v6823_v19, %v6821_v53  ;;  %v6858_v53 = vld [vmem:[#allocation20 + $0x548] sm:$0xff]  ;;  %v6860_v19 = vld [vmem:[#allocation20 + $0x558] sm:$0xff] }
 0x996   : > { %11984 = vmatprep.subr.bf16.mxu1 %v11983_v28  ;;  %v12019_v28 = vpack.c.bf16 %v6828_v38, %v6826_v52  ;;  %v12051_v52 = vpack.c.bf16 %v6860_v19, %v6858_v53  ;;  %v6857_v38 = vld [vmem:[#allocation20 + $0x540] sm:$0xff] }
 0x999   : > { %11986 = vmatpush1.bf16.msra.mxu1 %v11985_v22  ;;  %v12021_v22 = vpack.c.bf16 %v6827_v63, %v6825_v42  ;;  %v6864_v42 = vld [vmem:[#allocation20 + $0x578] sm:$0xff] }
 0x99a   : > { %11988 = vmatprep.subr.bf16.mxu1 %v11987_v40  ;;  %v6813_v40 = vld [vmem:[#allocation5 + $0x8] sm:$0xfc] }
 0x99d   : > { %11990 = vmatpush1.bf16.msra.mxu1 %v11989_v25  ;;  %v6836_v25 = vld [vmem:[#allocation20 + $0x498] sm:$0xff] }
 0x99e   : > { %11992 = vmatprep.subr.bf16.mxu1 %v11991_v55  ;;  %v6888_v55 = vrot.slane %v6813_v40, 2  ;;  %v12027_v54 = vpack.c.bf16 %v6836_v25, %v6834_v3  ;;  %v6866_v40 = vld [vmem:[#allocation20 + $0x588] sm:$0xff]  ;;  %v6865_v3 = vld [vmem:[#allocation20 + $0x580] sm:$0xff]  ;;  %v6867_v25 = vld [vmem:[#allocation20 + $0x590] sm:$0xff] }
 0x9a0   : > { %v6890_v13 = vsel %vm1646_vm5, %v6888_v55, %v6889_v47  ;;  %v6870_v55 = vld [vmem:[#allocation20 + $0x5a8] sm:$0xff] }
 0x9a1   : > { %11994 = vmatpush1.bf16.msra.mxu1 %v11993_v10  ;;  %v6835_v10 = vld [vmem:[#allocation20 + $0x490] sm:$0xff] }
 0x9a2   : > { %11996 = vmatprep.subr.bf16.mxu1 %v11995_v50  ;;  %v6838_v50 = vld [vmem:[#allocation20 + $0x4a8] sm:$0xff]  ;;  %v12029_v16 = vpack.c.bf16 %v6835_v10, %v6833_v4  ;;  %v6869_v10 = vld [vmem:[#allocation20 + $0x5a0] sm:$0xff] }
 0x9a3   : > { %v12031_v9 = vpack.c.bf16 %v6840_v8, %v6838_v50  ;;  %v6871_v50 = vld [vmem:[#allocation20 + $0x5b0] sm:$0xff]  ;;  %v6874_v8 = vld [vmem:[#allocation20 + $0x5c8] sm:$0xff] }
 0x9a5   : > { %11998 = vmatpush1.bf16.msra.mxu1 %v11997_v36  ;;  %v6837_v36 = vld [vmem:[#allocation20 + $0x4a0] sm:$0xff] }
 0x9a6   : > { %12000 = vmatprep.subr.bf16.mxu1 %v11999_v14  ;;  %v6839_v14 = vld [vmem:[#allocation20 + $0x4b0] sm:$0xff] }
 0x9a7   : > { %v12033_v35 = vpack.c.bf16 %v6839_v14, %v6837_v36  ;;  %v6873_v36 = vld [vmem:[#allocation20 + $0x5c0] sm:$0xff]  ;;  %v6875_v14 = vld [vmem:[#allocation20 + $0x5d0] sm:$0xff] }
 0x9a9   : > { %12002 = vmatpush1.bf16.msra.mxu1 %v12001_v51  ;;  %v6841_v51 = vld [vmem:[#allocation20 + $0x4c0] sm:$0xff] }
 0x9aa   : > { %12004 = vmatprep.subr.bf16.mxu1 %v12003_v1  ;;  %v6843_v1 = vld [vmem:[#allocation20 + $0x4d0] sm:$0xff] }
 0x9ab   : > { %v12037_v62 = vpack.c.bf16 %v6843_v1, %v6841_v51  ;;  %v6877_v51 = vld [vmem:[#allocation20 + $0x5e0] sm:$0xff]  ;;  %v6879_v1 = vld [vmem:[#allocation20 + $0x5f0] sm:$0xff] }
 0x9ac   : > { %v12073_v17 = vpack.c.bf16 %v6879_v1, %v6877_v51  ;;  %v7231_v51 = vld [vmem:[#allocation24 + $0x98] sm:$0xff]  ;;  %v7338_v1 = vld [vmem:[#allocation24 + $0x190] sm:$0xff] }
 0x9ad   : > { %12006 = vmatpush1.bf16.msra.mxu1 %v12005_v59  ;;  %v6845_v59 = vld [vmem:[#allocation20 + $0x4e0] sm:$0xff] }
 0x9ae   : > { %12008 = vmatprep.subr.bf16.mxu1 %v12007_v2  ;;  %v6847_v2 = vld [vmem:[#allocation20 + $0x4f0] sm:$0xff] }
 0x9af   : > { %v12041_v33 = vpack.c.bf16 %v6847_v2, %v6845_v59  ;;  %v6886_v59 = vrot.slane %v15470_v15, 2 }
 0x9b1   : > { %12010 = vmatpush1.bf16.msra.mxu1 %v12009_v60  ;;  %v6849_v60 = vld [vmem:[#allocation20 + $0x500] sm:$0xff] }
 0x9b2   : > { %12012 = vmatprep.subr.bf16.mxu1 %v12011_v0  ;;  %v6851_v0 = vld [vmem:[#allocation20 + $0x510] sm:$0xff] }
 0x9b3   : > { %v12045_v56 = vpack.c.bf16 %v6851_v0, %v6849_v60  ;;  %v6892_v60 = vsel %vm1646_vm5, %v6886_v59, %v6891_v6 }
 0x9b4   : > { %6788 = vmatmul.mubr.f32.vlgmr.msra.gmra.mrb[72].mxu1 %v6457_v31 }
 0x9b5   : > { %6793 = vmatprep.mubr.f32.mxu1 %v15473_v21  ;;  %12014 = vmatpush1.bf16.msra.mxu1 %v12013_v58  ;;  %v6853_v58 = vld [vmem:[#allocation20 + $0x520] sm:$0xff] }
 0x9b6   : > { %12016 = vmatprep.subr.bf16.mxu1 %v12015_v49  ;;  %v6855_v49 = vld [vmem:[#allocation20 + $0x530] sm:$0xff] }
 0x9b7   : > { %v12049_v31 = vpack.c.bf16 %v6855_v49, %v6853_v58 }
 0x9b8   : > { %6794 = vmatmul.mubr.f32.gmra.mrb[74].mxu1 %v15470_v15 }
 0x9b9   : > { %6799 = vmatprep.mubr.f32.mxu1 %v15479_v7  ;;  %12018 = vmatpush1.bf16.msra.mxu1 %v12017_v20  ;;  %v6859_v20 = vld [vmem:[#allocation20 + $0x550] sm:$0xff] }
 0x9ba   : > { %12020 = vmatprep.subr.bf16.mxu1 %v12019_v28  ;;  %v6862_v28 = vld [vmem:[#allocation20 + $0x568] sm:$0xff]  ;;  %v12053_v63 = vpack.c.bf16 %v6859_v20, %v6857_v38 }
 0x9bb   : > { %v12055_v37 = vpack.c.bf16 %v6864_v42, %v6862_v28 }
 0x9bc   : > { %6800 = vmatmul.mubr.f32.gmra.mrb[76].mxu1 %v15476_v48 }
 0x9bd   : > { %6805 = vmatprep.mubr.f32.mxu1 %v15492_v46  ;;  %12022 = vmatpush1.bf16.msra.mxu1 %v12021_v22  ;;  %v6863_v22 = vld [vmem:[#allocation20 + $0x570] sm:$0xff] }
 0x9be   : > { %12024 = vmatprep.subr.bf16.mxu1 %v12023_v61  ;;  %v6868_v61 = vld [vmem:[#allocation20 + $0x598] sm:$0xff]  ;;  %v12057_v44 = vpack.c.bf16 %v6863_v22, %v6861_v39 }
 0x9bf   : > { %v12059_v11 = vpack.c.bf16 %v6868_v61, %v6866_v40 }
 0x9c0   : > { %6806 = vmatmul.mubr.f32.gmra.mrb[78].mxu1 %v15486_v18 }
 0x9c1   : > { %12026 = vmatpush1.bf16.msra.mxu1 %v12025_v29  ;;  %6975 = vmatprep.mubr.f32.mxu1 %v6890_v13  ;;  %v6872_v29 = vld [vmem:[#allocation20 + $0x5b8] sm:$0xff] }
 0x9c2   : > { %12028 = vmatprep.subr.bf16.mxu1 %v12027_v54  ;;  %v12061_v54 = vpack.c.bf16 %v6867_v25, %v6865_v3  ;;  %v12063_v4 = vpack.c.bf16 %v6872_v29, %v6870_v55  ;;  %v6876_v13 = vld [vmem:[#allocation20 + $0x5d8] sm:$0xff]  ;;  %v7228_v25 = vld [vmem:[#allocation24 + $0x80] sm:$0xff] }
 0x9c5   : > { %12030 = vmatpush1.bf16.msra.mxu1 %v12029_v16  ;;  %v12065_v16 = vpack.c.bf16 %v6871_v50, %v6869_v10  ;;  %v7337_v10 = vld [vmem:[#allocation24 + $0x188] sm:$0xff] }
 0x9c6   : > { %12032 = vmatprep.subr.bf16.mxu1 %v12031_v9  ;;  %v12067_v9 = vpack.c.bf16 %v6876_v13, %v6874_v8 }
 0x9c9   : > { %12034 = vmatpush1.bf16.msra.mxu1 %v12033_v35  ;;  %v12069_v35 = vpack.c.bf16 %v6875_v14, %v6873_v36 }
 0x9ca   : > { %12036 = vmatprep.subr.bf16.mxu1 %v12035_v26  ;;  %v12071_v26 = vpack.c.bf16 %v6880_v23, %v6878_v12  ;;  %v7320_v23 = vld [vmem:[#allocation24 + $0x100] sm:$0xff] }
 0x9cd   : > { %12038 = vmatpush1.bf16.msra.mxu1 %v12037_v62  ;;  %v6885_v62 = vrot.slane %v6812_v41, 2  ;;  %v7339_v41 = vld [vmem:[#allocation24 + $0x198] sm:$0xff] }
 0x9ce   : > { %12040 = vmatprep.subr.bf16.mxu1 %v12039_v34  ;;  %v6893_v34 = vrot.slane %v15479_v7, 2  ;;  %v6895_v7 = vrot.slane %v15486_v18, 2 }
 0x9cf   : > { %v6887_v2 = vsel %vm1646_vm5, %v6885_v62, %v6886_v59  ;;  %v7123_v62 = vld [vmem:[#allocation23 + $0x10] sm:$0xff] }
 0x9d0   : > { %v6894_v30 = vsel %vm1646_vm5, %v6889_v47, %v6893_v34  ;;  %v6896_v48 = vsel %vm1646_vm5, %v6891_v6, %v6895_v7  ;;  %v7008_v47 = vld [vmem:[#allocation21] sm:$0x3] }
 0x9d1   : > { %12042 = vmatpush1.bf16.msra.mxu1 %v12041_v33  ;;  %v6897_v33 = vrot.slane %v15492_v46, 2  ;;  %v6900_v46 = vsel %vm1646_vm5, %v6895_v7, %v6899_v57  ;;  %v7013_v18 = vrot.slane %v7008_v47, %v16707_v27  ;;  %v7215_v6 = vld [vmem:[#allocation24 + $0x18] sm:$0xff]  ;;  %v7232_v7 = vld [vmem:[#allocation24 + $0xa0] sm:$0xff] }
 0x9d2   : > { %12044 = vmatprep.subr.bf16.mxu1 %v12043_v24  ;;  %v6815_v24 = vld [vmem:[#allocation5 + $0x48] sm:$0x3] }
 0x9d3   : > { %v6898_v15 = vsel %vm1646_vm5, %v6893_v34, %v6897_v33  ;;  %v6901_v0 = vrot.slane %v6815_v24, 2  ;;  %v7322_v24 = vld [vmem:[#allocation24 + $0x110] sm:$0xff] }
 0x9d5   : > { %12046 = vmatpush1.bf16.msra.mxu1 %v12045_v56  ;;  %v6902_v21 = vsel %vm1646_vm5, %v6897_v33, %v6901_v0  ;;  %v12127_v33 = vpack.c.bf16 %v7339_v41, %v7338_v1  ;;  %v7340_v0 = vld [vmem:[#allocation24 + $0x1a0] sm:$0xff]  ;;  %v7349_v1 = vld [vmem:[#allocation24 + $0x1e8] sm:$0xff] }
 0x9d6   : > { %12048 = vmatprep.subr.bf16.mxu1 %v12047_v43  ;;  %v7017_v43 = vrot.slane %v7008_v47, %v16709_v5 }
 0x9d9   : > { %12050 = vmatpush1.bf16.msra.mxu1 %v12049_v31 }
 0x9da   : > { %12052 = vmatprep.subr.bf16.mxu1 %v12051_v52 }
 0x9dd   : > { %12054 = vmatpush1.bf16.msra.mxu1 %v12053_v63 }
 0x9de   : > { %12056 = vmatprep.subr.bf16.mxu1 %v12055_v37 }
 0x9e1   : > { %12058 = vmatpush1.bf16.msra.mxu1 %v12057_v44 }
 0x9e2   : > { %12060 = vmatprep.subr.bf16.mxu1 %v12059_v11 }
 0x9e5   : > { %12062 = vmatpush1.bf16.msra.mxu1 %v12061_v54  ;;  %v7229_v54 = vld [vmem:[#allocation24 + $0x88] sm:$0xff] }
 0x9e6   : > { %12064 = vmatprep.subr.bf16.mxu1 %v12063_v4  ;;  %v7336_v4 = vld [vmem:[#allocation24 + $0x180] sm:$0xff]  ;;  %v12091_v14 = vpack.c.bf16 %v7229_v54, %v7228_v25  ;;  %v7238_v54 = vld [vmem:[#allocation24 + $0xd0] sm:$0xff] }
 0x9e7   : > { %v12123_v12 = vpack.c.bf16 %v7337_v10, %v7336_v4  ;;  %v7239_v4 = vld [vmem:[#allocation24 + $0xd8] sm:$0xff]  ;;  %v7346_v10 = vld [vmem:[#allocation24 + $0x1d0] sm:$0xff] }
 0x9e9   : > { %12066 = vmatpush1.bf16.msra.mxu1 %v12065_v16  ;;  %v7212_v16 = vld [vmem:[#allocation24] sm:$0xff] }
 0x9ea   : > { %12068 = vmatprep.subr.bf16.mxu1 %v12067_v9  ;;  %v7213_v9 = vld [vmem:[#allocation24 + $0x8] sm:$0xff] }
 0x9eb   : > { %v12093_v34 = vpack.c.bf16 %v7213_v9, %v7212_v16  ;;  %v7222_v16 = vld [vmem:[#allocation24 + $0x50] sm:$0xff]  ;;  %v7223_v9 = vld [vmem:[#allocation24 + $0x58] sm:$0xff] }
 0x9ec   : > { %v12113_v41 = vpack.c.bf16 %v7223_v9, %v7222_v16 }
 0x9ed   : > { %12070 = vmatpush1.bf16.msra.mxu1 %v12069_v35  ;;  %v7321_v35 = vld [vmem:[#allocation24 + $0x108] sm:$0xff] }
 0x9ee   : > { %12072 = vmatprep.subr.bf16.mxu1 %v12071_v26  ;;  %v7230_v26 = vld [vmem:[#allocation24 + $0x90] sm:$0xff]  ;;  %v12125_v59 = vpack.c.bf16 %v7321_v35, %v7320_v23  ;;  %v7331_v23 = vld [vmem:[#allocation24 + $0x158] sm:$0xff]  ;;  %v7240_v35 = vld [vmem:[#allocation24 + $0xe0] sm:$0xff] }
 0x9f1   : > { %12074 = vmatpush1.bf16.msra.mxu1 %v12073_v17  ;;  %v7036_v17 = vld [vmem:[#allocation23] sm:$0xff] }
 0x9f4   : > { %6976 = vmatmul.mubr.f32.vlgmr.msra.gmra.mrb[72].mxu1 %v6887_v2  ;;  %v7214_v2 = vld [vmem:[#allocation24 + $0x10] sm:$0xff] }
 0x9f5   : > { %6981 = vmatprep.mubr.f32.mxu1 %v6894_v30  ;;  %v12095_v30 = vpack.c.bf16 %v7231_v51, %v7230_v26  ;;  %v7241_v26 = vld [vmem:[#allocation24 + $0xe8] sm:$0xff]  ;;  %v7348_v51 = vld [vmem:[#allocation24 + $0x1e0] sm:$0xff] }
 0x9f8   : > { %6982 = vmatmul.mubr.f32.gmra.mrb[74].mxu1 %v6892_v60  ;;  %v7323_v60 = vld [vmem:[#allocation24 + $0x118] sm:$0xff] }
 0x9f9   : > { %6987 = vmatprep.mubr.f32.mxu1 %v6898_v15  ;;  %v7233_v15 = vld [vmem:[#allocation24 + $0xa8] sm:$0xff]  ;;  %v12129_v57 = vpack.c.bf16 %v7323_v60, %v7322_v24 }
 0x9fa   : > { %v12099_v47 = vpack.c.bf16 %v7233_v15, %v7232_v7  ;;  %v7037_v60 = vld [vmem:[#allocation23 + $0x8] sm:$0xff]  ;;  %v7124_v7 = vld [vmem:[#allocation23 + $0x18] sm:$0xff]  ;;  %v7242_v15 = vld [vmem:[#allocation24 + $0xf0] sm:$0xff] }
 0x9fc   : > { %6988 = vmatmul.mubr.f32.gmra.mrb[76].mxu1 %v6896_v48  ;;  %v12097_v48 = vpack.c.bf16 %v7215_v6, %v7214_v2  ;;  %v7225_v2 = vld [vmem:[#allocation24 + $0x68] sm:$0xff]  ;;  %v7332_v6 = vld [vmem:[#allocation24 + $0x160] sm:$0xff] }
 0x9fd   : > { %6993 = vmatprep.mubr.f32.mxu1 %v6902_v21  ;;  %v7216_v21 = vld [vmem:[#allocation24 + $0x20] sm:$0xff] }
 0xa00   : > { %6994 = vmatmul.mubr.f32.gmra.mrb[78].mxu1 %v6900_v46  ;;  %v7217_v46 = vld [vmem:[#allocation24 + $0x28] sm:$0xff] }
 0xa01   : > { %7195 = vmatprep.mubr.f32.mxu1 %v16728_v32 }
 0xac7   : > { %v6977_v56 = vpop.f32.mrb[72].mxu1 }
 0xac8   : > { %v6979_v58 = vpop.f32.mrb[73].mxu1  ;;  %v7020_v49 = vadd.f32 %v7013_v18, %v6977_v56  ;;  %v7324_v56 = vld [vmem:[#allocation24 + $0x120] sm:$0xff] }
 0xac9   : > { %v7021_v53 = vadd.f32 %v7017_v43, %v6979_v58  ;;  %v7234_v58 = vld [vmem:[#allocation24 + $0xb0] sm:$0xff] }
 0xaca   : > { %v7028_v20 = vmax.f32 %v7020_v49, 0.0  ;;  %v7235_v49 = vld [vmem:[#allocation24 + $0xb8] sm:$0xff] }
 0xacb   : > { %v6983_v19 = vpop.f32.mrb[74].mxu1  ;;  %v7029_v42 = vmax.f32 %v7021_v53, 0.0  ;;  %v7342_v53 = vld [vmem:[#allocation24 + $0x1b0] sm:$0xff] }
 0xacc   : > { %v7022_v31 = vadd.f32 %v7013_v18, %v6983_v19  ;;  %v6985_v52 = vpop.f32.mrb[75].mxu1  ;;  %v7343_v19 = vld [vmem:[#allocation24 + $0x1b8] sm:$0xff] }
 0xacd   : > { %v7023_v38 = vadd.f32 %v7017_v43, %v6985_v52 }
 0xace   : > { %v7030_v28 = vmax.f32 %v7022_v31, 0.0  ;;  %v12101_v31 = vpack.c.bf16 %v7217_v46, %v7216_v21  ;;  %v7226_v21 = vld [vmem:[#allocation24 + $0x70] sm:$0xff] }
 0xacf   : > { %v7031_v63 = vmax.f32 %v7023_v38, 0.0  ;;  %v6989_v37 = vpop.f32.mrb[76].mxu1  ;;  %v7218_v38 = vld [vmem:[#allocation24 + $0x30] sm:$0xff] }
 0xad0   : > { %v12077_v39 = vpack.c.bf16 %v7030_v28, %v7028_v20  ;;  %v6991_v22 = vpop.f32.mrb[77].mxu1  ;;  %v7024_v61 = vadd.f32 %v7013_v18, %v6989_v37  ;;  %v7219_v20 = vld [vmem:[#allocation24 + $0x38] sm:$0xff]  ;;  %v12103_v28 = vpack.c.bf16 %v7235_v49, %v7234_v58  ;;  %v13526_v49 = vmov 0.0|0.0  }
 0xad1   : > { %v12075_v40 = vpack.c.bf16 %v7031_v63, %v7029_v42  ;;  %v7025_v27 = vadd.f32 %v7017_v43, %v6991_v22  ;;  %v12135_v42 = vpack.c.bf16 %v7343_v19, %v7342_v53  ;;  %v7326_v63 = vld [vmem:[#allocation24 + $0x130] sm:$0xff]  ;;  %v7327_v37 = vld [vmem:[#allocation24 + $0x138] sm:$0xff]  ;;  %v7237_v22 = vld [vmem:[#allocation24 + $0xc8] sm:$0xff] }
 0xad2   : > { %v7032_v55 = vmax.f32 %v7024_v61, 0.0  ;;  %v7345_v61 = vld [vmem:[#allocation24 + $0x1c8] sm:$0xff] }
 0xad3   : > { %v6995_v44 = vpop.f32.mrb[78].mxu1  ;;  %12076 = vmatprep.subr.bf16.mxu0 %v12075_v40  ;;  %12084 = vmatprep.subr.bf16.mxu1 %v12075_v40  ;;  %v7033_v50 = vmax.f32 %v7025_v27, 0.0  ;;  %v7344_v40 = vld [vmem:[#allocation24 + $0x1c0] sm:$0xff]  ;;  %v12105_v27 = vpack.c.bf16 %v7219_v20, %v7218_v38  ;;  %v7431_v19 = vld [vmem:[%s16749_s16 + $0x8] sm:$0xff] }
 0xad4   : > { %v7026_v5 = vadd.f32 %v7013_v18, %v6995_v44  ;;  %v6997_v11 = vpop.f32.mrb[79].mxu1  ;;  %12078 = vmatpush1.bf16.msra.mxu0 %v12077_v39  ;;  %12086 = vmatpush1.bf16.msra.mxu1 %v12077_v39  ;;  %v12131_v18 = vpack.c.bf16 %v7341_v45, %v7340_v0  ;;  %v7236_v39 = vld [vmem:[#allocation24 + $0xc0] sm:$0xff]  ;;  %v12137_v44 = vpack.c.bf16 %v7327_v37, %v7326_v63  ;;  %v7243_v0 = vld [vmem:[#allocation24 + $0xf8] sm:$0xff] }
 0xad5   : > { %v7027_v3 = vadd.f32 %v7017_v43, %v6997_v11  ;;  %v7325_v43 = vld [vmem:[#allocation24 + $0x128] sm:$0xff]  ;;  %v12139_v25 = vpack.c.bf16 %v7345_v61, %v7344_v40  ;;  %v12119_v45 = vpack.c.bf16 %v7243_v0, %v7242_v15  ;;  %v7432_v37 = vld [vmem:[%s16749_s16 + $0x10] sm:$0xff] }
 0xad6   : > { %v7034_v29 = vmax.f32 %v7026_v5, 0.0  ;;  %v12133_v52 = vpack.c.bf16 %v7325_v43, %v7324_v56  ;;  %v7220_v5 = vld [vmem:[#allocation24 + $0x40] sm:$0xff]  ;;  %v7221_v11 = vld [vmem:[#allocation24 + $0x48] sm:$0xff]  ;;  %v7335_v56 = vld [vmem:[#allocation24 + $0x178] sm:$0xff] }
 0xad7   : > { %v7035_v8 = vmax.f32 %v7027_v3, 0.0  ;;  %v12107_v3 = vpack.c.bf16 %v7237_v22, %v7236_v39  ;;  %v7430_v53 = vld [vmem:[%s16748_s18] sm:$0xff]  ;;  %v7433_v39 = vld [vmem:[%s16749_s16 + $0x18] sm:$0xff]  ;;  %v7435_v61 = vld [vmem:[%s16749_s16 + $0x28] sm:$0xff]  ;;  %s664_s18 = sand.u32 1, %s16750_s20  }
 0xad8   : > { %v12081_v13 = vpack.c.bf16 %v7034_v29, %v7032_v55  ;;  %v7328_v55 = vld [vmem:[#allocation24 + $0x140] sm:$0xff]  ;;  %v7329_v29 = vld [vmem:[#allocation24 + $0x148] sm:$0xff]  ;;  %v12156_v63 = vpack.c.bf16 %v7431_v19, %v7430_v53  ;;  %v12159_v22 = vpack.c.bf16 %v7433_v39, %v7432_v37  ;;  %v9181_v37 = vld [vmem:[%s16749_s16 + $0x110] sm:$0xff]  ;;  %s665_s19 = scalar_lea.vmem [#allocation27], %s664_s18  ;;  %s8870_s2 = scalar_lea.sflag [#allocation8], %s664_s18 }
 0xad9   : > { %v12079_v36 = vpack.c.bf16 %v7035_v8, %v7033_v50  ;;  %v7347_v50 = vld [vmem:[#allocation24 + $0x1d8] sm:$0xff]  ;;  %v12109_v8 = vpack.c.bf16 %v7221_v11, %v7220_v5  ;;  %v7434_v40 = vld [vmem:[%s16749_s16 + $0x20] sm:$0xff]  ;;  %v9168_v15 = vld [vmem:[%s16749_s16 + $0xa8] sm:$0xff]  ;;  %s8882_s4 = sshll.u32 %s665_s19, 4  ;;  %s16489_s4 = int_to_ptr.vmem [resolvable:$true] %s8882_s4 }
 0xada   : > { %v7437_v5 = vld [vmem:[%s16749_s16 + $0x38] sm:$0xff]  ;;  %v9176_v53 = vld [vmem:[%s16749_s16 + $0xe8] sm:$0xff]  ;;  %s13414_s20 = scalar_lea.vmem %s16489_s4, 16  ;;  %p13421_p12 = scmp.lt.s32.totalorder %s16489_s4, %s13419_s25 }
 0xadb   : > { %12080 = vmatprep.subr.bf16.mxu0 %v12079_v36  ;;  %12088 = vmatprep.subr.bf16.mxu1 %v12079_v36  ;;  %v12111_v36 = vpack.c.bf16 %v7239_v4, %v7238_v54  ;;  %v7441_v54 = vld [vmem:[%s16749_s16 + $0x58] sm:$0xff]  ;;  %p13415_p0 = scmp.ne.s32.totalorder %s16489_s4, %s13414_s20  ;;  %p13422_p10 = scmp.lt.s32.totalorder %s13420_s30, %s13414_s20 }
 0xadc   : > { %12082 = vmatpush1.bf16.msra.mxu0 %v12081_v13  ;;  %12090 = vmatpush1.bf16.msra.mxu1 %v12081_v13  ;;  %v12141_v13 = vpack.c.bf16 %v7329_v29, %v7328_v55  ;;  %v7440_v29 = vld [vmem:[%s16749_s16 + $0x50] sm:$0xff]  ;;  %v9182_v39 = vld [vmem:[%s16749_s16 + $0x118] sm:$0xff] }
 0xadd   : > { %12092 = vmatprep.subr.bf16.mxu0 %v12091_v14  ;;  %12124 = vmatprep.subr.bf16.mxu1 %v12123_v12  ;;  %v12143_v14 = vpack.c.bf16 %v7347_v50, %v7346_v10  ;;  %v7330_v12 = vld [vmem:[#allocation24 + $0x150] sm:$0xff]  ;;  %v12171_v4 = vpack.c.bf16 %v7441_v54, %v7440_v29  ;;  %v7442_v10 = vld [vmem:[%s16749_s16 + $0x60] sm:$0xff]  ;;  %v9190_v54 = vld [vmem:[%s16749_s16 + $0x158] sm:$0xff]  ;;  %p13416_p5 = pnand %p13415_p0, %p16753_p6  ;;  %p13423_p2 = por %p13422_p10, %p13421_p12 }
 0xade   : > { %v7443_v50 = vld [vmem:[%s16749_s16 + $0x68] sm:$0xff]  ;;  %v9189_v29 = vld [vmem:[%s16749_s16 + $0x150] sm:$0xff] }
 0xadf   : > { %9159 = vmatmul.mubr.msk.f32.vlgmr.msra.gmra.mrb[64].mxu0 %vm7038_vm9, %v7036_v17  ;;  %9161 = vmatmul.mubr.msk.f32.vlgmr.msra.gmra.mrb[80].mxu1 %vm7038_vm9, %v7123_v62  ;;  %v12145_v17 = vpack.c.bf16 %v7331_v23, %v7330_v12  ;;  %v7224_v62 = vld [vmem:[#allocation24 + $0x60] sm:$0xff]  ;;  %v7444_v23 = vld [vmem:[%s16749_s16 + $0x70] sm:$0xff]  ;;  %p13417_p9 = pneg %p13416_p5 }
 0xae0   : > { %12094 = vmatpush3.bf16.msra.mxu0 %v12093_v34  ;;  %12126 = vmatpush3.bf16.msra.mxu1 %v12125_v59  ;;  %v12115_v34 = vpack.c.bf16 %v7241_v26, %v7240_v35  ;;  %v12147_v59 = vpack.c.bf16 %v7349_v1, %v7348_v51  ;;  %v7445_v35 = vld [vmem:[%s16749_s16 + $0x78] sm:$0xff] }
 0xae1   : > { %12096 = vmatprep.subr.bf16.mxu0 %v12095_v30  ;;  %12128 = vmatprep.subr.bf16.mxu1 %v12127_v33  ;;  %v7333_v30 = vld [vmem:[#allocation24 + $0x168] sm:$0xff]  ;;  %v12117_v33 = vpack.c.bf16 %v7225_v2, %v7224_v62  ;;  %v12177_v26 = vpack.c.bf16 %v7445_v35, %v7444_v23  ;;  %v9197_v35 = vld [vmem:[%s16749_s16 + $0x190] sm:$0xff]  ;;  %p13424_p3 = pnand %p13423_p2, %p13417_p9 }
 0xae2   : > { %7115 = vmatprep.mubr.f32.mxu0 %v16728_v32  ;;  %7201 = vmatprep.mubr.f32.mxu1 %v16728_v32  ;;  %v12149_v24 = vpack.c.bf16 %v7333_v30, %v7332_v6 }
 0xae3   : > { %9160 = vmatmul.mubr.msk.f32.gmra.mrb[66].mxu0 %vm7038_vm9, %v7037_v60  ;;  %9162 = vmatmul.mubr.msk.f32.gmra.mrb[82].mxu1 %vm7038_vm9, %v7124_v7  ;;  %v9167_v7 = vld [vmem:[%s16749_s16 + $0xa0] sm:$0xff] }
 0xae4   : > { %12098 = vmatpush3.bf16.msra.mxu0 %v12097_v48  ;;  %12130 = vmatpush3.bf16.msra.mxu1 %v12129_v57  ;;  %v7350_v48 = vld [vmem:[#allocation24 + $0x1f0] sm:$0xff]  ;;  %v7351_v57 = vld [vmem:[#allocation24 + $0x1f8] sm:$0xff]  ;;  %v12186_v0 = vpack.c.bf16 %v9168_v15, %v9167_v7 }
 0xae5   : > { %12100 = vmatprep.subr.bf16.mxu0 %v12099_v47  ;;  %12132 = vmatprep.subr.bf16.mxu1 %v12131_v18  ;;  %v12151_v46 = vpack.c.bf16 %v7351_v57, %v7350_v48  ;;  %v7227_v47 = vld [vmem:[#allocation24 + $0x78] sm:$0xff]  ;;  %v7334_v18 = vld [vmem:[#allocation24 + $0x170] sm:$0xff] }
 0xae6   : > { %v12121_v43 = vpack.c.bf16 %v7227_v47, %v7226_v21  ;;  %v12153_v58 = vpack.c.bf16 %v7335_v56, %v7334_v18  ;;  %v9170_v48 = vld [vmem:[%s16749_s16 + $0xb8] sm:$0xff]  ;;  %v9171_v21 = vld [vmem:[%s16749_s16 + $0xc0] sm:$0xff]  ;;  %v9173_v18 = vld [vmem:[%s16749_s16 + $0xd0] sm:$0xff] }
 0xae7   : > { %v9174_v56 = vld [vmem:[%s16749_s16 + $0xd8] sm:$0xff] }
 0xae8   : > { %12102 = vmatpush3.bf16.msra.mxu0 %v12101_v31  ;;  %12134 = vmatpush3.bf16.msra.mxu1 %v12133_v52 }
 0xae9   : > { %12104 = vmatprep.subr.bf16.mxu0 %v12103_v28  ;;  %12136 = vmatprep.subr.bf16.mxu1 %v12135_v42 }
 0xaec   : > { %12106 = vmatpush3.bf16.msra.mxu0 %v12105_v27  ;;  %12138 = vmatpush3.bf16.msra.mxu1 %v12137_v44  ;;  %v12162_v27 = vpack.c.bf16 %v7435_v61, %v7434_v40  ;;  %v7436_v44 = vld [vmem:[%s16749_s16 + $0x30] sm:$0xff]  ;;  %v9183_v40 = vld [vmem:[%s16749_s16 + $0x120] sm:$0xff]  ;;  %v9184_v61 = vld [vmem:[%s16749_s16 + $0x128] sm:$0xff] }
 0xaed   : > { %12108 = vmatprep.subr.bf16.mxu0 %v12107_v3  ;;  %12140 = vmatprep.subr.bf16.mxu1 %v12139_v25  ;;  %v12165_v11 = vpack.c.bf16 %v7437_v5, %v7436_v44  ;;  %v7438_v3 = vld [vmem:[%s16749_s16 + $0x40] sm:$0xff]  ;;  %v7439_v25 = vld [vmem:[%s16749_s16 + $0x48] sm:$0xff]  ;;  %v9185_v44 = vld [vmem:[%s16749_s16 + $0x130] sm:$0xff] }
 0xaee   : > { %v12168_v55 = vpack.c.bf16 %v7439_v25, %v7438_v3  ;;  %v9186_v5 = vld [vmem:[%s16749_s16 + $0x138] sm:$0xff]  ;;  %v9187_v3 = vld [vmem:[%s16749_s16 + $0x140] sm:$0xff]  ;;  %v9188_v25 = vld [vmem:[%s16749_s16 + $0x148] sm:$0xff] }
 0xaf0   : > { %12110 = vmatpush3.bf16.msra.mxu0 %v12109_v8  ;;  %12142 = vmatpush3.bf16.msra.mxu1 %v12141_v13  ;;  %v12174_v8 = vpack.c.bf16 %v7443_v50, %v7442_v10  ;;  %v9191_v10 = vld [vmem:[%s16749_s16 + $0x160] sm:$0xff]  ;;  %v9192_v50 = vld [vmem:[%s16749_s16 + $0x168] sm:$0xff] }
 0xaf1   : > { %12112 = vmatprep.subr.bf16.mxu0 %v12111_v36  ;;  %12144 = vmatprep.subr.bf16.mxu1 %v12143_v14 }
 0xaf4   : > { %12114 = vmatpush3.bf16.msra.mxu0 %v12113_v41  ;;  %12146 = vmatpush3.bf16.msra.mxu1 %v12145_v17  ;;  %v9163_v41 = vld [vmem:[%s16749_s16 + $0x80] sm:$0xff]  ;;  %v9164_v17 = vld [vmem:[%s16749_s16 + $0x88] sm:$0xff] }
 0xaf5   : > { %12116 = vmatprep.subr.bf16.mxu0 %v12115_v34  ;;  %12148 = vmatprep.subr.bf16.mxu1 %v12147_v59  ;;  %v12180_v6 = vpack.c.bf16 %v9164_v17, %v9163_v41  ;;  %v9200_v41 = vld [vmem:[%s16749_s16 + $0x1a8] sm:$0xff] }
 0xaf8   : > { %12118 = vmatpush3.bf16.msra.mxu0 %v12117_v33  ;;  %12150 = vmatpush3.bf16.msra.mxu1 %v12149_v24  ;;  %v9165_v33 = vld [vmem:[%s16749_s16 + $0x90] sm:$0xff]  ;;  %v9166_v24 = vld [vmem:[%s16749_s16 + $0x98] sm:$0xff] }
 0xaf9   : > { %12120 = vmatprep.subr.bf16.mxu0 %v12119_v45  ;;  %12152 = vmatprep.subr.bf16.mxu1 %v12151_v46  ;;  %v12183_v60 = vpack.c.bf16 %v9166_v24, %v9165_v33  ;;  %v9169_v45 = vld [vmem:[%s16749_s16 + $0xb0] sm:$0xff]  ;;  %v9172_v46 = vld [vmem:[%s16749_s16 + $0xc8] sm:$0xff] }
 0xafa   : > { %v12189_v57 = vpack.c.bf16 %v9170_v48, %v9169_v45  ;;  %v12192_v47 = vpack.c.bf16 %v9172_v46, %v9171_v21  ;;  %v9205_v24 = vld [vmem:[%s16749_s16 + $0x1d0] sm:$0xff]  ;;  %v9208_v21 = vld [vmem:[%s16749_s16 + $0x1e8] sm:$0xff] }
 0xafc   : > { %12122 = vmatpush3.bf16.msra.mxu0 %v12121_v43  ;;  %12154 = vmatpush3.bf16.msra.mxu1 %v12153_v58  ;;  %v12195_v43 = vpack.c.bf16 %v9174_v56, %v9173_v18  ;;  %v9175_v58 = vld [vmem:[%s16749_s16 + $0xe0] sm:$0xff] }
 0xafd   : > { %12155 = vmatprep.subr.bf16.mxu0 %v13526_v49  ;;  %v12198_v19 = vpack.c.bf16 %v9176_v53, %v9175_v58  ;;  %v9210_v58 = vld [vmem:[%s16749_s16 + $0x1f8] sm:$0xff] }
 0xbb2   : > { %v7111_v31 = vpop.f32.mrb[64].mxu0  ;;  %v7197_v52 = vpop.f32.mrb[80].mxu1 }
 0xbb3   : > { %v7208_v38 = vmax.f32 %v7111_v31, %v7197_v52  ;;  %v7113_v20 = vpop.f32.mrb[65].mxu0  ;;  %v7199_v28 = vpop.f32.mrb[81].mxu1  ;;  %v9177_v31 = vld [vmem:[%s16749_s16 + $0xf0] sm:$0xff]  ;;  %v9178_v52 = vld [vmem:[%s16749_s16 + $0xf8] sm:$0xff] }
 0xbb4   : > { %v7209_v42 = vmax.f32 %v7113_v20, %v7199_v28  ;;  %v9179_v20 = vld [vmem:[%s16749_s16 + $0x100] sm:$0xff]  ;;  %v9180_v28 = vld [vmem:[%s16749_s16 + $0x108] sm:$0xff] }
 0xbb6   : > { %7308 = vmatprep.mubr.f32.mxu0 %v7209_v42  ;;  %7416 = vmatprep.mubr.f32.mxu1 %v7209_v42  ;;  %v7117_v13 = vpop.f32.mrb[66].mxu0  ;;  %v7203_v16 = vpop.f32.mrb[82].mxu1  ;;  %v12204_v42 = vpack.c.bf16 %v9180_v28, %v9179_v20  ;;  %v9213_v20 = vld [vmem:[%s16749_s16 + $0x210] sm:$0xff]  ;;  %v9214_v28 = vld [vmem:[%s16749_s16 + $0x218] sm:$0xff] }
 0xbb7   : > { %7309 = vmatmul.mubr.f32.vlgmr.msra.gmra.mrb[68].mxu0 %v7208_v38  ;;  %7417 = vmatmul.mubr.f32.vlgmr.msra.gmra.mrb[84].mxu1 %v7208_v38  ;;  %v7119_v9 = vpop.f32.mrb[67].mxu0  ;;  %v7210_v36 = vmax.f32 %v7117_v13, %v7203_v16  ;;  %v7205_v14 = vpop.f32.mrb[83].mxu1  ;;  %v12201_v38 = vpack.c.bf16 %v9178_v52, %v9177_v31  ;;  %v9193_v13 = vld [vmem:[%s16749_s16 + $0x170] sm:$0xff]  ;;  %v9194_v16 = vld [vmem:[%s16749_s16 + $0x178] sm:$0xff]  ;;  %v9212_v31 = vld [vmem:[%s16749_s16 + $0x208] sm:$0xff] }
 0xbb8   : > { %12157 = vmatpush3.bf16.msra.mxu0 %v12156_v63  ;;  %v7211_v12 = vmax.f32 %v7119_v9, %v7205_v14  ;;  %v12225_v9 = vpack.c.bf16 %v9194_v16, %v9193_v13  ;;  %v9196_v14 = vld [vmem:[%s16749_s16 + $0x188] sm:$0xff] }
 0xbb9   : > { %12158 = vmatprep.subr.bf16.mxu0 %v13526_v49  ;;  %v9228_v13 = vld [vmem:[%s16749_s16 + $0x288] sm:$0xff] }
 0xbba   : > { %7313 = vmatprep.mubr.f32.mxu0 %v7211_v12  ;;  %7421 = vmatprep.mubr.f32.mxu1 %v7211_v12 }
 0xbbb   : > { %7314 = vmatmul.mubr.f32.gmra.mrb[70].mxu0 %v7210_v36  ;;  %7422 = vmatmul.mubr.f32.gmra.mrb[86].mxu1 %v7210_v36  ;;  %v9195_v36 = vld [vmem:[%s16749_s16 + $0x180] sm:$0xff] }
 0xbbc   : > { %12160 = vmatpush3.bf16.msra.mxu0 %v12159_v22  ;;  %9787 = vmatprep.mubr.msk.f32.mxu0 %vm13527_vm10, %v16728_v32  ;;  %v12207_v22 = vpack.c.bf16 %v9182_v39, %v9181_v37  ;;  %v12228_v12 = vpack.c.bf16 %v9196_v14, %v9195_v36  ;;  %v9216_v37 = vld [vmem:[%s16749_s16 + $0x228] sm:$0xff]  ;;  %v9229_v36 = vld [vmem:[%s16749_s16 + $0x290] sm:$0xff]  ;;  %v9230_v14 = vld [vmem:[%s16749_s16 + $0x298] sm:$0xff] }
 0xbbd   : > { %12161 = vmatprep.subr.bf16.mxu0 %v13526_v49 }
 0xbc0   : > { %12163 = vmatpush3.bf16.msra.mxu0 %v12162_v27  ;;  %v12210_v27 = vpack.c.bf16 %v9184_v61, %v9183_v40  ;;  %v9218_v40 = vld [vmem:[%s16749_s16 + $0x238] sm:$0xff] }
 0xbc1   : > { %12164 = vmatprep.subr.bf16.mxu0 %v13526_v49 }
 0xbc4   : > { %12166 = vmatpush3.bf16.msra.mxu0 %v12165_v11  ;;  %v12213_v11 = vpack.c.bf16 %v9186_v5, %v9185_v44  ;;  %v9220_v44 = vld [vmem:[%s16749_s16 + $0x248] sm:$0xff] }
 0xbc5   : > { %12167 = vmatprep.subr.bf16.mxu0 %v13526_v49 }
 0xbc8   : > { %12169 = vmatpush3.bf16.msra.mxu0 %v12168_v55  ;;  %v12216_v55 = vpack.c.bf16 %v9188_v25, %v9187_v3  ;;  %v9222_v3 = vld [vmem:[%s16749_s16 + $0x258] sm:$0xff] }
 0xbc9   : > { %12170 = vmatprep.subr.bf16.mxu0 %v13526_v49 }
 0xbcc   : > { %12172 = vmatpush3.bf16.msra.mxu0 %v12171_v4  ;;  %v12219_v4 = vpack.c.bf16 %v9190_v54, %v9189_v29  ;;  %v9224_v29 = vld [vmem:[%s16749_s16 + $0x268] sm:$0xff] }
 0xbcd   : > { %12173 = vmatprep.subr.bf16.mxu0 %v13526_v49 }
 0xbd0   : > { %12175 = vmatpush3.bf16.msra.mxu0 %v12174_v8  ;;  %v12222_v8 = vpack.c.bf16 %v9192_v50, %v9191_v10  ;;  %v9226_v10 = vld [vmem:[%s16749_s16 + $0x278] sm:$0xff] }
 0xbd1   : > { %12176 = vmatprep.subr.bf16.mxu0 %v13526_v49 }
 0xbd4   : > { %12178 = vmatpush3.bf16.msra.mxu0 %v12177_v26  ;;  %v9198_v26 = vld [vmem:[%s16749_s16 + $0x198] sm:$0xff] }
 0xbd5   : > { %12179 = vmatprep.subr.bf16.mxu0 %v13526_v49 }
 0xc8a   : > { %v9439_v51 = vpop.f32.mrb[68].mxu0  ;;  %v9477_v1 = vpop.f32.mrb[84].mxu1 }
 0xc8b   : > { %v9440_v62 = vpop.f32.mrb[69].mxu0  ;;  %v9478_v34 = vpop.f32.mrb[85].mxu1 }
 0xc8c   : > { %v9441_v59 = vadd.f32 %v9440_v62, %v9439_v51  ;;  %v9479_v2 = vadd.f32 %v9478_v34, %v9477_v1  ;;  %v12231_v51 = vpack.c.bf16 %v9198_v26, %v9197_v35  ;;  %v9199_v1 = vld [vmem:[%s16749_s16 + $0x1a0] sm:$0xff]  ;;  %v9201_v62 = vld [vmem:[%s16749_s16 + $0x1b0] sm:$0xff]  ;;  %v9202_v34 = vld [vmem:[%s16749_s16 + $0x1b8] sm:$0xff] }
 0xc8d   : > { %v12234_v17 = vpack.c.bf16 %v9200_v41, %v9199_v1  ;;  %v9232_v35 = vld [vmem:[%s16749_s16 + $0x2a8] sm:$0xff]  ;;  %v9234_v1 = vld [vmem:[%s16749_s16 + $0x2b8] sm:$0xff] }
 0xc8e   : > { %v15599_v30 = vmax.f32 %v9441_v59, %v9479_v2  ;;  %v12237_v59 = vpack.c.bf16 %v9202_v34, %v9201_v62  ;;  %v9203_v2 = vld [vmem:[%s16749_s16 + $0x1c0] sm:$0xff]  ;;  %v9442_v7 = vpop.f32.mrb[70].mxu0  ;;  %v9480_v15 = vpop.f32.mrb[86].mxu1  ;;  %v9236_v62 = vld [vmem:[%s16749_s16 + $0x2c8] sm:$0xff] }
 0xc8f   : > { %v9443_v45 = vpop.f32.mrb[71].mxu0  ;;  %v9481_v48 = vpop.f32.mrb[87].mxu1 }
 0xc90   : > { %9788 = vmatmul.mubr.f32.vlgmr.msra.gmra.mrb[72].mxu0 %v15599_v30  ;;  %v7535_v63 = vrot.slane %v15599_v30, 1  ;;  %v7625_v23 = vrot.slane %v15599_v30, 2  ;;  %v9444_v46 = vadd.f32 %v9443_v45, %v9442_v7  ;;  %v9241_v7 = vld [vmem:[%s16749_s16 + $0x2f0] sm:$0xff]  ;;  %v9243_v45 = vld [vmem:[%s16749_s16 + $0x300] sm:$0xff] }
 0xc91   : > { %12181 = vmatpush3.bf16.msra.mxu0 %v12180_v6  ;;  %9822 = vmatprep.mubr.msk.f32.mxu0 %vm13527_vm10, %v16728_v32  ;;  %v9204_v6 = vld [vmem:[%s16749_s16 + $0x1c8] sm:$0xff] }
 0xc92   : > { %12182 = vmatprep.subr.bf16.mxu0 %v13526_v49  ;;  %v12240_v33 = vpack.c.bf16 %v9204_v6, %v9203_v2  ;;  %v9238_v2 = vld [vmem:[%s16749_s16 + $0x2d8] sm:$0xff] }
 0xc95   : > { %12184 = vmatpush3.bf16.msra.mxu0 %v12183_v60  ;;  %v9206_v60 = vld [vmem:[%s16749_s16 + $0x1d8] sm:$0xff] }
 0xc96   : > { %12185 = vmatprep.subr.bf16.mxu0 %v13526_v49 }
 0xc99   : > { %12187 = vmatpush3.bf16.msra.mxu0 %v12186_v0  ;;  %v12243_v0 = vpack.c.bf16 %v9206_v60, %v9205_v24  ;;  %v9240_v24 = vld [vmem:[%s16749_s16 + $0x2e8] sm:$0xff] }
 0xc9a   : > { %12188 = vmatprep.subr.bf16.mxu0 %v13526_v49 }
 0xc9d   : > { %12190 = vmatpush3.bf16.msra.mxu0 %v12189_v57  ;;  %v9207_v57 = vld [vmem:[%s16749_s16 + $0x1e0] sm:$0xff] }
 0xc9e   : > { %12191 = vmatprep.subr.bf16.mxu0 %v13526_v49  ;;  %v12246_v56 = vpack.c.bf16 %v9208_v21, %v9207_v57  ;;  %v7895_v21 = vrot.slane %v15599_v30, 5 }
 0xca1   : > { %12193 = vmatpush3.bf16.msra.mxu0 %v12192_v47  ;;  %v9482_v47 = vadd.f32 %v9481_v48, %v9480_v15  ;;  %v9242_v15 = vld [vmem:[%s16749_s16 + $0x2f8] sm:$0xff]  ;;  %v9244_v48 = vld [vmem:[%s16749_s16 + $0x308] sm:$0xff] }
 0xca2   : > { %12194 = vmatprep.subr.bf16.mxu0 %v13526_v49  ;;  %v12300_v57 = vpack.c.bf16 %v9244_v48, %v9243_v45  ;;  %v9282_v45 = vld [vmem:[%s16749_s16 + $0x438] sm:$0xff] }
 0xca3   : > { %v15763_v18 = vmax.f32 %v9444_v46, %v9482_v47  ;;  %v9245_v46 = vld [vmem:[%s16749_s16 + $0x310] sm:$0xff]  ;;  %v9246_v47 = vld [vmem:[%s16749_s16 + $0x318] sm:$0xff] }
 0xca5   : > { %12196 = vmatpush3.bf16.msra.mxu0 %v12195_v43  ;;  %v9209_v43 = vld [vmem:[%s16749_s16 + $0x1f0] sm:$0xff] }
 0xca6   : > { %12197 = vmatprep.subr.bf16.mxu0 %v13526_v49  ;;  %v12249_v53 = vpack.c.bf16 %v9210_v58, %v9209_v43  ;;  %v9247_v43 = vld [vmem:[%s16749_s16 + $0x320] sm:$0xff]  ;;  %v9248_v58 = vld [vmem:[%s16749_s16 + $0x328] sm:$0xff] }
 0xca9   : > { %12199 = vmatpush3.bf16.msra.mxu0 %v12198_v19  ;;  %v9211_v19 = vld [vmem:[%s16749_s16 + $0x200] sm:$0xff] }
 0xcaa   : > { %12200 = vmatprep.subr.bf16.mxu0 %v13526_v49  ;;  %v12252_v52 = vpack.c.bf16 %v9212_v31, %v9211_v19  ;;  %v9249_v19 = vld [vmem:[%s16749_s16 + $0x330] sm:$0xff]  ;;  %v9250_v31 = vld [vmem:[%s16749_s16 + $0x338] sm:$0xff] }
 0xcad   : > { %12202 = vmatpush3.bf16.msra.mxu0 %v12201_v38  ;;  %v7715_v38 = vrot.slane %v15599_v30, 3 }
 0xcae   : > { %12203 = vmatprep.subr.bf16.mxu0 %v13526_v49 }
 0xcb0   : > { %9823 = vmatmul.mubr.f32.vlgmr.msra.gmra.mrb[72].mxu0 %v7535_v63  ;;  %v9215_v63 = vld [vmem:[%s16749_s16 + $0x220] sm:$0xff] }
 0xcb1   : > { %12205 = vmatpush3.bf16.msra.mxu0 %v12204_v42  ;;  %9857 = vmatprep.mubr.msk.f32.mxu0 %vm13527_vm10, %v16728_v32  ;;  %v12255_v42 = vpack.c.bf16 %v9214_v28, %v9213_v20  ;;  %v12258_v39 = vpack.c.bf16 %v9216_v37, %v9215_v63  ;;  %v9252_v20 = vld [vmem:[%s16749_s16 + $0x348] sm:$0xff]  ;;  %v9254_v63 = vld [vmem:[%s16749_s16 + $0x358] sm:$0xff] }
 0xcb2   : > { %12206 = vmatprep.subr.bf16.mxu0 %v13526_v49 }
 0xcb5   : > { %12208 = vmatpush3.bf16.msra.mxu0 %v12207_v22  ;;  %v9217_v22 = vld [vmem:[%s16749_s16 + $0x230] sm:$0xff] }
 0xcb6   : > { %12209 = vmatprep.subr.bf16.mxu0 %v13526_v49  ;;  %v12261_v61 = vpack.c.bf16 %v9218_v40, %v9217_v22  ;;  %v9256_v22 = vld [vmem:[%s16749_s16 + $0x368] sm:$0xff] }
 0xcb9   : > { %12211 = vmatpush3.bf16.msra.mxu0 %v12210_v27  ;;  %v9219_v27 = vld [vmem:[%s16749_s16 + $0x240] sm:$0xff] }
 0xcba   : > { %12212 = vmatprep.subr.bf16.mxu0 %v13526_v49  ;;  %v12264_v5 = vpack.c.bf16 %v9220_v44, %v9219_v27  ;;  %v9258_v27 = vld [vmem:[%s16749_s16 + $0x378] sm:$0xff] }
 0xcbd   : > { %12214 = vmatpush3.bf16.msra.mxu0 %v12213_v11  ;;  %v9221_v11 = vld [vmem:[%s16749_s16 + $0x250] sm:$0xff] }
 0xcbe   : > { %12215 = vmatprep.subr.bf16.mxu0 %v13526_v49  ;;  %v12267_v25 = vpack.c.bf16 %v9222_v3, %v9221_v11  ;;  %v9260_v11 = vld [vmem:[%s16749_s16 + $0x388] sm:$0xff] }
 0xcc1   : > { %12217 = vmatpush3.bf16.msra.mxu0 %v12216_v55  ;;  %v9223_v55 = vld [vmem:[%s16749_s16 + $0x260] sm:$0xff] }
 0xcc2   : > { %12218 = vmatprep.subr.bf16.mxu0 %v13526_v49  ;;  %v12270_v54 = vpack.c.bf16 %v9224_v29, %v9223_v55  ;;  %v9261_v55 = vld [vmem:[%s16749_s16 + $0x390] sm:$0xff]  ;;  %v9262_v29 = vld [vmem:[%s16749_s16 + $0x398] sm:$0xff] }
 0xcc5   : > { %12220 = vmatpush3.bf16.msra.mxu0 %v12219_v4  ;;  %v9225_v4 = vld [vmem:[%s16749_s16 + $0x270] sm:$0xff] }
 0xcc6   : > { %12221 = vmatprep.subr.bf16.mxu0 %v13526_v49  ;;  %v12273_v50 = vpack.c.bf16 %v9226_v10, %v9225_v4  ;;  %v9263_v4 = vld [vmem:[%s16749_s16 + $0x3a0] sm:$0xff]  ;;  %v9264_v10 = vld [vmem:[%s16749_s16 + $0x3a8] sm:$0xff] }
 0xcc9   : > { %12223 = vmatpush3.bf16.msra.mxu0 %v12222_v8  ;;  %v9227_v8 = vld [vmem:[%s16749_s16 + $0x280] sm:$0xff] }
 0xcca   : > { %12224 = vmatprep.subr.bf16.mxu0 %v13526_v49  ;;  %v12276_v16 = vpack.c.bf16 %v9228_v13, %v9227_v8  ;;  %v9265_v8 = vld [vmem:[%s16749_s16 + $0x3b0] sm:$0xff]  ;;  %v9266_v13 = vld [vmem:[%s16749_s16 + $0x3b8] sm:$0xff] }
 0xccd   : > { %12226 = vmatpush3.bf16.msra.mxu0 %v12225_v9  ;;  %v7805_v9 = vrot.slane %v15599_v30, 4 }
 0xcce   : > { %12227 = vmatprep.subr.bf16.mxu0 %v13526_v49 }
 0xcd0   : > { %9858 = vmatmul.mubr.f32.vlgmr.msra.gmra.mrb[72].mxu0 %v7625_v23  ;;  %v9231_v23 = vld [vmem:[%s16749_s16 + $0x2a0] sm:$0xff] }
 0xcd1   : > { %12229 = vmatpush3.bf16.msra.mxu0 %v12228_v12  ;;  %9892 = vmatprep.mubr.msk.f32.mxu0 %vm13527_vm10, %v16728_v32  ;;  %v12279_v12 = vpack.c.bf16 %v9230_v14, %v9229_v36  ;;  %v12282_v26 = vpack.c.bf16 %v9232_v35, %v9231_v23  ;;  %v9268_v36 = vld [vmem:[%s16749_s16 + $0x3c8] sm:$0xff]  ;;  %v9270_v23 = vld [vmem:[%s16749_s16 + $0x3d8] sm:$0xff] }
 0xcd2   : > { %12230 = vmatprep.subr.bf16.mxu0 %v13526_v49 }
 0xcd5   : > { %12232 = vmatpush3.bf16.msra.mxu0 %v12231_v51  ;;  %v9233_v51 = vld [vmem:[%s16749_s16 + $0x2b0] sm:$0xff] }
 0xcd6   : > { %12233 = vmatprep.subr.bf16.mxu0 %v13526_v49  ;;  %v12285_v41 = vpack.c.bf16 %v9234_v1, %v9233_v51  ;;  %v9272_v51 = vld [vmem:[%s16749_s16 + $0x3e8] sm:$0xff] }
 0xcd9   : > { %12235 = vmatpush3.bf16.msra.mxu0 %v12234_v17  ;;  %v9235_v17 = vld [vmem:[%s16749_s16 + $0x2c0] sm:$0xff] }
 0xcda   : > { %12236 = vmatprep.subr.bf16.mxu0 %v13526_v49  ;;  %v12288_v34 = vpack.c.bf16 %v9236_v62, %v9235_v17  ;;  %v9274_v17 = vld [vmem:[%s16749_s16 + $0x3f8] sm:$0xff] }
 0xcdd   : > { %12238 = vmatpush3.bf16.msra.mxu0 %v12237_v59  ;;  %v9237_v59 = vld [vmem:[%s16749_s16 + $0x2d0] sm:$0xff] }
 0xcde   : > { %12239 = vmatprep.subr.bf16.mxu0 %v13526_v49  ;;  %v12291_v6 = vpack.c.bf16 %v9238_v2, %v9237_v59  ;;  %v9276_v59 = vld [vmem:[%s16749_s16 + $0x408] sm:$0xff] }
 0xce1   : > { %12241 = vmatpush3.bf16.msra.mxu0 %v12240_v33  ;;  %v9239_v33 = vld [vmem:[%s16749_s16 + $0x2e0] sm:$0xff] }
 0xce2   : > { %12242 = vmatprep.subr.bf16.mxu0 %v13526_v49  ;;  %v12294_v60 = vpack.c.bf16 %v9240_v24, %v9239_v33  ;;  %v9277_v33 = vld [vmem:[%s16749_s16 + $0x410] sm:$0xff]  ;;  %v9278_v24 = vld [vmem:[%s16749_s16 + $0x418] sm:$0xff] }
 0xce5   : > { %12244 = vmatpush3.bf16.msra.mxu0 %v12243_v0  ;;  %v12297_v0 = vpack.c.bf16 %v9242_v15, %v9241_v7  ;;  %v9280_v7 = vld [vmem:[%s16749_s16 + $0x428] sm:$0xff] }
 0xce6   : > { %12245 = vmatprep.subr.bf16.mxu0 %v13526_v49 }
 0xce9   : > { %12247 = vmatpush3.bf16.msra.mxu0 %v12246_v56  ;;  %v12303_v56 = vpack.c.bf16 %v9246_v47, %v9245_v46  ;;  %v9285_v47 = vld [vmem:[%s16749_s16 + $0x450] sm:$0xff] }
 0xcea   : > { %12248 = vmatprep.subr.bf16.mxu0 %v13526_v49 }
 0xced   : > { %12250 = vmatpush3.bf16.msra.mxu0 %v12249_v53  ;;  %v12306_v53 = vpack.c.bf16 %v9248_v58, %v9247_v43  ;;  %v9287_v58 = vld [vmem:[%s16749_s16 + $0x460] sm:$0xff] }
 0xcee   : > { %12251 = vmatprep.subr.bf16.mxu0 %v13526_v49 }
 0xcf0   : > { %9893 = vmatmul.mubr.f32.vlgmr.msra.gmra.mrb[72].mxu0 %v7715_v38  ;;  %v9251_v38 = vld [vmem:[%s16749_s16 + $0x340] sm:$0xff] }
 0xcf1   : > { %12253 = vmatpush3.bf16.msra.mxu0 %v12252_v52  ;;  %9927 = vmatprep.mubr.msk.f32.mxu0 %vm13527_vm10, %v16728_v32  ;;  %v12309_v52 = vpack.c.bf16 %v9250_v31, %v9249_v19  ;;  %v12312_v28 = vpack.c.bf16 %v9252_v20, %v9251_v38  ;;  %v9289_v31 = vld [vmem:[%s16749_s16 + $0x470] sm:$0xff]  ;;  %v9291_v20 = vld [vmem:[%s16749_s16 + $0x480] sm:$0xff] }
 0xcf2   : > { %12254 = vmatprep.subr.bf16.mxu0 %v13526_v49 }
 0xcf5   : > { %12256 = vmatpush3.bf16.msra.mxu0 %v12255_v42  ;;  %v9253_v42 = vld [vmem:[%s16749_s16 + $0x350] sm:$0xff] }
 0xcf6   : > { %12257 = vmatprep.subr.bf16.mxu0 %v13526_v49  ;;  %v12315_v37 = vpack.c.bf16 %v9254_v63, %v9253_v42  ;;  %v9293_v63 = vld [vmem:[%s16749_s16 + $0x490] sm:$0xff] }
 0xcf9   : > { %12259 = vmatpush3.bf16.msra.mxu0 %v12258_v39  ;;  %v9255_v39 = vld [vmem:[%s16749_s16 + $0x360] sm:$0xff] }
 0xcfa   : > { %12260 = vmatprep.subr.bf16.mxu0 %v13526_v49  ;;  %v12318_v40 = vpack.c.bf16 %v9256_v22, %v9255_v39  ;;  %v9295_v22 = vld [vmem:[%s16749_s16 + $0x4a0] sm:$0xff] }
 0xcfd   : > { %12262 = vmatpush3.bf16.msra.mxu0 %v12261_v61  ;;  %v9257_v61 = vld [vmem:[%s16749_s16 + $0x370] sm:$0xff] }
 0xcfe   : > { %12263 = vmatprep.subr.bf16.mxu0 %v13526_v49  ;;  %v12321_v44 = vpack.c.bf16 %v9258_v27, %v9257_v61  ;;  %v9297_v27 = vld [vmem:[%s16749_s16 + $0x4b0] sm:$0xff] }
 0xd01   : > { %12265 = vmatpush3.bf16.msra.mxu0 %v12264_v5  ;;  %v9259_v5 = vld [vmem:[%s16749_s16 + $0x380] sm:$0xff] }
 0xd02   : > { %12266 = vmatprep.subr.bf16.mxu0 %v13526_v49  ;;  %v12324_v3 = vpack.c.bf16 %v9260_v11, %v9259_v5  ;;  %v9299_v11 = vld [vmem:[%s16749_s16 + $0x4c0] sm:$0xff] }
 0xd05   : > { %12268 = vmatpush3.bf16.msra.mxu0 %v12267_v25  ;;  %v7985_v25 = vrot.slane %v15599_v30, 6 }
 0xd06   : > { %12269 = vmatprep.subr.bf16.mxu0 %v13526_v49 }
 0xd09   : > { %12271 = vmatpush3.bf16.msra.mxu0 %v12270_v54  ;;  %v12327_v54 = vpack.c.bf16 %v9262_v29, %v9261_v55  ;;  %v9301_v55 = vld [vmem:[%s16749_s16 + $0x4d0] sm:$0xff]  ;;  %v9302_v29 = vld [vmem:[%s16749_s16 + $0x4d8] sm:$0xff] }
 0xd0a   : > { %12272 = vmatprep.subr.bf16.mxu0 %v13526_v49 }
 0xd0d   : > { %12274 = vmatpush3.bf16.msra.mxu0 %v12273_v50  ;;  %v12330_v50 = vpack.c.bf16 %v9264_v10, %v9263_v4  ;;  %v9303_v4 = vld [vmem:[%s16749_s16 + $0x4e0] sm:$0xff]  ;;  %v9304_v10 = vld [vmem:[%s16749_s16 + $0x4e8] sm:$0xff] }
 0xd0e   : > { %12275 = vmatprep.subr.bf16.mxu0 %v13526_v49 }
 0xd10   : > { %9928 = vmatmul.mubr.f32.vlgmr.msra.gmra.mrb[72].mxu0 %v7805_v9  ;;  %v9267_v9 = vld [vmem:[%s16749_s16 + $0x3c0] sm:$0xff] }
 0xd11   : > { %12277 = vmatpush3.bf16.msra.mxu0 %v12276_v16  ;;  %9962 = vmatprep.mubr.msk.f32.mxu0 %vm13527_vm10, %v16728_v32  ;;  %v12333_v16 = vpack.c.bf16 %v9266_v13, %v9265_v8  ;;  %v12336_v14 = vpack.c.bf16 %v9268_v36, %v9267_v9  ;;  %v9305_v8 = vld [vmem:[%s16749_s16 + $0x4f0] sm:$0xff]  ;;  %v9306_v13 = vld [vmem:[%s16749_s16 + $0x4f8] sm:$0xff]  ;;  %v9307_v9 = vld [vmem:[%s16749_s16 + $0x500] sm:$0xff] }
 0xd12   : > { %12278 = vmatprep.subr.bf16.mxu0 %v13526_v49  ;;  %v9308_v36 = vld [vmem:[%s16749_s16 + $0x508] sm:$0xff] }
 0xd15   : > { %12280 = vmatpush3.bf16.msra.mxu0 %v12279_v12  ;;  %v9269_v12 = vld [vmem:[%s16749_s16 + $0x3d0] sm:$0xff] }
 0xd16   : > { %12281 = vmatprep.subr.bf16.mxu0 %v13526_v49  ;;  %v12339_v35 = vpack.c.bf16 %v9270_v23, %v9269_v12  ;;  %v8254_v12 = vrot.slane %v15763_v18, 1  ;;  %v9309_v23 = vld [vmem:[%s16749_s16 + $0x510] sm:$0xff] }
 0xd19   : > { %12283 = vmatpush3.bf16.msra.mxu0 %v12282_v26  ;;  %v9271_v26 = vld [vmem:[%s16749_s16 + $0x3e0] sm:$0xff] }
 0xd1a   : > { %12284 = vmatprep.subr.bf16.mxu0 %v13526_v49  ;;  %v12342_v1 = vpack.c.bf16 %v9272_v51, %v9271_v26  ;;  %v9311_v51 = vld [vmem:[%s16749_s16 + $0x520] sm:$0xff] }
 0xd1d   : > { %12286 = vmatpush3.bf16.msra.mxu0 %v12285_v41  ;;  %v9273_v41 = vld [vmem:[%s16749_s16 + $0x3f0] sm:$0xff] }
 0xd1e   : > { %12287 = vmatprep.subr.bf16.mxu0 %v13526_v49  ;;  %v12345_v62 = vpack.c.bf16 %v9274_v17, %v9273_v41  ;;  %v9313_v17 = vld [vmem:[%s16749_s16 + $0x530] sm:$0xff] }
 0xd21   : > { %12289 = vmatpush3.bf16.msra.mxu0 %v12288_v34  ;;  %v9275_v34 = vld [vmem:[%s16749_s16 + $0x400] sm:$0xff] }
 0xd22   : > { %12290 = vmatprep.subr.bf16.mxu0 %v13526_v49  ;;  %v12348_v2 = vpack.c.bf16 %v9276_v59, %v9275_v34  ;;  %v9315_v59 = vld [vmem:[%s16749_s16 + $0x540] sm:$0xff] }
 0xd25   : > { %12292 = vmatpush3.bf16.msra.mxu0 %v12291_v6  ;;  %v8075_v6 = vrot.slane %v15599_v30, 7  ;;  %v9279_v30 = vld [vmem:[%s16749_s16 + $0x420] sm:$0xff] }
 0xd26   : > { %12293 = vmatprep.subr.bf16.mxu0 %v13526_v49  ;;  %v12354_v15 = vpack.c.bf16 %v9280_v7, %v9279_v30  ;;  %v9319_v30 = vld [vmem:[%s16749_s16 + $0x560] sm:$0xff]  ;;  %v9320_v7 = vld [vmem:[%s16749_s16 + $0x568] sm:$0xff] }
 0xd29   : > { %12295 = vmatpush3.bf16.msra.mxu0 %v12294_v60  ;;  %v12351_v60 = vpack.c.bf16 %v9278_v24, %v9277_v33  ;;  %v9317_v33 = vld [vmem:[%s16749_s16 + $0x550] sm:$0xff]  ;;  %v9318_v24 = vld [vmem:[%s16749_s16 + $0x558] sm:$0xff] }
 0xd2a   : > { %12296 = vmatprep.subr.bf16.mxu0 %v13526_v49 }
 0xd2d   : > { %12298 = vmatpush3.bf16.msra.mxu0 %v12297_v0  ;;  %v9281_v0 = vld [vmem:[%s16749_s16 + $0x430] sm:$0xff] }
 0xd2e   : > { %12299 = vmatprep.subr.bf16.mxu0 %v13526_v49  ;;  %v12357_v48 = vpack.c.bf16 %v9282_v45, %v9281_v0  ;;  %v9321_v0 = vld [vmem:[%s16749_s16 + $0x570] sm:$0xff]  ;;  %v9322_v45 = vld [vmem:[%s16749_s16 + $0x578] sm:$0xff] }
 0xd30   : > { %9963 = vmatmul.mubr.f32.vlgmr.msra.gmra.mrb[72].mxu0 %v7895_v21  ;;  %v9284_v21 = vld [vmem:[%s16749_s16 + $0x448] sm:$0xff] }
 0xd31   : > { %12301 = vmatpush3.bf16.msra.mxu0 %v12300_v57  ;;  %9997 = vmatprep.mubr.msk.f32.mxu0 %vm13527_vm10, %v16728_v32  ;;  %v9283_v57 = vld [vmem:[%s16749_s16 + $0x440] sm:$0xff] }
 0xd32   : > { %12302 = vmatprep.subr.bf16.mxu0 %v13526_v49  ;;  %v12360_v46 = vpack.c.bf16 %v9284_v21, %v9283_v57  ;;  %v9323_v57 = vld [vmem:[%s16749_s16 + $0x580] sm:$0xff]  ;;  %v9324_v21 = vld [vmem:[%s16749_s16 + $0x588] sm:$0xff] }
 0xd35   : > { %12304 = vmatpush3.bf16.msra.mxu0 %v12303_v56  ;;  %v9286_v56 = vld [vmem:[%s16749_s16 + $0x458] sm:$0xff] }
 0xd36   : > { %12305 = vmatprep.subr.bf16.mxu0 %v13526_v49  ;;  %v12363_v43 = vpack.c.bf16 %v9286_v56, %v9285_v47  ;;  %v8344_v47 = vrot.slane %v15763_v18, 2  ;;  %v9325_v56 = vld [vmem:[%s16749_s16 + $0x590] sm:$0xff] }
 0xd39   : > { %12307 = vmatpush3.bf16.msra.mxu0 %v12306_v53  ;;  %v9288_v53 = vld [vmem:[%s16749_s16 + $0x468] sm:$0xff] }
 0xd3a   : > { %12308 = vmatprep.subr.bf16.mxu0 %v13526_v49  ;;  %v12366_v19 = vpack.c.bf16 %v9288_v53, %v9287_v58  ;;  %v9327_v53 = vld [vmem:[%s16749_s16 + $0x5a0] sm:$0xff] }
 0xd3d   : > { %12310 = vmatpush3.bf16.msra.mxu0 %v12309_v52  ;;  %v9290_v52 = vld [vmem:[%s16749_s16 + $0x478] sm:$0xff] }
 0xd3e   : > { %12311 = vmatprep.subr.bf16.mxu0 %v13526_v49  ;;  %v12369_v38 = vpack.c.bf16 %v9290_v52, %v9289_v31  ;;  %v9329_v52 = vld [vmem:[%s16749_s16 + $0x5b0] sm:$0xff] }
 0xd41   : > { %12313 = vmatpush3.bf16.msra.mxu0 %v12312_v28  ;;  %v9292_v28 = vld [vmem:[%s16749_s16 + $0x488] sm:$0xff] }
 0xd42   : > { %12314 = vmatprep.subr.bf16.mxu0 %v13526_v49  ;;  %v12372_v42 = vpack.c.bf16 %v9292_v28, %v9291_v20  ;;  %v9331_v28 = vld [vmem:[%s16749_s16 + $0x5c0] sm:$0xff] }
 0xd45   : > { %12316 = vmatpush3.bf16.msra.mxu0 %v12315_v37  ;;  %v9294_v37 = vld [vmem:[%s16749_s16 + $0x498] sm:$0xff] }
 0xd46   : > { %12317 = vmatprep.subr.bf16.mxu0 %v13526_v49  ;;  %v12375_v39 = vpack.c.bf16 %v9294_v37, %v9293_v63  ;;  %v9333_v37 = vld [vmem:[%s16749_s16 + $0x5d0] sm:$0xff] }
 0xd49   : > { %12319 = vmatpush3.bf16.msra.mxu0 %v12318_v40  ;;  %v9296_v40 = vld [vmem:[%s16749_s16 + $0x4a8] sm:$0xff] }
 0xd4a   : > { %12320 = vmatprep.subr.bf16.mxu0 %v13526_v49  ;;  %v12378_v61 = vpack.c.bf16 %v9296_v40, %v9295_v22  ;;  %v9335_v40 = vld [vmem:[%s16749_s16 + $0x5e0] sm:$0xff] }
 0xd4d   : > { %12322 = vmatpush3.bf16.msra.mxu0 %v12321_v44  ;;  %v9298_v44 = vld [vmem:[%s16749_s16 + $0x4b8] sm:$0xff] }
 0xd4e   : > { %12323 = vmatprep.subr.bf16.mxu0 %v13526_v49  ;;  %v12381_v5 = vpack.c.bf16 %v9298_v44, %v9297_v27  ;;  %v9337_v44 = vld [vmem:[%s16749_s16 + $0x5f0] sm:$0xff] }
 0xd50   : > { %9998 = vmatmul.mubr.f32.vlgmr.msra.gmra.mrb[72].mxu0 %v7985_v25 }
 0xd51   : > { %12325 = vmatpush3.bf16.msra.mxu0 %v12324_v3  ;;  %10032 = vmatprep.mubr.msk.f32.mxu0 %vm13527_vm10, %v16728_v32  ;;  %v9300_v3 = vld [vmem:[%s16749_s16 + $0x4c8] sm:$0xff] }
 0xd52   : > { %12326 = vmatprep.subr.bf16.mxu0 %v13526_v49  ;;  %v12384_v25 = vpack.c.bf16 %v9300_v3, %v9299_v11  ;;  %v9339_v3 = vld [vmem:[%s16749_s16 + $0x600] sm:$0xff] }
 0xd55   : > { %12328 = vmatpush3.bf16.msra.mxu0 %v12327_v54  ;;  %v12387_v54 = vpack.c.bf16 %v9302_v29, %v9301_v55  ;;  %v8434_v29 = vrot.slane %v15763_v18, 3 }
 0xd56   : > { %12329 = vmatprep.subr.bf16.mxu0 %v13526_v49 }
 0xd59   : > { %12331 = vmatpush3.bf16.msra.mxu0 %v12330_v50  ;;  %v12390_v50 = vpack.c.bf16 %v9304_v10, %v9303_v4  ;;  %v9342_v4 = vld [vmem:[%s16749_s16 + $0x618] sm:$0xff] }
 0xd5a   : > { %12332 = vmatprep.subr.bf16.mxu0 %v13526_v49 }
 0xd5d   : > { %12334 = vmatpush3.bf16.msra.mxu0 %v12333_v16  ;;  %v12393_v16 = vpack.c.bf16 %v9306_v13, %v9305_v8  ;;  %v9344_v8 = vld [vmem:[%s16749_s16 + $0x628] sm:$0xff] }
 0xd5e   : > { %12335 = vmatprep.subr.bf16.mxu0 %v13526_v49 }
 0xd61   : > { %12337 = vmatpush3.bf16.msra.mxu0 %v12336_v14  ;;  %v12396_v14 = vpack.c.bf16 %v9308_v36, %v9307_v9  ;;  %v9346_v9 = vld [vmem:[%s16749_s16 + $0x638] sm:$0xff] }
 0xd62   : > { %12338 = vmatprep.subr.bf16.mxu0 %v13526_v49 }
 0xd65   : > { %12340 = vmatpush3.bf16.msra.mxu0 %v12339_v35  ;;  %v9310_v35 = vld [vmem:[%s16749_s16 + $0x518] sm:$0xff] }
 0xd66   : > { %12341 = vmatprep.subr.bf16.mxu0 %v13526_v49  ;;  %v12399_v26 = vpack.c.bf16 %v9310_v35, %v9309_v23  ;;  %v9349_v35 = vld [vmem:[%s16749_s16 + $0x650] sm:$0xff] }
 0xd69   : > { %12343 = vmatpush3.bf16.msra.mxu0 %v12342_v1  ;;  %v9312_v1 = vld [vmem:[%s16749_s16 + $0x528] sm:$0xff] }
 0xd6a   : > { %12344 = vmatprep.subr.bf16.mxu0 %v13526_v49  ;;  %v12402_v41 = vpack.c.bf16 %v9312_v1, %v9311_v51  ;;  %v9351_v1 = vld [vmem:[%s16749_s16 + $0x660] sm:$0xff] }
 0xd6d   : > { %12346 = vmatpush3.bf16.msra.mxu0 %v12345_v62  ;;  %v9314_v62 = vld [vmem:[%s16749_s16 + $0x538] sm:$0xff] }
 0xd6e   : > { %12347 = vmatprep.subr.bf16.mxu0 %v13526_v49  ;;  %v12405_v34 = vpack.c.bf16 %v9314_v62, %v9313_v17  ;;  %v9353_v62 = vld [vmem:[%s16749_s16 + $0x670] sm:$0xff] }
 0xd70   : > { %10033 = vmatmul.mubr.f32.vlgmr.msra.gmra.mrb[72].mxu0 %v8075_v6 }
 0xd71   : > { %12349 = vmatpush3.bf16.msra.mxu0 %v12348_v2  ;;  %10067 = vmatprep.mubr.msk.f32.mxu0 %vm13527_vm10, %v16728_v32  ;;  %v9316_v2 = vld [vmem:[%s16749_s16 + $0x548] sm:$0xff] }
 0xd72   : > { %12350 = vmatprep.subr.bf16.mxu0 %v13526_v49  ;;  %v12408_v6 = vpack.c.bf16 %v9316_v2, %v9315_v59  ;;  %v9355_v2 = vld [vmem:[%s16749_s16 + $0x680] sm:$0xff] }
 0xd75   : > { %12352 = vmatpush3.bf16.msra.mxu0 %v12351_v60  ;;  %v12411_v60 = vpack.c.bf16 %v9318_v24, %v9317_v33  ;;  %v8524_v24 = vrot.slane %v15763_v18, 4 }
 0xd76   : > { %12353 = vmatprep.subr.bf16.mxu0 %v13526_v49 }
 0xd79   : > { %12355 = vmatpush3.bf16.msra.mxu0 %v12354_v15  ;;  %v12414_v15 = vpack.c.bf16 %v9320_v7, %v9319_v30  ;;  %v9358_v30 = vld [vmem:[%s16749_s16 + $0x698] sm:$0xff] }
 0xd7a   : > { %12356 = vmatprep.subr.bf16.mxu0 %v13526_v49 }
 0xd7d   : > { %12358 = vmatpush3.bf16.msra.mxu0 %v12357_v48  ;;  %v12417_v48 = vpack.c.bf16 %v9322_v45, %v9321_v0  ;;  %v9360_v0 = vld [vmem:[%s16749_s16 + $0x6a8] sm:$0xff] }
 0xd7e   : > { %12359 = vmatprep.subr.bf16.mxu0 %v13526_v49 }
 0xd81   : > { %12361 = vmatpush3.bf16.msra.mxu0 %v12360_v46  ;;  %v12420_v46 = vpack.c.bf16 %v9324_v21, %v9323_v57  ;;  %v9362_v57 = vld [vmem:[%s16749_s16 + $0x6b8] sm:$0xff] }
 0xd82   : > { %12362 = vmatprep.subr.bf16.mxu0 %v13526_v49 }
 0xd85   : > { %12364 = vmatpush3.bf16.msra.mxu0 %v12363_v43  ;;  %v9326_v43 = vld [vmem:[%s16749_s16 + $0x598] sm:$0xff] }
 0xd86   : > { %12365 = vmatprep.subr.bf16.mxu0 %v13526_v49  ;;  %v12423_v58 = vpack.c.bf16 %v9326_v43, %v9325_v56  ;;  %v9365_v43 = vld [vmem:[%s16749_s16 + $0x6d0] sm:$0xff] }
 0xd89   : > { %12367 = vmatpush3.bf16.msra.mxu0 %v12366_v19  ;;  %v9328_v19 = vld [vmem:[%s16749_s16 + $0x5a8] sm:$0xff] }
 0xd8a   : > { %12368 = vmatprep.subr.bf16.mxu0 %v13526_v49  ;;  %v12426_v31 = vpack.c.bf16 %v9328_v19, %v9327_v53  ;;  %v9367_v19 = vld [vmem:[%s16749_s16 + $0x6e0] sm:$0xff] }
 0xd8d   : > { %12370 = vmatpush3.bf16.msra.mxu0 %v12369_v38  ;;  %v9330_v38 = vld [vmem:[%s16749_s16 + $0x5b8] sm:$0xff] }
 0xd8e   : > { %12371 = vmatprep.subr.bf16.mxu0 %v13526_v49  ;;  %v12429_v20 = vpack.c.bf16 %v9330_v38, %v9329_v52  ;;  %v9369_v38 = vld [vmem:[%s16749_s16 + $0x6f0] sm:$0xff] }
 0xd90   : > { %10068 = vmatmul.mubr.f32.vlgmr.msra.gmra.mrb[72].mxu0 %v15763_v18 }
 0xd91   : > { %12373 = vmatpush3.bf16.msra.mxu0 %v12372_v42  ;;  %10102 = vmatprep.mubr.msk.f32.mxu0 %vm13527_vm10, %v16728_v32  ;;  %v9332_v42 = vld [vmem:[%s16749_s16 + $0x5c8] sm:$0xff] }
 0xd92   : > { %12374 = vmatprep.subr.bf16.mxu0 %v13526_v49  ;;  %v12432_v63 = vpack.c.bf16 %v9332_v42, %v9331_v28  ;;  %v9371_v42 = vld [vmem:[%s16749_s16 + $0x700] sm:$0xff] }
 0xd95   : > { %12376 = vmatpush3.bf16.msra.mxu0 %v12375_v39  ;;  %v9334_v39 = vld [vmem:[%s16749_s16 + $0x5d8] sm:$0xff] }
 0xd96   : > { %12377 = vmatprep.subr.bf16.mxu0 %v13526_v49  ;;  %v12435_v22 = vpack.c.bf16 %v9334_v39, %v9333_v37  ;;  %v8614_v39 = vrot.slane %v15763_v18, 5 }
 0xd99   : > { %12379 = vmatpush3.bf16.msra.mxu0 %v12378_v61  ;;  %v9336_v61 = vld [vmem:[%s16749_s16 + $0x5e8] sm:$0xff] }
 0xd9a   : > { %12380 = vmatprep.subr.bf16.mxu0 %v13526_v49  ;;  %v12438_v27 = vpack.c.bf16 %v9336_v61, %v9335_v40  ;;  %v9374_v40 = vld [vmem:[%s16749_s16 + $0x718] sm:$0xff] }
 0xd9d   : > { %12382 = vmatpush3.bf16.msra.mxu0 %v12381_v5  ;;  %v9338_v5 = vld [vmem:[%s16749_s16 + $0x5f8] sm:$0xff] }
 0xd9e   : > { %12383 = vmatprep.subr.bf16.mxu0 %v13526_v49  ;;  %v12441_v11 = vpack.c.bf16 %v9338_v5, %v9337_v44  ;;  %v9376_v44 = vld [vmem:[%s16749_s16 + $0x728] sm:$0xff] }
 0xda1   : > { %12385 = vmatpush3.bf16.msra.mxu0 %v12384_v25  ;;  %v9340_v25 = vld [vmem:[%s16749_s16 + $0x608] sm:$0xff] }
 0xda2   : > { %12386 = vmatprep.subr.bf16.mxu0 %v13526_v49  ;;  %v12444_v55 = vpack.c.bf16 %v9340_v25, %v9339_v3  ;;  %v9378_v3 = vld [vmem:[%s16749_s16 + $0x738] sm:$0xff] }
 0xda5   : > { %12388 = vmatpush3.bf16.msra.mxu0 %v12387_v54  ;;  %v9341_v54 = vld [vmem:[%s16749_s16 + $0x610] sm:$0xff] }
 0xda6   : > { %12389 = vmatprep.subr.bf16.mxu0 %v13526_v49  ;;  %v12447_v10 = vpack.c.bf16 %v9342_v4, %v9341_v54  ;;  %v9381_v4 = vld [vmem:[%s16749_s16 + $0x750] sm:$0xff] }
 0xda9   : > { %12391 = vmatpush3.bf16.msra.mxu0 %v12390_v50  ;;  %v9343_v50 = vld [vmem:[%s16749_s16 + $0x620] sm:$0xff] }
 0xdaa   : > { %12392 = vmatprep.subr.bf16.mxu0 %v13526_v49  ;;  %v12450_v13 = vpack.c.bf16 %v9344_v8, %v9343_v50  ;;  %v9383_v8 = vld [vmem:[%s16749_s16 + $0x760] sm:$0xff] }
 0xdad   : > { %12394 = vmatpush3.bf16.msra.mxu0 %v12393_v16  ;;  %v9345_v16 = vld [vmem:[%s16749_s16 + $0x630] sm:$0xff] }
 0xdae   : > { %12395 = vmatprep.subr.bf16.mxu0 %v13526_v49  ;;  %v12453_v36 = vpack.c.bf16 %v9346_v9, %v9345_v16  ;;  %v9385_v9 = vld [vmem:[%s16749_s16 + $0x770] sm:$0xff] }
 0xdb0   : > { %10103 = vmatmul.mubr.f32.vlgmr.msra.gmra.mrb[72].mxu0 %v8254_v12  ;;  %v9348_v12 = vld [vmem:[%s16749_s16 + $0x648] sm:$0xff] }
 0xdb1   : > { %12397 = vmatpush3.bf16.msra.mxu0 %v12396_v14  ;;  %10137 = vmatprep.mubr.msk.f32.mxu0 %vm13527_vm10, %v16728_v32  ;;  %v9347_v14 = vld [vmem:[%s16749_s16 + $0x640] sm:$0xff] }
 0xdb2   : > { %12398 = vmatprep.subr.bf16.mxu0 %v13526_v49  ;;  %v12456_v23 = vpack.c.bf16 %v9348_v12, %v9347_v14  ;;  %v9387_v12 = vld [vmem:[%s16749_s16 + $0x780] sm:$0xff] }
 0xdb5   : > { %12400 = vmatpush3.bf16.msra.mxu0 %v12399_v26  ;;  %v9350_v26 = vld [vmem:[%s16749_s16 + $0x658] sm:$0xff] }
 0xdb6   : > { %12401 = vmatprep.subr.bf16.mxu0 %v13526_v49  ;;  %v12459_v51 = vpack.c.bf16 %v9350_v26, %v9349_v35  ;;  %v8704_v26 = vrot.slane %v15763_v18, 6 }
 0xdb9   : > { %12403 = vmatpush3.bf16.msra.mxu0 %v12402_v41  ;;  %v9352_v41 = vld [vmem:[%s16749_s16 + $0x668] sm:$0xff] }
 0xdba   : > { %12404 = vmatprep.subr.bf16.mxu0 %v13526_v49  ;;  %v12462_v17 = vpack.c.bf16 %v9352_v41, %v9351_v1  ;;  %v9390_v1 = vld [vmem:[%s16749_s16 + $0x798] sm:$0xff] }
 0xdbd   : > { %12406 = vmatpush3.bf16.msra.mxu0 %v12405_v34  ;;  %v9354_v34 = vld [vmem:[%s16749_s16 + $0x678] sm:$0xff] }
 0xdbe   : > { %12407 = vmatprep.subr.bf16.mxu0 %v13526_v49  ;;  %v12465_v59 = vpack.c.bf16 %v9354_v34, %v9353_v62  ;;  %v9392_v62 = vld [vmem:[%s16749_s16 + $0x7a8] sm:$0xff] }
 0xdc1   : > { %12409 = vmatpush3.bf16.msra.mxu0 %v12408_v6  ;;  %v9356_v6 = vld [vmem:[%s16749_s16 + $0x688] sm:$0xff] }
 0xdc2   : > { %12410 = vmatprep.subr.bf16.mxu0 %v13526_v49  ;;  %v12468_v33 = vpack.c.bf16 %v9356_v6, %v9355_v2  ;;  %v9395_v6 = vld [vmem:[%s16749_s16 + $0x7c0] sm:$0xff] }
 0xdc5   : > { %12412 = vmatpush3.bf16.msra.mxu0 %v12411_v60  ;;  %v9357_v60 = vld [vmem:[%s16749_s16 + $0x690] sm:$0xff] }
 0xdc6   : > { %12413 = vmatprep.subr.bf16.mxu0 %v13526_v49  ;;  %v12471_v7 = vpack.c.bf16 %v9358_v30, %v9357_v60  ;;  %v9397_v60 = vld [vmem:[%s16749_s16 + $0x7d0] sm:$0xff]  ;;  %v9398_v30 = vld [vmem:[%s16749_s16 + $0x7d8] sm:$0xff] }
 0xdc9   : > { %12415 = vmatpush3.bf16.msra.mxu0 %v12414_v15  ;;  %v9359_v15 = vld [vmem:[%s16749_s16 + $0x6a0] sm:$0xff] }
 0xdca   : > { %12416 = vmatprep.subr.bf16.mxu0 %v13526_v49  ;;  %v12474_v45 = vpack.c.bf16 %v9360_v0, %v9359_v15  ;;  %v9399_v15 = vld [vmem:[%s16749_s16 + $0x7e0] sm:$0xff]  ;;  %v9400_v0 = vld [vmem:[%s16749_s16 + $0x7e8] sm:$0xff] }
 0xdcd   : > { %12418 = vmatpush3.bf16.msra.mxu0 %v12417_v48  ;;  %v9361_v48 = vld [vmem:[%s16749_s16 + $0x6b0] sm:$0xff] }
 0xdce   : > { %12419 = vmatprep.subr.bf16.mxu0 %v13526_v49  ;;  %v12477_v21 = vpack.c.bf16 %v9362_v57, %v9361_v48  ;;  %v9401_v48 = vld [vmem:[%s16749_s16 + $0x7f0] sm:$0xff]  ;;  %v9402_v57 = vld [vmem:[%s16749_s16 + $0x7f8] sm:$0xff] }
 0xdd0   : > { %10138 = vmatmul.mubr.f32.vlgmr.msra.gmra.mrb[72].mxu0 %v8344_v47  ;;  %v9364_v47 = vld [vmem:[%s16749_s16 + $0x6c8] sm:$0xff] }
 0xdd1   : > { %12421 = vmatpush3.bf16.msra.mxu0 %v12420_v46  ;;  %10172 = vmatprep.mubr.msk.f32.mxu0 %vm13527_vm10, %v16728_v32  ;;  %v9363_v46 = vld [vmem:[%s16749_s16 + $0x6c0] sm:$0xff] }
 0xdd2   : > { %12422 = vmatprep.subr.bf16.mxu0 %v13526_v49  ;;  %v12480_v56 = vpack.c.bf16 %v9364_v47, %v9363_v46  ;;  %v8794_v46 = vrot.slane %v15763_v18, 7  ;;  %v7429_v47 = vld [vmem:[#allocation26] sm:$0x1] }
 0xdd5   : > { %12424 = vmatpush3.bf16.msra.mxu0 %v12423_v58  ;;  %v9366_v58 = vld [vmem:[%s16749_s16 + $0x6d8] sm:$0xff] }
 0xdd6   : > { %12425 = vmatprep.subr.bf16.mxu0 %v13526_v49  ;;  %v12483_v53 = vpack.c.bf16 %v9366_v58, %v9365_v43 }
 0xdd9   : > { %12427 = vmatpush3.bf16.msra.mxu0 %v12426_v31  ;;  %v9368_v31 = vld [vmem:[%s16749_s16 + $0x6e8] sm:$0xff] }
 0xdda   : > { %12428 = vmatprep.subr.bf16.mxu0 %v13526_v49  ;;  %v12486_v52 = vpack.c.bf16 %v9368_v31, %v9367_v19 }
 0xddd   : > { %12430 = vmatpush3.bf16.msra.mxu0 %v12429_v20  ;;  %v9370_v20 = vld [vmem:[%s16749_s16 + $0x6f8] sm:$0xff] }
 0xdde   : > { %12431 = vmatprep.subr.bf16.mxu0 %v13526_v49  ;;  %v12489_v28 = vpack.c.bf16 %v9370_v20, %v9369_v38 }
 0xde1   : > { %12433 = vmatpush3.bf16.msra.mxu0 %v12432_v63  ;;  %v9372_v63 = vld [vmem:[%s16749_s16 + $0x708] sm:$0xff] }
 0xde2   : > { %12434 = vmatprep.subr.bf16.mxu0 %v13526_v49  ;;  %v12492_v37 = vpack.c.bf16 %v9372_v63, %v9371_v42 }
 0xde5   : > { %12436 = vmatpush3.bf16.msra.mxu0 %v12435_v22  ;;  %v9373_v22 = vld [vmem:[%s16749_s16 + $0x710] sm:$0xff] }
 0xde6   : > { %12437 = vmatprep.subr.bf16.mxu0 %v13526_v49  ;;  %v12495_v61 = vpack.c.bf16 %v9374_v40, %v9373_v22 }
 0xde9   : > { %12439 = vmatpush3.bf16.msra.mxu0 %v12438_v27  ;;  %v9375_v27 = vld [vmem:[%s16749_s16 + $0x720] sm:$0xff] }
 0xdea   : > { %12440 = vmatprep.subr.bf16.mxu0 %v13526_v49  ;;  %v12498_v5 = vpack.c.bf16 %v9376_v44, %v9375_v27 }
 0xded   : > { %12442 = vmatpush3.bf16.msra.mxu0 %v12441_v11  ;;  %v9377_v11 = vld [vmem:[%s16749_s16 + $0x730] sm:$0xff] }
 0xdee   : > { %12443 = vmatprep.subr.bf16.mxu0 %v13526_v49  ;;  %v12501_v25 = vpack.c.bf16 %v9378_v3, %v9377_v11 }
 0xdf0   : > { %10173 = vmatmul.mubr.f32.vlgmr.msra.gmra.mrb[72].mxu0 %v8434_v29  ;;  %v9380_v29 = vld [vmem:[%s16749_s16 + $0x748] sm:$0xff] }
 0xdf1   : > { %12445 = vmatpush3.bf16.msra.mxu0 %v12444_v55  ;;  %10207 = vmatprep.mubr.msk.f32.mxu0 %vm13527_vm10, %v16728_v32  ;;  %v9379_v55 = vld [vmem:[%s16749_s16 + $0x740] sm:$0xff] }
 0xdf2   : > { %12446 = vmatprep.subr.bf16.mxu0 %v13526_v49  ;;  %v12504_v54 = vpack.c.bf16 %v9380_v29, %v9379_v55 }
 0xdf5   : > { %12448 = vmatpush3.bf16.msra.mxu0 %v12447_v10  ;;  %v9382_v10 = vld [vmem:[%s16749_s16 + $0x758] sm:$0xff] }
 0xdf6   : > { %12449 = vmatprep.subr.bf16.mxu0 %v13526_v49  ;;  %v12507_v50 = vpack.c.bf16 %v9382_v10, %v9381_v4 }
 0xdf9   : > { %12451 = vmatpush3.bf16.msra.mxu0 %v12450_v13  ;;  %v9384_v13 = vld [vmem:[%s16749_s16 + $0x768] sm:$0xff] }
 0xdfa   : > { %12452 = vmatprep.subr.bf16.mxu0 %v13526_v49  ;;  %v12510_v16 = vpack.c.bf16 %v9384_v13, %v9383_v8 }
 0xdfd   : > { %12454 = vmatpush3.bf16.msra.mxu0 %v12453_v36  ;;  %v9386_v36 = vld [vmem:[%s16749_s16 + $0x778] sm:$0xff] }
 0xdfe   : > { %12455 = vmatprep.subr.bf16.mxu0 %v13526_v49  ;;  %v12513_v14 = vpack.c.bf16 %v9386_v36, %v9385_v9 }
 0xe01   : > { %12457 = vmatpush3.bf16.msra.mxu0 %v12456_v23  ;;  %v9388_v23 = vld [vmem:[%s16749_s16 + $0x788] sm:$0xff] }
 0xe02   : > { %12458 = vmatprep.subr.bf16.mxu0 %v13526_v49  ;;  %v12516_v35 = vpack.c.bf16 %v9388_v23, %v9387_v12 }
 0xe05   : > { %12460 = vmatpush3.bf16.msra.mxu0 %v12459_v51  ;;  %v9389_v51 = vld [vmem:[%s16749_s16 + $0x790] sm:$0xff] }
 0xe06   : > { %12461 = vmatprep.subr.bf16.mxu0 %v13526_v49  ;;  %v12519_v41 = vpack.c.bf16 %v9390_v1, %v9389_v51 }
 0xe09   : > { %12463 = vmatpush3.bf16.msra.mxu0 %v12462_v17  ;;  %v9391_v17 = vld [vmem:[%s16749_s16 + $0x7a0] sm:$0xff] }
 0xe0a   : > { %12464 = vmatprep.subr.bf16.mxu0 %v13526_v49  ;;  %v12522_v34 = vpack.c.bf16 %v9392_v62, %v9391_v17 }
 0xe0d   : > { %12466 = vmatpush3.bf16.msra.mxu0 %v12465_v59  ;;  %v9393_v59 = vld [vmem:[%s16749_s16 + $0x7b0] sm:$0xff] }
 0xe0e   : > { %12467 = vmatprep.subr.bf16.mxu0 %v13526_v49 }
 0xe10   : > { %10208 = vmatmul.mubr.f32.vlgmr.msra.gmra.mrb[72].mxu0 %v8524_v24 }
 0xe11   : > { %12469 = vmatpush3.bf16.msra.mxu0 %v12468_v33  ;;  %10242 = vmatprep.mubr.msk.f32.mxu0 %vm13527_vm10, %v16728_v32  ;;  %v9396_v33 = vld [vmem:[%s16749_s16 + $0x7c8] sm:$0xff] }
 0xe12   : > { %12470 = vmatprep.subr.bf16.mxu0 %v13526_v49  ;;  %v12528_v24 = vpack.c.bf16 %v9396_v33, %v9395_v6 }
 0xe15   : > { %12472 = vmatpush3.bf16.msra.mxu0 %v12471_v7  ;;  %v12531_v7 = vpack.c.bf16 %v9398_v30, %v9397_v60 }
 0xe16   : > { %12473 = vmatprep.subr.bf16.mxu0 %v13526_v49 }
 0xe19   : > { %12475 = vmatpush3.bf16.msra.mxu0 %v12474_v45  ;;  %v12534_v45 = vpack.c.bf16 %v9400_v0, %v9399_v15 }
 0xe1a   : > { %12476 = vmatprep.subr.bf16.mxu0 %v13526_v49 }
 0xe1d   : > { %12478 = vmatpush3.bf16.msra.mxu0 %v12477_v21  ;;  %v12537_v21 = vpack.c.bf16 %v9402_v57, %v9401_v48 }
 0xe1e   : > { %12479 = vmatprep.subr.bf16.mxu0 %v13526_v49 }
 0xe21   : > { %12481 = vmatpush3.bf16.msra.mxu0 %v12480_v56 }
 0xe22   : > { %12482 = vmatprep.subr.bf16.mxu0 %v13526_v49 }
 0xe25   : > { %12484 = vmatpush3.bf16.msra.mxu0 %v12483_v53 }
 0xe26   : > { %12485 = vmatprep.subr.bf16.mxu0 %v13526_v49 }
 0xe29   : > { %12487 = vmatpush3.bf16.msra.mxu0 %v12486_v52 }
 0xe2a   : > { %12488 = vmatprep.subr.bf16.mxu0 %v13526_v49 }
 0xe2d   : > { %12490 = vmatpush3.bf16.msra.mxu0 %v12489_v28 }
 0xe2e   : > { %12491 = vmatprep.subr.bf16.mxu0 %v13526_v49 }
 0xe30   : > { %10243 = vmatmul.mubr.f32.vlgmr.msra.gmra.mrb[72].mxu0 %v8614_v39 }
 0xe31   : > { %12493 = vmatpush3.bf16.msra.mxu0 %v12492_v37  ;;  %10277 = vmatprep.mubr.msk.f32.mxu0 %vm13527_vm10, %v16728_v32 }
 0xe32   : > { %12494 = vmatprep.subr.bf16.mxu0 %v13526_v49 }
 0xe35   : > { %12496 = vmatpush3.bf16.msra.mxu0 %v12495_v61 }
 0xe36   : > { %12497 = vmatprep.subr.bf16.mxu0 %v13526_v49 }
 0xe39   : > { %12499 = vmatpush3.bf16.msra.mxu0 %v12498_v5 }
 0xe3a   : > { %12500 = vmatprep.subr.bf16.mxu0 %v13526_v49 }
 0xe3d   : > { %12502 = vmatpush3.bf16.msra.mxu0 %v12501_v25 }
 0xe3e   : > { %12503 = vmatprep.subr.bf16.mxu0 %v13526_v49 }
 0xe41   : > { %12505 = vmatpush3.bf16.msra.mxu0 %v12504_v54 }
 0xe42   : > { %12506 = vmatprep.subr.bf16.mxu0 %v13526_v49 }
 0xe45   : > { %12508 = vmatpush3.bf16.msra.mxu0 %v12507_v50 }
 0xe46   : > { %12509 = vmatprep.subr.bf16.mxu0 %v13526_v49 }
 0xe49   : > { %12511 = vmatpush3.bf16.msra.mxu0 %v12510_v16 }
 0xe4a   : > { %12512 = vmatprep.subr.bf16.mxu0 %v13526_v49 }
 0xe4d   : > { %12514 = vmatpush3.bf16.msra.mxu0 %v12513_v14 }
 0xe4e   : > { %12515 = vmatprep.subr.bf16.mxu0 %v13526_v49 }
 0xe50   : > { %10278 = vmatmul.mubr.f32.vlgmr.msra.gmra.mrb[72].mxu0 %v8704_v26 }
 0xe51   : > { %12517 = vmatpush3.bf16.msra.mxu0 %v12516_v35  ;;  %10312 = vmatprep.mubr.msk.f32.mxu0 %vm13527_vm10, %v16728_v32  ;;  %v9394_v32 = vld [vmem:[%s16749_s16 + $0x7b8] sm:$0xff] }
 0xe52   : > { %12518 = vmatprep.subr.bf16.mxu0 %v13526_v49  ;;  %v12525_v2 = vpack.c.bf16 %v9394_v32, %v9393_v59 }
 0xe55   : > { %12520 = vmatpush3.bf16.msra.mxu0 %v12519_v41 }
 0xe56   : > { %12521 = vmatprep.subr.bf16.mxu0 %v13526_v49 }
 0xe59   : > { %12523 = vmatpush3.bf16.msra.mxu0 %v12522_v34 }
 0xe5a   : > { %12524 = vmatprep.subr.bf16.mxu0 %v13526_v49 }
 0xe5d   : > { %12526 = vmatpush3.bf16.msra.mxu0 %v12525_v2 }
 0xe5e   : > { %12527 = vmatprep.subr.bf16.mxu0 %v13526_v49 }
 0xe61   : > { %12529 = vmatpush3.bf16.msra.mxu0 %v12528_v24 }
 0xe62   : > { %12530 = vmatprep.subr.bf16.mxu0 %v13526_v49 }
 0xe65   : > { %12532 = vmatpush3.bf16.msra.mxu0 %v12531_v7 }
 0xe66   : > { %12533 = vmatprep.subr.bf16.mxu0 %v13526_v49 }
 0xe69   : > { %12535 = vmatpush3.bf16.msra.mxu0 %v12534_v45 }
 0xe6a   : > { %12536 = vmatprep.subr.bf16.mxu0 %v13526_v49 }
 0xe6d   : > { %12538 = vmatpush3.bf16.msra.mxu0 %v12537_v21 }
 0xe70   : > { %10313 = vmatmul.mubr.f32.vlgmr.msra.gmra.mrb[72].mxu0 %v8794_v46 }
 0xf43   : > { %v8862_v56 = vpop.f32.mrb[72].mxu0 }
 0xf44   : > { %v12555_v43 = vadd.f32 %v8862_v56, %v7429_v47  ;;  %v10314_v58 = vpop.f32.mrb[73].mxu0 }
 0xf46   : > { %8868 = vst.msk [vmem:[%s665_s19] sm:$0x1] %vm8867_vm11, %v12555_v43 }
 0xf47   : > { %13427 = shalt.err (!%p13424_p3)
}
 0xf48   : > { %s13428_s26 = scalar_lea.hbm %s16487_s24, 16  ;;  %s13432_s29 = scalar_lea.hbm %s16752_s27, 32 }
 0xf49   : > { %p13429_p4 = scmp.ne.s32.totalorder %s16487_s24, %s13428_s26  ;;  %p13433_p11 = scmp.lt.u32.totalorder %s16487_s24, %s16752_s27 }
 0xf4a   : > { %p13434_p13 = scmp.lt.u32.totalorder %s13432_s29, %s13428_s26  ;;  %p13436_p0 = scmp.lt.u32.totalorder %s13428_s26, %s16487_s24 }
 0xf4b   : > { %p13430_p7 = pnand %p13429_p4, %p16753_p6 }
 0xf4c   : > { %p13435_p1 = por %p13434_p13, %p13433_p11 }
 0xf4d   : > { %p13431_p8 = pneg %p13430_p7 }
 0xf4e   : > { %p13437_p5 = por %p13436_p0, %p13435_p1 }
 0xf50   : > { %p13438_p9 = pnand %p13437_p5, %p13431_p8 }
 0xf52   : > { %13441 = shalt.err (!%p13438_p9)
}
 0xf53   : > { %12894 = dma.vmem_to_hbm [thread:$0]  (%p16753_p6), %s16489_s4, 16, %s16487_s24, %s8870_s2  }
 0xf54 PF: > { %s16754_s18 = sld [smem:[#allocation39_spill]]  ;;  %s16755_s0 = sld [smem:[#allocation36_spill]] }
 0xf55   : > { %s16756_s19 = sld [smem:[#allocation43_spill]] }
 0xf5a   : > { %p12966_p12 = scmp.ge.s32.totalorder %s16754_s18, 2  ;;  %s8894_s28 = sand.u32 1, %s16755_s0  }
 0xf5b   : > { %p16757_p10 = scmp.ne.s32.totalorder %s16756_s19, 0  ;;  %s8895_s21 = scalar_lea.sflag [#allocation8], %s8894_s28 }
 0xf5d   : > { %p12937_p2 = pnand %p12966_p12, %p16757_p10 }
 0xf5f   : > { %13487 = dma.done.wait (!%p12937_p2), %s8895_s21, 16  }
 0xf60   : > { %13489 = vsyncadd (!%p12937_p2), %s8895_s21, 4294967280  ;;  %s16758_s21 = sld [smem:[#allocation40_spill]]  ;;  %s16759_s18 = sld [smem:[#allocation37_spill]] }
 0xf61   : > { %s16760_s19 = sld [smem:[#allocation38_spill]]  ;;  %s16761_s20 = sld [smem:[#allocation41_spill]] }
 0xf66   : > { %p32_p3 = scmp.ge.s32.totalorder %s16758_s21, 4  }
 0xf68   :  { %34 = sbr.rel (!%p32_p3) target bundleno = 17 (0x11), region = 199 }
 0xf6f   :  { %8899 = vsyncpa [#allocation7], 1 }
 0xf70   :  { %8901 = vsyncpa [#allocation7 + $0x1], 1 }
 0xf71   :  { %8902 = vsyncpa [#allocation10], 1 }
 0xf72   :  { %8903 = vsyncpa [#allocation13], 1 }
 0xf73   :  { %8904 = vsyncpa [#allocation16], 1 }
 0xf74   :  { %8905 = vsyncpa [#allocation19], 1 }
 0xf75   :  { %8906 = vsyncpa [#allocation22], 1 }
 0xf76   :  { %8907 = vsyncpa [#allocation25], 1 }
 0xf77   :  { %8908 = vsyncpa [#allocation8], 1 }
 0xf78   :  { %8910 = vsyncpa [#allocation8 + $0x1], 1 }

</bundles_post_ra>
